<compile_context>
chip_gen: v7x
topology: tpu7x:2x2x1
jax: 0.10.0
libtpu: 0.0.40
codegen_flags: <defaults>
</compile_context>

<pallas_src>
import numpy as np
import jax
import jax.numpy as jnp
from jax import lax
from jax.experimental import pallas as pl
from jax.experimental.pallas import tpu as pltpu

# ---- static model dimensions (from opts) ----
N = 8                    # objects per image (<= 256, the rank-embedding table size)
DIM_MM = 64              # opts['dim_mm']
DIM_HO = 32              # opts['dim_ho']
DIM_KEY = DIM_MM // 2    # 32 (relation dim_key == positional-encoding width)
WAVE_LENGTH = 1000.0
N_FREQ = DIM_KEY // 8    # 4 frequencies per geometry component
LANES_MIN = 128          # minimum lane width of the packed parameter array


def _pack_layout(n):
    """Row offsets inside the single packed f32[rows, lanes] parameter array."""
    lanes = max(LANES_MIN, 16 * n)
    r_wtv = 0                      # w_tv             : (32, 64)
    r_wkqv = r_wtv + DIM_HO        # w_k|w_q|w_v      : (64, 128)
    r_btv = r_wkqv + DIM_MM        # b_tv             : (1, 64)
    r_bkqv = r_btv + 1             # b_k|b_q|b_v      : (1, 128)
    r_wr = r_bkqv + 1              # w_r row          : (1, 64)
    r_wsin = r_wr + 1              # sin half of w_geo, lane layout (f*4+c)*n+j : (1, 16n)
    r_wcos = r_wsin + 1            # cos half of w_geo                          : (1, 16n)
    rows = -(-(r_wcos + 1) // 8) * 8
    return (r_wtv, r_wkqv, r_btv, r_bkqv, r_wr, r_wsin, r_wcos), rows, lanes


def build_param_pack(params, n):
    """Pack every matrix/row parameter into one resident f32[rows, lanes] array."""
    f32 = jnp.float32
    _, rows, lanes = _pack_layout(n)

    w_kqv = jnp.concatenate([params["w_k"], params["w_q"], params["w_v"]], axis=1)  # (64,128)
    b_kqv = jnp.concatenate([params["b_k"], params["b_q"], params["b_v"]], axis=1)  # (1,128)

    # torch flattens the positional encoding as l = c*8 + s*4 + f (c component, s sin/cos,
    # f frequency).  The kernel builds `half` with lane order (f*4 + c)*n + j, so split
    # w_geo into its sin / cos halves and reorder to (f, c) before repeating over j.
    wg = params["w_geo"].reshape(4, 2, N_FREQ)                                   # [c, s, f]
    w_sin_row = jnp.repeat(jnp.transpose(wg[:, 0, :]).reshape(-1), n).reshape(1, 16 * n)
    w_cos_row = jnp.repeat(jnp.transpose(wg[:, 1, :]).reshape(-1), n).reshape(1, 16 * n)

    blocks = [
        params["w_tv"],                       # (32, 64)
        w_kqv,                                # (64, 128)
        params["b_tv"],                       # (1, 64)
        b_kqv,                                # (1, 128)
        params["w_r"].reshape(1, DIM_MM),     # (1, 64)
        w_sin_row,                            # (1, 16n)
        w_cos_row,                            # (1, 16n)
    ]
    pack = jnp.concatenate(
        [jnp.pad(b.astype(f32), ((0, 0), (0, lanes - b.shape[1]))) for b in blocks], axis=0)
    return jnp.pad(pack, ((0, rows - pack.shape[0]), (0, 0)))


def _make_kernel(n, b_tile):
    (r_wtv, r_wkqv, r_btv, r_bkqv, r_wr, r_wsin, r_wcos), _, _ = _pack_layout(n)
    m = b_tile * n
    f16 = 16 * n
    inv_sqrt_dk = float(1.0 / np.sqrt(DIM_KEY))
    scales = [float(100.0 / (WAVE_LENGTH ** (8.0 * f / DIM_KEY))) for f in range(N_FREQ)]
    eps = 1e-10

    def kernel(feat_ref, rank_ref, rois_ref, roist_ref, scal_ref, pack_ref, out_ref):
        f32 = jnp.float32

        # ---- packed parameter views (static slices of the resident pack) ----
        w_tv = pack_ref[r_wtv:r_wtv + DIM_HO, 0:DIM_MM]                      # (32, 64)
        w_kqv = pack_ref[r_wkqv:r_wkqv + DIM_MM, 0:2 * DIM_KEY + DIM_MM]     # (64, 128)
        b_tv = pack_ref[r_btv:r_btv + 1, 0:DIM_MM]                           # (1, 64)
        b_kqv = pack_ref[r_bkqv:r_bkqv + 1, 0:2 * DIM_KEY + DIM_MM]          # (1, 128)
        w_r = pack_ref[r_wr:r_wr + 1, 0:DIM_MM]                              # (1, 64)
        w_sin = pack_ref[r_wsin:r_wsin + 1, 0:f16]                           # (1, 16n)
        w_cos = pack_ref[r_wcos:r_wcos + 1, 0:f16]                           # (1, 16n)
        b_r = scal_ref[0]                                                    # SMEM scalars
        b_geo = scal_ref[1]

        # ---- dense projections, stacked over the whole image tile (M = b_tile*n) ----
        feat = feat_ref[...].reshape(m, DIM_HO)                              # (M, 32)
        rank = rank_ref[...].reshape(m, DIM_MM)                              # (M, 64)
        fv = jnp.dot(feat, w_tv, preferred_element_type=f32) + b_tv + rank
        fv = jnp.maximum(fv, 0.0)                                            # (M, 64)
        kqv = jnp.dot(fv, w_kqv, preferred_element_type=f32) + b_kqv         # (M, 128)
        key = kqv[:, 0:DIM_KEY].reshape(b_tile, n, DIM_KEY)
        qry = kqv[:, DIM_KEY:2 * DIM_KEY].reshape(b_tile, n, DIM_KEY)
        vis = kqv[:, 2 * DIM_KEY:2 * DIM_KEY + DIM_MM].reshape(b_tile, n, DIM_MM)

        # visual_weight[b, i, j] = <key_i, query_j> / sqrt(dim_key), per image
        vw = lax.dot_general(key, qry, (((2,), (2,)), ((0,), (0,))),
                             preferred_element_type=f32) * inv_sqrt_dk       # (B, n, n)

        # ---- box geometry (keys as columns, queries from the pre-transposed rows) ----
        rois = rois_ref[...]                                                 # (B, n, 4)
        rois_t = roist_ref[...]                                              # (B, 4, n)
        x1k, y1k, x2k, y2k = (rois[:, :, 0:1], rois[:, :, 1:2],
                              rois[:, :, 2:3], rois[:, :, 3:4])              # (B, n, 1)
        x1q, y1q, x2q, y2q = (rois_t[:, 0:1, :], rois_t[:, 1:2, :],
                              rois_t[:, 2:3, :], rois_t[:, 3:4, :])          # (B, 1, n)
        wk = x2k - x1k + eps
        hk = y2k - y1k + eps
        xk = (x2k + x1k) * 0.5
        yk = (y2k + y1k) * 0.5
        wq = x2q - x1q + eps
        hq = y2q - y1q + eps
        xq = (x2q + x1q) * 0.5
        yq = (y2q + y1q) * 0.5

        def safelog(v):
            return jnp.where(v == 0.0, 0.0, jnp.log(v))

        pos4 = jnp.concatenate(
            [safelog(jnp.abs(xk - xq) / wk),
             safelog(jnp.abs(yk - yq) / hk),
             safelog(wk / wq),
             safelog(hk / hq)], axis=2)                                      # (B, n, 4n)

        # ---- positional encoding as ONE dense (B, n, 16n) tile: one sin, one cos ----
        # lane layout (f*4 + c)*n + j ; frequency scales folded in as compile-time floats
        half = jnp.concatenate([pos4 * s for s in scales], axis=2)           # (B, n, 16n)
        acc = jnp.sin(half) * w_sin + jnp.cos(half) * w_cos                  # (B, n, 16n)
        # fold the 16 weighted slabs down to (B, n, n) with pairwise lane-halving adds
        acc = acc[..., 0:8 * n] + acc[..., 8 * n:16 * n]
        acc = acc[..., 0:4 * n] + acc[..., 4 * n:8 * n]
        acc = acc[..., 0:2 * n] + acc[..., 2 * n:4 * n]
        geo = acc[..., 0:n] + acc[..., n:2 * n]
        geo = jnp.maximum(geo + b_geo, 0.0)                                  # (B, n, n)

        # ---- relation attention (per image, batched over the tile) ----
        att = jnp.exp(vw) * geo      # faithful to the reference (no max-subtraction)
        ii = lax.broadcasted_iota(jnp.int32, (b_tile, n, n), 1)
        jj = lax.broadcasted_iota(jnp.int32, (b_tile, n, n), 2)
        att = jnp.where(ii == jj, 0.0, att)                                  # zero diagonal
        att = att / (jnp.sum(att, axis=2, keepdims=True) + 1e-10)
        fo = lax.dot_general(att, vis, (((2,), (1,)), ((0,), (0,))),
                             preferred_element_type=f32)                     # (B, n, 64)
        fo = jnp.maximum(fo, 0.0).reshape(m, DIM_MM)

        # ---- rescore head: one lane-dense (1, M) sigmoid row per block ----
        score = lax.dot_general(w_r, fo, (((1,), (1,)), ((), ())),
                                preferred_element_type=f32) + b_r            # (1, M)
        out_ref[...] = jax.nn.sigmoid(score)

    return kernel


def _choose_grid(bsz):
    """>=2 fat 'parallel' blocks when possible (v7x megacore); 1 block otherwise."""
    num_blocks = 2 if (bsz >= 2 and bsz % 2 == 0) else 1
    b_tile = bsz // num_blocks
    while b_tile > 128 and b_tile % 2 == 0:   # keep per-block activations modest
        num_blocks *= 2
        b_tile //= 2
    return num_blocks, b_tile


def dumplicate_removal_forward(feature_obj, highest_prob, rois_obj, params):
    """Batched forward. feature_obj [B,N,dim_ho], highest_prob [B,N], rois_obj [B,N,4|5]."""
    squeeze = feature_obj.ndim == 2
    if squeeze:
        feature_obj, highest_prob, rois_obj = (
            feature_obj[None], highest_prob[None], rois_obj[None])
    bsz, n, _ = feature_obj.shape
    assert 1 <= n <= 256

    # glue: descending sort + embedding gather (data-dependent gather stays in XLA)
    # TODO(synk): torch.sort(descending) / nn.Embedding lookup are plain-JAX glue, not in-kernel.
    rank = jnp.argsort(-highest_prob, axis=-1)
    feat_rank = params["rank_emb"][rank].astype(jnp.float32)          # [B, n, 64]
    rois = rois_obj[..., 1:] if rois_obj.shape[-1] == 5 else rois_obj
    rois = rois.astype(jnp.float32)                                   # [B, n, 4]  key layout
    rois_t = jnp.swapaxes(rois, 1, 2)                                 # [B, 4, n]  query layout

    pack = build_param_pack(params, n)                                # resident parameters
    pack_rows, lanes = pack.shape
    scalars = jnp.stack([params["b_r"].reshape(()),
                         params["b_geo"].reshape(())]).astype(jnp.float32)   # SMEM [b_r, b_geo]

    num_blocks, b_tile = _choose_grid(bsz)
    m = b_tile * n
    kernel = _make_kernel(n, b_tile)

    grid_spec = pltpu.PrefetchScalarGridSpec(
        num_scalar_prefetch=0,
        grid=(num_blocks,),
        in_specs=[
            pl.BlockSpec((b_tile, n, DIM_HO), lambda g: (g, 0, 0)),   # feature_obj
            pl.BlockSpec((b_tile, n, DIM_MM), lambda g: (g, 0, 0)),   # rank embedding
            pl.BlockSpec((b_tile, n, 4), lambda g: (g, 0, 0)),        # rois (keys)
            pl.BlockSpec((b_tile, 4, n), lambda g: (g, 0, 0)),        # rois^T (queries)
            pl.BlockSpec(memory_space=pltpu.MemorySpace.SMEM),        # [b_r, b_geo]
            pl.BlockSpec((pack_rows, lanes), lambda g: (0, 0)),       # resident parameters
        ],
        out_specs=pl.BlockSpec((None, 1, m), lambda g: (g, 0, 0)),
    )
    out = pl.pallas_call(
        kernel,
        out_shape=jax.ShapeDtypeStruct((num_blocks, 1, m), jnp.float32),
        grid_spec=grid_spec,
        compiler_params=pltpu.CompilerParams(
            dimension_semantics=("parallel",)),
    )(feature_obj.astype(jnp.float32), feat_rank, rois, rois_t, scalars, pack)

    out = out.reshape(bsz, n)
    return out[0] if squeeze else out


# ------------------------- pure-JAX reference (per image) -------------------------
def _reference_single(feature_obj, highest_prob, rois, params):
    rank = jnp.argsort(-highest_prob)
    feat_rank = params["rank_emb"][rank]
    fo = feature_obj @ params["w_tv"] + params["b_tv"][0]
    fv = jnp.maximum(feat_rank + fo, 0.0)
    key = fv @ params["w_k"] + params["b_k"][0]
    query = fv @ params["w_q"] + params["b_q"][0]
    vis = fv @ params["w_v"] + params["b_v"][0]
    visual_weight = (query[None, :, :] * key[:, None, :]).sum(-1) / np.sqrt(DIM_KEY)

    wk = (rois[:, 2] - rois[:, 0] + 1e-10)[:, None]
    hk = (rois[:, 3] - rois[:, 1] + 1e-10)[:, None]
    xk = ((rois[:, 2] + rois[:, 0]) / 2)[:, None]
    yk = ((rois[:, 3] + rois[:, 1]) / 2)[:, None]
    wq = (rois[:, 2] - rois[:, 0] + 1e-10)[None, :]
    hq = (rois[:, 3] - rois[:, 1] + 1e-10)[None, :]
    xq = ((rois[:, 2] + rois[:, 0]) / 2)[None, :]
    yq = ((rois[:, 3] + rois[:, 1]) / 2)[None, :]
    feat = jnp.stack(
        [jnp.abs(xk - xq) / wk, jnp.abs(yk - yq) / hk, wk / wq, hk / hq], axis=2)
    pos = jnp.where(feat == 0, 0.0, jnp.log(feat))
    base = jnp.array(
        [WAVE_LENGTH ** (8.0 * i / DIM_KEY) for i in range(DIM_KEY // 8)],
        jnp.float32).reshape(1, 1, 1, -1)
    enc = pos[..., None] * 100.0 / base
    enc = jnp.concatenate([jnp.sin(enc), jnp.cos(enc)], axis=3)
    enc = enc.reshape(enc.shape[0], enc.shape[1], -1)
    geo = jnp.maximum(enc @ params["w_geo"] + params["b_geo"][0], 0.0)

    att = jnp.exp(visual_weight) * geo
    n = att.shape[0]
    att = att * (1.0 - jnp.eye(n, dtype=att.dtype))
    att = att / (att.sum(1, keepdims=True) + 1e-10)
    feat_out = att @ vis
    score = jax.nn.sigmoid(jnp.maximum(feat_out, 0.0) @ params["w_r"] + params["b_r"][0])
    return score[:, 0]


def reference_forward(feature_obj, highest_prob, rois_obj, params):
    return jax.vmap(_reference_single, in_axes=(0, 0, 0, None))(
        feature_obj, highest_prob, rois_obj, params)


def init_params(key):
    ks = jax.random.split(key, 16)
    s = 0.1
    f32 = jnp.float32
    return {
        "rank_emb": s * jax.random.normal(ks[0], (256, DIM_MM), f32),
        "w_tv": s * jax.random.normal(ks[1], (DIM_HO, DIM_MM), f32),
        "b_tv": s * jax.random.normal(ks[2], (1, DIM_MM), f32),
        "w_k": s * jax.random.normal(ks[3], (DIM_MM, DIM_KEY), f32),
        "b_k": s * jax.random.normal(ks[4], (1, DIM_KEY), f32),
        "w_q": s * jax.random.normal(ks[5], (DIM_MM, DIM_KEY), f32),
        "b_q": s * jax.random.normal(ks[6], (1, DIM_KEY), f32),
        "w_v": s * jax.random.normal(ks[7], (DIM_MM, DIM_MM), f32),
        "b_v": s * jax.random.normal(ks[8], (1, DIM_MM), f32),
        "w_geo": s * jax.random.normal(ks[9], (DIM_KEY,), f32),
        "b_geo": s * jax.random.normal(ks[10], (1,), f32),
        "w_r": s * jax.random.normal(ks[11], (DIM_MM, 1), f32),
        "b_r": s * jax.random.normal(ks[12], (1, 1), f32),
    }


if __name__ == "__main__":
    root = jax.random.PRNGKey(0)
    k_par, k_feat, k_prob, k_xy, k_wh = jax.random.split(root, 5)

    B = 32                          # 2 parallel blocks of 16 images -> M = 128 rows/block
    params = init_params(k_par)

    feature_obj = jax.random.normal(k_feat, (B, N, DIM_HO), jnp.float32)
    highest_prob = jax.random.uniform(k_prob, (B, N), jnp.float32)
    xy1 = jax.random.uniform(k_xy, (B, N, 2), jnp.float32, 0.0, 50.0)
    wh = jax.random.uniform(k_wh, (B, N, 2), jnp.float32, 5.0, 40.0)
    rois_obj = jnp.concatenate([xy1, xy1 + wh], axis=-1)   # [B, N, 4] valid boxes

    out = dumplicate_removal_forward(feature_obj, highest_prob, rois_obj, params)
    out = jax.block_until_ready(out)

    ref = reference_forward(feature_obj, highest_prob, rois_obj, params)
    ref = jax.block_until_ready(ref)

    np.testing.assert_allclose(np.asarray(out), np.asarray(ref), rtol=1e-3, atol=2e-4)
    print("KERNEL_OK")
</pallas_src>

<mosaic_0001>
module attributes {stable_mosaic.version = 11 : i64} {
  func.func @kernel(%arg0: i32, %arg1: memref<16x8x32xf32, #tpu.memory_space<vmem>>, %arg2: memref<16x8x64xf32, #tpu.memory_space<vmem>>, %arg3: memref<16x8x4xf32, #tpu.memory_space<vmem>>, %arg4: memref<16x4x8xf32, #tpu.memory_space<vmem>>, %arg5: memref<2xf32, #tpu.memory_space<smem>>, %arg6: memref<104x128xf32, #tpu.memory_space<vmem>>, %arg7: memref<1x1x128xf32, #tpu.memory_space<vmem>>) attributes {dimension_semantics = [#tpu.dimension_semantics<parallel>], iteration_bounds = array<i64: 2>, scalar_prefetch = 0 : i64, scratch_operands = 0 : i64, tpu.core_type = #tpu.core_type<tc>, window_params = [{transform_indices = @transform_0, window_bounds = array<i64: 16, 8, 32>}, {transform_indices = @transform_1, window_bounds = array<i64: 16, 8, 64>}, {transform_indices = @transform_2, window_bounds = array<i64: 16, 8, 4>}, {transform_indices = @transform_3, window_bounds = array<i64: 16, 4, 8>}, {transform_indices = @transform_4, window_bounds = array<i64: 2>}, {pipeline_mode = #tpu.pipeline_mode<synchronous>, transform_indices = @transform_5, window_bounds = array<i64: 104, 128>}, {transform_indices = @transform_6, window_bounds = array<i64: 1, 1, 128>}]} {
    %c0 = arith.constant 0 : index
    %c0_0 = arith.constant 0 : index
    %0 = vector.load %arg6[%c0, %c0_0] : memref<104x128xf32, #tpu.memory_space<vmem>>, vector<32x64xf32>
    %c32 = arith.constant 32 : index
    %c0_1 = arith.constant 0 : index
    %1 = vector.load %arg6[%c32, %c0_1] : memref<104x128xf32, #tpu.memory_space<vmem>>, vector<64x128xf32>
    %c96 = arith.constant 96 : index
    %c0_2 = arith.constant 0 : index
    %2 = vector.load %arg6[%c96, %c0_2] : memref<104x128xf32, #tpu.memory_space<vmem>>, vector<1x64xf32>
    %c97 = arith.constant 97 : index
    %c0_3 = arith.constant 0 : index
    %3 = vector.load %arg6[%c97, %c0_3] : memref<104x128xf32, #tpu.memory_space<vmem>>, vector<1x128xf32>
    %c98 = arith.constant 98 : index
    %c0_4 = arith.constant 0 : index
    %4 = vector.load %arg6[%c98, %c0_4] : memref<104x128xf32, #tpu.memory_space<vmem>>, vector<1x64xf32>
    %c99 = arith.constant 99 : index
    %c0_5 = arith.constant 0 : index
    %5 = vector.load %arg6[%c99, %c0_5] : memref<104x128xf32, #tpu.memory_space<vmem>>, vector<1x128xf32>
    %c100 = arith.constant 100 : index
    %c0_6 = arith.constant 0 : index
    %6 = vector.load %arg6[%c100, %c0_6] : memref<104x128xf32, #tpu.memory_space<vmem>>, vector<1x128xf32>
    %c0_7 = arith.constant 0 : index
    %7 = memref.load %arg5[%c0_7] : memref<2xf32, #tpu.memory_space<smem>>
    %c1 = arith.constant 1 : index
    %8 = memref.load %arg5[%c1] : memref<2xf32, #tpu.memory_space<smem>>
    %c0_8 = arith.constant 0 : index
    %c0_9 = arith.constant 0 : index
    %c0_10 = arith.constant 0 : index
    %9 = vector.load %arg1[%c0_8, %c0_9, %c0_10] : memref<16x8x32xf32, #tpu.memory_space<vmem>>, vector<16x8x32xf32>
    %10 = vector.shape_cast %9 : vector<16x8x32xf32> to vector<128x32xf32>
    %c0_11 = arith.constant 0 : index
    %c0_12 = arith.constant 0 : index
    %c0_13 = arith.constant 0 : index
    %11 = vector.load %arg2[%c0_11, %c0_12, %c0_13] : memref<16x8x64xf32, #tpu.memory_space<vmem>>, vector<16x8x64xf32>
    %12 = vector.shape_cast %11 : vector<16x8x64xf32> to vector<128x64xf32>
    %cst = arith.constant dense<0.000000e+00> : vector<128x64xf32>
    %13 = tpu.matmul %10, %0, %cst {dimension_numbers = #tpu.dot_dimension_numbers<[1], [0], [0], [1], [0, 0, 1, 1], [], []>} : vector<128x32xf32>, vector<32x64xf32>, vector<128x64xf32> -> vector<128x64xf32>
    %14 = vector.broadcast %2 : vector<1x64xf32> to vector<128x64xf32>
    %15 = arith.addf %13, %14 : vector<128x64xf32>
    %16 = arith.addf %15, %12 : vector<128x64xf32>
    %cst_14 = arith.constant 0.000000e+00 : f32
    %17 = vector.broadcast %cst_14 : f32 to vector<128x64xf32>
    %18 = arith.maximumf %16, %17 : vector<128x64xf32>
    %cst_15 = arith.constant dense<0.000000e+00> : vector<128x128xf32>
    %19 = tpu.matmul %18, %1, %cst_15 {dimension_numbers = #tpu.dot_dimension_numbers<[1], [0], [0], [1], [0, 0, 1, 1], [], []>} : vector<128x64xf32>, vector<64x128xf32>, vector<128x128xf32> -> vector<128x128xf32>
    %20 = vector.broadcast %3 : vector<1x128xf32> to vector<128x128xf32>
    %21 = arith.addf %19, %20 : vector<128x128xf32>
    %22 = vector.extract_strided_slice %21 {offsets = [0, 0], sizes = [128, 32], strides = [1, 1]} : vector<128x128xf32> to vector<128x32xf32>
    %23 = vector.shape_cast %22 : vector<128x32xf32> to vector<16x8x32xf32>
    %24 = vector.extract_strided_slice %21 {offsets = [0, 32], sizes = [128, 32], strides = [1, 1]} : vector<128x128xf32> to vector<128x32xf32>
    %25 = vector.shape_cast %24 : vector<128x32xf32> to vector<16x8x32xf32>
    %26 = vector.extract_strided_slice %21 {offsets = [0, 64], sizes = [128, 64], strides = [1, 1]} : vector<128x128xf32> to vector<128x64xf32>
    %27 = vector.shape_cast %26 : vector<128x64xf32> to vector<16x8x64xf32>
    %cst_16 = arith.constant dense<0.000000e+00> : vector<16x8x8xf32>
    %28 = tpu.matmul %23, %25, %cst_16 {dimension_numbers = #tpu.dot_dimension_numbers<[2], [2], [1], [1], [0, 0, 0, 1, 1, 1], [0], [0]>} : vector<16x8x32xf32>, vector<16x8x32xf32>, vector<16x8x8xf32> -> vector<16x8x8xf32>
    %cst_17 = arith.constant 0.176776692 : f32
    %29 = vector.broadcast %cst_17 : f32 to vector<16x8x8xf32>
    %30 = arith.mulf %28, %29 : vector<16x8x8xf32>
    %c0_18 = arith.constant 0 : index
    %c0_19 = arith.constant 0 : index
    %c0_20 = arith.constant 0 : index
    %31 = vector.load %arg3[%c0_18, %c0_19, %c0_20] : memref<16x8x4xf32, #tpu.memory_space<vmem>>, vector<16x8x4xf32>
    %c0_21 = arith.constant 0 : index
    %c0_22 = arith.constant 0 : index
    %c0_23 = arith.constant 0 : index
    %32 = vector.load %arg4[%c0_21, %c0_22, %c0_23] : memref<16x4x8xf32, #tpu.memory_space<vmem>>, vector<16x4x8xf32>
    %33 = vector.extract_strided_slice %31 {offsets = [0, 0, 0], sizes = [16, 8, 1], strides = [1, 1, 1]} : vector<16x8x4xf32> to vector<16x8x1xf32>
    %34 = vector.extract_strided_slice %31 {offsets = [0, 0, 1], sizes = [16, 8, 1], strides = [1, 1, 1]} : vector<16x8x4xf32> to vector<16x8x1xf32>
    %35 = vector.extract_strided_slice %31 {offsets = [0, 0, 2], sizes = [16, 8, 1], strides = [1, 1, 1]} : vector<16x8x4xf32> to vector<16x8x1xf32>
    %36 = vector.extract_strided_slice %31 {offsets = [0, 0, 3], sizes = [16, 8, 1], strides = [1, 1, 1]} : vector<16x8x4xf32> to vector<16x8x1xf32>
    %37 = vector.extract_strided_slice %32 {offsets = [0, 0, 0], sizes = [16, 1, 8], strides = [1, 1, 1]} : vector<16x4x8xf32> to vector<16x1x8xf32>
    %38 = vector.extract_strided_slice %32 {offsets = [0, 1, 0], sizes = [16, 1, 8], strides = [1, 1, 1]} : vector<16x4x8xf32> to vector<16x1x8xf32>
    %39 = vector.extract_strided_slice %32 {offsets = [0, 2, 0], sizes = [16, 1, 8], strides = [1, 1, 1]} : vector<16x4x8xf32> to vector<16x1x8xf32>
    %40 = vector.extract_strided_slice %32 {offsets = [0, 3, 0], sizes = [16, 1, 8], strides = [1, 1, 1]} : vector<16x4x8xf32> to vector<16x1x8xf32>
    %41 = arith.subf %35, %33 : vector<16x8x1xf32>
    %cst_24 = arith.constant 1.000000e-10 : f32
    %42 = vector.broadcast %cst_24 : f32 to vector<16x8x1xf32>
    %43 = arith.addf %41, %42 : vector<16x8x1xf32>
    %44 = arith.subf %36, %34 : vector<16x8x1xf32>
    %cst_25 = arith.constant 1.000000e-10 : f32
    %45 = vector.broadcast %cst_25 : f32 to vector<16x8x1xf32>
    %46 = arith.addf %44, %45 : vector<16x8x1xf32>
    %47 = arith.addf %35, %33 : vector<16x8x1xf32>
    %cst_26 = arith.constant 5.000000e-01 : f32
    %48 = vector.broadcast %cst_26 : f32 to vector<16x8x1xf32>
    %49 = arith.mulf %47, %48 : vector<16x8x1xf32>
    %50 = arith.addf %36, %34 : vector<16x8x1xf32>
    %cst_27 = arith.constant 5.000000e-01 : f32
    %51 = vector.broadcast %cst_27 : f32 to vector<16x8x1xf32>
    %52 = arith.mulf %50, %51 : vector<16x8x1xf32>
    %53 = arith.subf %39, %37 : vector<16x1x8xf32>
    %cst_28 = arith.constant 1.000000e-10 : f32
    %54 = vector.broadcast %cst_28 : f32 to vector<16x1x8xf32>
    %55 = arith.addf %53, %54 : vector<16x1x8xf32>
    %56 = arith.subf %40, %38 : vector<16x1x8xf32>
    %cst_29 = arith.constant 1.000000e-10 : f32
    %57 = vector.broadcast %cst_29 : f32 to vector<16x1x8xf32>
    %58 = arith.addf %56, %57 : vector<16x1x8xf32>
    %59 = arith.addf %39, %37 : vector<16x1x8xf32>
    %cst_30 = arith.constant 5.000000e-01 : f32
    %60 = vector.broadcast %cst_30 : f32 to vector<16x1x8xf32>
    %61 = arith.mulf %59, %60 : vector<16x1x8xf32>
    %62 = arith.addf %40, %38 : vector<16x1x8xf32>
    %cst_31 = arith.constant 5.000000e-01 : f32
    %63 = vector.broadcast %cst_31 : f32 to vector<16x1x8xf32>
    %64 = arith.mulf %62, %63 : vector<16x1x8xf32>
    %65 = vector.broadcast %49 : vector<16x8x1xf32> to vector<16x8x8xf32>
    %66 = vector.broadcast %61 : vector<16x1x8xf32> to vector<16x8x8xf32>
    %67 = arith.subf %65, %66 : vector<16x8x8xf32>
    %68 = math.absf %67 : vector<16x8x8xf32>
    %69 = vector.broadcast %43 : vector<16x8x1xf32> to vector<16x8x8xf32>
    %70 = arith.divf %68, %69 : vector<16x8x8xf32>
    %cst_32 = arith.constant 0.000000e+00 : f32
    %71 = vector.broadcast %cst_32 : f32 to vector<16x8x8xf32>
    %72 = arith.cmpf oeq, %70, %71 : vector<16x8x8xf32>
    %73 = math.log %70 : vector<16x8x8xf32>
    %cst_33 = arith.constant 0.000000e+00 : f32
    %74 = vector.broadcast %cst_33 : f32 to vector<16x8x8xf32>
    %75 = arith.select %72, %74, %73 : vector<16x8x8xi1>, vector<16x8x8xf32>
    %76 = vector.broadcast %52 : vector<16x8x1xf32> to vector<16x8x8xf32>
    %77 = vector.broadcast %64 : vector<16x1x8xf32> to vector<16x8x8xf32>
    %78 = arith.subf %76, %77 : vector<16x8x8xf32>
    %79 = math.absf %78 : vector<16x8x8xf32>
    %80 = vector.broadcast %46 : vector<16x8x1xf32> to vector<16x8x8xf32>
    %81 = arith.divf %79, %80 : vector<16x8x8xf32>
    %cst_34 = arith.constant 0.000000e+00 : f32
    %82 = vector.broadcast %cst_34 : f32 to vector<16x8x8xf32>
    %83 = arith.cmpf oeq, %81, %82 : vector<16x8x8xf32>
    %84 = math.log %81 : vector<16x8x8xf32>
    %cst_35 = arith.constant 0.000000e+00 : f32
    %85 = vector.broadcast %cst_35 : f32 to vector<16x8x8xf32>
    %86 = arith.select %83, %85, %84 : vector<16x8x8xi1>, vector<16x8x8xf32>
    %87 = vector.broadcast %43 : vector<16x8x1xf32> to vector<16x8x8xf32>
    %88 = vector.broadcast %55 : vector<16x1x8xf32> to vector<16x8x8xf32>
    %89 = arith.divf %87, %88 : vector<16x8x8xf32>
    %cst_36 = arith.constant 0.000000e+00 : f32
    %90 = vector.broadcast %cst_36 : f32 to vector<16x8x8xf32>
    %91 = arith.cmpf oeq, %89, %90 : vector<16x8x8xf32>
    %92 = math.log %89 : vector<16x8x8xf32>
    %cst_37 = arith.constant 0.000000e+00 : f32
    %93 = vector.broadcast %cst_37 : f32 to vector<16x8x8xf32>
    %94 = arith.select %91, %93, %92 : vector<16x8x8xi1>, vector<16x8x8xf32>
    %95 = vector.broadcast %46 : vector<16x8x1xf32> to vector<16x8x8xf32>
    %96 = vector.broadcast %58 : vector<16x1x8xf32> to vector<16x8x8xf32>
    %97 = arith.divf %95, %96 : vector<16x8x8xf32>
    %cst_38 = arith.constant 0.000000e+00 : f32
    %98 = vector.broadcast %cst_38 : f32 to vector<16x8x8xf32>
    %99 = arith.cmpf oeq, %97, %98 : vector<16x8x8xf32>
    %100 = math.log %97 : vector<16x8x8xf32>
    %cst_39 = arith.constant 0.000000e+00 : f32
    %101 = vector.broadcast %cst_39 : f32 to vector<16x8x8xf32>
    %102 = arith.select %99, %101, %100 : vector<16x8x8xi1>, vector<16x8x8xf32>
    %103 = tpu.concatenate %75, %86, %94, %102 in 2 : vector<16x8x8xf32>, vector<16x8x8xf32>, vector<16x8x8xf32>, vector<16x8x8xf32> -> vector<16x8x32xf32>
    %cst_40 = arith.constant 1.000000e+02 : f32
    %104 = vector.broadcast %cst_40 : f32 to vector<16x8x32xf32>
    %105 = arith.mulf %103, %104 : vector<16x8x32xf32>
    %cst_41 = arith.constant 17.782795 : f32
    %106 = vector.broadcast %cst_41 : f32 to vector<16x8x32xf32>
    %107 = arith.mulf %103, %106 : vector<16x8x32xf32>
    %cst_42 = arith.constant 3.1622777 : f32
    %108 = vector.broadcast %cst_42 : f32 to vector<16x8x32xf32>
    %109 = arith.mulf %103, %108 : vector<16x8x32xf32>
    %cst_43 = arith.constant 0.562341332 : f32
    %110 = vector.broadcast %cst_43 : f32 to vector<16x8x32xf32>
    %111 = arith.mulf %103, %110 : vector<16x8x32xf32>
    %112 = tpu.concatenate %105, %107, %109, %111 in 2 : vector<16x8x32xf32>, vector<16x8x32xf32>, vector<16x8x32xf32>, vector<16x8x32xf32> -> vector<16x8x128xf32>
    %113 = math.sin %112 : vector<16x8x128xf32>
    %114 = vector.shape_cast %5 : vector<1x128xf32> to vector<1x1x128xf32>
    %115 = vector.broadcast %114 : vector<1x1x128xf32> to vector<16x8x128xf32>
    %116 = arith.mulf %113, %115 : vector<16x8x128xf32>
    %117 = math.cos %112 : vector<16x8x128xf32>
    %118 = vector.shape_cast %6 : vector<1x128xf32> to vector<1x1x128xf32>
    %119 = vector.broadcast %118 : vector<1x1x128xf32> to vector<16x8x128xf32>
    %120 = arith.mulf %117, %119 : vector<16x8x128xf32>
    %121 = arith.addf %116, %120 : vector<16x8x128xf32>
    %122 = vector.extract_strided_slice %121 {offsets = [0, 0, 0], sizes = [16, 8, 64], strides = [1, 1, 1]} : vector<16x8x128xf32> to vector<16x8x64xf32>
    %123 = vector.extract_strided_slice %121 {offsets = [0, 0, 64], sizes = [16, 8, 64], strides = [1, 1, 1]} : vector<16x8x128xf32> to vector<16x8x64xf32>
    %124 = arith.addf %122, %123 : vector<16x8x64xf32>
    %125 = vector.extract_strided_slice %124 {offsets = [0, 0, 0], sizes = [16, 8, 32], strides = [1, 1, 1]} : vector<16x8x64xf32> to vector<16x8x32xf32>
    %126 = vector.extract_strided_slice %124 {offsets = [0, 0, 32], sizes = [16, 8, 32], strides = [1, 1, 1]} : vector<16x8x64xf32> to vector<16x8x32xf32>
    %127 = arith.addf %125, %126 : vector<16x8x32xf32>
    %128 = vector.extract_strided_slice %127 {offsets = [0, 0, 0], sizes = [16, 8, 16], strides = [1, 1, 1]} : vector<16x8x32xf32> to vector<16x8x16xf32>
    %129 = vector.extract_strided_slice %127 {offsets = [0, 0, 16], sizes = [16, 8, 16], strides = [1, 1, 1]} : vector<16x8x32xf32> to vector<16x8x16xf32>
    %130 = arith.addf %128, %129 : vector<16x8x16xf32>
    %131 = vector.extract_strided_slice %130 {offsets = [0, 0, 0], sizes = [16, 8, 8], strides = [1, 1, 1]} : vector<16x8x16xf32> to vector<16x8x8xf32>
    %132 = vector.extract_strided_slice %130 {offsets = [0, 0, 8], sizes = [16, 8, 8], strides = [1, 1, 1]} : vector<16x8x16xf32> to vector<16x8x8xf32>
    %133 = arith.addf %131, %132 : vector<16x8x8xf32>
    %134 = vector.broadcast %8 : f32 to vector<16x8x8xf32>
    %135 = arith.addf %133, %134 : vector<16x8x8xf32>
    %cst_44 = arith.constant 0.000000e+00 : f32
    %136 = vector.broadcast %cst_44 : f32 to vector<16x8x8xf32>
    %137 = arith.maximumf %135, %136 : vector<16x8x8xf32>
    %138 = math.exp %30 : vector<16x8x8xf32>
    %139 = arith.mulf %138, %137 : vector<16x8x8xf32>
    %140 = tpu.iota {dimensions = array<i32: 1>} : vector<16x8x8xi32>
    %141 = tpu.iota {dimensions = array<i32: 2>} : vector<16x8x8xi32>
    %142 = arith.cmpi eq, %140, %141 : vector<16x8x8xi32>
    %cst_45 = arith.constant 0.000000e+00 : f32
    %143 = vector.broadcast %cst_45 : f32 to vector<16x8x8xf32>
    %144 = arith.select %142, %143, %139 : vector<16x8x8xi1>, vector<16x8x8xf32>
    %cst_46 = arith.constant dense<0.000000e+00> : vector<16x8xf32>
    %145 = vector.multi_reduction <add>, %144, %cst_46 [2] : vector<16x8x8xf32> to vector<16x8xf32>
    %146 = vector.shape_cast %145 : vector<16x8xf32> to vector<16x8x1xf32>
    %cst_47 = arith.constant 1.000000e-10 : f32
    %147 = vector.broadcast %cst_47 : f32 to vector<16x8x1xf32>
    %148 = arith.addf %146, %147 : vector<16x8x1xf32>
    %149 = vector.broadcast %148 : vector<16x8x1xf32> to vector<16x8x8xf32>
    %150 = arith.divf %144, %149 : vector<16x8x8xf32>
    %cst_48 = arith.constant dense<0.000000e+00> : vector<16x8x64xf32>
    %151 = tpu.matmul %150, %27, %cst_48 {dimension_numbers = #tpu.dot_dimension_numbers<[2], [1], [1], [2], [0, 0, 0, 1, 1, 2], [0], [0]>} : vector<16x8x8xf32>, vector<16x8x64xf32>, vector<16x8x64xf32> -> vector<16x8x64xf32>
    %cst_49 = arith.constant 0.000000e+00 : f32
    %152 = vector.broadcast %cst_49 : f32 to vector<16x8x64xf32>
    %153 = arith.maximumf %151, %152 : vector<16x8x64xf32>
    %154 = vector.shape_cast %153 : vector<16x8x64xf32> to vector<128x64xf32>
    %cst_50 = arith.constant dense<0.000000e+00> : vector<1x128xf32>
    %155 = tpu.matmul %4, %154, %cst_50 {dimension_numbers = #tpu.dot_dimension_numbers<[1], [1], [0], [0], [0, 0, 1, 0], [], []>} : vector<1x64xf32>, vector<128x64xf32>, vector<1x128xf32> -> vector<1x128xf32>
    %156 = vector.broadcast %7 : f32 to vector<1x128xf32>
    %157 = arith.addf %155, %156 : vector<1x128xf32>
    %158 = arith.negf %157 : vector<1x128xf32>
    %159 = math.exp %158 : vector<1x128xf32>
    %cst_51 = arith.constant 1.000000e+00 : f32
    %160 = vector.broadcast %cst_51 : f32 to vector<1x128xf32>
    %161 = arith.addf %160, %159 : vector<1x128xf32>
    %162 = arith.divf %160, %161 : vector<1x128xf32>
    %c0_52 = arith.constant 0 : index
    %c0_53 = arith.constant 0 : index
    %c0_54 = arith.constant 0 : index
    %163 = vector.load %arg7[%c0_52, %c0_53, %c0_54] : memref<1x1x128xf32, #tpu.memory_space<vmem>>, vector<1x1x128xf32>
    %164 = vector.shape_cast %163 : vector<1x1x128xf32> to vector<1x128xf32>
    %165 = vector.shape_cast %162 : vector<1x128xf32> to vector<1x1x128xf32>
    tpu.vector_store %arg7[%c0_52, %c0_53, %c0_54], %165 {strides = array<i32>} : memref<1x1x128xf32, #tpu.memory_space<vmem>>, vector<1x1x128xf32>,
    return
  }
  func.func @transform_0(%arg0: i32) -> (i32, i32, i32) {
    %c0_i32 = arith.constant 0 : i32
    %c0_i32_0 = arith.constant 0 : i32
    %c0_i32_1 = arith.constant 0 : i32
    return %arg0, %c0_i32, %c0_i32_0 : i32, i32, i32
  }
  func.func @transform_1(%arg0: i32) -> (i32, i32, i32) {
    %c0_i32 = arith.constant 0 : i32
    %c0_i32_0 = arith.constant 0 : i32
    %c0_i32_1 = arith.constant 0 : i32
    return %arg0, %c0_i32, %c0_i32_0 : i32, i32, i32
  }
  func.func @transform_2(%arg0: i32) -> (i32, i32, i32) {
    %c0_i32 = arith.constant 0 : i32
    %c0_i32_0 = arith.constant 0 : i32
    %c0_i32_1 = arith.constant 0 : i32
    return %arg0, %c0_i32, %c0_i32_0 : i32, i32, i32
  }
  func.func @transform_3(%arg0: i32) -> (i32, i32, i32) {
    %c0_i32 = arith.constant 0 : i32
    %c0_i32_0 = arith.constant 0 : i32
    %c0_i32_1 = arith.constant 0 : i32
    return %arg0, %c0_i32, %c0_i32_0 : i32, i32, i32
  }
  func.func @transform_4(%arg0: i32) -> i32 {
    %c0_i32 = arith.constant 0 : i32
    %c0_i32_0 = arith.constant 0 : i32
    return %c0_i32 : i32
  }
  func.func @transform_5(%arg0: i32) -> (i32, i32) {
    %c0_i32 = arith.constant 0 : i32
    %c0_i32_0 = arith.constant 0 : i32
    %c0_i32_1 = arith.constant 0 : i32
    return %c0_i32, %c0_i32_0 : i32, i32
  }
  func.func @transform_6(%arg0: i32) -> (i32, i32, i32) {
    %c0_i32 = arith.constant 0 : i32
    %c0_i32_0 = arith.constant 0 : i32
    %c0_i32_1 = arith.constant 0 : i32
    return %arg0, %c0_i32, %c0_i32_0 : i32, i32, i32
  }
}

</mosaic_0001>

<bundles_post_ra>
// kernel: tpu_custom_call.1
= control target key start
LH: loop header
LB: loop body
LE: loop exit
PB: predicated region body
PF: predicated region fallthrough
CT: control target
= control target key end

     0   :  { %11 = vsyncpa [#allocation3], 0  ;;  %s15367_s0 = inlined_call_operand.vmem [shape: f32[32,8,32], index: 0, kind: input, shape index: {}]   ;;  %s15368_s1 = inlined_call_operand.hbm [shape: f32[32,8,64], index: 1, kind: input, shape index: {}]   ;;  %s15369_s2 = inlined_call_operand.vmem [shape: f32[32,8,4], index: 2, kind: input, shape index: {}]   ;;  %s15370_s3 = inlined_call_operand.vmem [shape: f32[32,4,8], index: 3, kind: input, shape index: {}]   ;;  %s15371_s4 = inlined_call_operand.vmem [shape: f32[2], index: 4, kind: input, shape index: {}]   ;;  %s15372_s5 = inlined_call_operand.vmem [shape: f32[104,128], index: 5, kind: input, shape index: {}]   ;;  %s15373_s6 = inlined_call_operand.hbm [shape: f32[2,1,128], index: 6, kind: output, shape index: {}]  }
   0x1   :  { %13 = vsyncpa [#allocation3 + $0x1], 0 }
   0x2   :  { %14 = vsyncpa [#allocation5], 0 }
   0x3   :  { %15 = vsyncpa [#allocation4], 0 }
   0x4   :  { %17 = vsyncpa [#allocation4 + $0x1], 0  ;;  %s10699_s21 = smov 0   ;;  %s10701_s22 = smov 0  }
   0x5   :  { %s10703_s23 = smov 0   ;;  %s10705_s24 = smov 0  }
   0x6 LB: > { %s10720_s25 = sadd.s32 4294967295, %s10637_s24   ;;  %s9263_s26 = sadd.s32 4294967294, %s10637_s24   ;;  %s10637_s24 = sphi %s10705_s24, %s15731_s24   ;;  %s10633_s23 = sphi %s10703_s23, %s15730_s23   ;;  %s10629_s22 = sphi %s10701_s22, %s15729_s22   ;;  %s10625_s21 = sphi %s10699_s21, %s15728_s21  }
   0x7   : > { %s10724_s27 = sadd.s32 1, %s10637_s24   ;;  %s56_s28 = sadd.s32 1, %s10633_s23 }
   0x8   : > { %s53_s29 = ssub.s32 %s10637_s24, %s10724_s27  ;;  %p63_p0 = scmp.ne.s32.totalorder %s10633_s23, %s10629_s22 }
   0x9   : > { %p54_p1 = scmp.eq.s32.totalorder %s53_s29, 0  ;;  %p64_p2 = scmp.eq.s32.totalorder %s10637_s24, 0 }
   0xa   : > { %p69_p3 = scmp.ne.s32.totalorder %s10629_s22, %s10625_s21  ;;  %p15375_p4 = scmp.eq.s32.totalorder %s10720_s25, 0 }
   0xb   : > { %s10736_s30 = scalar_select %p54_p1, %s10633_s23, %s56_s28  }
   0xc   : > { %p10738_p5 = por %p64_p2, %p63_p0  ;;  %p10744_p6 = por %p15375_p4, %p69_p3 }
   0xd   : > { %p187_p7 = scmp.eq.s32.totalorder %s10720_s25, 1  ;;  %p193_p8 = scmp.eq.s32.totalorder %s9263_s26, 1 }
   0xe   : > { %s15468_s8 = scalar_select %p10744_p6, 1, 0 }
   0xf   : > { %p9264_p9 = scmp.ge.s32.totalorder %s10637_s24, 1  ;;  %p200_p10 = scmp.lt.s32.totalorder %s10637_s24, 3 }
  0x10   : > { %p10751_p11 = por %p187_p7, %p63_p0  ;;  %p10755_p12 = por %p193_p8, %p69_p3 }
  0x11   : > { %p10759_p13 = pnand %p9264_p9, %p200_p10  ;;  %s213_s14 = sshll.u32 %s15371_s4, 4  ;;  %s214_s14 = int_to_ptr.vmem [resolvable:$true] %s213_s14 }
  0x12   : > { %s15469_s9 = scalar_select %p10751_p11, 1, 0 }
  0x13   : > { %s15470_s10 = scalar_select %p10755_p12, 1, 0 }
  0x14   : > { %p10034_p1 = pneg %p10759_p13  ;;  %p10047_p2 = scmp.lt.s32.totalorder %s10637_s24, 2 }
  0x15   : > { %s236_s16 = sand.u32 1, %s10633_s23   ;;  %s10522_s19 = scalar_lea.vmem %s214_s14, 16 }
  0x16   : > { %p10772_p7 = pnand %p10034_p1, %p15375_p4  ;;  %p10779_p3 = pnand %p10047_p2, %p10738_p5 }
  0x17   : > { %s9267_s18 = sshll.u32 %s236_s16, 7  ;;  %p10523_p8 = scmp.ne.s32.totalorder %s214_s14, %s10522_s19 }
  0x18   : > { %p10524_p9 = pneg %p10772_p7  ;;  %p10530_p12 = scmp.lt.s32.totalorder %s214_s14, %s214_s14 }
  0x19   : > { %p10531_p11 = scmp.lt.s32.totalorder %s10522_s19, %s10522_s19 }
  0x1a   : > { %p10525_p10 = pnand %p10524_p9, %p10523_p8 }
  0x1b   : > { %p10532_p1 = por %p10531_p11, %p10530_p12 }
  0x1c   : > { %p10526_p0 = pneg %p10525_p10 }
  0x1e   : > { %p10533_p4 = pnand %p10532_p1, %p10526_p0 }
  0x20   : > { %10536 = shalt.err (!%p10533_p4)
}
  0x21   : > { %s10639_s20 = smov [#allocation6]   ;;  %s9513_s26 = sshll.u32 %s10637_s24, 11 }
  0x22   : > { %10037 = dma.vmem_to_smem (!%p10772_p7), %s214_s14, 16, %s10639_s20, [#allocation5]  }
  0x23   : > { %s240_s28 = scalar_lea.vmem [#allocation2], %s9267_s18  ;;  %s10791_s13 = scalar_lea.hbm %s15368_s1, %s9513_s26 }
  0x24   : > { %s247_s29 = sshll.u32 %s240_s28, 4  ;;  %s10795_s19 = scalar_lea.sflag [#allocation3], %s236_s16  ;;  %s10793_s29 = int_to_ptr.vmem [resolvable:$true] %s247_s29 }
  0x25   : > { %s10537_s15 = scalar_lea.hbm %s10791_s13, 2048  ;;  %p10539_p5 = pneg %p10779_p3 }
  0x26   : > { %p10538_p4 = scmp.ne.s32.totalorder %s10791_s13, %s10537_s15  ;;  %s10542_s20 = scalar_lea.hbm %s15368_s1, 4096 }
  0x27   : > { %p10543_p0 = scmp.lt.u32.totalorder %s10791_s13, %s15368_s1  ;;  %p10544_p2 = scmp.lt.u32.totalorder %s10542_s20, %s10537_s15 }
  0x28   : > { %p10540_p11 = pnand %p10539_p5, %p10538_p4  ;;  %p10546_p8 = scmp.lt.u32.totalorder %s10537_s15, %s10791_s13 }
  0x29   : > { %p10545_p7 = por %p10544_p2, %p10543_p0 }
  0x2a   : > { %p10541_p12 = pneg %p10540_p11 }
  0x2b   : > { %p10547_p9 = por %p10546_p8, %p10545_p7 }
  0x2d   : > { %p10548_p10 = pnand %p10547_p9, %p10541_p12 }
  0x2f   : > { %10551 = shalt.err (!%p10548_p10)
}
  0x30   : > { %s10552_s16 = scalar_lea.vmem %s10793_s29, 2048  ;;  %s10640_s7 = smov [#allocation2]  }
  0x31   : > { %p10553_p1 = scmp.ne.s32.totalorder %s10793_s29, %s10552_s16  ;;  %s10557_s12 = sshll.u32 %s10640_s7, 4  ;;  %s10558_s12 = int_to_ptr.vmem [resolvable:$false] %s10557_s12 }
  0x32   : > { %s10559_s14 = scalar_lea.vmem %s10558_s12, 4096  ;;  %p10560_p6 = scmp.lt.s32.totalorder %s10793_s29, %s10558_s12 }
  0x33   : > { %p10555_p4 = pnand %p10553_p1, %p10539_p5  ;;  %p10561_p0 = scmp.lt.s32.totalorder %s10559_s14, %s10552_s16 }
  0x35   : > { %p10556_p11 = pneg %p10555_p4  ;;  %p10562_p2 = por %p10561_p0, %p10560_p6 }
  0x37   : > { %p10563_p7 = pnand %p10562_p2, %p10556_p11 }
  0x39   : > { %10566 = shalt.err (!%p10563_p7)
}
  0x3a   : > { %s10641_s15 = smov 128   ;;  %s10642_s18 = smov 8  }
  0x3b   : > { %10041 = dma.hbm_to_vmem [thread:$0]  (!%p10779_p3), %s10791_s13, 2048, %s10793_s29, %s10795_s19, %s10641_s15, %s10641_s15, %s10642_s18  }
  0x3c   : > { %277 = sbr.rel (%p10759_p13) target bundleno = 2370 (0x942), region = 44 }
  0x43   : > { %s10826_s20 = sand.u32 1, %s10629_s22   ;;  %p15474_p6 = scmp.ne.s32.totalorder %s15468_s8, 0 }
  0x44   : > { %s9271_s26 = sshll.u32 %s10826_s20, 7  ;;  %s280_s28 = scalar_lea.sflag [#allocation3], %s10826_s20 }
  0x45   : > { %s10830_s16 = scalar_lea.vmem [#allocation2], %s9271_s26 }
  0x46   : > { %10612 = dma.done.wait (%p15474_p6), %s280_s28, 2048  }
  0x47   : > { %10614 = vsyncadd (%p15474_p6), %s280_s28, 4294965248  ;;  %p15475_p3 = scmp.eq.s32.totalorder %s10720_s25, 0 }
  0x49   : > { %10616 = dma.done.wait (%p15475_p3), [#allocation5], 16   ;;  %p15476_p13 = pmov %p15475_p3 }
  0x4b   : > { %10618 = vsyncadd (%p15476_p13), [#allocation5], 4294967280 }
  0x4c   : > { %292 = sfence }
  0x4d   : > { %s10841_s11 = sshll.u32 %s10720_s25, 4  ;;  %v10643_v0 = vmov 3   ;;  %s10644_s25 = smov 2   ;;  %v350_v17 = vld [vmem:[%s15372_s5] sm:$0xff]  ;;  %v351_v18 = vld [vmem:[%s15372_s5 + $0x8] sm:$0xff]  ;;  %v352_v20 = vld [vmem:[%s15372_s5 + $0x10] sm:$0xff] }
  0x4e   : > { %p332_p5 = scmp.lt.s32.totalorder %s10841_s11, 31  ;;  %10105 = vset.pattern.permute.xlu0 %v10643_v0  ;;  %10106 = vset.pattern.permute.xlu1 %v10643_v0  ;;  %v9906_v19 = vpack.c.bf16 %v351_v18, %v350_v17  ;;  %v353_v21 = vld [vmem:[%s15372_s5 + $0x18] sm:$0xff]  ;;  %vm405_vm0 = vcmask 261120   ;;  %v10645_v59 = vmov 2   ;;  %s10646_s13 = smov 16   ;;  %vm635_vm3 = vcmask 523264  }
  0x4f   : > { %v9910_v22 = vpack.c.bf16 %v353_v21, %v352_v20  ;;  %s10650_s7 = smov 64   ;;  %s10651_s12 = smov 96  }
  0x50   : > { %s10847_s8 = scalar_select %p332_p5, %s10841_s11, 31  ;;  %9907 = vmatprep.subr.bf16.mxu1 %v9906_v19 }
  0x51   : > { %9909 = vmatpush3.bf16.msra.mxu1 %v9906_v19  ;;  %s15323_s28 = scalar_lea.hbm %s15373_s6, %s10841_s11  ;;  %s9137_s29 = scalar_lea.sflag [#allocation4], %s10826_s20 }
  0x52   : > { %s9274_s17 = sshll.u32 %s10847_s8, 3  ;;  %9911 = vmatprep.subr.bf16.mxu1 %v9910_v22  ;;  %p15725_p8 = scmp.ne.s32.totalorder %s15469_s9, 0 }
  0x53   : > { %s10855_s19 = scalar_lea.vmem %s15369_s2, %s9274_s17 }
  0x54   : > { %v10858_v1 = vld [vmem:[%s10855_s19] sm:$0xff]  ;;  %v10861_v2 = vld [vmem:[%s10855_s19 + $0x10] sm:$0xff]  ;;  %v10866_v3 = vld [vmem:[%s10855_s19 + $0x8] sm:$0xff] }
  0x55   : > { %2125 = vrot.lane.b32.xlu0 %v10858_v1, %s10644_s25  ;;  %2129 = vrot.lane.b32.xlu1 %v10861_v2, %s10644_s25  ;;  %v10869_v4 = vld [vmem:[%s10855_s19 + $0x18] sm:$0xff]  ;;  %v10874_v5 = vld [vmem:[%s10855_s19 + $0x20] sm:$0xff] }
  0x56   : > { %v10877_v6 = vld [vmem:[%s10855_s19 + $0x28] sm:$0xff]  ;;  %v10882_v7 = vld [vmem:[%s10855_s19 + $0x30] sm:$0xff]  ;;  %v10885_v8 = vld [vmem:[%s10855_s19 + $0x38] sm:$0xff]  ;;  %9913 = vmatpush3.bf16.msra.mxu1 %v9910_v22 }
  0x57   : > { %v10890_v9 = vld [vmem:[%s10855_s19 + $0x40] sm:$0xff]  ;;  %v10893_v10 = vld [vmem:[%s10855_s19 + $0x48] sm:$0xff]  ;;  %v10898_v11 = vld [vmem:[%s10855_s19 + $0x50] sm:$0xff] }
  0x58   : > { %v10901_v12 = vld [vmem:[%s10855_s19 + $0x58] sm:$0xff]  ;;  %v10906_v13 = vld [vmem:[%s10855_s19 + $0x60] sm:$0xff]  ;;  %v10909_v14 = vld [vmem:[%s10855_s19 + $0x68] sm:$0xff] }
  0x59   : > { %2127 = vrot.lane.b32.xlu0 %v10866_v3, %s10644_s25  ;;  %2131 = vrot.lane.b32.xlu1 %v10869_v4, %s10644_s25  ;;  %v10914_v15 = vld [vmem:[%s10855_s19 + $0x70] sm:$0xff]  ;;  %v10917_v16 = vld [vmem:[%s10855_s19 + $0x78] sm:$0xff]  ;;  %s10647_s19 = smov 24  }
  0x5d   : > { %2133 = vrot.lane.b32.xlu0 %v10874_v5, %s10644_s25  ;;  %2135 = vrot.lane.b32.xlu1 %v10877_v6, %s10644_s25 }
  0x61   : > { %2137 = vrot.lane.b32.xlu0 %v10882_v7, %s10644_s25  ;;  %2139 = vrot.lane.b32.xlu1 %v10885_v8, %s10644_s25 }
  0x65   : > { %2141 = vrot.lane.b32.xlu0 %v10890_v9, %s10644_s25  ;;  %2143 = vrot.lane.b32.xlu1 %v10893_v10, %s10644_s25 }
  0x69   : > { %2145 = vrot.lane.b32.xlu0 %v10898_v11, %s10644_s25  ;;  %2147 = vrot.lane.b32.xlu1 %v10901_v12, %s10644_s25 }
  0x6d   : > { %2149 = vrot.lane.b32.xlu0 %v10906_v13, %s10644_s25  ;;  %2151 = vrot.lane.b32.xlu1 %v10909_v14, %s10644_s25 }
  0x71   : > { %2153 = vrot.lane.b32.xlu0 %v10914_v15, %s10644_s25  ;;  %2155 = vrot.lane.b32.xlu1 %v10917_v16, %s10644_s25  ;;  %s10938_s25 = scalar_lea.vmem %s15367_s0, %s9274_s17  ;;  %s9278_s17 = sshll.u32 %s10847_s8, 2 }
  0x72   : > { %v369_v23 = vld [vmem:[%s10938_s25] sm:$0xff]  ;;  %v370_v24 = vld [vmem:[%s10938_s25 + $0x8] sm:$0xff]  ;;  %v371_v25 = vld [vmem:[%s10938_s25 + $0x10] sm:$0xff]  ;;  %s10968_s14 = scalar_lea.vmem %s15370_s3, %s9278_s17  ;;  %s10649_s17 = smov 32  }
  0x73   : > { %9647 = vmatprep.mubr.msk.f32.mxu1 %vm405_vm0, %v369_v23  ;;  %v372_v26 = vld [vmem:[%s10938_s25 + $0x18] sm:$0xff]  ;;  %v373_v27 = vld [vmem:[%s10938_s25 + $0x20] sm:$0xff]  ;;  %v374_v28 = vld [vmem:[%s10938_s25 + $0x28] sm:$0xff]  ;;  %s330_s8 = scalar_lea.vmem [#allocation7], %s10826_s20 }
  0x74   : > { %9648 = vmatmul.mubr.msk.f32.vlgmr.msra.gmra.mrb[0].mxu1 %vm405_vm0, %v370_v24  ;;  %v375_v29 = vld [vmem:[%s10938_s25 + $0x30] sm:$0xff]  ;;  %v376_v30 = vld [vmem:[%s10938_s25 + $0x38] sm:$0xff]  ;;  %v377_v31 = vld [vmem:[%s10938_s25 + $0x40] sm:$0xff]  ;;  %s9149_s15 = sshll.u32 %s330_s8, 4  ;;  %s15325_s15 = int_to_ptr.vmem [resolvable:$true] %s9149_s15 }
  0x75   : > { %9650 = vmatprep.mubr.msk.f32.mxu1 %vm405_vm0, %v371_v25  ;;  %v378_v32 = vld [vmem:[%s10938_s25 + $0x48] sm:$0xff]  ;;  %v379_v33 = vld [vmem:[%s10938_s25 + $0x50] sm:$0xff]  ;;  %v380_v34 = vld [vmem:[%s10938_s25 + $0x58] sm:$0xff] }
  0x76   : > { %v10971_v35 = vld [vmem:[%s10968_s14 + $0x4] sm:$0xf]  ;;  %v10976_v41 = vld [vmem:[%s10968_s14] sm:$0xf]  ;;  %v11003_v60 = vld [vmem:[%s10968_s14 + $0x8] sm:$0xf] }
  0x77   : > { %v2254_v39 = vrot.slane %v10971_v35, 6  ;;  %v2253_v48 = vrot.slane %v10976_v41, 6  ;;  %v2255_v62 = vrot.slane %v11003_v60, 6 }
  0x78   : > { %9651 = vmatmul.mubr.msk.f32.gmra.mrb[2].mxu1 %vm405_vm0, %v372_v26 }
  0x79   : > { %9653 = vmatprep.mubr.msk.f32.mxu1 %vm405_vm0, %v373_v27  ;;  %v10981_v44 = vadd.f32 %v2254_v39, %v10971_v35  ;;  %v10993_v52 = vadd.f32 %v2253_v48, %v10976_v41  ;;  %v11017_v17 = vadd.f32 %v2255_v62, %v11003_v60 }
  0x7c   : > { %9654 = vmatmul.mubr.msk.f32.gmra.mrb[4].mxu1 %vm405_vm0, %v374_v28  ;;  %v11046_v28 = vld [vmem:[%s10968_s14 + $0x10] sm:$0xf] }
  0x7d   : > { %9656 = vmatprep.mubr.msk.f32.mxu1 %vm405_vm0, %v375_v29 }
  0x80   : > { %9657 = vmatmul.mubr.msk.f32.gmra.mrb[6].mxu1 %vm405_vm0, %v376_v30 }
  0x81   : > { %9659 = vmatprep.mubr.msk.f32.mxu1 %vm405_vm0, %v377_v31 }
  0x84   : > { %9660 = vmatmul.mubr.msk.f32.gmra.mrb[8].mxu1 %vm405_vm0, %v378_v32  ;;  %v2257_v32 = vrot.slane %v11046_v28, 6 }
  0x85   : > { %9662 = vmatprep.mubr.msk.f32.mxu1 %vm405_vm0, %v379_v33 }
  0x88   : > { %9663 = vmatmul.mubr.msk.f32.gmra.mrb[10].mxu1 %vm405_vm0, %v380_v34  ;;  %v11057_v34 = vld [vmem:[%s10968_s14 + $0x14] sm:$0xf] }
  0xc7   : > { %v2126_v36 = vpop.permute.xlu0 %2125  ;;  %v2130_v37 = vpop.permute.xlu1 %2129 }
  0xc8   : > { %v2173_v38 = vsub.f32 %v10858_v1, %v2126_v36  ;;  %v2205_v49 = vadd.f32 %v2126_v36, %v10858_v1  ;;  %v2175_v53 = vsub.f32 %v10861_v2, %v2130_v37  ;;  %v2207_v63 = vadd.f32 %v2130_v37, %v10861_v2  ;;  %v11011_v1 = vld [vmem:[%s10968_s14 + $0xc] sm:$0xf] }
  0xc9   : > { %v2256_v2 = vrot.slane %v11011_v1, 6 }
  0xca   : > { %v2189_v40 = vadd.f32 1e-10, %v2173_v38  ;;  %v10997_v55 = vmul.f32 0.5, %v2205_v49  ;;  %v2191_v57 = vadd.f32 1e-10, %v2175_v53  ;;  %v11022_v20 = vmul.f32 0.5, %v2207_v63 }
  0xcb   : > { %v2128_v42 = vpop.permute.xlu0 %2127  ;;  %v2132_v43 = vpop.permute.xlu1 %2131  ;;  %v11029_v22 = vadd.f32 %v2256_v2, %v11011_v1  ;;  %v2258_v38 = vrot.slane %v11057_v34, 6 }
  0xcc   : > { %v2174_v45 = vsub.f32 %v10866_v3, %v2128_v42  ;;  %v2206_v46 = vadd.f32 %v2128_v42, %v10866_v3  ;;  %2862 = vperm.xlu0 %10105, %v2189_v40   ;;  %v2176_v47 = vsub.f32 %v10869_v4, %v2132_v43  ;;  %v2208_v18 = vadd.f32 %v2132_v43, %v10869_v4 }
  0xce   : > { %v10988_v50 = vmul.f32 0.5, %v2206_v46  ;;  %v2190_v51 = vadd.f32 1e-10, %v2174_v45  ;;  %v2192_v54 = vadd.f32 1e-10, %v2176_v47  ;;  %v11034_v23 = vmul.f32 0.5, %v2208_v18 }
  0xcf   : > { %v2134_v56 = vpop.permute.xlu0 %2133  ;;  %v2136_v19 = vpop.permute.xlu1 %2135  ;;  %v11077_v45 = vadd.f32 %v2258_v38, %v11057_v34 }
  0xd0   : > { %2706 = vperm.xlu0 %10105, %v10988_v50   ;;  %2866 = vperm.xlu1 %10106, %v2190_v51   ;;  %v2177_v58 = vsub.f32 %v10874_v5, %v2134_v56  ;;  %v2178_v4 = vsub.f32 %v10877_v6, %v2136_v19  ;;  %v2209_v29 = vadd.f32 %v2134_v56, %v10874_v5 }
  0xd1   : > { %v11063_v5 = vadd.f32 %v2257_v32, %v11046_v28 }
  0xd2   : > { %v11005_v61 = vadd.f32 1e-10, %v2177_v58  ;;  %v2194_v25 = vadd.f32 1e-10, %v2178_v4  ;;  %v11065_v37 = vmul.f32 0.5, %v2209_v29 }
  0xd3   : > { %v2138_v3 = vpop.permute.xlu0 %2137  ;;  %v2140_v30 = vpop.permute.xlu1 %2139 }
  0xd4   : > { %2874 = vperm.xlu0 %10105, %v2192_v54   ;;  %2702 = vperm.xlu1 %10106, %v10997_v55   ;;  %v2179_v21 = vsub.f32 %v10882_v7, %v2138_v3  ;;  %v2180_v36 = vsub.f32 %v10885_v8, %v2140_v30  ;;  %v2211_v58 = vadd.f32 %v2138_v3, %v10882_v7  ;;  %v382_v3 = vld [vmem:[%s10938_s25 + $0x68] sm:$0xff] }
  0xd6   : > { %v11036_v24 = vadd.f32 1e-10, %v2179_v21  ;;  %v2196_v42 = vadd.f32 1e-10, %v2180_v36  ;;  %v11106_v21 = vld [vmem:[%s10968_s14 + $0x1c] sm:$0xf]  ;;  %v2212_v36 = vadd.f32 %v2140_v30, %v10885_v8 }
  0xd7   : > { %v11040_v26 = vpop.permute.xlu0 %2141  ;;  %v2144_v53 = vpop.permute.xlu1 %2143  ;;  %v2227_v7 = vmul.f32 0.5, %v2211_v58  ;;  %v2260_v29 = vrot.slane %v11106_v21, 6  ;;  %v383_v58 = vld [vmem:[%s10938_s25 + $0x70] sm:$0xff] }
  0xd8   : > { %10108 = vset.pattern.permute.xlu0 %v10645_v59  ;;  %2870 = vperm.xlu1 %10106, %v2191_v57   ;;  %v2181_v27 = vsub.f32 %v10890_v9, %v11040_v26  ;;  %v2182_v4 = vsub.f32 %v10893_v10, %v2144_v53 }
  0xd9   : > { %2532 = vperm.xlu0 %10108, %v2190_v51  }
  0xda   : > { %v11054_v33 = vadd.f32 1e-10, %v2181_v27 }
  0xdb   : > { %v11050_v31 = vpop.permute.xlu0 %2145 }
  0xdc   : > { %10107 = vset.pattern.permute.xlu1 %v10645_v59  ;;  %v2183_v46 = vsub.f32 %v10898_v11, %v11050_v31 }
  0xdd   : > { %10110 = vset.pattern.permute.xlu0 %v10643_v0  ;;  %2527 = vperm.xlu1 %10107, %v2189_v40   ;;  %v2210_v40 = vadd.f32 %v2136_v19, %v10877_v6  ;;  %v2148_v19 = vpop.permute.xlu1 %2147 }
  0xde   : > { %2878 = vperm.xlu0 %10110, %v11005_v61   ;;  %v11088_v49 = vadd.f32 1e-10, %v2183_v46 }
  0xdf   : > { %v11072_v43 = vpop.permute.xlu0 %2149  ;;  %v11083_v6 = vmul.f32 0.5, %v2210_v40  ;;  %v2198_v40 = vadd.f32 1e-10, %v2182_v4  ;;  %v11135_v4 = vld [vmem:[%s10968_s14 + $0x20] sm:$0xf] }
  0xe0   : > { %v2185_v47 = vsub.f32 %v10906_v13, %v11072_v43 }
  0xe1   : > { %10109 = vset.pattern.permute.xlu1 %v10643_v0  ;;  %v2152_v46 = vpop.permute.xlu1 %2151 }
  0xe2   : > { %2710 = vperm.xlu1 %10109, %v11022_v20   ;;  %10112 = vset.pattern.permute.xlu0 %v10645_v59  ;;  %v11096_v56 = vadd.f32 1e-10, %v2185_v47  ;;  %v11129_v47 = vmul.f32 0.5, %v2212_v36  ;;  %v2186_v8 = vsub.f32 %v10909_v14, %v2152_v46  ;;  %v15378_v36 = vrot.slane %v11135_v4, 6 }
  0xe3   : > { %2542 = vperm.xlu0 %10112, %v2192_v54   ;;  %v11090_v51 = vpop.permute.xlu0 %2153 }
  0xe4   : > { %v2187_v54 = vsub.f32 %v10914_v15, %v11090_v51 }
  0xe6   : > { %2714 = vperm.xlu1 %10109, %v11034_v23   ;;  %v2203_v18 = vadd.f32 1e-10, %v2187_v54  ;;  %v2202_v54 = vadd.f32 1e-10, %v2186_v8 }
  0xe7   : > { %10114 = vset.pattern.permute.xlu0 %v10643_v0 }
  0xe8   : > { %2886 = vperm.xlu0 %10114, %v11036_v24  }
  0xea   : > { %2882 = vperm.xlu1 %10109, %v2194_v25  }
  0xec   : > { %10116 = vset.pattern.permute.xlu0 %v10645_v59 }
  0xed   : > { %2552 = vperm.xlu0 %10116, %v2194_v25   ;;  %v381_v25 = vld [vmem:[%s10938_s25 + $0x60] sm:$0xff] }
  0xee   : > { %10111 = vset.pattern.permute.xlu1 %v10645_v59  ;;  %9665 = vmatprep.mubr.msk.f32.mxu1 %vm405_vm0, %v381_v25  ;;  %v384_v25 = vld [vmem:[%s10938_s25 + $0x78] sm:$0xff]  ;;  %s10661_s25 = smov 120  }
  0xef   : > { %2537 = vperm.xlu1 %10111, %v2191_v57   ;;  %v11099_v57 = vld [vmem:[%s10968_s14 + $0x18] sm:$0xf]  ;;  %9666 = vmatmul.mubr.msk.f32.gmra.mrb[12].mxu1 %vm405_vm0, %v382_v3  ;;  %v2213_v3 = vadd.f32 %v11040_v26, %v10890_v9  ;;  %v2214_v26 = vadd.f32 %v2144_v53, %v10893_v10  ;;  %v2215_v10 = vadd.f32 %v11050_v31, %v10898_v11 }
  0xf0   : > { %v15382_v63 = vrot.slane %v11099_v57, 6  ;;  %9668 = vmatprep.mubr.msk.f32.mxu1 %vm405_vm0, %v383_v58 }
  0xf1   : > { %10118 = vset.pattern.permute.xlu0 %v10643_v0  ;;  %v2229_v8 = vmul.f32 0.5, %v2213_v3  ;;  %v2231_v53 = vmul.f32 0.5, %v2215_v10 }
  0xf2   : > { %2894 = vperm.xlu0 %10118, %v11054_v33   ;;  %v11114_v27 = vadd.f32 %v15382_v63, %v11099_v57 }
  0xf3   : > { %10113 = vset.pattern.permute.xlu1 %v10643_v0  ;;  %9669 = vmatmul.mubr.msk.f32.gmra.mrb[14].mxu1 %vm405_vm0, %v384_v25 }
  0xf4   : > { %2718 = vperm.xlu1 %10113, %v11065_v37  }
  0xf6   : > { %10120 = vset.pattern.permute.xlu0 %v10645_v59 }
  0xf7   : > { %2562 = vperm.xlu0 %10120, %v2196_v42  }
  0xf8   : > { %2722 = vperm.xlu1 %10113, %v11083_v6  }
  0xfb   : > { %10122 = vset.pattern.permute.xlu0 %v10643_v0 }
  0xfc   : > { %2890 = vperm.xlu1 %10113, %v2196_v42   ;;  %2902 = vperm.xlu0 %10122, %v11088_v49   ;;  %v11126_v42 = vadd.f32 %v2260_v29, %v11106_v21 }
 0x100   : > { %10115 = vset.pattern.permute.xlu1 %v10645_v59  ;;  %2910 = vperm.xlu0 %10122, %v11096_v56  }
 0x101   : > { %2547 = vperm.xlu1 %10115, %v11005_v61   ;;  %v2184_v61 = vsub.f32 %v10901_v12, %v2148_v19 }
 0x103   : > { %v2200_v30 = vadd.f32 1e-10, %v2184_v61  ;;  %v11145_v61 = vld [vmem:[%s10968_s14 + $0x24] sm:$0xf] }
 0x104   : > { %2918 = vperm.xlu0 %10122, %v2203_v18   ;;  %v15381_v9 = vrot.slane %v11145_v61, 6 }
 0x105   : > { %10117 = vset.pattern.permute.xlu1 %v10643_v0 }
 0x106   : > { %2726 = vperm.xlu1 %10117, %v2227_v7   ;;  %v11160_v58 = vadd.f32 %v15381_v9, %v11145_v61 }
 0x108   : > { %10127 = vset.pattern.permute.xlu0 %v10645_v59 }
 0x109   : > { %2572 = vperm.xlu0 %10127, %v2198_v40  }
 0x10a   : > { %2730 = vperm.xlu1 %10117, %v11129_v47  }
 0x10d   : > { %2582 = vperm.xlu0 %10127, %v2200_v30  }
 0x10e   : > { %2898 = vperm.xlu1 %10117, %v2198_v40   ;;  %v11151_v40 = vadd.f32 %v15378_v36, %v11135_v4  ;;  %v386_v36 = vld [vmem:[%s10830_s16 + $0x8] sm:$0xff] }
 0x111   : > { %2592 = vperm.xlu0 %10127, %v2202_v54  }
 0x112   : > { %10119 = vset.pattern.permute.xlu1 %v10645_v59 }
 0x113   : > { %2557 = vperm.xlu1 %10119, %v11036_v24   ;;  %v11162_v24 = vmul.f32 0.5, %v2214_v26 }
 0x115   : > { %2351 = vperm.xlu0 %10127, %v10997_v55   ;;  %v11172_v55 = vld [vmem:[%s10968_s14 + $0x2c] sm:$0xf] }
 0x116   : > { %v15380_v25 = vrot.slane %v11172_v55, 6 }
 0x117   : > { %10121 = vset.pattern.permute.xlu1 %v10643_v0 }
 0x118   : > { %2734 = vperm.xlu1 %10121, %v2229_v8   ;;  %v11182_v11 = vadd.f32 %v15380_v25, %v11172_v55 }
 0x119   : > { %2597 = vperm.xlu0 %10127, %v2203_v18   ;;  %v2216_v18 = vadd.f32 %v2148_v19, %v10901_v12  ;;  %v2219_v12 = vadd.f32 %v11090_v51, %v10914_v15  ;;  %v2218_v19 = vadd.f32 %v2152_v46, %v10909_v14  ;;  %v2285_v14 = vsub.f32 %v10976_v41, %v2253_v48 }
 0x11b   : > { %v11184_v31 = vmul.f32 0.5, %v2216_v18  ;;  %v2301_v3 = vadd.f32 1e-10, %v2285_v14  ;;  %v2286_v18 = vsub.f32 %v10971_v35, %v2254_v39  ;;  %v2287_v39 = vsub.f32 %v11003_v60, %v2255_v62 }
 0x11c   : > { %2738 = vperm.xlu1 %10121, %v11162_v24  }
 0x11d   : > { %2361 = vperm.xlu0 %10127, %v11022_v20   ;;  %v2217_v20 = vadd.f32 %v11072_v43, %v10906_v13  ;;  %v2235_v13 = vmul.f32 0.5, %v2219_v12  ;;  %v2156_v43 = vpop.permute.xlu1 %2155 }
 0x11e   : > { %v2188_v51 = vsub.f32 %v10917_v16, %v2156_v43  ;;  %v2220_v41 = vadd.f32 %v2156_v43, %v10917_v16 }
 0x120   : > { %2906 = vperm.xlu1 %10121, %v2200_v30   ;;  %v11204_v30 = vmul.f32 0.5, %v2218_v19  ;;  %v11234_v12 = vmul.f32 0.5, %v2220_v41 }
 0x121   : > { %2371 = vperm.xlu0 %10127, %v11065_v37   ;;  %v11192_v37 = vld [vmem:[%s10968_s14 + $0x34] sm:$0xf] }
 0x122   : > { %v15379_v15 = vrot.slane %v11192_v37, 6 }
 0x124   : > { %10123 = vset.pattern.permute.xlu1 %v10645_v59 }
 0x125   : > { %2567 = vperm.xlu1 %10123, %v11054_v33   ;;  %2381 = vperm.xlu0 %10127, %v2227_v7   ;;  %v2233_v33 = vmul.f32 0.5, %v2217_v20  ;;  %v11202_v7 = vadd.f32 %v15379_v15, %v11192_v37 }
 0x127   : > { %15477 = vst [vmem:[#allocation11_spill] sm:$0xff] %v11202_v7 }
 0x129   : > { %10124 = vset.pattern.permute.xlu1 %v10643_v0  ;;  %2391 = vperm.xlu0 %10127, %v2229_v8  }
 0x12a   : > { %2742 = vperm.xlu1 %10124, %v2231_v53  }
 0x12d   : > { %2401 = vperm.xlu0 %10127, %v2231_v53  }
 0x12e   : > { %2746 = vperm.xlu1 %10124, %v11184_v31  }
 0x131   : > { %2411 = vperm.xlu0 %10127, %v2233_v33  }
 0x132   : > { %2914 = vperm.xlu1 %10124, %v2202_v54   ;;  %v2204_v54 = vadd.f32 1e-10, %v2188_v51 }
 0x135   : > { %2421 = vperm.xlu0 %10127, %v2235_v13  }
 0x136   : > { %10125 = vset.pattern.permute.xlu1 %v10645_v59 }
 0x137   : > { %2577 = vperm.xlu1 %10125, %v11088_v49   ;;  %v15377_v49 = vlaneseq }
 0x139   : > { %10131 = vset.pattern.permute.xlu0 %v10643_v0  ;;  %v11211_v46 = vshrl.u32 %v15377_v49, 7 }
 0x13b   : > { %10126 = vset.pattern.permute.xlu1 %v10643_v0  ;;  %15478 = vst [vmem:[#allocation12_spill] sm:$0xff] %v11211_v46  ;;  %v11214_v8 = vsub.s32 3, %v11211_v46  ;;  %v11220_v10 = vsub.s32 2, %v11211_v46 }
 0x13c   : > { %2750 = vperm.xlu1 %10126, %v2233_v33   ;;  %v2302_v33 = vadd.f32 1e-10, %v2286_v18 }
 0x13d   : > { %v3184_v26 = vrot.slane %v2301_v3, %v11214_v8  ;;  %v3024_v48 = vrot.slane %v2301_v3, %v11220_v10 }
 0x13e   : > { %v3028_v35 = vrot.slane %v2302_v33, %v11220_v10  ;;  %v3188_v14 = vrot.slane %v2302_v33, %v11214_v8 }
 0x13f   : > { %10132 = vrcp.f32 %v3184_v26 }
 0x140   : > { %2754 = vperm.xlu1 %10126, %v11204_v30   ;;  %10134 = vrcp.f32 %v3024_v48 }
 0x141   : > { %10136 = vrcp.f32 %v3028_v35 }
 0x142   : > { %10138 = vrcp.f32 %v3188_v14 }
 0x144   : > { %2922 = vperm.xlu1 %10126, %v2204_v54  }
 0x148   : > { %10128 = vset.pattern.permute.xlu1 %v10645_v59 }
 0x149   : > { %2587 = vperm.xlu1 %10128, %v11096_v56   ;;  %v10133_v43 = vpop.eup %10132 }
 0x14a   : > { %v10135_v26 = vpop.eup %10134 }
 0x14b   : > { %v11222_v53 = vpop.permute.xlu0 %2862 }
 0x14c   : > { %v11257_v41 = vmul.f32 %v10133_v43, %v11222_v53  ;;  %v357_v43 = vld [vmem:[%s15372_s5 + $0x38] sm:$0xff] }
 0x14d   : > { %10129 = vset.pattern.permute.xlu1 %v10643_v0  ;;  %v2288_v0 = vsub.f32 %v11011_v1, %v2256_v2  ;;  %v2303_v1 = vadd.f32 1e-10, %v2287_v39  ;;  %v356_v39 = vld [vmem:[%s15372_s5 + $0x30] sm:$0xff] }
 0x14e   : > { %2758 = vperm.xlu1 %10129, %v2235_v13   ;;  %vm3277_vm2 = vcmp.eq.f32.partialorder %v11257_v41, 0.0 }
 0x14f   : > { %v11230_v56 = vpop.permute.xlu1 %2866  ;;  %v11232_v20 = vpop.permute.xlu0 %2706  ;;  %v2304_v19 = vadd.f32 1e-10, %v2288_v0  ;;  %v3192_v48 = vrot.slane %v2303_v1, %v11214_v8  ;;  %v2289_v0 = vsub.f32 %v11046_v28, %v2257_v32  ;;  %v3032_v35 = vrot.slane %v2303_v1, %v11220_v10 }
 0x150   : > { %v9918_v28 = vpack.c.bf16 %v357_v43, %v356_v39  ;;  %v360_v43 = vld [vmem:[%s15372_s5 + $0x50] sm:$0xff] }
 0x151   : > { %v3036_v3 = vrot.slane %v2304_v19, %v11220_v10  ;;  %v3196_v32 = vrot.slane %v2304_v19, %v11214_v8  ;;  %v11292_v14 = vadd.f32 1e-10, %v2289_v0  ;;  %v359_v19 = vld [vmem:[%s15372_s5 + $0x48] sm:$0xff] }
 0x152   : > { %2762 = vperm.xlu1 %10129, %v11234_v12  }
 0x153   : > { %v11237_v16 = vpop.permute.xlu1 %2702  ;;  %v11242_v13 = vpop.permute.xlu0 %2874  ;;  %10140 = vrcp.f32 %v3036_v3  ;;  %v2292_v3 = vsub.f32 %v11106_v21, %v2260_v29 }
 0x154   : > { %10142 = vlog2.f32 %v11257_v41 }
 0x156   : > { %10130 = vset.pattern.permute.xlu1 %v10645_v59  ;;  %v354_v59 = vld [vmem:[%s15372_s5 + $0x20] sm:$0xff] }
 0x157   : > { %v11249_v51 = vpop.permute.xlu1 %2870  ;;  %2356 = vperm.xlu1 %10130, %v10988_v50   ;;  %v355_v50 = vld [vmem:[%s15372_s5 + $0x28] sm:$0xff] }
 0x158   : > { %v11253_v2 = vpop.permute.xlu0 %2532  ;;  %v9914_v62 = vpack.c.bf16 %v355_v50, %v354_v59  ;;  %v9649_v50 = vpop.f32.mrb[0].mxu1 }
 0x159   : > { %15479 = vst [vmem:[#allocation13_spill] sm:$0xff] %v11253_v2  ;;  %v520_v0 = vpop.f32.mrb[1].mxu1 }
 0x15a   : > { %9915 = vmatprep.subr.bf16.mxu1 %v9914_v62 }
 0x15b   : > { %2602 = vperm.xlu1 %10130, %v2204_v54   ;;  %v2290_v54 = vsub.f32 %v11057_v34, %v2258_v38  ;;  %9917 = vmatpush3.bf16.msra.mxu1 %v9914_v62  ;;  %v10137_v38 = vpop.eup %10136 }
 0x15c   : > { %v11265_v60 = vpop.permute.xlu1 %2527  ;;  %9919 = vmatprep.subr.bf16.mxu1 %v9918_v28  ;;  %v11308_v21 = vmul.f32 %v10137_v38, %v11253_v2 }
 0x15d   : > { %15480 = vst [vmem:[#allocation14_spill] sm:$0xff] %v11265_v60  ;;  %v11269_v18 = vmul.f32 %v10135_v26, %v11265_v60  ;;  %v11271_v33 = vpop.permute.xlu0 %2878  ;;  %v2306_v1 = vadd.f32 1e-10, %v2290_v54  ;;  %v10139_v54 = vpop.eup %10138 }
 0x15e   : > { %v11336_v25 = vmul.f32 %v10139_v54, %v11230_v56  ;;  %v15485_v54 = vrot.slane %v11145_v61, 6  ;;  %vm3118_vm4 = vcmp.eq.f32.partialorder %v11308_v21, 0.0 }
 0x15f   : > { %10144 = vlog2.f32 %v11269_v18  ;;  %2366 = vperm.xlu1 %10130, %v11034_v23   ;;  %v358_v23 = vld [vmem:[%s15372_s5 + $0x40] sm:$0xff]  ;;  %9921 = vmatpush3.bf16.msra.mxu1 %v9918_v28  ;;  %v3044_v59 = vrot.slane %v2306_v1, %v11220_v10  ;;  %v361_v28 = vld [vmem:[%s15372_s5 + $0x58] sm:$0xff]  ;;  %vm3117_vm1 = vcmp.eq.f32.partialorder %v11269_v18, 0.0 }
 0x160   : > { %10146 = vrcp.f32 %v3192_v48  ;;  %v9922_v62 = vpack.c.bf16 %v359_v19, %v358_v23  ;;  %v11315_v48 = vld [vmem:[%s15372_s5 + $0x60] ss:$0 sm:$0xff]  ;;  %v3204_v23 = vrot.slane %v2306_v1, %v11214_v8  ;;  %v15484_v1 = vrot.slane %v11099_v57, 6 }
 0x161   : > { %v11290_v34 = vpop.permute.xlu1 %2710  ;;  %10148 = vrcp.f32 %v3032_v35  ;;  %v11319_v35 = vadd.f32 1e-10, %v2292_v3  ;;  %v521_v39 = vadd.f32 %v11315_v48, %v520_v0  ;;  %v526_v3 = vadd.f32 %v9649_v50, %v11315_v48  ;;  %v385_v19 = vld [vmem:[%s10830_s16] sm:$0xff] }
 0x162   : > { %v11303_v26 = vpop.permute.xlu0 %2542  ;;  %10150 = vrcp.f32 %v3196_v32  ;;  %9923 = vmatprep.subr.bf16.mxu1 %v9922_v62  ;;  %v10141_v32 = vpop.eup %10140  ;;  %v9926_v0 = vpack.c.bf16 %v361_v28, %v360_v43  ;;  %v2291_v50 = vsub.f32 %v11099_v57, %v15484_v1  ;;  %vm3278_vm5 = vcmp.eq.f32.partialorder %v11336_v25, 0.0 }
 0x163   : > { %15481 = vst [vmem:[#allocation15_spill] sm:$0xff] %v11303_v26  ;;  %2376 = vperm.xlu1 %10130, %v11083_v6   ;;  %v3200_v6 = vrot.slane %v11292_v14, %v11214_v8  ;;  %9925 = vmatpush3.bf16.msra.mxu1 %v9922_v62  ;;  %v10143_v49 = vpop.eup %10142  ;;  %10152 = vrcp.f32 %v3044_v59  ;;  %v599_v63 = vadd.f32 %v521_v39, %v385_v19 }
 0x164   : > { %10154 = vlog2.f32 %v11308_v21  ;;  %9927 = vmatprep.subr.bf16.mxu1 %v9926_v0  ;;  %v3052_v59 = vrot.slane %v11319_v35, %v11220_v10  ;;  %v11352_v39 = vmul.f32 %v10141_v32, %v11303_v26 }
 0x165   : > { %v11310_v29 = vpop.permute.xlu1 %2714  ;;  %10156 = vrcp.f32 %v3200_v6  ;;  %v615_v28 = vmax.f32 %v599_v63, 0.0  ;;  %v3212_v63 = vrot.slane %v11319_v35, %v11214_v8 }
 0x166   : > { %15482 = vst [vmem:[#allocation16_spill] sm:$0xff] %v11310_v29  ;;  %10158 = vrcp.f32 %v3204_v23  ;;  %vm3120_vm9 = vcmp.eq.f32.partialorder %v11352_v39, 0.0 }
 0x167   : > { %2386 = vperm.xlu1 %10130, %v11129_v47   ;;  %v11329_v38 = vpop.permute.xlu0 %2886  ;;  %v600_v47 = vadd.f32 %v526_v3, %v386_v36  ;;  %v2294_v36 = vsub.f32 %v11145_v61, %v15485_v54  ;;  %9929 = vmatpush3.bf16.msra.mxu1 %v9926_v0  ;;  %10160 = vlog2.f32 %v11336_v25  ;;  %v11361_v61 = vadd.f32 1e-10, %v2291_v50 }
 0x168   : > { %10162 = vrcp.f32 %v3052_v59  ;;  %v3040_v0 = vrot.slane %v11292_v14, %v11220_v10  ;;  %9687 = vmatprep.mubr.msk.f32.mxu1 %vm635_vm3, %v615_v28 }
 0x169   : > { %v10145_v15 = vpop.eup %10144  ;;  %v11339_v9 = vpop.permute.xlu1 %2882  ;;  %10164 = vlog2.f32 %v11352_v39  ;;  %v3208_v35 = vrot.slane %v11361_v61, %v11214_v8 }
 0x16a   : > { %15483 = vst [vmem:[#allocation17_spill] sm:$0xff] %v11339_v9  ;;  %v3134_v62 = vmul.f32 0.6931472, %v10145_v15  ;;  %v10147_v43 = vpop.eup %10146  ;;  %v3294_v15 = vmul.f32 0.6931472, %v10143_v49 }
 0x16b   : > { %2396 = vperm.xlu1 %10130, %v11162_v24   ;;  %v10149_v6 = vpop.eup %10148  ;;  %v616_v24 = vmax.f32 %v600_v47, 0.0  ;;  %v11359_v23 = vmul.f32 %v10147_v43, %v11249_v51  ;;  %v2310_v47 = vadd.f32 1e-10, %v2294_v36 }
 0x16c   : > { %v3165_v57 = vsel %vm3117_vm1, 0.0, %v3134_v62  ;;  %v11355_v3 = vpop.permute.xlu0 %2552  ;;  %v10151_v18 = vpop.eup %10150  ;;  %v3325_v32 = vsel %vm3277_vm2, 0.0, %v3294_v15  ;;  %v15488_v62 = vrot.slane %v11172_v55, 6 }
 0x16d   : > { %15486 = vst [vmem:[#allocation18_spill] sm:$0xff] %v11355_v3  ;;  %3421 = vrot.lane.b32.xlu0 %v3165_v57, %s10646_s13  ;;  %v11377_v1 = vmul.f32 %v10151_v18, %v11242_v13  ;;  %9688 = vmatmul.mubr.msk.f32.vlgmr.msra.gmra.mrb[16].mxu1 %vm635_vm3, %v616_v24  ;;  %v10153_v41 = vpop.eup %10152  ;;  %v3060_v54 = vrot.slane %v2310_v47, %v11220_v10  ;;  %v388_v57 = vld [vmem:[%s10830_s16 + $0x18] sm:$0xff]  ;;  %v9652_v15 = vpop.f32.mrb[2].mxu1  ;;  %v387_v18 = vld [vmem:[%s10830_s16 + $0x10] sm:$0xff]  ;;  %vm3279_vm8 = vcmp.eq.f32.partialorder %v11359_v23, 0.0 }
 0x16e   : > { %v11363_v19 = vpop.permute.xlu1 %2537  ;;  %v10155_v14 = vpop.eup %10154  ;;  %v2296_v59 = vsub.f32 %v11172_v55, %v15488_v62  ;;  %v536_v24 = vadd.f32 %v9652_v15, %v11315_v48 }
 0x16f   : > { %15487 = vst [vmem:[#allocation19_spill] sm:$0xff] %v11363_v19  ;;  %v11366_v49 = vmul.f32 %v10149_v6, %v11363_v19  ;;  %2406 = vperm.xlu1 %10130, %v11184_v31   ;;  %v10157_v43 = vpop.eup %10156  ;;  %v11396_v6 = vmul.f32 %v10153_v41, %v11355_v3  ;;  %v3136_v28 = vmul.f32 0.6931472, %v10155_v14  ;;  %vm3280_vm7 = vcmp.eq.f32.partialorder %v11377_v1, 0.0 }
 0x170   : > { %v10159_v36 = vpop.eup %10158  ;;  %v11407_v41 = vadd.f32 1e-10, %v2296_v59  ;;  %v602_v15 = vadd.f32 %v536_v24, %v388_v57 }
 0x171   : > { %10166 = vlog2.f32 %v11366_v49  ;;  %3485 = vrot.lane.b32.xlu0 %v3325_v32, %s10647_s19  ;;  %v11381_v31 = vpop.permute.xlu0 %2894  ;;  %v10161_v55 = vpop.eup %10160  ;;  %v3166_v26 = vsel %vm3118_vm4, 0.0, %v3136_v28  ;;  %vm3119_vm6 = vcmp.eq.f32.partialorder %v11366_v49, 0.0  ;;  %v392_v49 = vld [vmem:[%s10830_s16 + $0x38] sm:$0xff]  ;;  %vm3122_vm10 = vcmp.eq.f32.partialorder %v11396_v6, 0.0 }
 0x172   : > { %10168 = vlog2.f32 %v11359_v23  ;;  %v10163_v14 = vpop.eup %10162  ;;  %v3296_v2 = vmul.f32 0.6931472, %v10161_v55  ;;  %v618_v21 = vmax.f32 %v602_v15, 0.0 }
 0x173   : > { %v11387_v50 = vpop.permute.xlu1 %2718  ;;  %2416 = vperm.xlu1 %10130, %v11204_v30   ;;  %10170 = vrcp.f32 %v3212_v63  ;;  %v3220_v30 = vrot.slane %v2310_v47, %v11214_v8  ;;  %v530_v63 = vpop.f32.mrb[3].mxu1  ;;  %v11411_v47 = vmul.f32 %v10159_v36, %v11339_v9  ;;  %v3068_v36 = vrot.slane %v11407_v41, %v11220_v10 }
 0x174   : > { %10172 = vrcp.f32 %v3040_v0  ;;  %v531_v62 = vadd.f32 %v11315_v48, %v530_v63  ;;  %v9655_v46 = vpop.f32.mrb[4].mxu1  ;;  %v10165_v3 = vpop.eup %10164 }
 0x175   : > { %10174 = vlog2.f32 %v11377_v1  ;;  %v540_v59 = vpop.f32.mrb[5].mxu1  ;;  %v546_v24 = vadd.f32 %v9655_v46, %v11315_v48  ;;  %v393_v1 = vld [vmem:[%s10830_s16 + $0x40] sm:$0xff]  ;;  %vm3282_vm11 = vcmp.eq.f32.partialorder %v11411_v47, 0.0 }
 0x176   : > { %10176 = vrcp.f32 %v3208_v35  ;;  %v11402_v32 = vpop.permute.xlu0 %2562  ;;  %v601_v35 = vadd.f32 %v531_v62, %v387_v18  ;;  %v3048_v18 = vrot.slane %v11361_v61, %v11220_v10  ;;  %v9658_v60 = vpop.f32.mrb[6].mxu1 }
 0x177   : > { %15489 = vst [vmem:[#allocation20_spill] sm:$0xff] %v11402_v32  ;;  %v11404_v0 = vpop.permute.xlu1 %2722  ;;  %2426 = vperm.xlu1 %10130, %v11234_v12   ;;  %10178 = vrcp.f32 %v3060_v54  ;;  %v390_v12 = vld [vmem:[%s10830_s16 + $0x28] sm:$0xff]  ;;  %v550_v61 = vpop.f32.mrb[7].mxu1 }
 0x178   : > { %15490 = vst [vmem:[#allocation21_spill] sm:$0xff] %v11404_v0  ;;  %10180 = vlog2.f32 %v11396_v6  ;;  %v617_v57 = vmax.f32 %v601_v35, 0.0  ;;  %v604_v15 = vadd.f32 %v546_v24, %v390_v12  ;;  %v389_v35 = vld [vmem:[%s10830_s16 + $0x20] sm:$0xff]  ;;  %v541_v0 = vadd.f32 %v11315_v48, %v540_v59 }
 0x179   : > { %10182 = vrcp.f32 %v3220_v30  ;;  %v11426_v30 = vmul.f32 %v10163_v14, %v11402_v32  ;;  %v3326_v14 = vsel %vm3278_vm5, 0.0, %v3296_v2  ;;  %v3140_v32 = vmul.f32 0.6931472, %v10165_v3 }
 0x17a   : > { %10184 = vlog2.f32 %v11411_v47  ;;  %9690 = vmatprep.mubr.msk.f32.mxu1 %vm635_vm3, %v617_v57  ;;  %v9661_v57 = vpop.f32.mrb[8].mxu1  ;;  %v603_v3 = vadd.f32 %v541_v0, %v389_v35  ;;  %v391_v35 = vld [vmem:[%s10830_s16 + $0x30] sm:$0xff] }
 0x17b   : > { %v10167_v19 = vpop.eup %10166  ;;  %v11416_v63 = vpop.permute.xlu1 %2890  ;;  %3423 = vrot.lane.b32.xlu1 %v3166_v26, %s10646_s13  ;;  %v11431_v26 = vmul.f32 %v10157_v43, %v11271_v33  ;;  %9691 = vmatmul.mubr.msk.f32.gmra.mrb[18].mxu1 %vm635_vm3, %v618_v21  ;;  %10186 = vrcp.f32 %v3068_v36  ;;  %v3168_v9 = vsel %vm3120_vm9, 0.0, %v3140_v32  ;;  %v15492_v32 = vrot.slane %v11192_v37, 6 }
 0x17c   : > { %v11419_v54 = vpop.permute.xlu0 %2902  ;;  %v10169_v28 = vpop.eup %10168  ;;  %v3138_v62 = vmul.f32 0.6931472, %v10167_v19  ;;  %10188 = vlog2.f32 %v11426_v30  ;;  %v619_v0 = vmax.f32 %v603_v3, 0.0  ;;  %vm3124_vm13 = vcmp.eq.f32.partialorder %v11426_v30, 0.0 }
 0x17d   : > { %v10171_v55 = vpop.eup %10170  ;;  %v3298_v12 = vmul.f32 0.6931472, %v10169_v28  ;;  %v560_v59 = vpop.f32.mrb[9].mxu1  ;;  %v620_v28 = vmax.f32 %v604_v15, 0.0  ;;  %10190 = vlog2.f32 %v11431_v26  ;;  %vm3281_vm14 = vcmp.eq.f32.partialorder %v11431_v26, 0.0 }
 0x17e   : > { %v10173_v46 = vpop.eup %10172  ;;  %v3167_v19 = vsel %vm3119_vm6, 0.0, %v3138_v62  ;;  %v11453_v24 = vmul.f32 %v10171_v55, %v11416_v63  ;;  %v556_v62 = vadd.f32 %v9658_v60, %v11315_v48  ;;  %9693 = vmatprep.mubr.msk.f32.mxu1 %vm635_vm3, %v619_v0  ;;  %v566_v0 = vadd.f32 %v9661_v57, %v11315_v48 }
 0x17f   : > { %v10175_v43 = vpop.eup %10174  ;;  %3487 = vrot.lane.b32.xlu1 %v3326_v14, %s10647_s19  ;;  %3425 = vrot.lane.b32.xlu0 %v3167_v19, %s10646_s13  ;;  %v9664_v14 = vpop.f32.mrb[10].mxu1  ;;  %v3327_v55 = vsel %vm3279_vm8, 0.0, %v3298_v12 }
 0x180   : > { %v11440_v25 = vpop.permute.xlu0 %2910  ;;  %v11445_v2 = vpop.permute.xlu1 %2547  ;;  %v3300_v39 = vmul.f32 0.6931472, %v10175_v43  ;;  %v606_v60 = vadd.f32 %v556_v62, %v392_v49  ;;  %v2298_v43 = vsub.f32 %v11192_v37, %v15492_v32  ;;  %9694 = vmatmul.mubr.msk.f32.gmra.mrb[20].mxu1 %vm635_vm3, %v620_v28  ;;  %v394_v62 = vld [vmem:[%s10830_s16 + $0x48] sm:$0xff]  ;;  %v15493_v32 = vrot.slane %v11135_v4, 6 }
 0x181   : > { %15491 = vst [vmem:[#allocation22_spill] sm:$0xff] %v11445_v2  ;;  %v11450_v21 = vpop.eup %10176  ;;  %v11456_v36 = vmul.f32 %v10173_v46, %v11445_v2  ;;  %v570_v7 = vpop.f32.mrb[11].mxu1  ;;  %v551_v46 = vadd.f32 %v11315_v48, %v550_v61  ;;  %vm3284_vm15 = vcmp.eq.f32.partialorder %v11453_v24, 0.0 }
 0x182   : > { %v10179_v19 = vpop.eup %10178  ;;  %v3328_v61 = vsel %vm3280_vm7, 0.0, %v3300_v39  ;;  %v622_v49 = vmax.f32 %v606_v60, 0.0 }
 0x183   : > { %v10181_v29 = vpop.eup %10180  ;;  %10192 = vlog2.f32 %v11456_v36  ;;  %3427 = vrot.lane.b32.xlu1 %v3168_v9, %s10646_s13  ;;  %3489 = vrot.lane.b32.xlu0 %v3327_v55, %s10647_s19  ;;  %v605_v9 = vadd.f32 %v551_v46, %v391_v35  ;;  %v561_v55 = vadd.f32 %v11315_v48, %v560_v59  ;;  %v2293_v35 = vsub.f32 %v11135_v4, %v15493_v32 }
 0x184   : > { %v11465_v15 = vpop.permute.xlu0 %2918  ;;  %v10183_v2 = vpop.eup %10182  ;;  %10194 = vlog2.f32 %v11453_v24  ;;  %v3144_v3 = vmul.f32 0.6931472, %v10181_v29  ;;  %v11488_v46 = vadd.f32 1e-10, %v2298_v43  ;;  %vm3121_vm12 = vcmp.eq.f32.partialorder %v11456_v36, 0.0 }
 0x185   : > { %v11474_v23 = vpop.permute.xlu1 %2726  ;;  %v10185_v12 = vpop.eup %10184  ;;  %10196 = vrcp.f32 %v3048_v18  ;;  %v621_v37 = vmax.f32 %v605_v9, 0.0  ;;  %v608_v9 = vadd.f32 %v566_v0, %v394_v62  ;;  %v607_v4 = vadd.f32 %v561_v55, %v393_v1 }
 0x186   : > { %v10187_v29 = vpop.eup %10186  ;;  %v3304_v57 = vmul.f32 0.6931472, %v10185_v12  ;;  %v3170_v60 = vsel %vm3122_vm10, 0.0, %v3144_v3  ;;  %v3076_v6 = vrot.slane %v11488_v46, %v11220_v10  ;;  %v576_v0 = vadd.f32 %v9664_v14, %v11315_v48  ;;  %v395_v14 = vld [vmem:[%s10830_s16 + $0x50] sm:$0xff] }
 0x187   : > { %3491 = vrot.lane.b32.xlu1 %v3328_v61, %s10647_s19  ;;  %9696 = vmatprep.mubr.msk.f32.mxu1 %vm635_vm3, %v621_v37  ;;  %v10189_v59 = vpop.eup %10188  ;;  %v624_v47 = vmax.f32 %v608_v9, 0.0 }
 0x188   : > { %v11486_v28 = vpop.permute.xlu0 %2572  ;;  %9697 = vmatmul.mubr.msk.f32.gmra.mrb[22].mxu1 %vm635_vm3, %v622_v49  ;;  %v10191_v43 = vpop.eup %10190  ;;  %v3330_v37 = vsel %vm3282_vm11, 0.0, %v3304_v57  ;;  %v3148_v62 = vmul.f32 0.6931472, %v10189_v59  ;;  %v623_v57 = vmax.f32 %v607_v4, 0.0  ;;  %v396_v59 = vld [vmem:[%s10830_s16 + $0x58] sm:$0xff] }
 0x189   : > { %15494 = vst [vmem:[#allocation23_spill] sm:$0xff] %v11486_v28  ;;  %v11492_v18 = vmul.f32 %v10179_v19, %v11486_v28  ;;  %v11494_v39 = vpop.permute.xlu1 %2730  ;;  %v2309_v19 = vadd.f32 1e-10, %v2293_v35  ;;  %v571_v35 = vadd.f32 %v11315_v48, %v570_v7  ;;  %v3302_v9 = vmul.f32 0.6931472, %v10191_v43 }
 0x18a   : > { %9699 = vmatprep.mubr.msk.f32.mxu1 %vm635_vm3, %v623_v57  ;;  %v610_v4 = vadd.f32 %v576_v0, %v396_v59  ;;  %v11537_v43 = vld [vmem:[%s10968_s14 + $0x28] sm:$0xf] }
 0x18b   : > { %10198 = vlog2.f32 %v11492_v18  ;;  %3431 = vrot.lane.b32.xlu1 %v3170_v60, %s10646_s13  ;;  %v3056_v30 = vrot.slane %v2309_v19, %v11220_v10  ;;  %v3329_v26 = vsel %vm3281_vm14, 0.0, %v3302_v9  ;;  %v15393_v0 = vrot.slane %v11537_v43, 6 }
 0x18c   : > { %v11501_v61 = vpop.permute.xlu0 %2582  ;;  %9700 = vmatmul.mubr.msk.f32.gmra.mrb[24].mxu1 %vm635_vm3, %v624_v47  ;;  %vm3126_vm1 = vcmp.eq.f32.partialorder %v11492_v18, 0.0 }
 0x18d   : > { %15495 = vst [vmem:[#allocation24_spill] sm:$0xff] %v11501_v61  ;;  %v10193_v12 = vpop.eup %10192  ;;  %v11507_v3 = vmul.f32 %v10187_v29, %v11501_v61  ;;  %v11509_v49 = vpop.permute.xlu1 %2898  ;;  %v3228_v29 = vrot.slane %v11407_v41, %v11214_v8  ;;  %v2295_v24 = vsub.f32 %v11537_v43, %v15393_v0 }
 0x18e   : > { %v11513_v55 = vmul.f32 %v10183_v2, %v11509_v49  ;;  %v3142_v32 = vmul.f32 0.6931472, %v10193_v12  ;;  %v10195_v1 = vpop.eup %10194  ;;  %v11525_v2 = vmul.f32 %v11450_v21, %v11329_v38  ;;  %v3216_v12 = vrot.slane %v2309_v19, %v11214_v8 }
 0x18f   : > { %10200 = vlog2.f32 %v11507_v3  ;;  %3495 = vrot.lane.b32.xlu1 %v3330_v37, %s10647_s19  ;;  %v10197_v60 = vpop.eup %10196  ;;  %v3172_v21 = vsel %vm3124_vm13, 0.0, %v3148_v62  ;;  %v3308_v36 = vmul.f32 0.6931472, %v10195_v1  ;;  %vm3128_vm4 = vcmp.eq.f32.partialorder %v11507_v3, 0.0 }
 0x190   : > { %10202 = vrcp.f32 %v3076_v6  ;;  %v3169_v7 = vsel %vm3121_vm12, 0.0, %v3142_v32  ;;  %v609_v6 = vadd.f32 %v571_v35, %v395_v14  ;;  %v626_v32 = vmax.f32 %v610_v4, 0.0 }
 0x191   : > { %10204 = vlog2.f32 %v11513_v55  ;;  %3429 = vrot.lane.b32.xlu0 %v3169_v7, %s10646_s13  ;;  %v3332_v47 = vsel %vm3284_vm15, 0.0, %v3308_v36  ;;  %vm3286_vm2 = vcmp.eq.f32.partialorder %v11513_v55, 0.0  ;;  %v2311_v36 = vadd.f32 1e-10, %v2295_v24 }
 0x192   : > { %v11533_v41 = vpop.permute.xlu1 %2557  ;;  %10206 = vrcp.f32 %v3228_v29  ;;  %v625_v57 = vmax.f32 %v609_v6, 0.0  ;;  %v3236_v3 = vrot.slane %v11488_v46, %v11214_v8  ;;  %vm3283_vm6 = vcmp.eq.f32.partialorder %v11525_v2, 0.0 }
 0x193   : > { %15496 = vst [vmem:[#allocation25_spill] sm:$0xff] %v11533_v41  ;;  %v3098_v37 = vmul.f32 %v10197_v60, %v11533_v41  ;;  %3435 = vrot.lane.b32.xlu1 %v3172_v21, %s10646_s13  ;;  %10208 = vlog2.f32 %v11525_v2  ;;  %v11558_v21 = vpop.permute.xlu0 %2592 }
 0x194   : > { %9702 = vmatprep.mubr.msk.f32.mxu1 %vm635_vm3, %v625_v57  ;;  %15497 = vst [vmem:[#allocation26_spill] sm:$0xff] %v11558_v21 }
 0x195   : > { %v10199_v62 = vpop.eup %10198  ;;  %10210 = vlog2.f32 %v3098_v37  ;;  %3493 = vrot.lane.b32.xlu0 %v3329_v26, %s10647_s19  ;;  %9703 = vmatmul.mubr.msk.f32.gmra.mrb[26].mxu1 %vm635_vm3, %v626_v32  ;;  %vm3123_vm5 = vcmp.eq.f32.partialorder %v3098_v37, 0.0 }
 0x196   : > { %10212 = vrcp.f32 %v3216_v12  ;;  %v3152_v35 = vmul.f32 0.6931472, %v10199_v62 }
 0x197   : > { %v11547_v1 = vpop.permute.xlu1 %2734  ;;  %3499 = vrot.lane.b32.xlu1 %v3332_v47, %s10647_s19  ;;  %10214 = vrcp.f32 %v3056_v30 }
 0x198   : > { %v3174_v59 = vsel %vm3126_vm1, 0.0, %v3152_v35  ;;  %v3224_v35 = vrot.slane %v2311_v36, %v11214_v8 }
 0x199   : > { %v10201_v19 = vpop.eup %10200 }
 0x19a   : > { %v10203_v29 = vpop.eup %10202  ;;  %v3156_v9 = vmul.f32 0.6931472, %v10201_v19 }
 0x19b   : > { %v10205_v14 = vpop.eup %10204  ;;  %v11555_v60 = vpop.permute.xlu1 %2738  ;;  %3439 = vrot.lane.b32.xlu1 %v3174_v59, %s10646_s13  ;;  %v3112_v4 = vmul.f32 %v10203_v29, %v11558_v21  ;;  %v11575_v59 = vld [vmem:[%s10968_s14 + $0x30] sm:$0xf] }
 0x19c   : > { %v3312_v7 = vmul.f32 0.6931472, %v10205_v14  ;;  %v10207_v12 = vpop.eup %10206  ;;  %v3176_v47 = vsel %vm3128_vm4, 0.0, %v3156_v9  ;;  %v15392_v9 = vrot.slane %v11575_v59, 6 }
 0x19d   : > { %v10209_v18 = vpop.eup %10208  ;;  %10216 = vlog2.f32 %v3112_v4  ;;  %vm3130_vm8 = vcmp.eq.f32.partialorder %v3112_v4, 0.0 }
 0x19e   : > { %v3334_v6 = vsel %vm3286_vm2, 0.0, %v3312_v7  ;;  %v3306_v29 = vmul.f32 0.6931472, %v10209_v18  ;;  %v3064_v7 = vrot.slane %v2311_v36, %v11220_v10 }
 0x19f   : > { %v10211_v30 = vpop.eup %10210  ;;  %v11563_v26 = vpop.permute.xlu1 %2906  ;;  %3503 = vrot.lane.b32.xlu1 %v3334_v6, %s10647_s19  ;;  %v11589_v6 = vld [vmem:[%s10968_s14 + $0x38] sm:$0xf] }
 0x1a0   : > { %v10213_v32 = vpop.eup %10212  ;;  %v3268_v57 = vmul.f32 %v10207_v12, %v11563_v26  ;;  %v3146_v62 = vmul.f32 0.6931472, %v10211_v30  ;;  %v3331_v14 = vsel %vm3283_vm6, 0.0, %v3306_v29  ;;  %v2297_v12 = vsub.f32 %v11575_v59, %v15392_v9 }
 0x1a1   : > { %v10215_v55 = vpop.eup %10214  ;;  %v3262_v24 = vmul.f32 %v10213_v32, %v11381_v31 }
 0x1a2   : > { %v3171_v19 = vsel %vm3123_vm5, 0.0, %v3146_v62  ;;  %10218 = vlog2.f32 %v3268_v57  ;;  %v2313_v62 = vadd.f32 1e-10, %v2297_v12  ;;  %vm3288_vm7 = vcmp.eq.f32.partialorder %v3268_v57, 0.0 }
 0x1a3   : > { %3433 = vrot.lane.b32.xlu0 %v3171_v19, %s10646_s13  ;;  %3443 = vrot.lane.b32.xlu1 %v3176_v47, %s10646_s13  ;;  %10220 = vrcp.f32 %v3236_v3  ;;  %vm3285_vm10 = vcmp.eq.f32.partialorder %v3262_v24, 0.0 }
 0x1a4   : > { %v11577_v37 = vpop.permute.xlu1 %2567  ;;  %10222 = vrcp.f32 %v3224_v35  ;;  %v15395_v35 = vrot.slane %v11589_v6, 6  ;;  %v3232_v0 = vrot.slane %v2313_v62, %v11214_v8 }
 0x1a5   : > { %15498 = vst [vmem:[#allocation27_spill] sm:$0xff] %v11577_v37  ;;  %v3102_v46 = vmul.f32 %v10215_v55, %v11577_v37  ;;  %10224 = vlog2.f32 %v3262_v24 }
 0x1a6   : > { %v2299_v4 = vsub.f32 %v11589_v6, %v15395_v35 }
 0x1a7   : > { %3497 = vrot.lane.b32.xlu0 %v3331_v14, %s10647_s19  ;;  %10226 = vlog2.f32 %v3102_v46  ;;  %v10217_v18 = vpop.eup %10216  ;;  %vm3125_vm9 = vcmp.eq.f32.partialorder %v3102_v46, 0.0 }
 0x1a8   : > { %10228 = vrcp.f32 %v3064_v7  ;;  %v3160_v3 = vmul.f32 0.6931472, %v10217_v18 }
 0x1a9   : > { %v11583_v2 = vpop.permute.xlu1 %2742 }
 0x1aa   : > { %v3178_v12 = vsel %vm3130_vm8, 0.0, %v3160_v3 }
 0x1ac   : > { %v10219_v32 = vpop.eup %10218 }
 0x1ad   : > { %v11591_v30 = vpop.permute.xlu1 %2746  ;;  %v10221_v36 = vpop.eup %10220  ;;  %v3316_v47 = vmul.f32 0.6931472, %v10219_v32 }
 0x1ae   : > { %v10223_v55 = vpop.eup %10222 }
 0x1af   : > { %v10225_v19 = vpop.eup %10224  ;;  %v3336_v29 = vsel %vm3288_vm7, 0.0, %v3316_v47  ;;  %v11600_v18 = vmul.f32 %v10223_v55, %v11419_v54  ;;  %v2315_v55 = vadd.f32 1e-10, %v2299_v4 }
 0x1b0   : > { %3507 = vrot.lane.b32.xlu1 %v3336_v29, %s10647_s19  ;;  %v3310_v47 = vmul.f32 0.6931472, %v10225_v19  ;;  %v3072_v29 = vrot.slane %v2313_v62, %v11220_v10 }
 0x1b1   : > { %v11594_v14 = vpop.permute.xlu1 %2914  ;;  %v10227_v7 = vpop.eup %10226  ;;  %vm3287_vm13 = vcmp.eq.f32.partialorder %v11600_v18, 0.0 }
 0x1b2   : > { %v3272_v9 = vmul.f32 %v10221_v36, %v11594_v14  ;;  %v3150_v28 = vmul.f32 0.6931472, %v10227_v7  ;;  %v10229_v32 = vpop.eup %10228  ;;  %v3333_v46 = vsel %vm3285_vm10, 0.0, %v3310_v47  ;;  %v11613_v7 = vld [vmem:[%s10968_s14 + $0x3c] sm:$0xf]  ;;  %s10660_s14 = smov 112  }
 0x1b3   : > { %v15397_v24 = vrot.slane %v11613_v7, 6 }
 0x1b4   : > { %10230 = vlog2.f32 %v3272_v9  ;;  %v3173_v57 = vsel %vm3125_vm9, 0.0, %v3150_v28  ;;  %3447 = vrot.lane.b32.xlu1 %v3178_v12, %s10646_s13  ;;  %v3080_v28 = vrot.slane %v2315_v55, %v11220_v10  ;;  %vm3290_vm11 = vcmp.eq.f32.partialorder %v3272_v9, 0.0 }
 0x1b5   : > { %3437 = vrot.lane.b32.xlu0 %v3173_v57, %s10646_s13  ;;  %10232 = vrcp.f32 %v3232_v0  ;;  %v3240_v0 = vrot.slane %v2315_v55, %v11214_v8  ;;  %v2300_v4 = vsub.f32 %v11613_v7, %v15397_v24  ;;  %v11630_v55 = vmul.f32 0.5, %v11017_v17 }
 0x1b6   : > { %v11606_v36 = vpop.permute.xlu1 %2577  ;;  %10234 = vlog2.f32 %v11600_v18 }
 0x1b7   : > { %15499 = vst [vmem:[#allocation28_spill] sm:$0xff] %v11606_v36  ;;  %v3106_v3 = vmul.f32 %v10229_v32, %v11606_v36  ;;  %v2316_v36 = vadd.f32 1e-10, %v2300_v4 }
 0x1b9   : > { %10236 = vlog2.f32 %v3106_v3  ;;  %3501 = vrot.lane.b32.xlu0 %v3333_v46, %s10647_s19  ;;  %v11627_v46 = vmul.f32 0.5, %v10993_v52  ;;  %vm3127_vm12 = vcmp.eq.f32.partialorder %v3106_v3, 0.0  ;;  %v11652_v3 = vmul.f32 0.5, %v11029_v22 }
 0x1ba   : > { %10238 = vrcp.f32 %v3072_v29 }
 0x1bb   : > { %v11617_v19 = vpop.permute.xlu1 %2750  ;;  %10240 = vrcp.f32 %v3080_v28  ;;  %v2768_v52 = vrot.slane %v11627_v46, %v11214_v8 }
 0x1bc   : > { %10242 = vrcp.f32 %v3240_v0 }
 0x1bd   : > { %10244 = vrcp.f32 %v11222_v53  ;;  %v11648_v53 = vmul.f32 0.5, %v10981_v44  ;;  %v2829_v44 = vsub.f32 %v11237_v16, %v2768_v52  ;;  %v2780_v16 = vrot.slane %v11652_v3, %v11214_v8 }
 0x1be   : > { %v10231_v12 = vpop.eup %10230  ;;  %10246 = vrcp.f32 %v11249_v51  ;;  %v11686_v52 = vmul.f32 0.5, %v11077_v45  ;;  %v11704_v45 = vmul.f32 0.5, %v11160_v58 }
 0x1bf   : > { %v11621_v32 = vpop.permute.xlu1 %2754  ;;  %v3320_v62 = vmul.f32 0.6931472, %v10231_v12  ;;  %v10233_v57 = vpop.eup %10232  ;;  %10248 = vrcp.f32 %v11230_v56  ;;  %v2772_v56 = vrot.slane %v11648_v53, %v11214_v8 }
 0x1c0   : > { %v10235_v47 = vpop.eup %10234  ;;  %v11635_v12 = vpop.permute.xlu0 %2351  ;;  %v11641_v0 = vmul.f32 %v10233_v57, %v11440_v25  ;;  %v3244_v57 = vrot.slane %v2316_v36, %v11214_v8 }
 0x1c1   : > { %v3338_v35 = vsel %vm3290_vm11, 0.0, %v3320_v62  ;;  %v3314_v62 = vmul.f32 0.6931472, %v10235_v47  ;;  %v11659_v47 = vmul.f32 0.5, %v11063_v5 }
 0x1c2   : > { %3511 = vrot.lane.b32.xlu1 %v3338_v35, %s10647_s19  ;;  %v2776_v35 = vrot.slane %v11630_v55, %v11214_v8  ;;  %10250 = vlog2.f32 %v11641_v0  ;;  %vm3289_vm15 = vcmp.eq.f32.partialorder %v11641_v0, 0.0 }
 0x1c3   : > { %v10237_v29 = vpop.eup %10236  ;;  %v11633_v28 = vpop.permute.xlu1 %2922  ;;  %15501 = vst [vmem:[#allocation30_spill] sm:$0xff] %v11659_v47  ;;  %v3335_v22 = vsel %vm3287_vm13, 0.0, %v3314_v62  ;;  %v11689_v62 = vmul.f32 0.5, %v11114_v27  ;;  %v2830_v27 = vsub.f32 %v11232_v20, %v2772_v56 }
 0x1c4   : > { %v3154_v24 = vmul.f32 0.6931472, %v10237_v29  ;;  %v10239_v9 = vpop.eup %10238  ;;  %v11666_v51 = vpop.permute.xlu0 %2597  ;;  %v3084_v29 = vrot.slane %v2316_v36, %v11220_v10 }
 0x1c5   : > { %v10241_v4 = vpop.eup %10240  ;;  %15502 = vst [vmem:[#allocation31_spill] sm:$0xff] %v11666_v51  ;;  %15504 = vst [vmem:[#allocation32_spill] sm:$0xff] %v11689_v62 }
 0x1c6   : > { %v3175_v17 = vsel %vm3127_vm12, 0.0, %v3154_v24  ;;  %v11671_v37 = vmul.f32 %v10241_v4, %v11666_v51  ;;  %v10243_v5 = vpop.eup %10242  ;;  %v2845_v4 = vand.u32 2147483647, %v2829_v44 }
 0x1c7   : > { %3441 = vrot.lane.b32.xlu0 %v3175_v17, %s10646_s13  ;;  %v2831_v17 = vsub.f32 %v11290_v34, %v2776_v35  ;;  %v2784_v34 = vrot.slane %v11659_v47, %v11214_v8 }
 0x1c8   : > { %v11655_v24 = vpop.permute.xlu1 %2587  ;;  %vm3131_vm1 = vcmp.eq.f32.partialorder %v11671_v37, 0.0 }
 0x1c9   : > { %15500 = vst [vmem:[#allocation29_spill] sm:$0xff] %v11655_v24  ;;  %v11662_v18 = vmul.f32 %v10239_v9, %v11655_v24  ;;  %v15503_v9 = vrot.slane %v11537_v43, 6 }
 0x1cb   : > { %10252 = vlog2.f32 %v11662_v18  ;;  %3505 = vrot.lane.b32.xlu0 %v3335_v22, %s10647_s19  ;;  %v2327_v36 = vadd.f32 %v15503_v9, %v11537_v43  ;;  %v11694_v22 = vmul.f32 0.5, %v11126_v42  ;;  %v11697_v43 = vmul.f32 0.5, %v11151_v40 }
 0x1cc   : > { %10254 = vrcp.f32 %v3244_v57  ;;  %v2847_v57 = vand.u32 2147483647, %v2831_v17  ;;  %v11700_v9 = vmul.f32 %v10243_v5, %v11465_v15  ;;  %v11711_v40 = vmul.f32 0.5, %v11182_v11 }
 0x1cd   : > { %10256 = vrcp.f32 %v11271_v33  ;;  %v11691_v35 = vpop.permute.xlu1 %2758  ;;  %15505 = vst [vmem:[#allocation33_spill] sm:$0xff] %v11697_v43  ;;  %v10245_v33 = vpop.eup %10244  ;;  %v11708_v42 = vmul.f32 0.5, %v2327_v36  ;;  %v15507_v17 = vrot.slane %v11575_v59, 6  ;;  %v2833_v11 = vsub.f32 %v11387_v50, %v2784_v34 }
 0x1ce   : > { %10258 = vrcp.f32 %v3084_v29  ;;  %v2792_v29 = vrot.slane %v11689_v62, %v11214_v8  ;;  %v10247_v20 = vpop.eup %10246  ;;  %v11722_v56 = vmul.f32 %v10245_v33, %v2845_v4  ;;  %v2846_v33 = vand.u32 2147483647, %v2830_v27 }
 0x1cf   : > { %10260 = vlog2.f32 %v11671_v37  ;;  %15506 = vst [vmem:[#allocation34_spill] sm:$0xff] %v11708_v42  ;;  %v2329_v58 = vadd.f32 %v15507_v17, %v11575_v59  ;;  %v10249_v36 = vpop.eup %10248  ;;  %v11728_v44 = vmul.f32 %v10247_v20, %v2847_v57  ;;  %v2800_v59 = vrot.slane %v11697_v43, %v11214_v8  ;;  %v15510_v43 = vld [vmem:[#allocation11_spill] sm:$0xff] }
 0x1d0   : > { %10262 = vrcp.f32 %v11242_v13  ;;  %v10251_v4 = vpop.eup %10250  ;;  %v2808_v50 = vrot.slane %v11708_v42, %v11214_v8  ;;  %v15509_v13 = vrot.slane %v11589_v6, 6  ;;  %v11747_v27 = vmul.f32 0.5, %v15510_v43  ;;  %v397_v43 = vld [vmem:[%s10830_s16 + $0x60] sm:$0xff] }
 0x1d1   : > { %v11720_v5 = vpop.permute.xlu1 %2762  ;;  %10264 = vrcp.f32 %v11329_v38  ;;  %v15508_v38 = vld [vmem:[#allocation16_spill] sm:$0xff]  ;;  %v11741_v20 = vmul.f32 0.5, %v2329_v58  ;;  %v2849_v42 = vand.u32 2147483647, %v2833_v11  ;;  %v9667_v58 = vpop.f32.mrb[12].mxu1  ;;  %v2835_v62 = vsub.f32 %v11474_v23, %v2792_v29  ;;  %v15511_v29 = vld [vmem:[#allocation17_spill] sm:$0xff] }
 0x1d2   : > { %10266 = vlog2.f32 %v11700_v9  ;;  %v2832_v21 = vsub.f32 %v15508_v38, %v2780_v16  ;;  %v2331_v17 = vadd.f32 %v15509_v13, %v11589_v6  ;;  %v11749_v38 = vmul.f32 %v10249_v36, %v2846_v33  ;;  %v580_v13 = vpop.f32.mrb[13].mxu1 }
 0x1d3   : > { %10268 = vrcp.f32 %v11381_v31  ;;  %v398_v31 = vld [vmem:[%s10830_s16 + $0x68] sm:$0xff]  ;;  %vm3129_vm14 = vcmp.eq.f32.partialorder %v11662_v18, 0.0  ;;  %v586_v6 = vadd.f32 %v9667_v58, %v11315_v48  ;;  %v3318_v11 = vmul.f32 0.6931472, %v10251_v4 }
 0x1d4   : > { %10270 = vlog2.f32 %v11722_v56  ;;  %v2848_v33 = vand.u32 2147483647, %v2832_v21  ;;  %v581_v24 = vadd.f32 %v11315_v48, %v580_v13  ;;  %v15514_v37 = vrot.slane %v11613_v7, 6 }
 0x1d5   : > { %v10253_v57 = vpop.eup %10252  ;;  %10272 = vlog2.f32 %v11728_v44  ;;  %v612_v23 = vadd.f32 %v586_v6, %v398_v31  ;;  %v3337_v0 = vsel %vm3289_vm15, 0.0, %v3318_v11  ;;  %vm3291_vm2 = vcmp.eq.f32.partialorder %v11700_v9, 0.0 }
 0x1d6   : > { %v10255_v16 = vpop.eup %10254  ;;  %v11752_v34 = vpop.permute.xlu1 %2356  ;;  %v3158_v61 = vmul.f32 0.6931472, %v10253_v57  ;;  %10274 = vrcp.f32 %v11419_v54  ;;  %v611_v48 = vadd.f32 %v581_v24, %v397_v43  ;;  %v2851_v54 = vand.u32 2147483647, %v2835_v62  ;;  %v15513_v24 = vld [vmem:[#allocation21_spill] sm:$0xff] }
 0x1d7   : > { %v10257_v41 = vpop.eup %10256  ;;  %v11763_v47 = vmul.f32 %v10255_v16, %v11633_v28  ;;  %10276 = vrcp.f32 %v15511_v29  ;;  %v2816_v62 = vrot.slane %v11741_v20, %v11214_v8  ;;  %vm2957_vm4 = vcmp.eq.f32.partialorder %v11722_v56, 0.0 }
 0x1d8   : > { %v10259_v36 = vpop.eup %10258  ;;  %v3177_v51 = vsel %vm3129_vm14, 0.0, %v3158_v61  ;;  %v11768_v58 = vmul.f32 %v10257_v41, %v2849_v42  ;;  %v2837_v61 = vsub.f32 %v11547_v1, %v2800_v59  ;;  %10278 = vrcp.f32 %v11416_v63 }
 0x1d9   : > { %v10261_v57 = vpop.eup %10260  ;;  %3445 = vrot.lane.b32.xlu0 %v3177_v51, %s10646_s13  ;;  %v628_v51 = vmax.f32 %v612_v23, 0.0  ;;  %10280 = vrcp.f32 %v11440_v25  ;;  %v627_v6 = vmax.f32 %v611_v48, 0.0  ;;  %v15512_v1 = vrot.slane %v11686_v52, %v11214_v8 }
 0x1da   : > { %v10263_v18 = vpop.eup %10262  ;;  %v11771_v21 = vpop.permute.xlu1 %2602  ;;  %v3162_v31 = vmul.f32 0.6931472, %v10261_v57  ;;  %10282 = vlog2.f32 %v11763_v47  ;;  %v2853_v63 = vand.u32 2147483647, %v2837_v61  ;;  %v2839_v25 = vsub.f32 %v11583_v2, %v2808_v50 }
 0x1db   : > { %v11775_v4 = vmul.f32 %v10259_v36, %v11771_v21  ;;  %v10265_v16 = vpop.eup %10264  ;;  %v11778_v42 = vmul.f32 %v10263_v18, %v2848_v33  ;;  %v2834_v59 = vsub.f32 %v15513_v24, %v15512_v1  ;;  %9705 = vmatprep.mubr.msk.f32.mxu1 %vm635_vm3, %v627_v6  ;;  %v11795_v36 = vmul.f32 0.5, %v2331_v17  ;;  %v399_v6 = vld [vmem:[%s10830_s16 + $0x70] sm:$0xff] }
 0x1dc   : > { %v10267_v41 = vpop.eup %10266  ;;  %v11793_v13 = vmul.f32 %v10265_v16, %v2851_v54  ;;  %v2332_v33 = vadd.f32 %v15514_v37, %v11613_v7  ;;  %9706 = vmatmul.mubr.msk.f32.gmra.mrb[28].mxu1 %vm635_vm3, %v628_v51  ;;  %v2820_v50 = vrot.slane %v11747_v27, %v11214_v8  ;;  %v3179_v11 = vsel %vm3131_vm1, 0.0, %v3162_v31  ;;  %v400_v54 = vld [vmem:[%s10830_s16 + $0x78] sm:$0xff]  ;;  %v9670_v51 = vpop.f32.mrb[14].mxu1  ;;  %v10520_v31 = vld [vmem:[%s15372_s5 + $0x60] ss:$0 sm:$0xff]  ;;  %s10648_s16 = smov 8  }
 0x1dd   : > { %3509 = vrot.lane.b32.xlu0 %v3337_v0, %s10647_s19  ;;  %10284 = vlog2.f32 %v11775_v4  ;;  %v10269_v43 = vpop.eup %10268  ;;  %v3322_v57 = vmul.f32 0.6931472, %v10267_v41  ;;  %v2850_v17 = vand.u32 2147483647, %v2834_v59  ;;  %v15515_v18 = vrot.slane %v11694_v22, %v11214_v8  ;;  %v590_v41 = vpop.f32.mrb[15].mxu1 }
 0x1de   : > { %10286 = vlog2.f32 %v11768_v58  ;;  %v10271_v2 = vpop.eup %10270  ;;  %v11812_v29 = vmul.f32 %v10269_v43, %v2853_v63  ;;  %v2855_v61 = vand.u32 2147483647, %v2839_v25  ;;  %v2841_v48 = vsub.f32 %v11617_v19, %v2816_v62  ;;  %v11826_v19 = vpop.permute.xlu1 %2366 }
 0x1df   : > { %10288 = vlog2.f32 %v11749_v38  ;;  %v10273_v23 = vpop.eup %10272  ;;  %v2836_v7 = vsub.f32 %v11494_v39, %v15515_v18  ;;  %v2824_v0 = vrot.slane %v11795_v36, %v11214_v8  ;;  %v11819_v39 = vmul.f32 0.5, %v2332_v33 }
 0x1e0   : > { %10290 = vlog2.f32 %v11778_v42  ;;  %v10275_v16 = vpop.eup %10274  ;;  %v3339_v24 = vsel %vm3291_vm2, 0.0, %v3322_v57  ;;  %v2974_v59 = vmul.f32 0.6931472, %v10271_v2  ;;  %v591_v63 = vadd.f32 %v10520_v31, %v590_v41 }
 0x1e1   : > { %3449 = vrot.lane.b32.xlu0 %v3179_v11, %s10646_s13  ;;  %10292 = vrcp.f32 %v11509_v49  ;;  %v596_v49 = vadd.f32 %v10520_v31, %v9670_v51  ;;  %v10277_v1 = vpop.eup %10276  ;;  %v2852_v43 = vand.u32 2147483647, %v2836_v7  ;;  %v15516_v37 = vrot.slane %v11704_v45, %v11214_v8  ;;  %v11840_v51 = vpop.permute.xlu0 %2361 }
 0x1e2   : > { %10294 = vlog2.f32 %v11793_v13  ;;  %v10279_v25 = vpop.eup %10278  ;;  %v11830_v62 = vmul.f32 %v10277_v1, %v2850_v17  ;;  %v11838_v18 = vmul.f32 %v10275_v16, %v2855_v61  ;;  %v2857_v9 = vand.u32 2147483647, %v2841_v48 }
 0x1e3   : > { %10296 = vrcp.f32 %v11465_v15  ;;  %v2838_v33 = vsub.f32 %v11555_v60, %v15516_v37  ;;  %v614_v11 = vadd.f32 %v596_v49, %v400_v54  ;;  %v10281_v15 = vpop.eup %10280  ;;  %v613_v2 = vadd.f32 %v591_v63, %v399_v6  ;;  %v11857_v6 = vpop.permute.xlu1 %2376 }
 0x1e4   : > { %10298 = vlog2.f32 %v11812_v29  ;;  %v10283_v57 = vpop.eup %10282  ;;  %v2843_v17 = vsub.f32 %v11691_v35, %v2824_v0  ;;  %v3005_v31 = vsel %vm2957_vm4, 0.0, %v2974_v59  ;;  %vm2959_vm5 = vcmp.eq.f32.partialorder %v11728_v44, 0.0 }
 0x1e5   : > { %3513 = vrot.lane.b32.xlu0 %v3339_v24, %s10647_s19  ;;  %10300 = vrcp.f32 %v11563_v26  ;;  %v630_v60 = vmax.f32 %v614_v11, 0.0  ;;  %v2978_v54 = vmul.f32 0.6931472, %v10273_v23  ;;  %v629_v49 = vmax.f32 %v613_v2, 0.0  ;;  %v11869_v37 = vpop.permute.xlu0 %2371 }
 0x1e6   : > { %10302 = vlog2.f32 %v11830_v62  ;;  %v11847_v48 = vmul.f32 %v10279_v25, %v2852_v43  ;;  %v2854_v16 = vand.u32 2147483647, %v2838_v33  ;;  %v15517_v56 = vrot.slane %v11711_v40, %v11214_v8 }
 0x1e7   : > { %v10285_v7 = vpop.eup %10284  ;;  %10304 = vlog2.f32 %v11838_v18  ;;  %v11855_v23 = vmul.f32 %v10281_v15, %v2857_v9  ;;  %vm3132_vm6 = vcmp.eq.f32.partialorder %v11775_v4, 0.0  ;;  %9708 = vmatprep.mubr.msk.f32.mxu1 %vm635_vm3, %v629_v49  ;;  %v2859_v1 = vand.u32 2147483647, %v2843_v17  ;;  %v11884_v17 = vpop.permute.xlu1 %2386 }
 0x1e8   : > { %v10287_v61 = vpop.eup %10286  ;;  %v3164_v26 = vmul.f32 0.6931472, %v10285_v7  ;;  %v2840_v0 = vsub.f32 %v11591_v30, %v15517_v56  ;;  %10306 = vrcp.f32 %v11594_v14  ;;  %v3324_v59 = vmul.f32 0.6931472, %v10283_v57  ;;  %9709 = vmatmul.mubr.msk.f32.gmra.mrb[30].mxu1 %vm635_vm3, %v630_v60 }
 0x1e9   : > { %3357 = vrot.lane.b32.xlu0 %v3005_v31, %s10648_s16  ;;  %v10289_v35 = vpop.eup %10288  ;;  %v3007_v30 = vsel %vm2959_vm5, 0.0, %v2978_v54  ;;  %v2982_v25 = vmul.f32 0.6931472, %v10287_v61  ;;  %10308 = vlog2.f32 %v11847_v48  ;;  %v2828_v14 = vrot.slane %v11819_v39, %v11214_v8 }
 0x1ea   : > { %v10291_v41 = vpop.eup %10290  ;;  %v3180_v24 = vsel %vm3132_vm6, 0.0, %v3164_v26  ;;  %v2976_v33 = vmul.f32 0.6931472, %v10289_v35  ;;  %v2856_v15 = vand.u32 2147483647, %v2840_v0  ;;  %10310 = vlog2.f32 %v11855_v23 }
 0x1eb   : > { %v10293_v63 = vpop.eup %10292  ;;  %3451 = vrot.lane.b32.xlu1 %v3180_v24, %s10646_s13  ;;  %v2842_v44 = vsub.f32 %v11621_v32, %v2820_v50  ;;  %vm3292_vm7 = vcmp.eq.f32.partialorder %v11763_v47, 0.0  ;;  %10312 = vrcp.f32 %v11633_v28  ;;  %vm2961_vm8 = vcmp.eq.f32.partialorder %v11768_v58, 0.0  ;;  %v11893_v58 = vpop.permute.xlu0 %2381  ;;  %s10567_s13 = scalar_lea.vmem %s15325_s15, 16 }
 0x1ec   : > { %v10295_v43 = vpop.eup %10294  ;;  %v11867_v4 = vmul.f32 %v10293_v63, %v2854_v16  ;;  %v3340_v2 = vsel %vm3292_vm7, 0.0, %v3324_v59  ;;  %v3009_v60 = vsel %vm2961_vm8, 0.0, %v2982_v25  ;;  %vm2958_vm9 = vcmp.eq.f32.partialorder %v11749_v38, 0.0  ;;  %v11900_v35 = vpop.permute.xlu1 %2396  ;;  %p10568_p12 = scmp.ne.s32.totalorder %s15325_s15, %s10567_s13 }
 0x1ed   : > { %3361 = vrot.lane.b32.xlu0 %v3007_v30, %s10648_s16  ;;  %v10297_v11 = vpop.eup %10296  ;;  %v2986_v7 = vmul.f32 0.6931472, %v10295_v43  ;;  %v2858_v32 = vand.u32 2147483647, %v2842_v44  ;;  %v2844_v28 = vsub.f32 %v11720_v5, %v2828_v14  ;;  %v3006_v50 = vsel %vm2958_vm9, 0.0, %v2976_v33 }
 0x1ee   : > { %v11881_v9 = vmul.f32 %v10297_v11, %v2859_v1  ;;  %v10299_v57 = vpop.eup %10298  ;;  %10314 = vlog2.f32 %v11867_v4  ;;  %vm2963_vm10 = vcmp.eq.f32.partialorder %v11793_v13, 0.0  ;;  %v2980_v54 = vmul.f32 0.6931472, %v10291_v41  ;;  %p10569_p9 = pnand %p10568_p12, %p15725_p8 }
 0x1ef   : > { %3515 = vrot.lane.b32.xlu1 %v3340_v2, %s10647_s19  ;;  %v10301_v31 = vpop.eup %10300  ;;  %v3011_v38 = vsel %vm2963_vm10, 0.0, %v2986_v7  ;;  %v2990_v61 = vmul.f32 0.6931472, %v10299_v57  ;;  %v2860_v26 = vand.u32 2147483647, %v2844_v28  ;;  %vm2960_vm11 = vcmp.eq.f32.partialorder %v11778_v42, 0.0  ;;  %v11905_v63 = vpop.permute.xlu0 %2391 }
 0x1f0   : > { %v11890_v8 = vmul.f32 %v10301_v31, %v2856_v15  ;;  %v10303_v47 = vpop.eup %10302  ;;  %10316 = vlog2.f32 %v11881_v9  ;;  %v3008_v0 = vsel %vm2960_vm11, 0.0, %v2980_v54  ;;  %vm2965_vm12 = vcmp.eq.f32.partialorder %v11812_v29, 0.0  ;;  %v11910_v43 = vpop.permute.xlu1 %2406  ;;  %p10570_p10 = pneg %p10569_p9  ;;  %s10663_s19 = smov [#allocation7]  }
 0x1f1   : > { %3365 = vrot.lane.b32.xlu0 %v3009_v60, %s10648_s16  ;;  %v10305_v49 = vpop.eup %10304  ;;  %v2984_v13 = vmul.f32 0.6931472, %v10303_v47  ;;  %v3013_v1 = vsel %vm2965_vm12, 0.0, %v2990_v61  ;;  %vm2962_vm13 = vcmp.eq.f32.partialorder %v11830_v62, 0.0  ;;  %vm2967_vm14 = vcmp.eq.f32.partialorder %v11838_v18, 0.0 }
 0x1f2   : > { %v10307_v16 = vpop.eup %10306  ;;  %10318 = vlog2.f32 %v11890_v8  ;;  %v2994_v24 = vmul.f32 0.6931472, %v10305_v49  ;;  %vm2964_vm15 = vcmp.eq.f32.partialorder %v11847_v48, 0.0  ;;  %vm2969_vm1 = vcmp.eq.f32.partialorder %v11855_v23, 0.0 }
 0x1f3   : > { %3359 = vrot.lane.b32.xlu1 %v3006_v50, %s10648_s16  ;;  %v2952_v5 = vmul.f32 %v10307_v16, %v2858_v32  ;;  %v10309_v56 = vpop.eup %10308  ;;  %v3010_v42 = vsel %vm2962_vm13, 0.0, %v2984_v13  ;;  %v11915_v15 = vpop.permute.xlu0 %2401  ;;  %vm2966_vm2 = vcmp.eq.f32.partialorder %v11867_v4, 0.0  ;;  %vm2971_vm4 = vcmp.eq.f32.partialorder %v11881_v9, 0.0 }
 0x1f4   : > { %v10311_v41 = vpop.eup %10310  ;;  %v2988_v25 = vmul.f32 0.6931472, %v10309_v56  ;;  %v3015_v14 = vsel %vm2967_vm14, 0.0, %v2994_v24  ;;  %v11920_v60 = vpop.permute.xlu1 %2416  ;;  %vm2968_vm5 = vcmp.eq.f32.partialorder %v11890_v8, 0.0  ;;  %vm15459_vm9 = vcmask 64512  }
 0x1f5   : > { %3369 = vrot.lane.b32.xlu0 %v3011_v38, %s10648_s16  ;;  %v10313_v59 = vpop.eup %10312  ;;  %10320 = vlog2.f32 %v2952_v5  ;;  %v2998_v33 = vmul.f32 0.6931472, %v10311_v41  ;;  %vm2970_vm6 = vcmp.eq.f32.partialorder %v2952_v5, 0.0  ;;  %vm3550_vm10 = vcmask 130048  }
 0x1f6   : > { %v2956_v30 = vmul.f32 %v10313_v59, %v2860_v26  ;;  %v3012_v62 = vsel %vm2964_vm15, 0.0, %v2988_v25  ;;  %vm3567_vm11 = vcmask 195584  }
 0x1f7   : > { %3363 = vrot.lane.b32.xlu1 %v3008_v0, %s10648_s16  ;;  %v3017_v2 = vsel %vm2969_vm1, 0.0, %v2998_v33  ;;  %v11925_v32 = vpop.permute.xlu0 %2411  ;;  %v2432_v33 = vrot.slane %v11627_v46, %v11220_v10 }
 0x1f8   : > { %v10315_v29 = vpop.eup %10314  ;;  %10322 = vlog2.f32 %v2956_v30  ;;  %v11929_v54 = vpop.permute.xlu1 %2426  ;;  %vm2972_vm7 = vcmp.eq.f32.partialorder %v2956_v30, 0.0 }
 0x1f9   : > { %3373 = vrot.lane.b32.xlu0 %v3013_v1, %s10648_s16  ;;  %v2992_v18 = vmul.f32 0.6931472, %v10315_v29 }
 0x1fa   : > { %v10317_v11 = vpop.eup %10316 }
 0x1fb   : > { %3367 = vrot.lane.b32.xlu1 %v3010_v42, %s10648_s16  ;;  %v3002_v57 = vmul.f32 0.6931472, %v10317_v11  ;;  %v3014_v7 = vsel %vm2966_vm2, 0.0, %v2992_v18  ;;  %v11932_v4 = vpop.permute.xlu0 %2421  ;;  %v15518_v11 = vld [vmem:[#allocation14_spill] sm:$0xff] }
 0x1fc   : > { %v10319_v44 = vpop.eup %10318  ;;  %v11935_v38 = vpop.permute.xlu1 %3423  ;;  %10324 = vrcp.f32 %v15518_v11 }
 0x1fd   : > { %3377 = vrot.lane.b32.xlu0 %v3015_v14, %s10648_s16  ;;  %v2996_v48 = vmul.f32 0.6931472, %v10319_v44  ;;  %v3019_v23 = vsel %vm2971_vm4, 0.0, %v3002_v57  ;;  %v15520_v57 = vld [vmem:[#allocation19_spill] sm:$0xff] }
 0x1fe   : > { %10326 = vrcp.f32 %v15520_v57  ;;  %v15528_v57 = vld [vmem:[#allocation30_spill] sm:$0xff] }
 0x1ff   : > { %3371 = vrot.lane.b32.xlu1 %v3012_v62, %s10648_s16  ;;  %v10321_v31 = vpop.eup %10320  ;;  %v3016_v28 = vsel %vm2968_vm5, 0.0, %v2996_v48  ;;  %v11937_v61 = vpop.permute.xlu0 %3421  ;;  %v2493_v62 = vsub.f32 %v11635_v12, %v2432_v33 }
 0x200   : > { %v3000_v47 = vmul.f32 0.6931472, %v10321_v31  ;;  %v11940_v16 = vpop.permute.xlu1 %3487 }
 0x201   : > { %3381 = vrot.lane.b32.xlu0 %v3017_v2, %s10648_s16  ;;  %v2440_v2 = vrot.slane %v11630_v55, %v11220_v10 }
 0x202   : > { %v10323_v50 = vpop.eup %10322  ;;  %v3018_v9 = vsel %vm2970_vm6, 0.0, %v3000_v47  ;;  %v2436_v47 = vrot.slane %v11648_v53, %v11220_v10  ;;  %v15527_v53 = vld [vmem:[#allocation15_spill] sm:$0xff] }
 0x203   : > { %3375 = vrot.lane.b32.xlu1 %v3014_v7, %s10648_s16  ;;  %v3004_v49 = vmul.f32 0.6931472, %v10323_v50  ;;  %v11942_v26 = vpop.permute.xlu0 %3485  ;;  %v2509_v7 = vand.u32 2147483647, %v2493_v62  ;;  %v2495_v31 = vsub.f32 %v11840_v51, %v2440_v2  ;;  %v2444_v62 = vrot.slane %v11652_v3, %v11220_v10  ;;  %v15530_v3 = vld [vmem:[#allocation29_spill] sm:$0xff] }
 0x204   : > { %v11946_v5 = vpop.permute.xlu1 %3427 }
 0x205   : > { %3385 = vrot.lane.b32.xlu0 %v3019_v23, %s10648_s16  ;;  %v3020_v8 = vsel %vm2972_vm7, 0.0, %v3004_v49  ;;  %v2511_v55 = vand.u32 2147483647, %v2495_v31  ;;  %v15529_v31 = vld [vmem:[#allocation22_spill] sm:$0xff] }
 0x206   : > { %v10325_v23 = vpop.eup %10324 }
 0x207   : > { %3379 = vrot.lane.b32.xlu1 %v3016_v28, %s10648_s16  ;;  %v11944_v56 = vpop.permute.xlu0 %3425  ;;  %v2606_v12 = vmul.f32 %v10325_v23, %v2509_v7  ;;  %v2448_v7 = vrot.slane %v15528_v57, %v11220_v10 }
 0x208   : > { %v11950_v13 = vpop.permute.xlu1 %3491  ;;  %v10327_v51 = vpop.eup %10326 }
 0x209   : > { %v11998_v11 = vmul.f32 %v10327_v51, %v2511_v55  ;;  %v2497_v55 = vsub.f32 %v11869_v37, %v2448_v7  ;;  %v2488_v7 = vrot.slane %v11795_v36, %v11220_v10  ;;  %vm2637_vm8 = vcmp.eq.f32.partialorder %v2606_v12, 0.0 }
 0x20b   : > { %3383 = vrot.lane.b32.xlu1 %v3018_v9, %s10648_s16  ;;  %v11948_v0 = vpop.permute.xlu0 %3489  ;;  %v15525_v9 = vld [vmem:[#allocation13_spill] sm:$0xff]  ;;  %v2513_v37 = vand.u32 2147483647, %v2497_v55  ;;  %v2452_v55 = vrot.slane %v11686_v52, %v11220_v10  ;;  %vm2639_vm12 = vcmp.eq.f32.partialorder %v11998_v11, 0.0 }
 0x20c   : > { %v11954_v1 = vpop.permute.xlu1 %3431  ;;  %10328 = vrcp.f32 %v15525_v9 }
 0x20d   : > { %10330 = vlog2.f32 %v2606_v12 }
 0x20e   : > { %10332 = vrcp.f32 %v15527_v53 }
 0x20f   : > { %3387 = vrot.lane.b32.xlu1 %v3020_v8, %s10648_s16  ;;  %v11952_v41 = vpop.permute.xlu0 %3429  ;;  %v2494_v8 = vsub.f32 %v11752_v34, %v2436_v47  ;;  %10334 = vrcp.f32 %v15529_v31  ;;  %v2496_v34 = vsub.f32 %v11826_v19, %v2444_v62  ;;  %v15533_v31 = vld [vmem:[#allocation31_spill] sm:$0xff]  ;;  %v2480_v19 = vrot.slane %v11741_v20, %v11220_v10  ;;  %s9279_s16 = sld [smem:[#allocation6 + $0x1]] }
 0x210   : > { %v11958_v59 = vpop.permute.xlu1 %3495  ;;  %10336 = vlog2.f32 %v11998_v11 }
 0x211   : > { %v2510_v23 = vand.u32 2147483647, %v2494_v8  ;;  %10338 = vrcp.f32 %v15530_v3  ;;  %v2512_v62 = vand.u32 2147483647, %v2496_v34  ;;  %v2505_v20 = vsub.f32 %v11925_v32, %v2480_v19  ;;  %v15538_v32 = vld [vmem:[#allocation24_spill] sm:$0xff] }
 0x212   : > { %10340 = vrcp.f32 %v15533_v31 }
 0x213   : > { %v11956_v24 = vpop.permute.xlu0 %3493 }
 0x214   : > { %v11962_v42 = vpop.permute.xlu1 %3435 }
 0x216   : > { %v10329_v9 = vpop.eup %10328 }
 0x217   : > { %v11960_v30 = vpop.permute.xlu0 %3433  ;;  %v12016_v53 = vmul.f32 %v10329_v9, %v2510_v23  ;;  %v10331_v8 = vpop.eup %10330  ;;  %v15534_v9 = vld [vmem:[#allocation32_spill] sm:$0xff] }
 0x218   : > { %v11968_v14 = vpop.permute.xlu1 %3499  ;;  %v10333_v23 = vpop.eup %10332  ;;  %v2456_v3 = vrot.slane %v15534_v9, %v11220_v10  ;;  %v2507_v9 = vsub.f32 %v11932_v4, %v2488_v7  ;;  %v2521_v4 = vand.u32 2147483647, %v2505_v20 }
 0x219   : > { %10342 = vlog2.f32 %v12016_v53  ;;  %v10335_v31 = vpop.eup %10334  ;;  %v12036_v34 = vmul.f32 %v10333_v23, %v2512_v62  ;;  %vm2638_vm13 = vcmp.eq.f32.partialorder %v12016_v53, 0.0 }
 0x21a   : > { %v2499_v62 = vsub.f32 %v11893_v58, %v2456_v3  ;;  %v2523_v12 = vand.u32 2147483647, %v2507_v9  ;;  %v2484_v58 = vrot.slane %v11747_v27, %v11220_v10 }
 0x21b   : > { %v11964_v25 = vpop.permute.xlu0 %3497  ;;  %vm2640_vm14 = vcmp.eq.f32.partialorder %v12036_v34, 0.0 }
 0x21c   : > { %v11976_v44 = vpop.permute.xlu1 %3439 }
 0x21d   : > { %15519 = vst [vmem:[#allocation16_spill] sm:$0xff] %v11976_v44 }
 0x220   : > { %v11984_v46 = vpop.permute.xlu1 %3503 }
 0x221   : > { %15522 = vst [vmem:[#allocation17_spill] sm:$0xff] %v11984_v46  ;;  %v15536_v46 = vld [vmem:[#allocation18_spill] sm:$0xff] }
 0x224   : > { %v11996_v33 = vpop.permute.xlu1 %3443 }
 0x227   : > { %v11966_v29 = vpop.permute.xlu0 %3437 }
 0x228   : > { %v12014_v51 = vpop.permute.xlu1 %3507 }
 0x22b   : > { %v11974_v18 = vpop.permute.xlu0 %3501 }
 0x239   : > { %v11981_v48 = vpop.permute.xlu0 %3441 }
 0x23a   : > { %15521 = vst [vmem:[#allocation11_spill] sm:$0xff] %v11981_v48  ;;  %v12043_v48 = vmul.f32 %v10335_v31, %v2513_v37 }
 0x23c   : > { %vm2641_vm15 = vcmp.eq.f32.partialorder %v12043_v48, 0.0 }
 0x23d   : > { %v11993_v49 = vpop.permute.xlu0 %3505 }
 0x23e   : > { %15526 = vst [vmem:[#allocation19_spill] sm:$0xff] %v11993_v49  ;;  %v15535_v49 = vld [vmem:[#allocation25_spill] sm:$0xff] }
 0x23f   : > { %10344 = vrcp.f32 %v15535_v49  ;;  %v10337_v49 = vpop.eup %10336 }
 0x240   : > { %v11986_v28 = vpop.f32.mrb[16].mxu1  ;;  %10346 = vrcp.f32 %v15536_v46  ;;  %v10339_v52 = vpop.eup %10338  ;;  %v2658_v3 = vmul.f32 0.6931472, %v10337_v49  ;;  %v15542_v49 = vld [vmem:[#allocation20_spill] sm:$0xff] }
 0x241   : > { %15523 = vst [vmem:[#allocation21_spill] sm:$0xff] %v11986_v28  ;;  %v11990_v50 = vpop.f32.mrb[17].mxu1  ;;  %10348 = vrcp.f32 %v15538_v32  ;;  %v10341_v32 = vpop.eup %10340  ;;  %v12065_v20 = vmul.f32 %v10339_v52, %v2521_v4 }
 0x242   : > { %15524 = vst [vmem:[#allocation14_spill] sm:$0xff] %v11990_v50  ;;  %10350 = vlog2.f32 %v12036_v34  ;;  %v10343_v27 = vpop.eup %10342  ;;  %v12080_v52 = vmul.f32 %v10341_v32, %v2523_v12  ;;  %v15543_v32 = vld [vmem:[#allocation27_spill] sm:$0xff] }
 0x243   : > { %10352 = vlog2.f32 %v12043_v48  ;;  %vm2649_vm1 = vcmp.eq.f32.partialorder %v12065_v20, 0.0 }
 0x244   : > { %vm2651_vm4 = vcmp.eq.f32.partialorder %v12080_v52, 0.0 }
 0x24b   : > { %v12002_v2 = vpop.permute.xlu0 %3445 }
 0x24e   : > { %v12018_v28 = vpop.f32.mrb[18].mxu1 }
 0x24f   : > { %v12010_v47 = vpop.permute.xlu0 %3509  ;;  %15531 = vst [vmem:[#allocation13_spill] sm:$0xff] %v12018_v28  ;;  %v12020_v57 = vpop.f32.mrb[19].mxu1 }
 0x250   : > { %15532 = vst [vmem:[#allocation15_spill] sm:$0xff] %v12020_v57  ;;  %v12032_v28 = vpop.permute.xlu1 %3447  ;;  %v2654_v57 = vmul.f32 0.6931472, %v10331_v8  ;;  %v2476_v8 = vrot.slane %v11711_v40, %v11220_v10  ;;  %v2498_v40 = vsub.f32 %v11857_v6, %v2452_v55  ;;  %v15540_v55 = vld [vmem:[#allocation26_spill] sm:$0xff] }
 0x251   : > { %10354 = vrcp.f32 %v15540_v55 }
 0x252   : > { %v2685_v37 = vsel %vm2637_vm8, 0.0, %v2654_v57  ;;  %v2504_v23 = vsub.f32 %v11910_v43, %v2476_v8  ;;  %10356 = vrcp.f32 %v15542_v49 }
 0x253   : > { %v12025_v50 = vpop.permute.xlu0 %3449  ;;  %v12048_v44 = vpop.f32.mrb[20].mxu1  ;;  %10358 = vlog2.f32 %v12065_v20 }
 0x254   : > { %15537 = vst [vmem:[#allocation30_spill] sm:$0xff] %v12048_v44  ;;  %v12051_v19 = vpop.f32.mrb[21].mxu1  ;;  %v12054_v46 = vpop.permute.xlu1 %3511  ;;  %v2515_v44 = vand.u32 2147483647, %v2499_v62  ;;  %v2520_v4 = vand.u32 2147483647, %v2504_v23  ;;  %10360 = vrcp.f32 %v11771_v21 }
 0x255   : > { %v10345_v62 = vpop.eup %10344  ;;  %v2656_v23 = vmul.f32 0.6931472, %v10343_v27  ;;  %10362 = vrcp.f32 %v15543_v32 }
 0x256   : > { %v12088_v55 = vmul.f32 %v10345_v62, %v2515_v44  ;;  %10364 = vlog2.f32 %v12080_v52 }
 0x257   : > { %v12040_v36 = vpop.permute.xlu0 %3513 }
 0x258   : > { %10366 = vlog2.f32 %v12088_v55  ;;  %vm2643_vm2 = vcmp.eq.f32.partialorder %v12088_v55, 0.0 }
 0x25b   : > { %v3358_v7 = vpop.permute.xlu0 %3357  ;;  %v12067_v6 = vpop.f32.mrb[22].mxu1 }
 0x25c   : > { %v3534_v31 = vsel %vm15459_vm9, %v2685_v37, %v3358_v7  ;;  %15539 = vst [vmem:[#allocation22_spill] sm:$0xff] %v12067_v6  ;;  %v12076_v8 = vpop.f32.mrb[23].mxu1  ;;  %v2514_v37 = vand.u32 2147483647, %v2498_v40  ;;  %v10347_v40 = vpop.eup %10346 }
 0x25d   : > { %v3551_v57 = vsel %vm3550_vm10, %v3534_v31, %v11937_v61  ;;  %v12074_v9 = vpop.permute.xlu1 %3451  ;;  %v2492_v31 = vrot.slane %v11819_v39, %v11220_v10 }
 0x25e   : > { %v12072_v43 = vsel %vm3567_vm11, %v3551_v57, %v11942_v26  ;;  %v2506_v26 = vsub.f32 %v11920_v60, %v2484_v58  ;;  %v2687_v57 = vsel %vm2639_vm12, 0.0, %v2658_v3  ;;  %v10349_v60 = vpop.eup %10348  ;;  %v12095_v39 = vmul.f32 %v10347_v40, %v2514_v37 }
 0x25f   : > { %15541 = vst [vmem:[#allocation29_spill] sm:$0xff] %v12072_v43  ;;  %v3362_v7 = vpop.permute.xlu0 %3361  ;;  %v3600_v61 = vmul.f32 17.782795, %v12072_v43  ;;  %v2460_v58 = vrot.slane %v11694_v22, %v11220_v10  ;;  %v12101_v44 = vmul.f32 %v10349_v60, %v2520_v4  ;;  %v10351_v21 = vpop.eup %10350  ;;  %v2508_v49 = vsub.f32 %v11929_v54, %v2492_v31  ;;  %v15545_v4 = vld [vmem:[#allocation33_spill] sm:$0xff] }
 0x260   : > { %v3536_v12 = vsel %vm15459_vm9, %v2687_v57, %v3362_v7  ;;  %v2522_v7 = vand.u32 2147483647, %v2506_v26  ;;  %v12108_v22 = vpop.f32.mrb[24].mxu1  ;;  %v10353_v37 = vpop.eup %10352  ;;  %v2464_v62 = vrot.slane %v15545_v4, %v11220_v10  ;;  %v2686_v57 = vsel %vm2638_vm13, 0.0, %v2656_v23 }
 0x261   : > { %3664 = vrot.lane.b32.xlu0 %v3600_v61, %s10649_s17  ;;  %v12092_v11 = vpop.permute.xlu1 %3515  ;;  %v3616_v61 = vmul.f32 3.1622777, %v12072_v43  ;;  %v3553_v27 = vsel %vm3550_vm10, %v3536_v12, %v11944_v56  ;;  %15544 = vst [vmem:[#allocation31_spill] sm:$0xff] %v12108_v22  ;;  %v12113_v40 = vpop.f32.mrb[25].mxu1  ;;  %10368 = vlog2.f32 %v12095_v39  ;;  %v2500_v54 = vsub.f32 %v11884_v17, %v2460_v58 }
 0x262   : > { %v3632_v31 = vmul.f32 0.56234133, %v12072_v43  ;;  %v10355_v12 = vpop.eup %10354  ;;  %10370 = vlog2.f32 %v12101_v44  ;;  %v12124_v60 = vsel %vm3567_vm11, %v3553_v27, %v11948_v0  ;;  %v2660_v32 = vmul.f32 0.6931472, %v10351_v21  ;;  %v15548_v43 = vld [vmem:[#allocation28_spill] sm:$0xff] }
 0x263   : > { %v3366_v3 = vpop.permute.xlu0 %3365  ;;  %v2524_v17 = vand.u32 2147483647, %v2508_v49  ;;  %v2662_v58 = vmul.f32 0.6931472, %v10353_v37  ;;  %v3634_v20 = vmul.f32 0.56234133, %v12124_v60 }
 0x264   : > { %vm2642_vm5 = vcmp.eq.f32.partialorder %v12095_v39, 0.0  ;;  %vm2648_vm6 = vcmp.eq.f32.partialorder %v12101_v44, 0.0 }
 0x265   : > { %3728 = vrot.lane.b32.xlu0 %v3616_v61, %s10650_s7  ;;  %v3360_v26 = vpop.permute.xlu1 %3359  ;;  %v12128_v61 = vmul.f32 %v10355_v12, %v2522_v7  ;;  %v3602_v7 = vmul.f32 17.782795, %v12124_v60  ;;  %v2689_v34 = vsel %vm2641_vm15, 0.0, %v2662_v58 }
 0x266   : > { %v3535_v56 = vsel %vm15459_vm9, %v2686_v57, %v3360_v26  ;;  %v10357_v57 = vpop.eup %10356  ;;  %v2501_v26 = vsub.f32 %v11905_v63, %v2464_v62  ;;  %v3538_v48 = vsel %vm15459_vm9, %v2689_v34, %v3366_v3 }
 0x267   : > { %v12118_v53 = vpop.permute.xlu0 %3369  ;;  %v3552_v23 = vsel %vm3550_vm10, %v3535_v56, %v11935_v38  ;;  %v10359_v22 = vpop.eup %10358  ;;  %v2516_v38 = vand.u32 2147483647, %v2500_v54  ;;  %v2688_v56 = vsel %vm2640_vm14, 0.0, %v2660_v32  ;;  %10372 = vlog2.f32 %v12128_v61 }
 0x268   : > { %v12132_v4 = vsel %vm3567_vm11, %v3552_v23, %v11940_v16  ;;  %v10361_v49 = vpop.eup %10360  ;;  %v15546_v16 = vld [vmem:[#allocation34_spill] sm:$0xff]  ;;  %v12145_v63 = vpop.f32.mrb[26].mxu1  ;;  %10374 = vrcp.f32 %v15548_v43  ;;  %vm2650_vm7 = vcmp.eq.f32.partialorder %v12128_v61, 0.0 }
 0x269   : > { %3792 = vrot.lane.b32.xlu0 %v3632_v31, %s10651_s12  ;;  %v3364_v0 = vpop.permute.xlu1 %3363  ;;  %v3601_v27 = vmul.f32 17.782795, %v12132_v4  ;;  %v2472_v37 = vrot.slane %v15546_v16, %v11220_v10  ;;  %15547 = vst [vmem:[#allocation32_spill] sm:$0xff] %v12145_v63  ;;  %v10363_v62 = vpop.eup %10362  ;;  %v12148_v54 = vmul.f32 %v10361_v49, %v2524_v17  ;;  %v2517_v16 = vand.u32 2147483647, %v2501_v26  ;;  %v15549_v49 = vld [vmem:[#allocation23_spill] sm:$0xff] }
 0x26a   : > { %v3537_v31 = vsel %vm15459_vm9, %v2688_v56, %v3364_v0  ;;  %v12152_v12 = vpop.f32.mrb[27].mxu1  ;;  %v10365_v23 = vpop.eup %10364  ;;  %v2678_v63 = vmul.f32 0.6931472, %v10359_v22  ;;  %v12157_v6 = vmul.f32 %v10357_v57, %v2516_v38  ;;  %v2468_v17 = vrot.slane %v11704_v45, %v11220_v10 }
 0x26b   : > { %v12138_v21 = vpop.permute.xlu0 %3373  ;;  %3666 = vrot.lane.b32.xlu1 %v3601_v27, %s10649_s17  ;;  %v3617_v27 = vmul.f32 3.1622777, %v12132_v4  ;;  %v3618_v0 = vmul.f32 3.1622777, %v12124_v60  ;;  %10376 = vrcp.f32 %v15549_v49  ;;  %v12165_v26 = vmul.f32 %v10363_v62, %v2517_v16 }
 0x26c   : > { %v3554_v3 = vsel %vm3550_vm10, %v3537_v31, %v11946_v5  ;;  %10378 = vlog2.f32 %v12148_v54  ;;  %v3555_v10 = vsel %vm3550_vm10, %v3538_v48, %v11952_v41  ;;  %v2503_v22 = vsub.f32 %v11915_v15, %v2472_v37 }
 0x26d   : > { %3668 = vrot.lane.b32.xlu0 %v3602_v7, %s10649_s17  ;;  %v3368_v32 = vpop.permute.xlu1 %3367  ;;  %v10367_v7 = vpop.eup %10366  ;;  %v3633_v38 = vmul.f32 0.56234133, %v12132_v4  ;;  %v2697_v5 = vsel %vm2649_vm1, 0.0, %v2678_v63  ;;  %v2682_v56 = vmul.f32 0.6931472, %v10365_v23  ;;  %10380 = vlog2.f32 %v12157_v6 }
 0x26e   : > { %v10369_v43 = vpop.eup %10368  ;;  %v2502_v62 = vsub.f32 %v11900_v35, %v2468_v17  ;;  %v12183_v41 = vsel %vm3567_vm11, %v3554_v3, %v11950_v13  ;;  %10382 = vlog2.f32 %v12165_v26  ;;  %v12189_v15 = vsel %vm3567_vm11, %v3555_v10, %v11956_v24 }
 0x26f   : > { %v12161_v58 = vpop.permute.xlu0 %3377  ;;  %3730 = vrot.lane.b32.xlu1 %v3617_v27, %s10650_s7  ;;  %v10371_v45 = vpop.eup %10370  ;;  %v2664_v37 = vmul.f32 0.6931472, %v10369_v43  ;;  %v2666_v31 = vmul.f32 0.6931472, %v10367_v7  ;;  %v3603_v16 = vmul.f32 17.782795, %v12183_v41 }
 0x270   : > { %v2676_v13 = vmul.f32 0.6931472, %v10371_v45  ;;  %v2518_v27 = vand.u32 2147483647, %v2502_v62  ;;  %v2519_v7 = vand.u32 2147483647, %v2503_v22 }
 0x271   : > { %3732 = vrot.lane.b32.xlu0 %v3618_v0, %s10650_s7  ;;  %v12176_v57 = vpop.permute.xlu1 %3371  ;;  %v10373_v48 = vpop.eup %10372  ;;  %v3604_v0 = vmul.f32 17.782795, %v12189_v15  ;;  %v2690_v49 = vsel %vm2642_vm5, 0.0, %v2664_v37  ;;  %v2691_v52 = vsel %vm2643_vm2, 0.0, %v2666_v31  ;;  %v3619_v55 = vmul.f32 3.1622777, %v12183_v41 }
 0x272   : > { %v10375_v3 = vpop.eup %10374  ;;  %v3539_v43 = vsel %vm15459_vm9, %v2690_v49, %v3368_v32  ;;  %v2696_v10 = vsel %vm2648_vm6, 0.0, %v2676_v13  ;;  %v3540_v22 = vsel %vm15459_vm9, %v2691_v52, %v12118_v53  ;;  %v3620_v62 = vmul.f32 3.1622777, %v12189_v15 }
 0x273   : > { %v3382_v34 = vpop.permute.xlu0 %3381  ;;  %3794 = vrot.lane.b32.xlu1 %v3633_v38, %s10651_s12  ;;  %v3557_v37 = vsel %vm3550_vm10, %v3540_v22, %v11960_v30  ;;  %v3635_v13 = vmul.f32 0.56234133, %v12183_v41  ;;  %vm2652_vm8 = vcmp.eq.f32.partialorder %v12148_v54, 0.0  ;;  %vm2644_vm12 = vcmp.eq.f32.partialorder %v12157_v6, 0.0 }
 0x274   : > { %v3546_v63 = vsel %vm15459_vm9, %v2697_v5, %v3382_v34  ;;  %v2680_v5 = vmul.f32 0.6931472, %v10373_v48  ;;  %v3556_v34 = vsel %vm3550_vm10, %v3539_v43, %v11954_v1  ;;  %v12252_v61 = vsel %vm3567_vm11, %v3557_v37, %v11964_v25  ;;  %v15556_v37 = vld [vmem:[#allocation19_spill] sm:$0xff] }
 0x275   : > { %v3563_v35 = vsel %vm3550_vm10, %v3546_v63, %v12002_v2  ;;  %3796 = vrot.lane.b32.xlu0 %v3634_v20, %s10651_s12  ;;  %v12201_v24 = vpop.permute.xlu1 %3375  ;;  %v2699_v2 = vsel %vm2651_vm4, 0.0, %v2682_v56  ;;  %v10377_v45 = vpop.eup %10376  ;;  %v12229_v20 = vmul.f32 %v10375_v3, %v2519_v7  ;;  %vm2645_vm13 = vcmp.eq.f32.partialorder %v12165_v26, 0.0 }
 0x276   : > { %v12199_v23 = vsel %vm3567_vm11, %v3563_v35, %v12010_v47  ;;  %v10379_v56 = vpop.eup %10378  ;;  %v12223_v32 = vmul.f32 %v10377_v45, %v2518_v27  ;;  %v2698_v35 = vsel %vm2650_vm7, 0.0, %v2680_v5  ;;  %v3622_v52 = vmul.f32 3.1622777, %v12252_v61 }
 0x277   : > { %v3386_v17 = vpop.permute.xlu0 %3385  ;;  %3670 = vrot.lane.b32.xlu1 %v3603_v16, %s10649_s17  ;;  %v10381_v53 = vpop.eup %10380  ;;  %v12246_v16 = vsel %vm3567_vm11, %v3556_v34, %v11958_v59  ;;  %vm2647_vm15 = vcmp.eq.f32.partialorder %v12229_v20, 0.0  ;;  %v15554_v34 = vld [vmem:[#allocation11_spill] sm:$0xff] }
 0x278   : > { %v3548_v47 = vsel %vm15459_vm9, %v2699_v2, %v3386_v17  ;;  %v10383_v1 = vpop.eup %10382  ;;  %10384 = vlog2.f32 %v12223_v32  ;;  %v2668_v48 = vmul.f32 0.6931472, %v10381_v53  ;;  %v3621_v26 = vmul.f32 3.1622777, %v12246_v16 }
 0x279   : > { %v3565_v39 = vsel %vm3550_vm10, %v3548_v47, %v12025_v50  ;;  %3672 = vrot.lane.b32.xlu0 %v3604_v0, %s10649_s17  ;;  %v3380_v44 = vpop.permute.xlu1 %3379  ;;  %10386 = vlog2.f32 %v12229_v20  ;;  %v2670_v2 = vmul.f32 0.6931472, %v10383_v1  ;;  %v3605_v0 = vmul.f32 17.782795, %v12246_v16 }
 0x27a   : > { %v12220_v38 = vsel %vm3567_vm11, %v3565_v39, %v12040_v36  ;;  %v3545_v50 = vsel %vm15459_vm9, %v2696_v10, %v3380_v44  ;;  %v2692_v49 = vsel %vm2644_vm12, 0.0, %v2668_v48  ;;  %v3637_v39 = vmul.f32 0.56234133, %v12246_v16 }
 0x27b   : > { %15550 = vst [vmem:[#allocation25_spill] sm:$0xff] %v12220_v38  ;;  %v3562_v36 = vsel %vm3550_vm10, %v3545_v50, %v11996_v33  ;;  %3734 = vrot.lane.b32.xlu1 %v3619_v55, %s10650_s7  ;;  %v2684_v33 = vmul.f32 0.6931472, %v10379_v56  ;;  %v2693_v54 = vsel %vm2645_vm13, 0.0, %v2670_v2  ;;  %v3541_v47 = vsel %vm15459_vm9, %v2692_v49, %v12176_v57  ;;  %v15553_v50 = vld [vmem:[#allocation16_spill] sm:$0xff] }
 0x27c   : > { %v12238_v63 = vsel %vm3567_vm11, %v3562_v36, %v12014_v51  ;;  %v3636_v51 = vmul.f32 0.56234133, %v12189_v15  ;;  %v3542_v6 = vsel %vm15459_vm9, %v2693_v54, %v12138_v21  ;;  %v3638_v10 = vmul.f32 0.56234133, %v12252_v61  ;;  %v15555_v36 = vld [vmem:[#allocation17_spill] sm:$0xff] }
 0x27d   : > { %3736 = vrot.lane.b32.xlu0 %v3620_v62, %s10650_s7  ;;  %v3384_v31 = vpop.permute.xlu1 %3383  ;;  %v2700_v17 = vsel %vm2652_vm8, 0.0, %v2684_v33  ;;  %v3559_v57 = vsel %vm3550_vm10, %v3542_v6, %v11966_v29  ;;  %vm2646_vm14 = vcmp.eq.f32.partialorder %v12223_v32, 0.0  ;;  %v3611_v48 = vmul.f32 17.782795, %v12238_v63 }
 0x27e   : > { %v3547_v30 = vsel %vm15459_vm9, %v2698_v35, %v3384_v31  ;;  %v3627_v2 = vmul.f32 3.1622777, %v12238_v63  ;;  %v3646_v6 = vmul.f32 0.56234133, %v12220_v38 }
 0x27f   : > { %v3564_v27 = vsel %vm3550_vm10, %v3547_v30, %v12032_v28  ;;  %3798 = vrot.lane.b32.xlu1 %v3635_v13, %s10651_s12  ;;  %v3606_v28 = vmul.f32 17.782795, %v12252_v61 }
 0x280   : > { %v12260_v59 = vsel %vm3567_vm11, %v3564_v27, %v12054_v46  ;;  %v3612_v27 = vmul.f32 17.782795, %v12199_v23 }
 0x281   : > { %15551 = vst [vmem:[#allocation18_spill] sm:$0xff] %v12260_v59  ;;  %3800 = vrot.lane.b32.xlu0 %v3636_v51, %s10651_s12  ;;  %v3388_v25 = vpop.permute.xlu1 %3387  ;;  %v3629_v49 = vmul.f32 3.1622777, %v12260_v59  ;;  %v3645_v54 = vmul.f32 0.56234133, %v12260_v59 }
 0x282   : > { %v3549_v7 = vsel %vm15459_vm9, %v2700_v17, %v3388_v25  ;;  %v10385_v43 = vpop.eup %10384  ;;  %v3628_v17 = vmul.f32 3.1622777, %v12199_v23  ;;  %v3643_v25 = vmul.f32 0.56234133, %v12238_v63 }
 0x283   : > { %v3566_v46 = vsel %vm3550_vm10, %v3549_v7, %v12074_v9  ;;  %3674 = vrot.lane.b32.xlu1 %v3605_v0, %s10649_s17  ;;  %v3558_v9 = vsel %vm3550_vm10, %v3541_v47, %v11962_v42  ;;  %v12297_v42 = vsel %vm3567_vm11, %v3559_v57, %v11974_v18  ;;  %v2672_v45 = vmul.f32 0.6931472, %v10385_v43  ;;  %v9297_v47 = vld [vmem:[%s15372_s5 + $0x61] ss:$0 sm:$0xff]  ;;  %v15559_v43 = vld [vmem:[#allocation15_spill] sm:$0xff] }
 0x284   : > { %v12276_v3 = vsel %vm3567_vm11, %v3566_v46, %v12092_v11  ;;  %v10387_v11 = vpop.eup %10386  ;;  %v12292_v21 = vsel %vm3567_vm11, %v3558_v9, %v11968_v14  ;;  %v3608_v44 = vmul.f32 17.782795, %v12297_v42  ;;  %v3624_v32 = vmul.f32 3.1622777, %v12297_v42 }
 0x285   : > { %15552 = vst [vmem:[#allocation24_spill] sm:$0xff] %v12276_v3  ;;  %3676 = vrot.lane.b32.xlu0 %v3606_v28, %s10649_s17  ;;  %v2674_v22 = vmul.f32 0.6931472, %v10387_v11  ;;  %v3607_v29 = vmul.f32 17.782795, %v12292_v21  ;;  %v2694_v14 = vsel %vm2646_vm14, 0.0, %v2672_v45  ;;  %v12378_v57 = vadd.f32 %v9297_v47, %v15559_v43 }
 0x286   : > { %v3543_v18 = vsel %vm15459_vm9, %v2694_v14, %v12201_v24  ;;  %v3623_v56 = vmul.f32 3.1622777, %v12292_v21  ;;  %v3639_v24 = vmul.f32 0.56234133, %v12292_v21  ;;  %v3644_v0 = vmul.f32 0.56234133, %v12199_v23 }
 0x287   : > { %3738 = vrot.lane.b32.xlu1 %v3621_v26, %s10650_s7  ;;  %v2695_v55 = vsel %vm2647_vm15, 0.0, %v2674_v22  ;;  %v3560_v62 = vsel %vm3550_vm10, %v3543_v18, %v15553_v50  ;;  %v3613_v7 = vmul.f32 17.782795, %v12260_v59  ;;  %v3614_v28 = vmul.f32 17.782795, %v12220_v38  ;;  %v15557_v26 = vld [vmem:[#allocation14_spill] sm:$0xff] }
 0x288   : > { %v3544_v5 = vsel %vm15459_vm9, %v2695_v55, %v12161_v58  ;;  %v12322_v53 = vsel %vm3567_vm11, %v3560_v62, %v15555_v36  ;;  %v3640_v58 = vmul.f32 0.56234133, %v12297_v42  ;;  %v3630_v46 = vmul.f32 3.1622777, %v12220_v38  ;;  %15560 = vst [vmem:[#allocation20_spill] sm:$0xff] %v12378_v57  ;;  %v15562_v45 = vld [vmem:[#allocation21_spill] sm:$0xff] }
 0x289   : > { %3740 = vrot.lane.b32.xlu0 %v3622_v52, %s10650_s7  ;;  %v3561_v20 = vsel %vm3550_vm10, %v3544_v5, %v15554_v34  ;;  %v3609_v31 = vmul.f32 17.782795, %v12322_v53  ;;  %v3625_v13 = vmul.f32 3.1622777, %v12322_v53  ;;  %v3641_v30 = vmul.f32 0.56234133, %v12322_v53 }
 0x28a   : > { %v12327_v1 = vsel %vm3567_vm11, %v3561_v20, %v15556_v37  ;;  %v12371_v52 = vadd.f32 %v9297_v47, %v15557_v26  ;;  %v3615_v9 = vmul.f32 17.782795, %v12276_v3  ;;  %v3631_v11 = vmul.f32 3.1622777, %v12276_v3  ;;  %v15568_v55 = vld [vmem:[#allocation30_spill] sm:$0xff]  ;;  %v15573_v50 = vld [vmem:[#allocation29_spill] sm:$0xff] }
 0x28b   : > { %3802 = vrot.lane.b32.xlu1 %v3637_v39, %s10651_s12  ;;  %v3610_v35 = vmul.f32 17.782795, %v12327_v1  ;;  %v3626_v33 = vmul.f32 3.1622777, %v12327_v1  ;;  %v3642_v51 = vmul.f32 0.56234133, %v12327_v1  ;;  %v12385_v39 = vadd.f32 %v9297_v47, %v12051_v19 }
 0x28c   : > { %15558 = vst [vmem:[#allocation26_spill] sm:$0xff] %v12371_v52  ;;  %v12389_v22 = vadd.f32 %v15562_v45, %v9297_v47  ;;  %v12405_v19 = vadd.f32 %v9297_v47, %v12113_v40  ;;  %v12410_v18 = vadd.f32 %v15568_v55, %v9297_v47  ;;  %v3584_v62 = vmul.f32 100.0, %v15573_v50  ;;  %v15574_v34 = vld [vmem:[#allocation31_spill] sm:$0xff]  ;;  %v15576_v37 = vld [vmem:[#allocation32_spill] sm:$0xff] }
 0x28d   : > { %3804 = vrot.lane.b32.xlu0 %v3638_v10, %s10651_s12  ;;  %15561 = vst [vmem:[#allocation27_spill] sm:$0xff] %v12385_v39  ;;  %v3647_v10 = vmul.f32 0.56234133, %v12276_v3  ;;  %v12428_v20 = vadd.f32 %v15574_v34, %v9297_v47  ;;  %vm15462_vm10 = vcmask 785408   ;;  %v15420_v45 = vmov 2475754826  }
 0x28e   : > { %15563 = vst [vmem:[#allocation33_spill] sm:$0xff] %v12389_v22  ;;  %15567 = vst [vmem:[#allocation23_spill] sm:$0xff] %v12405_v19 }
 0x28f   : > { %3678 = vrot.lane.b32.xlu1 %v3607_v29, %s10649_s17  ;;  %v12395_v29 = vadd.f32 %v9297_v47, %v12076_v8  ;;  %15569 = vst [vmem:[#allocation16_spill] sm:$0xff] %v12410_v18  ;;  %v12415_v8 = vadd.f32 %v9297_v47, %v12152_v12  ;;  %15575 = vst [vmem:[#allocation19_spill] sm:$0xff] %v12428_v20 }
 0x291   : > { %3680 = vrot.lane.b32.xlu0 %v3608_v44, %s10649_s17  ;;  %15564 = vst [vmem:[#allocation34_spill] sm:$0xff] %v12395_v29  ;;  %v15565_v44 = vld [vmem:[#allocation13_spill] sm:$0xff]  ;;  %15570 = vst [vmem:[#allocation11_spill] sm:$0xff] %v12415_v8 }
 0x292   : > { %v12400_v14 = vadd.f32 %v15565_v44, %v9297_v47 }
 0x293   : > { %3742 = vrot.lane.b32.xlu1 %v3623_v56, %s10650_s7  ;;  %v15571_v56 = vld [vmem:[#allocation22_spill] sm:$0xff] }
 0x294   : > { %15566 = vst [vmem:[#allocation28_spill] sm:$0xff] %v12400_v14 }
 0x295   : > { %3744 = vrot.lane.b32.xlu0 %v3624_v32, %s10650_s7  ;;  %v12420_v32 = vadd.f32 %v15571_v56, %v9297_v47  ;;  %v15427_v56 = vmov 2131351028  }
 0x297   : > { %3806 = vrot.lane.b32.xlu1 %v3639_v24, %s10651_s12  ;;  %15572 = vst [vmem:[#allocation17_spill] sm:$0xff] %v12420_v32 }
 0x299   : > { %3808 = vrot.lane.b32.xlu0 %v3640_v58, %s10651_s12 }
 0x29b   : > { %3682 = vrot.lane.b32.xlu1 %v3609_v31, %s10649_s17  ;;  %v12438_v31 = vadd.f32 %v15576_v37, %v9297_v47  ;;  %v3586_v47 = vmul.f32 100.0, %v12124_v60 }
 0x29d   : > { %3684 = vrot.lane.b32.xlu0 %v3610_v35, %s10649_s17  ;;  %15577 = vst [vmem:[#allocation14_spill] sm:$0xff] %v12438_v31 }
 0x29f   : > { %3746 = vrot.lane.b32.xlu1 %v3625_v13, %s10650_s7 }
 0x2a1   : > { %3748 = vrot.lane.b32.xlu0 %v3626_v33, %s10650_s7 }
 0x2a3   : > { %3810 = vrot.lane.b32.xlu1 %v3641_v30, %s10651_s12 }
 0x2a5   : > { %3812 = vrot.lane.b32.xlu0 %v3642_v51, %s10651_s12 }
 0x2a7   : > { %3686 = vrot.lane.b32.xlu1 %v3611_v48, %s10649_s17 }
 0x2a9   : > { %3688 = vrot.lane.b32.xlu0 %v3612_v27, %s10649_s17 }
 0x2ab   : > { %3750 = vrot.lane.b32.xlu1 %v3627_v2, %s10650_s7 }
 0x2ad   : > { %3752 = vrot.lane.b32.xlu0 %v3628_v17, %s10650_s7  ;;  %v3585_v17 = vmul.f32 100.0, %v12132_v4 }
 0x2af   : > { %3814 = vrot.lane.b32.xlu1 %v3643_v25, %s10651_s12 }
 0x2b1   : > { %3816 = vrot.lane.b32.xlu0 %v3644_v0, %s10651_s12 }
 0x2b3   : > { %3690 = vrot.lane.b32.xlu1 %v3613_v7, %s10649_s17 }
 0x2b5   : > { %3692 = vrot.lane.b32.xlu0 %v3614_v28, %s10649_s17 }
 0x2b7   : > { %3754 = vrot.lane.b32.xlu1 %v3629_v49, %s10650_s7 }
 0x2b9   : > { %3756 = vrot.lane.b32.xlu0 %v3630_v46, %s10650_s7 }
 0x2bb   : > { %3818 = vrot.lane.b32.xlu1 %v3645_v54, %s10651_s12 }
 0x2bd   : > { %3820 = vrot.lane.b32.xlu0 %v3646_v6, %s10651_s12 }
 0x2bf   : > { %3694 = vrot.lane.b32.xlu1 %v3615_v9, %s10649_s17 }
 0x2c1   : > { %830 = vrot.lane.b32.xlu0 %v12371_v52, %s10651_s12 }
 0x2c3   : > { %3758 = vrot.lane.b32.xlu1 %v3631_v11, %s10650_s7  ;;  %v15418_v11 = vmov 683565275  }
 0x2c5   : > { %984 = vrot.lane.b32.xlu0 %v12378_v57, %s10651_s12 }
 0x2c7   : > { %3822 = vrot.lane.b32.xlu1 %v3647_v10, %s10651_s12 }
 0x2c9   : > { %1138 = vrot.lane.b32.xlu0 %v12385_v39, %s10651_s12 }
 0x2cb   : > { %907 = vrot.lane.b32.xlu1 %v12389_v22, %s10651_s12 }
 0x2cd   : > { %1292 = vrot.lane.b32.xlu0 %v12395_v29, %s10651_s12 }
 0x2cf   : > { %1061 = vrot.lane.b32.xlu1 %v12400_v14, %s10651_s12 }
 0x2d1   : > { %1446 = vrot.lane.b32.xlu0 %v12405_v19, %s10651_s12 }
 0x2d3   : > { %v3665_v5 = vpop.permute.xlu0 %3664  ;;  %1215 = vrot.lane.b32.xlu1 %v12410_v18, %s10651_s12 }
 0x2d4   : > { %v3840_v12 = vsel %vm405_vm0, %v3584_v62, %v3665_v5  ;;  %v15413_v62 = vmov 2102212464  }
 0x2d5   : > { %1600 = vrot.lane.b32.xlu0 %v12415_v8, %s10651_s12  ;;  %v15580_v8 = vmov 920167782  }
 0x2d7   : > { %v3729_v40 = vpop.permute.xlu0 %3728  ;;  %1369 = vrot.lane.b32.xlu1 %v12420_v32, %s10651_s12 }
 0x2d8   : > { %v3856_v24 = vsel %vm635_vm3, %v3840_v12, %v3729_v40 }
 0x2db   : > { %v3793_v36 = vpop.permute.xlu0 %3792  ;;  %1523 = vrot.lane.b32.xlu1 %v12428_v20, %s10651_s12 }
 0x2dc   : > { %v12433_v58 = vsel %vm15462_vm10, %v3856_v24, %v3793_v36  ;;  %v15416_v24 = vmov 920167782  }
 0x2dd   : > { %v15409_v35 = vand.u32 2147483647, %v12433_v58  ;;  %v3892_v13 = vand.u32 2139095040, %v12433_v58  ;;  %v3667_v33 = vpop.permute.xlu1 %3666 }
 0x2de   : > { %v3841_v0 = vsel %vm405_vm0, %v3585_v17, %v3667_v33 }
 0x2df   : > { %v3893_v30 = vshrl.u32 %v3892_v13, 23  ;;  %1677 = vrot.lane.b32.xlu1 %v12438_v31, %s10651_s12  ;;  %v3896_v48 = vand.u32 8388607, %v15409_v35  ;;  %v3669_v28 = vpop.permute.xlu0 %3668  ;;  %v15410_v13 = vmov 1326507024  }
 0x2e0   : > { %v3842_v4 = vsel %vm405_vm0, %v3586_v47, %v3669_v28 }
 0x2e1   : > { %v9346_v51 = vadd.s32 4294967169, %v3893_v30  ;;  %v3731_v27 = vpop.permute.xlu1 %3730  ;;  %v3897_v25 = vor.u32 8388608, %v3896_v48 }
 0x2e2   : > { %v3857_v49 = vsel %vm635_vm3, %v3841_v0, %v3731_v27 }
 0x2e3   : > { %v3899_v2 = vadd.s32 1, %v9346_v51  ;;  %v12453_v43 = vshll.u32 %v3897_v25, 8  ;;  %v3733_v30 = vpop.permute.xlu0 %3732 }
 0x2e5   : > { %vm3900_vm11 = vcmp.gt.s32.totalorder %v3899_v2, 0  ;;  %v3795_v46 = vpop.permute.xlu1 %3794 }
 0x2e6   : > { %v3901_v7 = vsel %vm3900_vm11, %v3899_v2, 0  ;;  %v12451_v6 = vsel %vm15462_vm10, %v3857_v49, %v3795_v46 }
 0x2e7   : > { %v3903_v54 = vand.u32 31, %v3901_v7  ;;  %v3902_v26 = vshrl.u32 %v3901_v7, 5  ;;  %v15412_v55 = vand.u32 2147483647, %v12451_v6  ;;  %v3996_v5 = vand.u32 2139095040, %v12451_v6 }
 0x2e9   : > { %v3904_v9 = vsub.s32 32, %v3903_v54  ;;  %v3906_v10 = vshll.u32 %v15418_v11, %v3903_v54  ;;  %v3909_v44 = vshll.u32 %v15420_v45, %v3903_v54  ;;  %v3912_v50 = vshll.u32 %v15427_v56, %v3903_v54 }
 0x2ea   : > { %v3915_v12 = vshll.u32 %v15413_v62, %v3903_v54  ;;  %v3918_v37 = vshll.u32 %v15416_v24, %v3903_v54  ;;  %vm3921_vm1 = vcmp.lt.s32.totalorder %v3902_v26, 1  ;;  %vm3924_vm2 = vcmp.lt.s32.totalorder %v3902_v26, 4 }
 0x2eb   : > { %v3907_v60 = vshrl.u32 %v15420_v45, %v3904_v9  ;;  %v3910_v40 = vshrl.u32 %v15427_v56, %v3904_v9  ;;  %v3913_v34 = vshrl.u32 %v15413_v62, %v3904_v9  ;;  %v3916_v36 = vshrl.u32 %v15416_v24, %v3904_v9 }
 0x2ec   : > { %v3919_v33 = vshrl.u32 %v15410_v13, %v3904_v9  ;;  %v3997_v25 = vshrl.u32 %v3996_v5, 23  ;;  %v3905_v0 = vshrl.u32 %v15418_v11, %v3904_v9  ;;  %vm3923_vm4 = vcmp.lt.s32.totalorder %v3902_v26, 3 }
 0x2ed   : > { %v3908_v51 = vor.u32 %v3907_v60, %v3906_v10  ;;  %v3911_v48 = vor.u32 %v3910_v40, %v3909_v44  ;;  %v3914_v27 = vor.u32 %v3913_v34, %v3912_v50  ;;  %v3917_v2 = vor.u32 %v3916_v36, %v3915_v12  ;;  %v3797_v34 = vpop.permute.xlu0 %3796 }
 0x2ee   : > { %v3920_v17 = vor.u32 %v3919_v33, %v3918_v37  ;;  %v9350_v47 = vadd.s32 4294967169, %v3997_v25  ;;  %vm3922_vm5 = vcmp.lt.s32.totalorder %v3902_v26, 2  ;;  %v3858_v37 = vsel %vm635_vm3, %v3842_v4, %v3733_v30 }
 0x2ef   : > { %v3926_v7 = vsel %vm3924_vm2, %v3914_v27, 2102212464  ;;  %v3929_v28 = vsel %vm3921_vm1, %v3908_v51, %v3911_v48  ;;  %v3933_v49 = vsel %vm3921_vm1, %v3911_v48, %v3914_v27  ;;  %v3930_v46 = vsel %vm3924_vm2, %v3917_v2, 920167782 }
 0x2f0   : > { %v3934_v54 = vsel %vm3924_vm2, %v3920_v17, 1326507024  ;;  %v3925_v35 = vsel %vm3921_vm1, %v3905_v0, %v3908_v51  ;;  %v3931_v13 = vsel %vm3923_vm4, %v3914_v27, %v3930_v46  ;;  %v3927_v44 = vsel %vm3923_vm4, %v3911_v48, %v3926_v7 }
 0x2f1   : > { %v3935_v10 = vsel %vm3923_vm4, %v3917_v2, %v3934_v54  ;;  %v3932_v60 = vsel %vm3922_vm5, %v3929_v28, %v3931_v13  ;;  %v4003_v50 = vadd.s32 1, %v9350_v47  ;;  %v3928_v26 = vsel %vm3922_vm5, %v3925_v35, %v3927_v44 }
 0x2f2   : > { %v3936_v40 = vsel %vm3922_vm5, %v3933_v49, %v3935_v10  ;;  %v12474_v9 = vmul.u32.u64.low %v12453_v43, %v3932_v60  ;;  %v12475_v36 = vmul.u32.u64.high %v12453_v43, %v3932_v60, %v12474_v9  ;;  %v12480_v51 = vsel %vm15462_vm10, %v3858_v37, %v3797_v34 }
 0x2f3   : > { %v12470_v5 = vmul.u32.u64.low %v12453_v43, %v3936_v40  ;;  %v12471_v12 = vmul.u32.u64.high %v12453_v43, %v3936_v40, %v12470_v5  ;;  %vm4004_vm6 = vcmp.gt.s32.totalorder %v4003_v50, 0  ;;  %v4000_v27 = vand.u32 8388607, %v15412_v55 }
 0x2f4   : > { %v4005_v33 = vsel %vm4004_vm6, %v4003_v50, 0  ;;  %v3947_v48 = vadd.s32 1, %v12475_v36  ;;  %v3944_v2 = vmul.u32 %v12453_v43, %v3928_v26  ;;  %v4100_v4 = vand.u32 2139095040, %v12480_v51 }
 0x2f5   : > { %v4007_v13 = vand.u32 31, %v4005_v33  ;;  %vm3946_vm7 = vc.u32 %v12471_v12, %v12474_v9  ;;  %v4006_v17 = vshrl.u32 %v4005_v33, 5  ;;  %v15578_v44 = vmov 1326507024  }
 0x2f6   : > { %v3948_v35 = vsel %vm3946_vm7, %v3947_v48, %v12475_v36  ;;  %v4001_v50 = vor.u32 8388608, %v4000_v27  ;;  %v4101_v48 = vshrl.u32 %v4100_v4, 23  ;;  %vm3891_vm7 = vcmp.lt.s32.totalorder %v12433_v58, 0 }
 0x2f7   : > { %v4008_v25 = vsub.s32 32, %v4007_v13  ;;  %v4010_v30 = vshll.u32 %v15418_v11, %v4007_v13  ;;  %v4013_v0 = vshll.u32 %v15420_v45, %v4007_v13  ;;  %v4016_v7 = vshll.u32 %v15427_v56, %v4007_v13 }
 0x2f8   : > { %v3949_v28 = vadd.s32 %v3948_v35, %v3944_v2  ;;  %v4019_v54 = vshll.u32 %v15413_v62, %v4007_v13  ;;  %v4022_v10 = vshll.u32 %v15416_v24, %v4007_v13  ;;  %vm4025_vm8 = vcmp.lt.s32.totalorder %v4006_v17, 1 }
 0x2f9   : > { %v4011_v49 = vshrl.u32 %v15420_v45, %v4008_v25  ;;  %v4014_v46 = vshrl.u32 %v15427_v56, %v4008_v25  ;;  %v4017_v43 = vshrl.u32 %v15413_v62, %v4008_v25  ;;  %v4020_v47 = vshrl.u32 %v15416_v24, %v4008_v25 }
 0x2fa   : > { %v4023_v60 = vshrl.u32 %v15578_v44, %v4008_v25  ;;  %v3950_v40 = vadd.s32 536870912, %v3949_v28  ;;  %vm4027_vm12 = vcmp.lt.s32.totalorder %v4006_v17, 3  ;;  %vm4028_vm13 = vcmp.lt.s32.totalorder %v4006_v17, 4 }
 0x2fb   : > { %v4012_v34 = vor.u32 %v4011_v49, %v4010_v30  ;;  %v4015_v5 = vor.u32 %v4014_v46, %v4013_v0  ;;  %v4018_v36 = vor.u32 %v4017_v43, %v4016_v7  ;;  %v4021_v37 = vor.u32 %v4020_v47, %v4019_v54 }
 0x2fc   : > { %v4024_v26 = vor.u32 %v4023_v60, %v4022_v10  ;;  %v12500_v33 = vshrl.u32 %v3950_v40, 30  ;;  %v4041_v30 = vshll.u32 %v4001_v50, 8  ;;  %vm4026_vm14 = vcmp.lt.s32.totalorder %v4006_v17, 2 }
 0x2fd   : > { %v4033_v2 = vsel %vm4025_vm8, %v4012_v34, %v4015_v5  ;;  %v4034_v35 = vsel %vm4028_vm13, %v4021_v37, 920167782  ;;  %v4037_v13 = vsel %vm4025_vm8, %v4015_v5, %v4018_v36  ;;  %v4030_v0 = vsel %vm4028_vm13, %v4018_v36, 2102212464 }
 0x2fe   : > { %v4038_v55 = vsel %vm4028_vm13, %v4024_v26, 1326507024  ;;  %v3952_v62 = vshll.u32 %v12500_v33, 30  ;;  %v4035_v27 = vsel %vm4027_vm12, %v4018_v36, %v4034_v35  ;;  %v9354_v49 = vadd.s32 4294967169, %v4101_v48 }
 0x2ff   : > { %v4039_v7 = vsel %vm4027_vm12, %v4021_v37, %v4038_v55  ;;  %v4009_v54 = vshrl.u32 %v15418_v11, %v4008_v25  ;;  %v4036_v4 = vsel %vm4026_vm14, %v4033_v2, %v4035_v27  ;;  %v4031_v50 = vsel %vm4027_vm12, %v4015_v5, %v4030_v0  ;;  %v3671_v5 = vpop.permute.xlu1 %3670 }
 0x300   : > { %v3953_v46 = vsub.s32 %v3949_v28, %v3952_v62  ;;  %v4040_v43 = vsel %vm4026_vm14, %v4037_v13, %v4039_v7  ;;  %v4107_v26 = vadd.s32 1, %v9354_v49  ;;  %v15415_v7 = vand.u32 2147483647, %v12480_v51 }
 0x301   : > { %v12510_v47 = vmul.u32.u64.low %v4041_v30, %v4040_v43  ;;  %v12511_v10 = vmul.u32.u64.high %v4041_v30, %v4040_v43, %v12510_v47  ;;  %v4029_v40 = vsel %vm4025_vm8, %v4009_v54, %v4012_v34  ;;  %v3945_v49 = vadd.s32 %v12474_v9, %v12471_v12 }
 0x302   : > { %v3955_v60 = vsub.s32 0, %v3953_v46  ;;  %v12515_v36 = vmul.u32.u64.low %v4041_v30, %v4036_v4  ;;  %v12516_v35 = vmul.u32.u64.high %v4041_v30, %v4036_v4, %v12515_v36  ;;  %v4032_v62 = vsel %vm4026_vm14, %v4029_v40, %v4031_v50 }
 0x303   : > { %vm4108_vm15 = vcmp.gt.s32.totalorder %v4107_v26, 0  ;;  %v4048_v34 = vmul.u32 %v4041_v30, %v4032_v62  ;;  %v15579_v9 = vmov 2102212464  }
 0x304   : > { %v9347_v55 = vmin.u32 %v3955_v60, %v3953_v46  ;;  %vm4050_vm11 = vc.u32 %v12511_v10, %v12515_v36  ;;  %v4051_v28 = vadd.s32 1, %v12516_v35  ;;  %v4109_v37 = vsel %vm4108_vm15, %v4107_v26, 0 }
 0x305   : > { %v4111_v2 = vand.u32 31, %v4109_v37  ;;  %v12537_v12 = vshrl.u32 %v4109_v37, 5 }
 0x306   : > { %v3957_v25 = vclz %v9347_v55  ;;  %v4052_v13 = vsel %vm4050_vm11, %v4051_v28, %v12516_v35  ;;  %v3735_v35 = vpop.permute.xlu1 %3734  ;;  %v4104_v55 = vand.u32 8388607, %v15415_v7 }
 0x307   : > { %v4053_v27 = vadd.s32 %v4052_v13, %v4048_v34  ;;  %v12524_v0 = vsub.s32 32, %v4111_v2  ;;  %v4123_v62 = vshll.u32 %v15579_v9, %v4111_v2  ;;  %v4117_v34 = vshll.u32 %v15420_v45, %v4111_v2 }
 0x308   : > { %v9348_v48 = vadd.s32 4294967294, %v3957_v25  ;;  %v4126_v31 = vshll.u32 %v15580_v8, %v4111_v2  ;;  %vm4132_vm2 = vcmp.lt.s32.totalorder %v12537_v12, 4  ;;  %vm4129_vm4 = vcmp.lt.s32.totalorder %v12537_v12, 1 }
 0x309   : > { %v4054_v47 = vadd.s32 536870912, %v4053_v27  ;;  %v4115_v30 = vshrl.u32 %v15420_v45, %v12524_v0  ;;  %v4118_v50 = vshrl.u32 %v15427_v56, %v12524_v0  ;;  %v4124_v26 = vshrl.u32 %v15416_v24, %v12524_v0 }
 0x30a   : > { %vm9349_vm1 = vcmp.lt.s32.totalorder %v9348_v48, 0  ;;  %v4127_v24 = vshrl.u32 %v15578_v44, %v12524_v0  ;;  %vm4131_vm5 = vcmp.lt.s32.totalorder %v12537_v12, 3  ;;  %vm4130_vm8 = vcmp.lt.s32.totalorder %v12537_v12, 2 }
 0x30b   : > { %v3960_v17 = vsel %vm9349_vm1, 0, %v9348_v48  ;;  %v4114_v48 = vshll.u32 %v15418_v11, %v4111_v2  ;;  %v12544_v13 = vshrl.u32 %v4054_v47, 30  ;;  %v4119_v7 = vor.u32 %v4118_v50, %v4117_v34 }
 0x30c   : > { %v3961_v54 = vsub.s32 32, %v3960_v17  ;;  %v3965_v4 = vsub.s32 4294967266, %v3960_v17  ;;  %v3962_v43 = vshll.u32 %v3953_v46, %v3960_v17  ;;  %v4121_v46 = vshrl.u32 %v15579_v9, %v12524_v0 }
 0x30d   : > { %v4120_v17 = vshll.u32 %v15427_v56, %v4111_v2 }
 0x30e   : > { %v3963_v60 = vshrl.u32 %v3945_v49, %v3961_v54  ;;  %v3966_v40 = vadd.s32 127, %v3965_v4  ;;  %v4125_v49 = vor.u32 %v4124_v26, %v4123_v62  ;;  %v3587_v54 = vmul.f32 100.0, %v12183_v41  ;;  %v3799_v26 = vpop.permute.xlu1 %3798 }
 0x30f   : > { %v4116_v4 = vor.u32 %v4115_v30, %v4114_v48  ;;  %v4056_v41 = vshll.u32 %v12544_v13, 30 }
 0x310   : > { %v3964_v25 = vor.u32 %v3963_v60, %v3962_v43  ;;  %v3967_v28 = vshll.u32 %v3966_v40, 23  ;;  %v3975_v43 = vsub.s32 4, %v12500_v33  ;;  %v4105_v60 = vor.u32 8388608, %v4104_v55 }
 0x311   : > { %v4122_v40 = vor.u32 %v4121_v46, %v4120_v17  ;;  %v3843_v11 = vsel %vm405_vm0, %v3587_v54, %v3671_v5  ;;  %v4138_v30 = vsel %vm4132_vm2, %v4125_v49, 920167782  ;;  %v4128_v46 = vor.u32 %v4127_v24, %v4126_v31 }
 0x312   : > { %v3968_v37 = vor.u32 4788187, %v3967_v28  ;;  %v3971_v47 = vcvt.s32.f32 %v3964_v25  ;;  %v3859_v50 = vsel %vm635_vm3, %v3843_v11, %v3735_v35  ;;  %v4137_v5 = vsel %vm4129_vm4, %v4116_v4, %v4119_v7 }
 0x313   : > { %v4139_v2 = vsel %vm4131_vm5, %v4122_v40, %v4138_v30  ;;  %v12565_v62 = vsel %vm15462_vm10, %v3859_v50, %v3799_v26  ;;  %v15581_v25 = vand.u32 2147483647, %v12433_v58  ;;  %v3976_v31 = vsel %vm3891_vm7, %v3975_v43, %v12500_v33 }
 0x314   : > { %v3969_v45 = vand.u32 2147483647, %v3968_v37  ;;  %v4140_v11 = vsel %vm4130_vm8, %v4137_v5, %v4139_v2  ;;  %v4145_v24 = vshll.u32 %v4105_v60, 8  ;;  %v12576_v48 = vsub.s32 %v4053_v27, %v4056_v41 }
 0x315   : > { %vm3890_vm6 = vcmp.le.f32.partialorder %v15581_v25, 0.7853982  ;;  %v4142_v34 = vsel %vm4132_vm2, %v4128_v46, 1326507024  ;;  %v4204_v17 = vand.u32 2139095040, %v12565_v62 }
 0x316   : > { %v3972_v55 = vmul.f32 %v3971_v47, %v3969_v45  ;;  %v4141_v45 = vsel %vm4129_vm4, %v4119_v7, %v4122_v40  ;;  %v4143_v33 = vsel %vm4131_vm5, %v4125_v49, %v4142_v34  ;;  %v3978_v47 = vsel %vm3890_vm6, 0, %v3976_v31 }
 0x317   : > { %v12584_v37 = vmul.u32.u64.low %v4145_v24, %v4140_v11  ;;  %v12585_v43 = vmul.u32.u64.high %v4145_v24, %v4140_v11, %v12584_v37  ;;  %v4134_v27 = vsel %vm4132_vm2, %v4122_v40, 2102212464  ;;  %v4144_v60 = vsel %vm4130_vm8, %v4141_v45, %v4143_v33 }
 0x318   : > { %v3973_v28 = vxor.u32 2147483648, %v3972_v55  ;;  %v15582_v26 = vmov 683565275   ;;  %v12594_v30 = vmul.u32.u64.low %v4145_v24, %v4144_v60  ;;  %v12595_v50 = vmul.u32.u64.high %v4145_v24, %v4144_v60, %v12594_v30 }
 0x319   : > { %v4113_v41 = vshrl.u32 %v15582_v26, %v12524_v0  ;;  %v4059_v49 = vsub.s32 0, %v12576_v48  ;;  %v4135_v5 = vsel %vm4131_vm5, %v4119_v7, %v4134_v27  ;;  %v3982_v40 = vadd.s32 3, %v3978_v47  ;;  %v3673_v0 = vpop.permute.xlu0 %3672 }
 0x31a   : > { %v3974_v35 = vsel %vm3891_vm7, %v3973_v28, %v3972_v55  ;;  %v4205_v55 = vshrl.u32 %v4204_v17, 23  ;;  %v4155_v2 = vadd.s32 1, %v12585_v43  ;;  %vm4154_vm12 = vc.u32 %v12595_v50, %v12584_v37 }
 0x31b   : > { %v3977_v54 = vsel %vm3890_vm6, %v12433_v58, %v3974_v35  ;;  %v4133_v46 = vsel %vm4129_vm4, %v4113_v41, %v4116_v4  ;;  %v9351_v28 = vmin.u32 %v4059_v49, %v12576_v48  ;;  %v5666_v45 = vand.u32 3, %v3978_v47 }
 0x31c   : > { %10388 = vcosq.f32 %v3977_v54  ;;  %v9358_v25 = vadd.s32 4294967169, %v4205_v55  ;;  %v4136_v31 = vsel %vm4130_vm8, %v4133_v46, %v4135_v5  ;;  %v3983_v35 = vand.u32 3, %v3982_v40 }
 0x31d   : > { %10390 = vsinq.f32 %v3977_v54  ;;  %v4156_v4 = vsel %vm4154_vm12, %v4155_v2, %v12585_v43  ;;  %v4152_v7 = vmul.u32 %v4145_v24, %v4136_v31  ;;  %v4061_v54 = vclz %v9351_v28  ;;  %v3737_v30 = vpop.permute.xlu0 %3736 }
 0x31e   : > { %v4211_v11 = vadd.s32 1, %v9358_v25  ;;  %vm5667_vm14 = vcmp.lt.s32.totalorder %v5666_v45, 2  ;;  %vm3988_vm15 = vcmp.eq.s32.totalorder %v3983_v35, 2  ;;  %vm5668_vm11 = vcmp.eq.s32.totalorder %v5666_v45, 0 }
 0x31f   : > { %v4157_v41 = vadd.s32 %v4156_v4, %v4152_v7  ;;  %vm5671_vm1 = vcmp.eq.s32.totalorder %v5666_v45, 2  ;;  %vm3984_vm2 = vcmp.lt.s32.totalorder %v3983_v35, 2  ;;  %vm3985_vm4 = vcmp.eq.s32.totalorder %v3983_v35, 0 }
 0x320   : > { %vm4212_vm13 = vcmp.gt.s32.totalorder %v4211_v11, 0  ;;  %v9352_v24 = vadd.s32 4294967294, %v4061_v54  ;;  %vm3981_vm5 = vweird.f32 %v12433_v58  ;;  %v3588_v31 = vmul.f32 100.0, %v12189_v15 }
 0x321   : > { %v4213_v34 = vsel %vm4212_vm13, %v4211_v11, 0  ;;  %v4158_v2 = vadd.s32 536870912, %v4157_v41  ;;  %v15426_v11 = vand.u32 2147483647, %v12565_v62  ;;  %v3801_v35 = vpop.permute.xlu0 %3800  ;;  %v15585_v7 = vmov 2475754826  }
 0x322   : > { %v4215_v33 = vand.u32 31, %v4213_v34  ;;  %vm9353_vm6 = vcmp.lt.s32.totalorder %v9352_v24, 0  ;;  %v3844_v4 = vsel %vm405_vm0, %v3588_v31, %v3673_v0  ;;  %v4214_v0 = vshrl.u32 %v4213_v34, 5 }
 0x323   : > { %v12620_v54 = vshrl.u32 %v4158_v2, 30  ;;  %v3860_v45 = vsel %vm635_vm3, %v3844_v4, %v3737_v30  ;;  %v4208_v15 = vand.u32 8388607, %v15426_v11 }
 0x324   : > { %v4216_v46 = vsub.s32 32, %v4215_v33  ;;  %v4227_v30 = vshll.u32 %v15579_v9, %v4215_v33  ;;  %v4230_v31 = vshll.u32 %v15580_v8, %v4215_v33  ;;  %vm4233_vm7 = vcmp.lt.s32.totalorder %v4214_v0, 1 }
 0x325   : > { %v4160_v2 = vshll.u32 %v12620_v54, 30  ;;  %v4209_v4 = vor.u32 8388608, %v4208_v15  ;;  %vm4236_vm8 = vcmp.lt.s32.totalorder %v4214_v0, 4  ;;  %vm4235_vm12 = vcmp.lt.s32.totalorder %v4214_v0, 3 }
 0x326   : > { %v10389_v17 = vpop.eup %10388  ;;  %v4222_v58 = vshrl.u32 %v15427_v56, %v4216_v46  ;;  %vm4234_vm13 = vcmp.lt.s32.totalorder %v4214_v0, 2 }
 0x327   : > { %v10391_v27 = vpop.eup %10390  ;;  %v3989_v60 = vxor.u32 2147483648, %v10389_v17  ;;  %v12642_v11 = vsub.s32 %v4157_v41, %v4160_v2  ;;  %v4249_v20 = vshll.u32 %v4209_v4, 8 }
 0x328   : > { %v3986_v49 = vxor.u32 2147483648, %v10391_v27 }
 0x329   : > { %v3990_v12 = vsel %vm3988_vm15, %v3989_v60, %v10391_v27  ;;  %v5673_v47 = vsel %vm5671_vm1, %v3989_v60, %v10391_v27  ;;  %v4218_v27 = vshll.u32 %v15582_v26, %v4215_v33  ;;  %v4221_v60 = vshll.u32 %v15585_v7, %v4215_v33 }
 0x32a   : > { %v3987_v43 = vsel %vm3985_vm4, %v10389_v17, %v3986_v49  ;;  %v5670_v55 = vsel %vm5668_vm11, %v10389_v17, %v3986_v49  ;;  %v4219_v17 = vshrl.u32 %v15585_v7, %v4216_v46  ;;  %v12628_v49 = vsel %vm15462_vm10, %v3860_v45, %v3801_v35 }
 0x32b   : > { %v3991_v5 = vsel %vm3984_vm2, %v3987_v43, %v3990_v12  ;;  %v5674_v40 = vsel %vm5667_vm14, %v5670_v55, %v5673_v47  ;;  %v12630_v12 = vsel %vm9353_vm6, 0, %v9352_v24  ;;  %v4223_v43 = vor.u32 %v4222_v58, %v4221_v60 }
 0x32c   : > { %v12611_v25 = vsel %vm3981_vm5, nan, %v3991_v5  ;;  %v12613_v28 = vsel %vm3981_vm5, nan, %v5674_v40  ;;  %v4220_v47 = vor.u32 %v4219_v17, %v4218_v27  ;;  %v4224_v55 = vshll.u32 %v15427_v56, %v4215_v33 }
 0x32d   : > { %15583 = vst [vmem:[#allocation15_spill] sm:$0xff] %v12611_v25  ;;  %15584 = vst [vmem:[#allocation21_spill] sm:$0xff] %v12613_v28  ;;  %v4225_v5 = vshrl.u32 %v15579_v9, %v4216_v46  ;;  %v4228_v40 = vshrl.u32 %v15580_v8, %v4216_v46  ;;  %v4231_v35 = vshrl.u32 %v15578_v44, %v4216_v46  ;;  %v4308_v24 = vand.u32 2139095040, %v12628_v49 }
 0x32e   : > { %v4069_v58 = vsub.s32 4294967266, %v12630_v12  ;;  %v4241_v27 = vsel %vm4233_vm7, %v4220_v47, %v4223_v43  ;;  %v4163_v2 = vsub.s32 0, %v12642_v11  ;;  %v4066_v0 = vshll.u32 %v12576_v48, %v12630_v12 }
 0x32f   : > { %v4226_v34 = vor.u32 %v4225_v5, %v4224_v55  ;;  %v4229_v17 = vor.u32 %v4228_v40, %v4227_v30  ;;  %v4232_v45 = vor.u32 %v4231_v35, %v4230_v31  ;;  %v4309_v56 = vshrl.u32 %v4308_v24, 23 }
 0x330   : > { %v4070_v15 = vadd.s32 127, %v4069_v58  ;;  %v4217_v40 = vshrl.u32 %v15582_v26, %v4216_v46  ;;  %v4049_v46 = vadd.s32 %v12515_v36, %v12511_v10  ;;  %vm3995_vm6 = vcmp.lt.s32.totalorder %v12451_v6, 0 }
 0x331   : > { %v4242_v60 = vsel %vm4236_vm8, %v4229_v17, 920167782  ;;  %v4246_v19 = vsel %vm4236_vm8, %v4232_v45, 1326507024  ;;  %v4238_v55 = vsel %vm4236_vm8, %v4226_v34, 2102212464  ;;  %v4245_v30 = vsel %vm4233_vm7, %v4223_v43, %v4226_v34 }
 0x332   : > { %v4243_v33 = vsel %vm4235_vm12, %v4226_v34, %v4242_v60  ;;  %v4247_v31 = vsel %vm4235_vm12, %v4229_v17, %v4246_v19  ;;  %v9362_v24 = vadd.s32 4294967169, %v4309_v56  ;;  %v4237_v45 = vsel %vm4233_vm7, %v4217_v40, %v4220_v47 }
 0x333   : > { %v4244_v5 = vsel %vm4234_vm13, %v4241_v27, %v4243_v33  ;;  %v4239_v4 = vsel %vm4235_vm12, %v4223_v43, %v4238_v55  ;;  %v4248_v58 = vsel %vm4234_vm13, %v4245_v30, %v4247_v31  ;;  %v3675_v27 = vpop.permute.xlu1 %3674  ;;  %v4065_v34 = vsub.s32 32, %v12630_v12 }
 0x334   : > { %v12649_v35 = vmul.u32.u64.low %v4249_v20, %v4244_v5  ;;  %v12650_v41 = vmul.u32.u64.high %v4249_v20, %v4244_v5, %v12649_v35  ;;  %v4071_v19 = vshll.u32 %v4070_v15, 23  ;;  %v9355_v33 = vmin.u32 %v4163_v2, %v12642_v11 }
 0x335   : > { %v12660_v17 = vmul.u32.u64.low %v4249_v20, %v4248_v58  ;;  %v12661_v60 = vmul.u32.u64.high %v4249_v20, %v4248_v58, %v12660_v17  ;;  %v4240_v56 = vsel %vm4234_vm13, %v4237_v45, %v4239_v4  ;;  %v4315_v5 = vadd.s32 1, %v9362_v24 }
 0x336   : > { %v4259_v47 = vadd.s32 1, %v12650_v41  ;;  %v4067_v43 = vshrl.u32 %v4049_v46, %v4065_v34  ;;  %v4256_v55 = vmul.u32 %v4249_v20, %v4240_v56  ;;  %v15433_v30 = vand.u32 2147483647, %v12628_v49 }
 0x337   : > { %vm4316_vm14 = vcmp.gt.s32.totalorder %v4315_v5, 0  ;;  %vm4258_vm15 = vc.u32 %v12661_v60, %v12649_v35  ;;  %v3739_v36 = vpop.permute.xlu1 %3738  ;;  %v4072_v15 = vor.u32 4788187, %v4071_v19  ;;  %v4165_v40 = vclz %v9355_v33 }
 0x338   : > { %v4317_v10 = vsel %vm4316_vm14, %v4315_v5, 0  ;;  %v4260_v31 = vsel %vm4258_vm15, %v4259_v47, %v12650_v41  ;;  %v3589_v4 = vmul.f32 100.0, %v12246_v16  ;;  %v4068_v20 = vor.u32 %v4067_v43, %v4066_v0 }
 0x339   : > { %v4319_v2 = vand.u32 31, %v4317_v10  ;;  %v4261_v45 = vadd.s32 %v4260_v31, %v4256_v55  ;;  %v4073_v34 = vand.u32 2147483647, %v4072_v15  ;;  %v9356_v46 = vadd.s32 4294967294, %v4165_v40 }
 0x33a   : > { %v4312_v17 = vand.u32 8388607, %v15433_v30  ;;  %v3845_v19 = vsel %vm405_vm0, %v3589_v4, %v3675_v27  ;;  %v15586_v41 = vmov 2131351028   ;;  %v12681_v5 = vshrl.u32 %v4317_v10, 5 }
 0x33b   : > { %v4320_v24 = vsub.s32 32, %v4319_v2  ;;  %v4262_v58 = vadd.s32 536870912, %v4261_v45  ;;  %v3803_v12 = vpop.permute.xlu1 %3802  ;;  %v4334_v16 = vshll.u32 %v15580_v8, %v4319_v2  ;;  %v3861_v55 = vsel %vm635_vm3, %v3845_v19, %v3739_v36 }
 0x33c   : > { %v4325_v27 = vshll.u32 %v15585_v7, %v4319_v2  ;;  %v4328_v40 = vshll.u32 %v15586_v41, %v4319_v2  ;;  %v4331_v31 = vshll.u32 %v15579_v9, %v4319_v2  ;;  %v4075_v0 = vcvt.s32.f32 %v4068_v20 }
 0x33d   : > { %v12676_v33 = vshrl.u32 %v4262_v58, 30  ;;  %v4326_v56 = vshrl.u32 %v15586_v41, %v4320_v24  ;;  %v4329_v47 = vshrl.u32 %v15579_v9, %v4320_v24  ;;  %v4332_v48 = vshrl.u32 %v15580_v8, %v4320_v24 }
 0x33e   : > { %v4335_v43 = vshrl.u32 %v15578_v44, %v4320_v24  ;;  %v4323_v15 = vshrl.u32 %v15585_v7, %v4320_v24  ;;  %v12692_v10 = vsel %vm15462_vm10, %v3861_v55, %v3803_v12  ;;  %v4322_v30 = vshll.u32 %v15582_v26, %v4319_v2 }
 0x33f   : > { %v4264_v4 = vshll.u32 %v12676_v33, 30  ;;  %v4327_v29 = vor.u32 %v4326_v56, %v4325_v27  ;;  %v4330_v32 = vor.u32 %v4329_v47, %v4328_v40  ;;  %v4333_v36 = vor.u32 %v4332_v48, %v4331_v31 }
 0x340   : > { %v4336_v58 = vor.u32 %v4335_v43, %v4334_v16  ;;  %v4076_v19 = vmul.f32 %v4075_v0, %v4073_v34  ;;  %vm9357_vm11 = vcmp.lt.s32.totalorder %v9356_v46, 0  ;;  %v4313_v39 = vor.u32 8388608, %v4312_v17 }
 0x341   : > { %v4324_v18 = vor.u32 %v4323_v15, %v4322_v30  ;;  %vm4340_vm1 = vcmp.lt.s32.totalorder %v12681_v5, 4  ;;  %v12696_v57 = vsub.s32 %v4261_v45, %v4264_v4  ;;  %vm4337_vm2 = vcmp.lt.s32.totalorder %v12681_v5, 1 }
 0x342   : > { %v4350_v20 = vsel %vm4340_vm1, %v4336_v58, 1326507024  ;;  %v4412_v12 = vand.u32 2139095040, %v12692_v10  ;;  %vm4339_vm4 = vcmp.lt.s32.totalorder %v12681_v5, 3  ;;  %v4346_v2 = vsel %vm4340_vm1, %v4333_v36, 920167782 }
 0x343   : > { %v4349_v34 = vsel %vm4337_vm2, %v4327_v29, %v4330_v32  ;;  %v4077_v30 = vxor.u32 2147483648, %v4076_v19  ;;  %v4351_v45 = vsel %vm4339_vm4, %v4333_v36, %v4350_v20  ;;  %v4168_v17 = vsel %vm9357_vm11, 0, %v9356_v46 }
 0x344   : > { %vm4338_vm5 = vcmp.lt.s32.totalorder %v12681_v5, 2  ;;  %v4345_v56 = vsel %vm4337_vm2, %v4324_v18, %v4327_v29  ;;  %v4353_v47 = vshll.u32 %v4313_v39, 8  ;;  %v4267_v48 = vsub.s32 0, %v12696_v57 }
 0x345   : > { %v4347_v16 = vsel %vm4339_vm4, %v4330_v32, %v4346_v2  ;;  %v4352_v43 = vsel %vm4338_vm5, %v4349_v34, %v4351_v45  ;;  %v4413_v55 = vshrl.u32 %v4412_v12, 23  ;;  %v4079_v15 = vsub.s32 4, %v12544_v13  ;;  %v3677_v2 = vpop.permute.xlu0 %3676 }
 0x346   : > { %v4169_v46 = vsub.s32 32, %v4168_v17  ;;  %v4342_v27 = vsel %vm4340_vm1, %v4330_v32, 2102212464  ;;  %v12721_v40 = vmul.u32.u64.low %v4353_v47, %v4352_v43  ;;  %v12722_v31 = vmul.u32.u64.high %v4353_v47, %v4352_v43, %v12721_v40 }
 0x347   : > { %v4173_v39 = vsub.s32 4294967266, %v4168_v17  ;;  %v4321_v0 = vshrl.u32 %v15582_v26, %v4320_v24  ;;  %v4348_v4 = vsel %vm4338_vm5, %v4345_v56, %v4347_v16  ;;  %v9366_v58 = vadd.s32 4294967169, %v4413_v55 }
 0x348   : > { %v4078_v36 = vsel %vm3995_vm6, %v4077_v30, %v4076_v19  ;;  %v9359_v20 = vmin.u32 %v4267_v48, %v12696_v57  ;;  %v3590_v12 = vmul.f32 100.0, %v12252_v61  ;;  %v4153_v32 = vadd.s32 %v12584_v37, %v12595_v50 }
 0x349   : > { %v4341_v34 = vsel %vm4337_vm2, %v4321_v0, %v4324_v18  ;;  %v4343_v24 = vsel %vm4339_vm4, %v4327_v29, %v4342_v27  ;;  %v4419_v45 = vadd.s32 1, %v9366_v58  ;;  %v15587_v56 = vand.u32 2147483647, %v12451_v6  ;;  %v3741_v5 = vpop.permute.xlu0 %3740 }
 0x34a   : > { %v4080_v61 = vsel %vm3995_vm6, %v4079_v15, %v12544_v13  ;;  %v12746_v19 = vmul.u32.u64.low %v4353_v47, %v4348_v4  ;;  %v12747_v30 = vmul.u32.u64.high %v4353_v47, %v4348_v4, %v12746_v19  ;;  %v4171_v29 = vshrl.u32 %v4153_v32, %v4169_v46 }
 0x34b   : > { %vm12739_vm7 = vcmp.le.f32.partialorder %v15587_v56, 0.7853982  ;;  %v4174_v37 = vadd.s32 127, %v4173_v39  ;;  %vm4420_vm8 = vcmp.gt.s32.totalorder %v4419_v45, 0  ;;  %v4269_v50 = vclz %v9359_v20 }
 0x34c   : > { %v4081_v18 = vsel %vm12739_vm7, %v12451_v6, %v4078_v36  ;;  %v4344_v48 = vsel %vm4338_vm5, %v4341_v34, %v4343_v24  ;;  %v15444_v43 = vand.u32 2147483647, %v12692_v10  ;;  %v4421_v55 = vsel %vm4420_vm8, %v4419_v45, 0 }
 0x34d   : > { %v4170_v13 = vshll.u32 %v12642_v11, %v4168_v17  ;;  %vm4362_vm12 = vc.u32 %v12722_v31, %v12746_v19  ;;  %v4423_v15 = vand.u32 31, %v4421_v55  ;;  %v12760_v27 = vmul.f32 100.0, %v12297_v42 }
 0x34e   : > { %v12764_v46 = vsel %vm12739_vm7, 0, %v4080_v61  ;;  %v4363_v40 = vadd.s32 1, %v12747_v30  ;;  %v12768_v39 = vmul.f32 100.0, %v12292_v21  ;;  %v12771_v0 = vmul.f32 100.0, %v12327_v1 }
 0x34f   : > { %10392 = vcosq.f32 %v4081_v18  ;;  %v4172_v11 = vor.u32 %v4171_v29, %v4170_v13  ;;  %v4360_v17 = vmul.u32 %v4353_v47, %v4344_v48  ;;  %v4424_v4 = vsub.s32 32, %v4423_v15 }
 0x350   : > { %v4175_v58 = vshll.u32 %v4174_v37, 23  ;;  %v9360_v42 = vadd.s32 4294967294, %v4269_v50  ;;  %v4364_v36 = vsel %vm4362_vm12, %v4363_v40, %v12747_v30  ;;  %v4416_v20 = vand.u32 8388607, %v15444_v43  ;;  %v3805_v40 = vpop.permute.xlu0 %3804 }
 0x351   : > { %v4365_v32 = vadd.s32 %v4364_v36, %v4360_v17  ;;  %v4426_v34 = vshll.u32 %v15582_v26, %v4423_v15  ;;  %v4427_v21 = vshrl.u32 %v15585_v7, %v4424_v4  ;;  %v4429_v24 = vshll.u32 %v15585_v7, %v4423_v15 }
 0x352   : > { %v4430_v1 = vshrl.u32 %v15586_v41, %v4424_v4  ;;  %v4433_v45 = vshrl.u32 %v15579_v9, %v4424_v4  ;;  %v4435_v47 = vshll.u32 %v15579_v9, %v4423_v15  ;;  %v4436_v56 = vshrl.u32 %v15580_v8, %v4424_v4 }
 0x353   : > { %v4366_v16 = vadd.s32 536870912, %v4365_v32  ;;  %v12783_v61 = vshrl.u32 %v4421_v55, 5  ;;  %v4432_v30 = vshll.u32 %v15586_v41, %v4423_v15  ;;  %v4439_v29 = vshrl.u32 %v15578_v44, %v4424_v4 }
 0x354   : > { %v4428_v37 = vor.u32 %v4427_v21, %v4426_v34  ;;  %v4431_v50 = vor.u32 %v4430_v1, %v4429_v24  ;;  %v4437_v48 = vor.u32 %v4436_v56, %v4435_v47  ;;  %v4438_v13 = vshll.u32 %v15580_v8, %v4423_v15 }
 0x355   : > { %v4176_v17 = vor.u32 4788187, %v4175_v58  ;;  %v12788_v36 = vshrl.u32 %v4366_v16, 30  ;;  %v3846_v43 = vsel %vm405_vm0, %v3590_v12, %v3677_v2  ;;  %v4417_v22 = vor.u32 8388608, %v4416_v20 }
 0x356   : > { %10394 = vsinq.f32 %v4081_v18  ;;  %v3862_v55 = vsel %vm635_vm3, %v3846_v43, %v3741_v5  ;;  %v4434_v14 = vor.u32 %v4433_v45, %v4432_v30  ;;  %v4440_v52 = vor.u32 %v4439_v29, %v4438_v13 }
 0x357   : > { %v4368_v28 = vshll.u32 %v12788_v36, 30  ;;  %vm4441_vm13 = vcmp.lt.s32.totalorder %v12783_v61, 1  ;;  %vm4444_vm14 = vcmp.lt.s32.totalorder %v12783_v61, 4  ;;  %v12796_v15 = vsel %vm15462_vm10, %v3862_v55, %v3805_v40 }
 0x358   : > { %v4179_v58 = vcvt.s32.f32 %v4172_v11  ;;  %vm9361_vm15 = vcmp.lt.s32.totalorder %v9360_v42, 0  ;;  %v4449_v12 = vsel %vm4441_vm13, %v4428_v37, %v4431_v50  ;;  %v4450_v2 = vsel %vm4444_vm14, %v4437_v48, 920167782 }
 0x359   : > { %v12802_v18 = vpop.eup %10392  ;;  %v4177_v43 = vand.u32 2147483647, %v4176_v17  ;;  %v12804_v5 = vsub.s32 %v4365_v32, %v4368_v28  ;;  %vm4443_vm11 = vcmp.lt.s32.totalorder %v12783_v61, 3  ;;  %v12807_v20 = vshll.u32 %v4417_v22, 8 }
 0x35a   : > { %vm4442_vm1 = vcmp.lt.s32.totalorder %v12783_v61, 2  ;;  %v4451_v11 = vsel %vm4443_vm11, %v4434_v14, %v4450_v2  ;;  %v4454_v34 = vsel %vm4444_vm14, %v4440_v52, 1326507024  ;;  %v4516_v21 = vand.u32 2139095040, %v12796_v15 }
 0x35b   : > { %v12815_v24 = vsel %vm9361_vm15, 0, %v9360_v42  ;;  %v4371_v1 = vsub.s32 0, %v12804_v5  ;;  %v4452_v28 = vsel %vm4442_vm1, %v4449_v12, %v4451_v11  ;;  %v4453_v22 = vsel %vm4441_vm13, %v4431_v50, %v4434_v14 }
 0x35c   : > { %v4183_v32 = vsub.s32 4, %v12620_v54  ;;  %v4455_v45 = vsel %vm4443_vm11, %v4437_v48, %v4454_v34  ;;  %v12826_v47 = vmul.u32.u64.low %v12807_v20, %v4452_v28  ;;  %v12827_v52 = vmul.u32.u64.high %v12807_v20, %v4452_v28, %v12826_v47 }
 0x35d   : > { %v4180_v42 = vmul.f32 %v4179_v58, %v4177_v43  ;;  %v9363_v56 = vmin.u32 %v4371_v1, %v12804_v5  ;;  %v4425_v16 = vshrl.u32 %v15582_v26, %v4424_v4  ;;  %v4446_v30 = vsel %vm4444_vm14, %v4434_v14, 2102212464  ;;  %v3679_v1 = vpop.permute.xlu1 %3678 }
 0x35e   : > { %v4277_v29 = vsub.s32 4294967266, %v12815_v24  ;;  %v4456_v13 = vsel %vm4442_vm1, %v4453_v22, %v4455_v45  ;;  %v4517_v40 = vshrl.u32 %v4516_v21, 23  ;;  %v12838_v48 = vmul.f32 100.0, %v12322_v53 }
 0x35f   : > { %v4086_v17 = vadd.s32 3, %v12764_v46  ;;  %vm4099_vm2 = vcmp.lt.s32.totalorder %v12480_v51, 0  ;;  %v4373_v55 = vclz %v9363_v56  ;;  %v4445_v4 = vsel %vm4441_vm13, %v4425_v16, %v4428_v37 }
 0x360   : > { %v12844_v58 = vpop.eup %10394  ;;  %v4447_v14 = vsel %vm4443_vm11, %v4431_v50, %v4446_v30  ;;  %v12849_v12 = vmul.u32.u64.low %v12807_v20, %v4456_v13  ;;  %v12850_v2 = vmul.u32.u64.high %v12807_v20, %v4456_v13, %v12849_v12  ;;  %v9370_v43 = vadd.s32 4294967169, %v4517_v40 }
 0x361   : > { %v4181_v53 = vxor.u32 2147483648, %v4180_v42  ;;  %v4184_v11 = vsel %vm4099_vm2, %v4183_v32, %v12620_v54  ;;  %v4273_v34 = vsub.s32 32, %v12815_v24  ;;  %v9364_v21 = vadd.s32 4294967294, %v4373_v55 }
 0x362   : > { %v4278_v37 = vadd.s32 127, %v4277_v29  ;;  %v4467_v28 = vadd.s32 1, %v12827_v52  ;;  %v4523_v22 = vadd.s32 1, %v9370_v43  ;;  %v12858_v50 = vmul.f32 100.0, %v12199_v23 }
 0x363   : > { %v15591_v45 = vand.u32 2147483647, %v12480_v51  ;;  %v4257_v54 = vadd.s32 %v12649_v35, %v12661_v60  ;;  %v4448_v32 = vsel %vm4442_vm1, %v4445_v4, %v4447_v14  ;;  %v12871_v16 = vmul.f32 100.0, %v12238_v63  ;;  %v3743_v14 = vpop.permute.xlu1 %3742 }
 0x364   : > { %15590 = vst [vmem:[#allocation13_spill] sm:$0xff] %v12858_v50  ;;  %v12873_v30 = vand.u32 3, %v4086_v17  ;;  %v12876_v23 = vand.u32 3, %v12764_v46  ;;  %vm4466_vm5 = vc.u32 %v12850_v2, %v12826_v47  ;;  %v4182_v35 = vsel %vm4099_vm2, %v4181_v53, %v4180_v42 }
 0x365   : > { %vm12862_vm4 = vcmp.le.f32.partialorder %v15591_v45, 0.7853982  ;;  %v4275_v60 = vshrl.u32 %v4257_v54, %v4273_v34  ;;  %vm9365_vm6 = vcmp.lt.s32.totalorder %v9364_v21, 0  ;;  %v15451_v61 = vand.u32 2147483647, %v12796_v15 }
 0x366   : > { %v4186_v29 = vsel %vm12862_vm4, 0, %v4184_v11  ;;  %v4279_v63 = vshll.u32 %v4278_v37, 23  ;;  %v4464_v13 = vmul.u32 %v12807_v20, %v4448_v32  ;;  %v4468_v40 = vsel %vm4466_vm5, %v4467_v28, %v12827_v52 }
 0x367   : > { %vm4524_vm7 = vcmp.gt.s32.totalorder %v4523_v22, 0  ;;  %v15453_v46 = vxor.u32 2147483648, %v12844_v58  ;;  %v15452_v17 = vxor.u32 2147483648, %v12802_v18  ;;  %v4190_v55 = vadd.s32 3, %v4186_v29 }
 0x368   : > { %v4274_v4 = vshll.u32 %v12696_v57, %v12815_v24  ;;  %vm4089_vm8 = vcmp.eq.s32.totalorder %v12873_v30, 0  ;;  %v4376_v42 = vsel %vm9365_vm6, 0, %v9364_v21  ;;  %v4469_v12 = vadd.s32 %v4468_v40, %v4464_v13 }
 0x369   : > { %v4525_v43 = vsel %vm4524_vm7, %v4523_v22, 0  ;;  %vm4092_vm12 = vcmp.eq.s32.totalorder %v12873_v30, 2  ;;  %v4185_v20 = vsel %vm12862_vm4, %v12480_v51, %v4182_v35  ;;  %v12896_v52 = vand.u32 3, %v4186_v29 }
 0x36a   : > { %v4276_v53 = vor.u32 %v4275_v60, %v4274_v4  ;;  %v4280_v11 = vor.u32 4788187, %v4279_v63  ;;  %v4470_v34 = vadd.s32 536870912, %v4469_v12  ;;  %v4520_v57 = vand.u32 8388607, %v15451_v61  ;;  %v3807_v60 = vpop.permute.xlu1 %3806 }
 0x36b   : > { %v4527_v24 = vand.u32 31, %v4525_v43  ;;  %v12903_v21 = vsel %vm4089_vm8, %v12802_v18, %v15453_v46  ;;  %v12908_v37 = vsel %vm4092_vm12, %v15452_v17, %v12844_v58  ;;  %v12910_v28 = vand.u32 3, %v4190_v55 }
 0x36c   : > { %v4381_v22 = vsub.s32 4294967266, %v4376_v42  ;;  %10396 = vcosq.f32 %v4185_v20  ;;  %vm4203_vm13 = vcmp.lt.s32.totalorder %v12565_v62, 0  ;;  %v12913_v45 = vshrl.u32 %v4470_v34, 30 }
 0x36d   : > { %v12915_v56 = vsub.s32 32, %v4527_v24  ;;  %v3847_v54 = vsel %vm405_vm0, %v12768_v39, %v3679_v1  ;;  %10398 = vsinq.f32 %v4185_v20  ;;  %v4287_v32 = vsub.s32 4, %v12676_v33 }
 0x36e   : > { %v4361_v29 = vadd.s32 %v12746_v19, %v12722_v31  ;;  %v4377_v35 = vsub.s32 32, %v4376_v42  ;;  %v4281_v63 = vand.u32 2147483647, %v4280_v11  ;;  %v4283_v13 = vcvt.s32.f32 %v4276_v53 }
 0x36f   : > { %v4472_v40 = vshll.u32 %v12913_v45, 30  ;;  %v4521_v55 = vor.u32 8388608, %v4520_v57  ;;  %v4382_v4 = vadd.s32 127, %v4381_v22  ;;  %v4531_v34 = vshrl.u32 %v15585_v7, %v12915_v56 }
 0x370   : > { %v4534_v39 = vshrl.u32 %v15586_v41, %v12915_v56  ;;  %v3863_v1 = vsel %vm635_vm3, %v3847_v54, %v3743_v14  ;;  %v4537_v31 = vshrl.u32 %v15579_v9, %v12915_v56  ;;  %v4540_v19 = vshrl.u32 %v15580_v8, %v12915_v56 }
 0x371   : > { %v12928_v20 = vsub.s32 %v4469_v12, %v4472_v40  ;;  %v12935_v53 = vsel %vm15462_vm10, %v3863_v1, %v3807_v60  ;;  %v4379_v11 = vshrl.u32 %v4361_v29, %v4377_v35  ;;  %v4530_v57 = vshll.u32 %v15582_v26, %v4527_v24 }
 0x372   : > { %v4533_v22 = vshll.u32 %v15585_v7, %v4527_v24  ;;  %v4543_v61 = vshrl.u32 %v15578_v44, %v12915_v56  ;;  %v15594_v14 = vand.u32 2147483647, %v12565_v62  ;;  %v12948_v40 = vshrl.u32 %v4525_v43, 5 }
 0x373   : > { %v4475_v54 = vsub.s32 0, %v12928_v20  ;;  %v4536_v60 = vshll.u32 %v15586_v41, %v4527_v24  ;;  %v4539_v29 = vshll.u32 %v15579_v9, %v4527_v24  ;;  %v4383_v35 = vshll.u32 %v4382_v4, 23 }
 0x374   : > { %vm12943_vm14 = vcmp.le.f32.partialorder %v15594_v14, 0.7853982  ;;  %v4532_v1 = vor.u32 %v4531_v34, %v4530_v57  ;;  %v4535_v17 = vor.u32 %v4534_v39, %v4533_v22  ;;  %v4542_v46 = vshll.u32 %v15580_v8, %v4527_v24 }
 0x375   : > { %v4378_v25 = vshll.u32 %v12804_v5, %v4376_v42  ;;  %v9367_v14 = vmin.u32 %v4475_v54, %v12928_v20  ;;  %v4538_v3 = vor.u32 %v4537_v31, %v4536_v60  ;;  %v4541_v38 = vor.u32 %v4540_v19, %v4539_v29 }
 0x376   : > { %vm5771_vm15 = vcmp.eq.s32.totalorder %v12876_v23, 0  ;;  %vm5774_vm11 = vcmp.eq.s32.totalorder %v12876_v23, 2  ;;  %v4284_v43 = vmul.f32 %v4283_v13, %v4281_v63  ;;  %v4288_v59 = vsel %vm4203_vm13, %v4287_v32, %v12676_v33  ;;  %v12961_v39 = vpop.eup %10396 }
 0x377   : > { %v4544_v4 = vor.u32 %v4543_v61, %v4542_v46  ;;  %v4620_v34 = vand.u32 2139095040, %v12935_v53  ;;  %v4380_v24 = vor.u32 %v4379_v11, %v4378_v25  ;;  %v4477_v5 = vclz %v9367_v14  ;;  %v12966_v31 = vpop.eup %10398 }
 0x378   : > { %vm4545_vm1 = vcmp.lt.s32.totalorder %v12948_v40, 1  ;;  %v12964_v42 = vshll.u32 %v4521_v55, 8  ;;  %vm4088_vm2 = vcmp.lt.s32.totalorder %v12873_v30, 2  ;;  %v4384_v63 = vor.u32 4788187, %v4383_v35 }
 0x379   : > { %vm4546_vm4 = vcmp.lt.s32.totalorder %v12948_v40, 2  ;;  %vm4548_vm5 = vcmp.lt.s32.totalorder %v12948_v40, 4  ;;  %v4553_v33 = vsel %vm4545_vm1, %v4532_v1, %v4535_v17  ;;  %v9368_v61 = vadd.s32 4294967294, %v4477_v5 }
 0x37a   : > { %vm4547_vm6 = vcmp.lt.s32.totalorder %v12948_v40, 3  ;;  %v4554_v25 = vsel %vm4548_vm5, %v4541_v38, 920167782  ;;  %v4557_v46 = vsel %vm4545_vm1, %v4535_v17, %v4538_v3  ;;  %vm5770_vm7 = vcmp.lt.s32.totalorder %v12876_v23, 2 }
 0x37b   : > { %v4550_v32 = vsel %vm4548_vm5, %v4538_v3, 2102212464  ;;  %v4555_v13 = vsel %vm4547_vm6, %v4538_v3, %v4554_v25  ;;  %v4558_v55 = vsel %vm4548_vm5, %v4544_v4, 1326507024  ;;  %v4621_v19 = vshrl.u32 %v4620_v34, 23 }
 0x37c   : > { %vm9369_vm8 = vcmp.lt.s32.totalorder %v9368_v61, 0  ;;  %v4529_v11 = vshrl.u32 %v15582_v26, %v12915_v56  ;;  %v4556_v57 = vsel %vm4546_vm4, %v4553_v33, %v4555_v13  ;;  %v4559_v22 = vsel %vm4547_vm6, %v4541_v38, %v4558_v55  ;;  %v3681_v13 = vpop.permute.xlu0 %3680 }
 0x37d   : > { %v4290_v54 = vsel %vm12943_vm14, 0, %v4288_v59  ;;  %v4560_v60 = vsel %vm4546_vm4, %v4557_v46, %v4559_v22  ;;  %v12990_v3 = vmul.u32.u64.low %v12964_v42, %v4556_v57  ;;  %v12991_v29 = vmul.u32.u64.high %v12964_v42, %v4556_v57, %v12990_v3 }
 0x37e   : > { %v4285_v35 = vxor.u32 2147483648, %v4284_v43  ;;  %v12994_v14 = vsel %vm9369_vm8, 0, %v9368_v61  ;;  %v4549_v56 = vsel %vm4545_vm1, %v4529_v11, %v4532_v1  ;;  %v4551_v38 = vsel %vm4547_vm6, %v4535_v17, %v4550_v32 }
 0x37f   : > { %vm4193_vm12 = vcmp.eq.s32.totalorder %v12910_v28, 0  ;;  %vm5877_vm5 = vcmp.eq.s32.totalorder %v12896_v52, 2  ;;  %v4385_v59 = vand.u32 2147483647, %v4384_v63  ;;  %v9374_v5 = vadd.s32 4294967169, %v4621_v19 }
 0x380   : > { %v13003_v4 = vmul.u32.u64.low %v12964_v42, %v4560_v60  ;;  %v13004_v34 = vmul.u32.u64.high %v12964_v42, %v4560_v60, %v13003_v4  ;;  %v15597_v33 = vxor.u32 2147483648, %v12844_v58  ;;  %v15598_v1 = vxor.u32 2147483648, %v12802_v18 }
 0x381   : > { %vm4196_vm1 = vcmp.eq.s32.totalorder %v12910_v28, 2  ;;  %vm5874_vm6 = vcmp.eq.s32.totalorder %v12896_v52, 0  ;;  %v4387_v63 = vcvt.s32.f32 %v4380_v24  ;;  %vm4307_vm8 = vcmp.lt.s32.totalorder %v12628_v49, 0 }
 0x382   : > { %v5773_v61 = vsel %vm5771_vm15, %v12802_v18, %v15597_v33  ;;  %v5776_v17 = vsel %vm5774_vm11, %v15598_v1, %v12844_v58  ;;  %v4485_v25 = vsub.s32 4294967266, %v12994_v14  ;;  %v4552_v46 = vsel %vm4546_vm4, %v4549_v56, %v4551_v38 }
 0x383   : > { %v4571_v32 = vadd.s32 1, %v12991_v29  ;;  %v4627_v55 = vadd.s32 1, %v9374_v5  ;;  %v13027_v18 = vsel %vm4088_vm2, %v12903_v21, %v12908_v37  ;;  %v4197_v58 = vxor.u32 2147483648, %v12961_v39 }
 0x384   : > { %v4286_v24 = vsel %vm4203_vm13, %v4285_v35, %v4284_v43  ;;  %v4294_v19 = vadd.s32 3, %v4290_v54  ;;  %v4388_v11 = vmul.f32 %v4387_v63, %v4385_v59  ;;  %vm4570_vm15 = vc.u32 %v13004_v34, %v12990_v3 }
 0x385   : > { %v15457_v40 = vand.u32 2147483647, %v12935_v53  ;;  %vm4628_vm11 = vcmp.gt.s32.totalorder %v4627_v55, 0  ;;  %v13037_v57 = vsel %vm5770_vm7, %v5773_v61, %v5776_v17  ;;  %v4194_v30 = vxor.u32 2147483648, %v12966_v31 }
 0x386   : > { %v4568_v21 = vmul.u32 %v12964_v42, %v4552_v46  ;;  %v3848_v37 = vsel %vm405_vm0, %v12760_v27, %v3681_v13  ;;  %v13043_v43 = vand.u32 3, %v4290_v54  ;;  %v4486_v22 = vadd.s32 127, %v4485_v25  ;;  %v3745_v54 = vpop.permute.xlu0 %3744 }
 0x387   : > { %v4572_v60 = vsel %vm4570_vm15, %v4571_v32, %v12991_v29  ;;  %v4629_v35 = vsel %vm4628_vm11, %v4627_v55, 0  ;;  %v4289_v56 = vsel %vm12943_vm14, %v12565_v62, %v4286_v24  ;;  %v13049_v23 = vand.u32 3, %v4294_v19 }
 0x388   : > { %v4391_v38 = vsub.s32 4, %v12788_v36  ;;  %v4573_v59 = vadd.s32 %v4572_v60, %v4568_v21  ;;  %v13055_v42 = vsel %vm4196_vm1, %v4197_v58, %v12966_v31  ;;  %v4389_v27 = vxor.u32 2147483648, %v4388_v11 }
 0x389   : > { %v4624_v29 = vand.u32 8388607, %v15457_v40  ;;  %v4631_v4 = vand.u32 31, %v4629_v35  ;;  %v13062_v12 = vsel %vm4193_vm12, %v12961_v39, %v4194_v30  ;;  %v13067_v5 = vsel %vm5877_vm5, %v4197_v58, %v12966_v31 }
 0x38a   : > { %v15599_v33 = vand.u32 2147483647, %v12628_v49  ;;  %v4481_v1 = vsub.s32 32, %v12994_v14  ;;  %v4574_v17 = vadd.s32 536870912, %v4573_v59  ;;  %v13079_v63 = vsel %vm5874_vm6, %v12961_v39, %v4194_v30  ;;  %v3809_v60 = vpop.permute.xlu0 %3808 }
 0x38b   : > { %10400 = vcosq.f32 %v4289_v56  ;;  %v4487_v25 = vshll.u32 %v4486_v22, 23  ;;  %v4632_v46 = vsub.s32 32, %v4631_v4  ;;  %v13084_v31 = vsel %vm4307_vm8, %v4391_v38, %v12788_v36 }
 0x38c   : > { %vm13071_vm13 = vcmp.le.f32.partialorder %v15599_v33, 0.7853982  ;;  %v4465_v32 = vadd.s32 %v12826_v47, %v12850_v2  ;;  %v13088_v13 = vshrl.u32 %v4574_v17, 30  ;;  %v3864_v55 = vsel %vm635_vm3, %v3848_v37, %v3745_v54 }
 0x38d   : > { %v4390_v58 = vsel %vm4307_vm8, %v4389_v27, %v4388_v11  ;;  %v4625_v39 = vor.u32 8388608, %v4624_v29  ;;  %v4635_v24 = vshrl.u32 %v15585_v7, %v4632_v46  ;;  %v4638_v19 = vshrl.u32 %v15586_v41, %v4632_v46 }
 0x38e   : > { %v4483_v30 = vshrl.u32 %v4465_v32, %v4481_v1  ;;  %v4576_v21 = vshll.u32 %v13088_v13, 30  ;;  %v4641_v36 = vshrl.u32 %v15579_v9, %v4632_v46  ;;  %v4644_v22 = vshrl.u32 %v15580_v8, %v4632_v46 }
 0x38f   : > { %v13098_v47 = vor.u32 4788187, %v4487_v25  ;;  %v4634_v2 = vshll.u32 %v15582_v26, %v4631_v4  ;;  %v4637_v37 = vshll.u32 %v15585_v7, %v4631_v4  ;;  %v4643_v11 = vshll.u32 %v15579_v9, %v4631_v4 }
 0x390   : > { %v13103_v38 = vsub.s32 %v4573_v59, %v4576_v21  ;;  %v4630_v27 = vshrl.u32 %v4629_v35, 5  ;;  %v4640_v54 = vshll.u32 %v15586_v41, %v4631_v4  ;;  %v4646_v29 = vshll.u32 %v15580_v8, %v4631_v4 }
 0x391   : > { %v4636_v33 = vor.u32 %v4635_v24, %v4634_v2  ;;  %v4639_v1 = vor.u32 %v4638_v19, %v4637_v37  ;;  %v4645_v17 = vor.u32 %v4644_v22, %v4643_v11  ;;  %v4647_v25 = vshrl.u32 %v15578_v44, %v4632_v46 }
 0x392   : > { %vm4085_vm14 = vweird.f32 %v12451_v6  ;;  %v4482_v32 = vshll.u32 %v12928_v20, %v12994_v14  ;;  %v4579_v40 = vsub.s32 0, %v13103_v38  ;;  %v4642_v50 = vor.u32 %v4641_v36, %v4640_v54 }
 0x393   : > { %v13113_v59 = vsel %vm15462_vm10, %v3864_v55, %v3809_v60  ;;  %vm4192_vm2 = vcmp.lt.s32.totalorder %v12910_v28, 2  ;;  %10402 = vsinq.f32 %v4289_v56  ;;  %v4393_v35 = vsel %vm13071_vm13, %v12628_v49, %v4390_v58 }
 0x394   : > { %v4648_v4 = vor.u32 %v4647_v25, %v4646_v29  ;;  %v13119_v24 = vshll.u32 %v4625_v39, 8  ;;  %vm5873_vm4 = vcmp.lt.s32.totalorder %v12896_v52, 2  ;;  %v4484_v19 = vor.u32 %v4483_v30, %v4482_v32 }
 0x395   : > { %v9371_v20 = vmin.u32 %v4579_v40, %v13103_v38  ;;  %vm4649_vm7 = vcmp.lt.s32.totalorder %v4630_v27, 1  ;;  %vm4652_vm12 = vcmp.lt.s32.totalorder %v4630_v27, 4  ;;  %v13123_v14 = vpop.eup %10400  ;;  %v4489_v55 = vand.u32 2147483647, %v13098_v47 }
 0x396   : > { %v4657_v56 = vsel %vm4649_vm7, %v4636_v33, %v4639_v1  ;;  %v4658_v21 = vsel %vm4652_vm12, %v4645_v17, 920167782  ;;  %v4724_v36 = vand.u32 2139095040, %v13113_v59  ;;  %vm4189_vm5 = vweird.f32 %v12480_v51 }
 0x397   : > { %v4581_v58 = vclz %v9371_v20  ;;  %v4633_v39 = vshrl.u32 %v15582_v26, %v4632_v46  ;;  %vm4651_vm1 = vcmp.lt.s32.totalorder %v4630_v27, 3  ;;  %v4654_v30 = vsel %vm4652_vm12, %v4642_v50, 2102212464 }
 0x398   : > { %vm4650_vm6 = vcmp.lt.s32.totalorder %v4630_v27, 2  ;;  %v4659_v40 = vsel %vm4651_vm1, %v4642_v50, %v4658_v21  ;;  %v4661_v22 = vsel %vm4649_vm7, %v4639_v1, %v4642_v50  ;;  %v4662_v2 = vsel %vm4652_vm12, %v4648_v4, 1326507024 }
 0x399   : > { %v9372_v37 = vadd.s32 4294967294, %v4581_v58  ;;  %v4653_v47 = vsel %vm4649_vm7, %v4633_v39, %v4636_v33  ;;  %v4660_v11 = vsel %vm4650_vm6, %v4657_v56, %v4659_v40  ;;  %v4663_v60 = vsel %vm4651_vm1, %v4645_v17, %v4662_v2 }
 0x39a   : > { %v4655_v54 = vsel %vm4651_vm1, %v4639_v1, %v4654_v30  ;;  %v4664_v29 = vsel %vm4650_vm6, %v4661_v22, %v4663_v60  ;;  %v13135_v25 = vmul.u32.u64.low %v13119_v24, %v4660_v11  ;;  %v13136_v32 = vmul.u32.u64.high %v13119_v24, %v4660_v11, %v13135_v25 }
 0x39b   : > { %vm9373_vm8 = vcmp.lt.s32.totalorder %v9372_v37, 0  ;;  %v13140_v46 = vmul.u32.u64.low %v13119_v24, %v4664_v29  ;;  %v13141_v20 = vmul.u32.u64.high %v13119_v24, %v4664_v29, %v13140_v46  ;;  %v4725_v50 = vshrl.u32 %v4724_v36, 23 }
 0x39c   : > { %v13146_v33 = vsel %vm4085_vm14, nan, %v13027_v18  ;;  %v13151_v1 = vsel %vm4085_vm14, nan, %v13037_v57  ;;  %v4394_v17 = vsel %vm13071_vm13, 0, %v13084_v31  ;;  %10404 = vcosq.f32 %v4393_v35 }
 0x39d   : > { %v4199_v4 = vsel %vm4192_vm2, %v13062_v12, %v13055_v42  ;;  %10406 = vsinq.f32 %v4393_v35  ;;  %vm4411_vm15 = vcmp.lt.s32.totalorder %v12692_v10, 0  ;;  %v4491_v18 = vcvt.s32.f32 %v4484_v19  ;;  %v10403_v21 = vpop.eup %10402  ;;  %v3683_v12 = vpop.permute.xlu1 %3682 }
 0x39e   : > { %v4584_v56 = vsel %vm9373_vm8, 0, %v9372_v37  ;;  %v5880_v6 = vsel %vm5873_vm4, %v13079_v63, %v13067_v5  ;;  %vm5977_vm11 = vcmp.eq.s32.totalorder %v13043_v43, 0  ;;  %v4656_v57 = vsel %vm4650_vm6, %v4653_v47, %v4655_v54 }
 0x39f   : > { %v4675_v61 = vadd.s32 1, %v13136_v32  ;;  %v9378_v31 = vadd.s32 4294967169, %v4725_v50  ;;  %vm4297_vm13 = vcmp.eq.s32.totalorder %v13049_v23, 0  ;;  %vm5980_vm14 = vcmp.eq.s32.totalorder %v13043_v43, 2 }
 0x3a0   : > { %v4398_v28 = vadd.s32 3, %v4394_v17  ;;  %v4492_v42 = vmul.f32 %v4491_v18, %v4489_v55  ;;  %v13172_v35 = vsel %vm4189_vm5, nan, %v4199_v4  ;;  %vm4296_vm2 = vcmp.lt.s32.totalorder %v13049_v23, 2 }
 0x3a1   : > { %vm4300_vm4 = vcmp.eq.s32.totalorder %v13049_v23, 2  ;;  %v15602_v52 = vand.u32 2147483647, %v12692_v10  ;;  %v4589_v63 = vsub.s32 4294967266, %v4584_v56  ;;  %vm4674_vm12 = vc.u32 %v13141_v20, %v13135_v25  ;;  %v3747_v46 = vpop.permute.xlu1 %3746 }
 0x3a2   : > { %v13186_v27 = vsel %vm4189_vm5, nan, %v5880_v6  ;;  %v4298_v19 = vxor.u32 2147483648, %v10403_v21  ;;  %v4301_v55 = vxor.u32 2147483648, %v13123_v14  ;;  %v4672_v36 = vmul.u32 %v13119_v24, %v4656_v57 }
 0x3a3   : > { %vm13178_vm7 = vcmp.le.f32.partialorder %v15602_v52, 0.7853982  ;;  %v4495_v58 = vsub.s32 4, %v12913_v45  ;;  %v4585_v39 = vsub.s32 32, %v4584_v56  ;;  %v4676_v30 = vsel %vm4674_vm12, %v4675_v61, %v13136_v32 }
 0x3a4   : > { %v4731_v40 = vadd.s32 1, %v9378_v31  ;;  %v13192_v22 = vand.u32 3, %v4398_v28  ;;  %v13194_v2 = vand.u32 3, %v4394_v17  ;;  %v4493_v37 = vxor.u32 2147483648, %v4492_v42 }
 0x3a5   : > { %v4677_v47 = vadd.s32 %v4676_v30, %v4672_v36  ;;  %v4569_v51 = vadd.s32 %v12990_v3, %v13004_v34  ;;  %v4590_v11 = vadd.s32 127, %v4589_v63  ;;  %v15458_v60 = vand.u32 2147483647, %v13113_v59 }
 0x3a6   : > { %vm4732_vm5 = vcmp.gt.s32.totalorder %v4731_v40, 0  ;;  %v4302_v24 = vsel %vm4300_vm4, %v4301_v55, %v10403_v21  ;;  %v3849_v32 = vsel %vm405_vm0, %v12838_v48, %v3683_v12  ;;  %v13203_v50 = vpop.eup %10404  ;;  %v4299_v17 = vsel %vm4297_vm13, %v13123_v14, %v4298_v19 }
 0x3a7   : > { %v4678_v54 = vadd.s32 536870912, %v4677_v47  ;;  %v4733_v29 = vsel %vm4732_vm5, %v4731_v40, 0  ;;  %v4496_v3 = vsel %vm4411_vm15, %v4495_v58, %v12913_v45  ;;  %v4587_v34 = vshrl.u32 %v4569_v51, %v4585_v39  ;;  %v13211_v18 = vpop.eup %10406  ;;  %v3811_v39 = vpop.permute.xlu1 %3810 }
 0x3a8   : > { %v4735_v4 = vand.u32 31, %v4733_v29  ;;  %v13216_v6 = vsel %vm5977_vm11, %v13123_v14, %v4298_v19  ;;  %v13220_v48 = vsel %vm5980_vm14, %v4301_v55, %v10403_v21  ;;  %v4494_v57 = vsel %vm4411_vm15, %v4493_v37, %v4492_v42 }
 0x3a9   : > { %v13224_v61 = vshrl.u32 %v4678_v54, 30  ;;  %v4586_v45 = vshll.u32 %v13103_v38, %v4584_v56  ;;  %v4591_v31 = vshll.u32 %v4590_v11, 23  ;;  %v4728_v28 = vand.u32 8388607, %v15458_v60 }
 0x3aa   : > { %v4736_v12 = vsub.s32 32, %v4735_v4  ;;  %v13231_v14 = vsel %vm4296_vm2, %v4299_v17, %v4302_v24  ;;  %v4405_v52 = vxor.u32 2147483648, %v13203_v50  ;;  %v13236_v21 = vsel %vm13178_vm7, 0, %v4496_v3 }
 0x3ab   : > { %v4680_v42 = vshll.u32 %v13224_v61, 30  ;;  %v4497_v38 = vsel %vm13178_vm7, %v12692_v10, %v4494_v57  ;;  %v4588_v56 = vor.u32 %v4587_v34, %v4586_v45  ;;  %v4599_v19 = vsub.s32 4, %v13088_v13 }
 0x3ac   : > { %v4739_v55 = vshrl.u32 %v15585_v7, %v4736_v12  ;;  %v4742_v36 = vshrl.u32 %v15586_v41, %v4736_v12  ;;  %v4748_v58 = vshrl.u32 %v15580_v8, %v4736_v12  ;;  %v4592_v30 = vor.u32 4788187, %v4591_v31 }
 0x3ad   : > { %v13244_v23 = vsub.s32 %v4677_v47, %v4680_v42  ;;  %v4729_v40 = vor.u32 8388608, %v4728_v28  ;;  %v4745_v37 = vshrl.u32 %v15579_v9, %v4736_v12  ;;  %v3865_v51 = vsel %vm635_vm3, %v3849_v32, %v3747_v46 }
 0x3ae   : > { %v4738_v11 = vshll.u32 %v15582_v26, %v4735_v4  ;;  %v4741_v47 = vshll.u32 %v15585_v7, %v4735_v4  ;;  %v4747_v24 = vshll.u32 %v15579_v9, %v4735_v4  ;;  %10408 = vcosq.f32 %v4497_v38 }
 0x3af   : > { %v4683_v5 = vsub.s32 0, %v13244_v23  ;;  %v4734_v54 = vshrl.u32 %v4733_v29, 5  ;;  %v4744_v17 = vshll.u32 %v15586_v41, %v4735_v4  ;;  %v13257_v3 = vsel %vm15462_vm10, %v3865_v51, %v3811_v39 }
 0x3b0   : > { %v4740_v57 = vor.u32 %v4739_v55, %v4738_v11  ;;  %v4743_v45 = vor.u32 %v4742_v36, %v4741_v47  ;;  %v4749_v32 = vor.u32 %v4748_v58, %v4747_v24  ;;  %vm5976_vm1 = vcmp.lt.s32.totalorder %v13043_v43, 2 }
 0x3b1   : > { %v9375_v34 = vmin.u32 %v4683_v5, %v13244_v23  ;;  %v4595_v46 = vcvt.s32.f32 %v4588_v56  ;;  %v4746_v31 = vor.u32 %v4745_v37, %v4744_v17  ;;  %v4750_v28 = vshll.u32 %v15580_v8, %v4735_v4 }
 0x3b2   : > { %v4751_v42 = vshrl.u32 %v15578_v44, %v4736_v12  ;;  %vm4515_vm6 = vcmp.lt.s32.totalorder %v12796_v15, 0  ;;  %v4593_v29 = vand.u32 2147483647, %v4592_v30  ;;  %v13264_v63 = vshll.u32 %v4729_v40, 8 }
 0x3b3   : > { %v4685_v60 = vclz %v9375_v34  ;;  %v4828_v39 = vand.u32 2139095040, %v13257_v3  ;;  %vm4293_vm8 = vweird.f32 %v12565_v62  ;;  %vm4753_vm15 = vcmp.lt.s32.totalorder %v4734_v54, 1 }
 0x3b4   : > { %v4752_v55 = vor.u32 %v4751_v42, %v4750_v28  ;;  %vm4754_vm11 = vcmp.lt.s32.totalorder %v4734_v54, 2  ;;  %vm4756_vm13 = vcmp.lt.s32.totalorder %v4734_v54, 4  ;;  %vm4755_vm14 = vcmp.lt.s32.totalorder %v4734_v54, 3 }
 0x3b5   : > { %v9376_v56 = vadd.s32 4294967294, %v4685_v60  ;;  %v4761_v4 = vsel %vm4753_vm15, %v4740_v57, %v4743_v45  ;;  %v4762_v36 = vsel %vm4756_vm13, %v4749_v32, 920167782  ;;  %v15605_v58 = vand.u32 2147483647, %v12796_v15 }
 0x3b6   : > { %v4758_v40 = vsel %vm4756_vm13, %v4746_v31, 2102212464  ;;  %v4763_v37 = vsel %vm4755_vm14, %v4746_v31, %v4762_v36  ;;  %v4765_v51 = vsel %vm4753_vm15, %v4743_v45, %v4746_v31  ;;  %v4766_v5 = vsel %vm4756_vm13, %v4752_v55, 1326507024 }
 0x3b7   : > { %vm13271_vm2 = vcmp.le.f32.partialorder %v15605_v58, 0.7853982  ;;  %vm9377_vm4 = vcmp.lt.s32.totalorder %v9376_v56, 0  ;;  %v4737_v11 = vshrl.u32 %v15582_v26, %v4736_v12  ;;  %v4764_v60 = vsel %vm4754_vm11, %v4761_v4, %v4763_v37 }
 0x3b8   : > { %v4767_v47 = vsel %vm4755_vm14, %v4749_v32, %v4766_v5  ;;  %vm6080_vm7 = vcmp.eq.s32.totalorder %v13194_v2, 0  ;;  %v13281_v24 = vsel %vm9377_vm4, 0, %v9376_v56  ;;  %10410 = vsinq.f32 %v4497_v38  ;;  %v13291_v55 = vpop.eup %10408 }
 0x3b9   : > { %v4768_v17 = vsel %vm4754_vm11, %v4765_v51, %v4767_v47  ;;  %v13285_v34 = vmul.u32.u64.low %v13264_v63, %v4764_v60  ;;  %v13286_v28 = vmul.u32.u64.high %v13264_v63, %v4764_v60, %v13285_v34  ;;  %v4596_v31 = vmul.f32 %v4595_v46, %v4593_v29 }
 0x3ba   : > { %v4757_v42 = vsel %vm4753_vm15, %v4737_v11, %v4740_v57  ;;  %v4759_v12 = vsel %vm4755_vm14, %v4743_v45, %v4758_v40  ;;  %v4693_v32 = vsub.s32 4294967266, %v13281_v24  ;;  %v4829_v36 = vshrl.u32 %v4828_v39, 23  ;;  %v3685_v57 = vpop.permute.xlu0 %3684 }
 0x3bb   : > { %v13295_v56 = vmul.u32.u64.low %v13264_v63, %v4768_v17  ;;  %v13296_v4 = vmul.u32.u64.high %v13264_v63, %v4768_v17, %v13295_v56  ;;  %v5983_v58 = vsel %vm5976_vm1, %v13216_v6, %v13220_v48  ;;  %vm4404_vm12 = vcmp.eq.s32.totalorder %v13192_v22, 2 }
 0x3bc   : > { %vm6079_vm5 = vcmp.lt.s32.totalorder %v13194_v2, 2  ;;  %vm6083_vm15 = vcmp.eq.s32.totalorder %v13194_v2, 2  ;;  %v4502_v38 = vadd.s32 3, %v13236_v21  ;;  %vm4397_vm13 = vweird.f32 %v12628_v49 }
 0x3bd   : > { %v4600_v45 = vsel %vm4515_vm6, %v4599_v19, %v13088_v13  ;;  %v4760_v43 = vsel %vm4754_vm11, %v4757_v42, %v4759_v12  ;;  %v4779_v6 = vadd.s32 1, %v13286_v28  ;;  %v9382_v48 = vadd.s32 4294967169, %v4829_v36 }
 0x3be   : > { %v13317_v46 = vsel %vm4293_vm8, nan, %v13231_v14  ;;  %vm4400_vm1 = vcmp.lt.s32.totalorder %v13192_v22, 2  ;;  %vm4401_vm14 = vcmp.eq.s32.totalorder %v13192_v22, 0  ;;  %v4406_v29 = vsel %vm4404_vm12, %v4405_v52, %v13211_v18  ;;  %v3749_v12 = vpop.permute.xlu0 %3748 }
 0x3bf   : > { %v15608_v13 = vxor.u32 2147483648, %v13211_v18  ;;  %v4597_v54 = vxor.u32 2147483648, %v4596_v31  ;;  %v4694_v39 = vadd.s32 127, %v4693_v32  ;;  %vm4778_vm11 = vc.u32 %v13296_v4, %v13285_v34 }
 0x3c0   : > { %v13331_v14 = vsel %vm4293_vm8, nan, %v5983_v58  ;;  %v13333_v40 = vand.u32 3, %v4502_v38  ;;  %v4602_v22 = vsel %vm13271_vm2, 0, %v4600_v45  ;;  %v4776_v37 = vmul.u32 %v13264_v63, %v4760_v43 }
 0x3c1   : > { %v4403_v19 = vsel %vm4401_vm14, %v13203_v50, %v15608_v13  ;;  %v6085_v51 = vsel %vm6083_vm15, %v4405_v52, %v13211_v18  ;;  %v13344_v5 = vand.u32 3, %v13236_v21  ;;  %v4780_v62 = vsel %vm4778_vm11, %v4779_v6, %v13286_v28 }
 0x3c2   : > { %v4835_v11 = vadd.s32 1, %v9382_v48  ;;  %v4407_v60 = vsel %vm4400_vm1, %v4403_v19, %v4406_v29  ;;  %v15609_v47 = vmov %v15608_v13  ;;  %v4689_v63 = vsub.s32 32, %v13281_v24  ;;  %v13355_v56 = vpop.eup %10410 }
 0x3c3   : > { %v6082_v17 = vsel %vm6080_vm7, %v13203_v50, %v15609_v47  ;;  %v4781_v42 = vadd.s32 %v4780_v62, %v4776_v37  ;;  %v4598_v52 = vsel %vm4515_vm6, %v4597_v54, %v4596_v31  ;;  %v4606_v32 = vadd.s32 3, %v4602_v22 }
 0x3c4   : > { %v4695_v21 = vshll.u32 %v4694_v39, 23  ;;  %vm4836_vm8 = vcmp.gt.s32.totalorder %v4835_v11, 0  ;;  %vm4508_vm4 = vcmp.eq.s32.totalorder %v13333_v40, 2  ;;  %v4673_v18 = vadd.s32 %v13135_v25, %v13141_v20  ;;  %v3813_v39 = vpop.permute.xlu0 %3812 }
 0x3c5   : > { %v4782_v28 = vadd.s32 536870912, %v4781_v42  ;;  %v4837_v36 = vsel %vm4836_vm8, %v4835_v11, 0  ;;  %v13362_v50 = vsel %vm6079_vm5, %v6082_v17, %v6085_v51  ;;  %v4509_v58 = vxor.u32 2147483648, %v13291_v55 }
 0x3c6   : > { %v15461_v31 = vand.u32 2147483647, %v13257_v3  ;;  %v4839_v38 = vand.u32 31, %v4837_v36  ;;  %v13368_v45 = vsel %vm4397_vm13, nan, %v4407_v60  ;;  %v4601_v43 = vsel %vm13271_vm2, %v12796_v15, %v4598_v52 }
 0x3c7   : > { %v4691_v25 = vshrl.u32 %v4673_v18, %v4689_v63  ;;  %v13373_v20 = vshrl.u32 %v4782_v28, 30  ;;  %vm4505_vm6 = vcmp.eq.s32.totalorder %v13333_v40, 0  ;;  %v13376_v2 = vand.u32 3, %v4606_v32 }
 0x3c8   : > { %v13378_v6 = vand.u32 3, %v4602_v22  ;;  %v4696_v48 = vor.u32 4788187, %v4695_v21  ;;  %v13380_v29 = vsub.s32 32, %v4839_v38  ;;  %v4506_v13 = vxor.u32 2147483648, %v13355_v56 }
 0x3c9   : > { %v4690_v19 = vshll.u32 %v13244_v23, %v13281_v24  ;;  %v4784_v30 = vshll.u32 %v13373_v20, 30  ;;  %v3850_v54 = vsel %vm405_vm0, %v12771_v0, %v3685_v57  ;;  %v4510_v22 = vsel %vm4508_vm4, %v4509_v58, %v13355_v56 }
 0x3ca   : > { %10412 = vcosq.f32 %v4601_v43  ;;  %v3866_v37 = vsel %vm635_vm3, %v3850_v54, %v3749_v12  ;;  %v4832_v51 = vand.u32 8388607, %v15461_v31  ;;  %v4846_v24 = vshrl.u32 %v15586_v41, %v13380_v29 }
 0x3cb   : > { %v4692_v62 = vor.u32 %v4691_v25, %v4690_v19  ;;  %v13396_v23 = vsub.s32 %v4781_v42, %v4784_v30  ;;  %v4849_v0 = vshrl.u32 %v15579_v9, %v13380_v29  ;;  %vm6183_vm2 = vcmp.eq.s32.totalorder %v13344_v5, 0 }
 0x3cc   : > { %vm6186_vm7 = vcmp.eq.s32.totalorder %v13344_v5, 2  ;;  %v4697_v57 = vand.u32 2147483647, %v4696_v48  ;;  %v13404_v11 = vshrl.u32 %v4837_v36, 5  ;;  %v4843_v60 = vshrl.u32 %v15585_v7, %v13380_v29 }
 0x3cd   : > { %v13409_v47 = vsel %vm15462_vm10, %v3866_v37, %v3813_v39  ;;  %v4787_v17 = vsub.s32 0, %v13396_v23  ;;  %v4842_v63 = vshll.u32 %v15582_v26, %v4839_v38  ;;  %v4845_v42 = vshll.u32 %v15585_v7, %v4839_v38 }
 0x3ce   : > { %v4848_v12 = vshll.u32 %v15586_v41, %v4839_v38  ;;  %vm4504_vm12 = vcmp.lt.s32.totalorder %v13333_v40, 2  ;;  %vm4619_vm5 = vcmp.lt.s32.totalorder %v12935_v53, 0  ;;  %v4851_v52 = vshll.u32 %v15579_v9, %v4839_v38 }
 0x3cf   : > { %v4852_v32 = vshrl.u32 %v15580_v8, %v13380_v29  ;;  %v4854_v21 = vshll.u32 %v15580_v8, %v4839_v38  ;;  %v4855_v18 = vshrl.u32 %v15578_v44, %v13380_v29  ;;  %v4699_v28 = vcvt.s32.f32 %v4692_v62 }
 0x3d0   : > { %v9379_v36 = vmin.u32 %v4787_v17, %v13396_v23  ;;  %v4847_v25 = vor.u32 %v4846_v24, %v4845_v42  ;;  %v4850_v48 = vor.u32 %v4849_v0, %v4848_v12  ;;  %v4844_v19 = vor.u32 %v4843_v60, %v4842_v63 }
 0x3d1   : > { %v4853_v30 = vor.u32 %v4852_v32, %v4851_v52  ;;  %v4856_v54 = vor.u32 %v4855_v18, %v4854_v21  ;;  %v4932_v39 = vand.u32 2139095040, %v13409_v47  ;;  %v4507_v37 = vsel %vm4505_vm6, %v13291_v55, %v4506_v13 }
 0x3d2   : > { %vm6182_vm15 = vcmp.lt.s32.totalorder %v13344_v5, 2  ;;  %10414 = vsinq.f32 %v4601_v43  ;;  %v15610_v38 = vand.u32 2147483647, %v12935_v53  ;;  %v4703_v24 = vsub.s32 4, %v13224_v61 }
 0x3d3   : > { %v4789_v0 = vclz %v9379_v36  ;;  %vm4501_vm14 = vweird.f32 %v12692_v10  ;;  %v4700_v60 = vmul.f32 %v4699_v28, %v4697_v57  ;;  %v4833_v17 = vor.u32 8388608, %v4832_v51 }
 0x3d4   : > { %vm13431_vm1 = vcmp.le.f32.partialorder %v15610_v38, 0.7853982  ;;  %vm4857_vm11 = vcmp.lt.s32.totalorder %v13404_v11, 1  ;;  %vm4860_vm8 = vcmp.lt.s32.totalorder %v13404_v11, 4  ;;  %vm4859_vm4 = vcmp.lt.s32.totalorder %v13404_v11, 3  ;;  %v13442_v12 = vpop.eup %10412 }
 0x3d5   : > { %v9380_v63 = vadd.s32 4294967294, %v4789_v0  ;;  %v4866_v43 = vsel %vm4860_vm8, %v4853_v30, 920167782  ;;  %v4869_v42 = vsel %vm4857_vm11, %v4847_v25, %v4850_v48  ;;  %v4865_v52 = vsel %vm4857_vm11, %v4844_v19, %v4847_v25 }
 0x3d6   : > { %v4867_v57 = vsel %vm4859_vm4, %v4850_v48, %v4866_v43  ;;  %v4870_v51 = vsel %vm4860_vm8, %v4856_v54, 1326507024  ;;  %v4933_v32 = vshrl.u32 %v4932_v39, 23  ;;  %v6185_v21 = vsel %vm6183_vm2, %v13291_v55, %v4506_v13 }
 0x3d7   : > { %v6188_v18 = vsel %vm6186_vm7, %v4509_v58, %v13355_v56  ;;  %vm4858_vm6 = vcmp.lt.s32.totalorder %v13404_v11, 2  ;;  %v4871_v28 = vsel %vm4859_vm4, %v4853_v30, %v4870_v51  ;;  %vm9381_vm9 = vcmp.lt.s32.totalorder %v9380_v63, 0 }
 0x3d8   : > { %v4862_v36 = vsel %vm4860_vm8, %v4850_v48, 2102212464  ;;  %v4872_v54 = vsel %vm4858_vm6, %v4869_v42, %v4871_v28  ;;  %v4873_v39 = vshll.u32 %v4833_v17, 8  ;;  %v4511_v13 = vsel %vm4504_vm12, %v4507_v37, %v4510_v22  ;;  %v3687_v37 = vpop.permute.xlu1 %3686 }
 0x3d9   : > { %v4704_v55 = vsel %vm4619_vm5, %v4703_v24, %v13224_v61  ;;  %v4841_v56 = vshrl.u32 %v15582_v26, %v13380_v29  ;;  %v4868_v58 = vsel %vm4858_vm6, %v4865_v52, %v4867_v57  ;;  %v4701_v30 = vxor.u32 2147483648, %v4700_v60 }
 0x3da   : > { %v13470_v38 = vmul.u32.u64.low %v4873_v39, %v4872_v54  ;;  %v13471_v48 = vmul.u32.u64.high %v4873_v39, %v4872_v54, %v13470_v38  ;;  %v9386_v0 = vadd.s32 4294967169, %v4933_v32  ;;  %v13476_v40 = vsel %vm4397_vm13, nan, %v13362_v50 }
 0x3db   : > { %v13478_v22 = vsel %vm9381_vm9, 0, %v9380_v63  ;;  %v4861_v61 = vsel %vm4857_vm11, %v4841_v56, %v4844_v19  ;;  %v4863_v29 = vsel %vm4859_vm4, %v4847_v25, %v4862_v36  ;;  %v6189_v24 = vsel %vm6182_vm15, %v6185_v21, %v6188_v18 }
 0x3dc   : > { %v4706_v17 = vsel %vm13431_vm1, 0, %v4704_v55  ;;  %v13488_v43 = vmul.u32.u64.low %v4873_v39, %v4868_v58  ;;  %v13489_v42 = vmul.u32.u64.high %v4873_v39, %v4868_v58, %v13488_v43  ;;  %v13492_v49 = vpop.eup %10414  ;;  %v13496_v50 = vsel %vm4501_vm14, nan, %v4511_v13  ;;  %v3751_v36 = vpop.permute.xlu1 %3750 }
 0x3dd   : > { %vm4609_vm9 = vcmp.eq.s32.totalorder %v13376_v2, 0  ;;  %vm4612_vm13 = vcmp.eq.s32.totalorder %v13376_v2, 2  ;;  %vm6289_vm2 = vcmp.eq.s32.totalorder %v13378_v6, 2  ;;  %v4702_v5 = vsel %vm4619_vm5, %v4701_v30, %v4700_v60 }
 0x3de   : > { %v4797_v25 = vsub.s32 4294967266, %v13478_v22  ;;  %v4864_v19 = vsel %vm4858_vm6, %v4861_v61, %v4863_v29  ;;  %v4939_v63 = vadd.s32 1, %v9386_v0  ;;  %v13508_v52 = vsel %vm4501_vm14, nan, %v6189_v24 }
 0x3df   : > { %15613 = vst [vmem:[#allocation30_spill] sm:$0xff] %v13508_v52  ;;  %v4613_v57 = vxor.u32 2147483648, %v13442_v12  ;;  %v4710_v51 = vadd.s32 3, %v4706_v17  ;;  %vm4882_vm7 = vc.u32 %v13471_v48, %v13488_v43  ;;  %v4610_v32 = vxor.u32 2147483648, %v13492_v49 }
 0x3e0   : > { %v13514_v21 = vand.u32 3, %v4706_v17  ;;  %v4883_v60 = vadd.s32 1, %v13489_v42  ;;  %vm4940_vm12 = vcmp.gt.s32.totalorder %v4939_v63, 0  ;;  %v4705_v11 = vsel %vm13431_vm1, %v12935_v53, %v4702_v5 }
 0x3e1   : > { %v4880_v10 = vmul.u32 %v4873_v39, %v4864_v19  ;;  %v15460_v18 = vand.u32 2147483647, %v13409_v47  ;;  %v4941_v28 = vsel %vm4940_vm12, %v4939_v63, 0  ;;  %v4793_v54 = vsub.s32 32, %v13478_v22 }
 0x3e2   : > { %v4798_v13 = vadd.s32 127, %v4797_v25  ;;  %v4884_v55 = vsel %vm4882_vm7, %v4883_v60, %v13489_v42  ;;  %v4943_v56 = vand.u32 31, %v4941_v28  ;;  %vm4608_vm5 = vcmp.lt.s32.totalorder %v13376_v2, 2 }
 0x3e3   : > { %v4614_v58 = vsel %vm4612_vm13, %v4613_v57, %v13492_v49  ;;  %vm6286_vm15 = vcmp.eq.s32.totalorder %v13378_v6, 0  ;;  %v13531_v62 = vsel %vm6289_vm2, %v4613_v57, %v13492_v49  ;;  %v13533_v39 = vand.u32 3, %v4710_v51 }
 0x3e4   : > { %v4885_v30 = vadd.s32 %v4884_v55, %v4880_v10  ;;  %v4611_v38 = vsel %vm4609_vm9, %v13442_v12, %v4610_v32  ;;  %10416 = vcosq.f32 %v4705_v11  ;;  %v4777_v0 = vadd.s32 %v13285_v34, %v13296_v4 }
 0x3e5   : > { %v13540_v61 = vsub.s32 32, %v4943_v56  ;;  %10418 = vsinq.f32 %v4705_v11  ;;  %v4936_v24 = vand.u32 8388607, %v15460_v18  ;;  %v3851_v17 = vsel %vm405_vm0, %v12871_v16, %v3687_v37  ;;  %v3815_v37 = vpop.permute.xlu1 %3814 }
 0x3e6   : > { %v4886_v29 = vadd.s32 536870912, %v4885_v30  ;;  %v4795_v42 = vshrl.u32 %v4777_v0, %v4793_v54  ;;  %v4799_v49 = vshll.u32 %v4798_v13, 23  ;;  %vm4723_vm1 = vcmp.lt.s32.totalorder %v13113_v59, 0 }
 0x3e7   : > { %v4947_v5 = vshrl.u32 %v15585_v7, %v13540_v61  ;;  %v4950_v25 = vshrl.u32 %v15586_v41, %v13540_v61  ;;  %v4953_v4 = vshrl.u32 %v15579_v9, %v13540_v61  ;;  %v4956_v19 = vshrl.u32 %v15580_v8, %v13540_v61 }
 0x3e8   : > { %v13551_v34 = vshrl.u32 %v4886_v29, 30  ;;  %v4959_v16 = vshrl.u32 %v15578_v44, %v13540_v61  ;;  %v13559_v63 = vshrl.u32 %v4941_v28, 5  ;;  %v4955_v57 = vshll.u32 %v15579_v9, %v4943_v56 }
 0x3e9   : > { %v4958_v51 = vshll.u32 %v15580_v8, %v4943_v56  ;;  %v3867_v60 = vsel %vm635_vm3, %v3851_v17, %v3751_v36  ;;  %v4946_v10 = vshll.u32 %v15582_v26, %v4943_v56  ;;  %v4949_v54 = vshll.u32 %v15585_v7, %v4943_v56 }
 0x3ea   : > { %v4888_v11 = vshll.u32 %v13551_v34, 30  ;;  %v4952_v13 = vshll.u32 %v15586_v41, %v4943_v56  ;;  %v4794_v55 = vshll.u32 %v13396_v23, %v13478_v22  ;;  %v4957_v0 = vor.u32 %v4956_v19, %v4955_v57 }
 0x3eb   : > { %v4960_v28 = vor.u32 %v4959_v16, %v4958_v51  ;;  %v13571_v29 = vsel %vm15462_vm10, %v3867_v60, %v3815_v37  ;;  %vm6285_vm14 = vcmp.lt.s32.totalorder %v13378_v6, 2  ;;  %v4948_v36 = vor.u32 %v4947_v5, %v4946_v10 }
 0x3ec   : > { %v13574_v18 = vsub.s32 %v4885_v30, %v4888_v11  ;;  %v4951_v17 = vor.u32 %v4950_v25, %v4949_v54  ;;  %v4954_v31 = vor.u32 %v4953_v4, %v4952_v13  ;;  %v4615_v52 = vsel %vm4608_vm5, %v4611_v38, %v4614_v58  ;;  %v3689_v54 = vpop.permute.xlu0 %3688 }
 0x3ed   : > { %v6288_v56 = vsel %vm6286_vm15, %v13442_v12, %v4610_v32  ;;  %v4796_v23 = vor.u32 %v4795_v42, %v4794_v55  ;;  %v4807_v22 = vsub.s32 4, %v13373_v20  ;;  %v15614_v19 = vand.u32 2147483647, %v13113_v59 }
 0x3ee   : > { %v4800_v30 = vor.u32 4788187, %v4799_v49  ;;  %v4891_v5 = vsub.s32 0, %v13574_v18  ;;  %v4937_v25 = vor.u32 8388608, %v4936_v24  ;;  %vm4964_vm8 = vcmp.lt.s32.totalorder %v13559_v63, 4  ;;  %v13590_v2 = vpop.eup %10416 }
 0x3ef   : > { %vm13584_vm11 = vcmp.le.f32.partialorder %v15614_v19, 0.7853982  ;;  %vm4961_vm4 = vcmp.lt.s32.totalorder %v13559_v63, 1  ;;  %v4970_v12 = vsel %vm4964_vm8, %v4957_v0, 920167782  ;;  %v5036_v58 = vand.u32 2139095040, %v13571_v29  ;;  %v13598_v38 = vpop.eup %10418 }
 0x3f0   : > { %v4974_v32 = vsel %vm4964_vm8, %v4960_v28, 1326507024  ;;  %vm4605_vm6 = vweird.f32 %v12796_v15  ;;  %v9383_v24 = vmin.u32 %v4891_v5, %v13574_v18  ;;  %vm4963_vm9 = vcmp.lt.s32.totalorder %v13559_v63, 3 }
 0x3f1   : > { %v4969_v42 = vsel %vm4961_vm4, %v4948_v36, %v4951_v17  ;;  %v4973_v49 = vsel %vm4961_vm4, %v4951_v17, %v4954_v31  ;;  %v4803_v4 = vcvt.s32.f32 %v4796_v23  ;;  %v4808_v37 = vsel %vm4723_vm1, %v4807_v22, %v13373_v20 }
 0x3f2   : > { %v4971_v57 = vsel %vm4963_vm9, %v4954_v31, %v4970_v12  ;;  %v4975_v51 = vsel %vm4963_vm9, %v4957_v0, %v4974_v32  ;;  %v4801_v60 = vand.u32 2147483647, %v4800_v30  ;;  %v4893_v11 = vclz %v9383_v24 }
 0x3f3   : > { %vm4962_vm13 = vcmp.lt.s32.totalorder %v13559_v63, 2  ;;  %v4977_v10 = vshll.u32 %v4937_v25, 8  ;;  %v4966_v13 = vsel %vm4964_vm8, %v4954_v31, 2102212464  ;;  %v5037_v28 = vshrl.u32 %v5036_v58, 23 }
 0x3f4   : > { %v4972_v55 = vsel %vm4962_vm13, %v4969_v42, %v4971_v57  ;;  %v4976_v20 = vsel %vm4962_vm13, %v4973_v49, %v4975_v51  ;;  %v9384_v23 = vadd.s32 4294967294, %v4893_v11  ;;  %v4945_v0 = vshrl.u32 %v15582_v26, %v13540_v61 }
 0x3f5   : > { %v13623_v22 = vmul.u32.u64.low %v4977_v10, %v4976_v20  ;;  %v13624_v19 = vmul.u32.u64.high %v4977_v10, %v4976_v20, %v13623_v22  ;;  %v6292_v30 = vsel %vm6285_vm14, %v6288_v56, %v13531_v62  ;;  %v9390_v25 = vadd.s32 4294967169, %v5037_v28 }
 0x3f6   : > { %v13629_v5 = vmul.u32.u64.low %v4977_v10, %v4972_v55  ;;  %v13630_v31 = vmul.u32.u64.high %v4977_v10, %v4972_v55, %v13629_v5  ;;  %vm6389_vm2 = vcmp.eq.s32.totalorder %v13514_v21, 0  ;;  %v4804_v12 = vmul.f32 %v4803_v4, %v4801_v60  ;;  %v15619_v60 = vld [vmem:[#allocation13_spill] sm:$0xff] }
 0x3f7   : > { %vm9385_vm7 = vcmp.lt.s32.totalorder %v9384_v23, 0  ;;  %v4965_v32 = vsel %vm4961_vm4, %v4945_v0, %v4948_v36  ;;  %v4967_v61 = vsel %vm4963_vm9, %v4951_v17, %v4966_v13  ;;  %v4717_v58 = vxor.u32 2147483648, %v13590_v2  ;;  %v3753_v36 = vpop.permute.xlu0 %3752 }
 0x3f8   : > { %v4810_v6 = vsel %vm13584_vm11, 0, %v4808_v37  ;;  %v13641_v62 = vsel %vm9385_vm7, 0, %v9384_v23  ;;  %v5043_v56 = vadd.s32 1, %v9390_v25  ;;  %vm4712_vm12 = vcmp.lt.s32.totalorder %v13533_v39, 2 }
 0x3f9   : > { %vm4713_vm5 = vcmp.eq.s32.totalorder %v13533_v39, 0  ;;  %v4714_v24 = vxor.u32 2147483648, %v13598_v38  ;;  %vm6392_vm15 = vcmp.eq.s32.totalorder %v13514_v21, 2  ;;  %v13649_v17 = vsel %vm4605_vm6, nan, %v4615_v52 }
 0x3fa   : > { %15617 = vst [vmem:[#allocation22_spill] sm:$0xff] %v13649_v17  ;;  %vm4716_vm14 = vcmp.eq.s32.totalorder %v13533_v39, 2  ;;  %v4901_v42 = vsub.s32 4294967266, %v13641_v62  ;;  %v4968_v49 = vsel %vm4962_vm13, %v4965_v32, %v4967_v61  ;;  %v13657_v4 = vsel %vm4605_vm6, nan, %v6292_v30 }
 0x3fb   : > { %15618 = vst [vmem:[#allocation29_spill] sm:$0xff] %v13657_v4  ;;  %v4805_v37 = vxor.u32 2147483648, %v4804_v12  ;;  %v4814_v57 = vadd.s32 3, %v4810_v6  ;;  %vm4986_vm8 = vc.u32 %v13624_v19, %v13629_v5  ;;  %v4718_v51 = vsel %vm4716_vm14, %v4717_v58, %v13598_v38  ;;  %v3817_v32 = vpop.permute.xlu0 %3816 }
 0x3fc   : > { %v4987_v52 = vadd.s32 1, %v13630_v31  ;;  %v3852_v11 = vsel %vm405_vm0, %v15619_v60, %v3689_v54  ;;  %vm5044_vm4 = vcmp.gt.s32.totalorder %v5043_v56, 0  ;;  %v4715_v63 = vsel %vm4713_vm5, %v13590_v2, %v4714_v24 }
 0x3fd   : > { %v4902_v15 = vadd.s32 127, %v4901_v42  ;;  %v4984_v13 = vmul.u32 %v4977_v10, %v4968_v49  ;;  %v5045_v55 = vsel %vm5044_vm4, %v5043_v56, 0  ;;  %v4897_v20 = vsub.s32 32, %v13641_v62 }
 0x3fe   : > { %v4988_v28 = vsel %vm4986_vm8, %v4987_v52, %v13630_v31  ;;  %v15464_v23 = vand.u32 2147483647, %v13571_v29  ;;  %v5047_v0 = vand.u32 31, %v5045_v55  ;;  %v4806_v22 = vsel %vm4723_vm1, %v4805_v37, %v4804_v12 }
 0x3ff   : > { %v13673_v30 = vand.u32 3, %v4814_v57  ;;  %v13675_v54 = vand.u32 3, %v4810_v6  ;;  %v4989_v25 = vadd.s32 %v4988_v28, %v4984_v13  ;;  %v6391_v10 = vsel %vm6389_vm2, %v13590_v2, %v4714_v24 }
 0x400   : > { %v6394_v31 = vsel %vm6392_vm15, %v4717_v58, %v13598_v38  ;;  %v4881_v61 = vadd.s32 %v13488_v43, %v13471_v48  ;;  %v13685_v56 = vsub.s32 32, %v5047_v0  ;;  %v13689_v12 = vsel %vm4712_vm12, %v4715_v63, %v4718_v51 }
 0x401   : > { %v4903_v6 = vshll.u32 %v4902_v15, 23  ;;  %v4990_v42 = vadd.s32 536870912, %v4989_v25  ;;  %v3868_v49 = vsel %vm635_vm3, %v3852_v11, %v3753_v36  ;;  %v4809_v2 = vsel %vm13584_vm11, %v13113_v59, %v4806_v22 }
 0x402   : > { %v4899_v24 = vshrl.u32 %v4881_v61, %v4897_v20  ;;  %v5040_v38 = vand.u32 8388607, %v15464_v23  ;;  %v13698_v48 = vsel %vm15462_vm10, %v3868_v49, %v3817_v32  ;;  %vm6388_vm1 = vcmp.lt.s32.totalorder %v13514_v21, 2 }
 0x403   : > { %v13701_v43 = vshrl.u32 %v4990_v42, 30  ;;  %v5051_v39 = vshrl.u32 %v15585_v7, %v13685_v56  ;;  %v5054_v58 = vshrl.u32 %v15586_v41, %v13685_v56  ;;  %v5060_v16 = vshrl.u32 %v15580_v8, %v13685_v56 }
 0x404   : > { %v4898_v36 = vshll.u32 %v13574_v18, %v13641_v62  ;;  %v13711_v37 = vshrl.u32 %v5045_v55, 5  ;;  %v5057_v57 = vshrl.u32 %v15579_v9, %v13685_v56  ;;  %v5059_v51 = vshll.u32 %v15579_v9, %v5047_v0 }
 0x405   : > { %v4904_v52 = vor.u32 4788187, %v4903_v6  ;;  %v4992_v60 = vshll.u32 %v13701_v43, 30  ;;  %v5050_v11 = vshll.u32 %v15582_v26, %v5047_v0  ;;  %v5053_v63 = vshll.u32 %v15585_v7, %v5047_v0 }
 0x406   : > { %v5056_v15 = vshll.u32 %v15586_v41, %v5047_v0  ;;  %v5061_v13 = vor.u32 %v5060_v16, %v5059_v51  ;;  %v5063_v18 = vshrl.u32 %v15578_v44, %v13685_v56  ;;  %v5140_v62 = vand.u32 2139095040, %v13698_v48 }
 0x407   : > { %vm4709_vm11 = vweird.f32 %v12935_v53  ;;  %v4900_v55 = vor.u32 %v4899_v24, %v4898_v36  ;;  %v13724_v20 = vsub.s32 %v4989_v25, %v4992_v60  ;;  %v5052_v28 = vor.u32 %v5051_v39, %v5050_v11 }
 0x408   : > { %v5055_v22 = vor.u32 %v5054_v58, %v5053_v63  ;;  %10420 = vcosq.f32 %v4809_v2  ;;  %v5041_v32 = vor.u32 8388608, %v5040_v38  ;;  %v5058_v61 = vor.u32 %v5057_v57, %v5056_v15 }
 0x409   : > { %v5062_v6 = vshll.u32 %v15580_v8, %v5047_v0  ;;  %10422 = vsinq.f32 %v4809_v2  ;;  %v4905_v42 = vand.u32 2147483647, %v4904_v52  ;;  %v4995_v49 = vsub.s32 0, %v13724_v20 }
 0x40a   : > { %vm5068_vm6 = vcmp.lt.s32.totalorder %v13711_v37, 4  ;;  %vm4827_vm9 = vcmp.lt.s32.totalorder %v13257_v3, 0  ;;  %vm5065_vm13 = vcmp.lt.s32.totalorder %v13711_v37, 1  ;;  %v5141_v24 = vshrl.u32 %v5140_v62, 23 }
 0x40b   : > { %v5064_v16 = vor.u32 %v5063_v18, %v5062_v6  ;;  %v5074_v25 = vsel %vm5068_vm6, %v5061_v13, 920167782  ;;  %v4907_v39 = vcvt.s32.f32 %v4900_v55  ;;  %v9387_v38 = vmin.u32 %v4995_v49, %v13724_v20 }
 0x40c   : > { %vm5067_vm2 = vcmp.lt.s32.totalorder %v13711_v37, 3  ;;  %v5073_v0 = vsel %vm5065_vm13, %v5052_v28, %v5055_v22  ;;  %v6395_v2 = vsel %vm6388_vm1, %v6391_v10, %v6394_v31  ;;  %v4911_v58 = vsub.s32 4, %v13551_v34 }
 0x40d   : > { %v5075_v36 = vsel %vm5067_vm2, %v5058_v61, %v5074_v25  ;;  %v13742_v57 = vshll.u32 %v5041_v32, 8  ;;  %v4908_v51 = vmul.f32 %v4907_v39, %v4905_v42  ;;  %v4997_v52 = vclz %v9387_v38 }
 0x40e   : > { %vm5066_vm7 = vcmp.lt.s32.totalorder %v13711_v37, 2  ;;  %v5077_v60 = vsel %vm5065_vm13, %v5055_v22, %v5058_v61  ;;  %v15620_v11 = vand.u32 2147483647, %v13257_v3  ;;  %v5070_v21 = vsel %vm5068_vm6, %v5058_v61, 2102212464 }
 0x40f   : > { %v5076_v10 = vsel %vm5066_vm7, %v5073_v0, %v5075_v36  ;;  %v5078_v31 = vsel %vm5068_vm6, %v5064_v16, 1326507024  ;;  %v9394_v15 = vadd.s32 4294967169, %v5141_v24  ;;  %vm4931_vm5 = vcmp.lt.s32.totalorder %v13409_v47, 0 }
 0x410   : > { %vm13749_vm12 = vcmp.le.f32.partialorder %v15620_v11, 0.7853982  ;;  %v9388_v18 = vadd.s32 4294967294, %v4997_v52  ;;  %v5079_v62 = vsel %vm5067_vm2, %v5061_v13, %v5078_v31  ;;  %v13770_v61 = vsel %vm4709_vm11, nan, %v13689_v12 }
 0x411   : > { %v13763_v55 = vmul.u32.u64.low %v13742_v57, %v5076_v10  ;;  %v13764_v32 = vmul.u32.u64.high %v13742_v57, %v5076_v10, %v13763_v55  ;;  %15623 = vst [vmem:[#allocation31_spill] sm:$0xff] %v13770_v61  ;;  %v5049_v6 = vshrl.u32 %v15582_v26, %v13685_v56  ;;  %v5080_v42 = vsel %vm5066_vm7, %v5077_v60, %v5079_v62 }
 0x412   : > { %v5147_v49 = vadd.s32 1, %v9394_v15  ;;  %vm4820_vm15 = vcmp.eq.s32.totalorder %v13673_v30, 2  ;;  %v4909_v13 = vxor.u32 2147483648, %v4908_v51  ;;  %vm9389_vm14 = vcmp.lt.s32.totalorder %v9388_v18, 0  ;;  %v10421_v24 = vpop.eup %10420 }
 0x413   : > { %v13778_v16 = vmul.u32.u64.low %v13742_v57, %v5080_v42  ;;  %v13779_v25 = vmul.u32.u64.high %v13742_v57, %v5080_v42, %v13778_v16  ;;  %vm4817_vm8 = vcmp.eq.s32.totalorder %v13673_v30, 0  ;;  %vm6495_vm4 = vcmp.eq.s32.totalorder %v13675_v54, 2  ;;  %v10423_v38 = vpop.eup %10422 }
 0x414   : > { %v5000_v12 = vsel %vm9389_vm14, 0, %v9388_v18  ;;  %v5069_v56 = vsel %vm5065_vm13, %v5049_v6, %v5052_v28  ;;  %v5071_v39 = vsel %vm5067_vm2, %v5055_v22, %v5070_v21  ;;  %vm5148_vm1 = vcmp.gt.s32.totalorder %v5147_v49, 0 }
 0x415   : > { %vm6492_vm6 = vcmp.eq.s32.totalorder %v13675_v54, 0  ;;  %v4912_v0 = vsel %vm4827_vm9, %v4911_v58, %v13551_v34  ;;  %v15624_v36 = vand.u32 2147483647, %v13409_v47  ;;  %v4985_v28 = vadd.s32 %v13629_v5, %v13624_v19 }
 0x416   : > { %v5001_v60 = vsub.s32 32, %v5000_v12  ;;  %v5005_v11 = vsub.s32 4294967266, %v5000_v12  ;;  %v5015_v22 = vsub.s32 4, %v13701_v43  ;;  %v5091_v21 = vadd.s32 1, %v13764_v32 }
 0x417   : > { %vm13793_vm10 = vcmp.le.f32.partialorder %v15624_v36, 0.7853982  ;;  %v15463_v10 = vand.u32 2147483647, %v13698_v48  ;;  %v5149_v31 = vsel %vm5148_vm1, %v5147_v49, 0  ;;  %v5002_v34 = vshll.u32 %v13724_v20, %v5000_v12 }
 0x418   : > { %v5003_v58 = vshrl.u32 %v4985_v28, %v5001_v60  ;;  %v5006_v15 = vadd.s32 127, %v5005_v11  ;;  %v5072_v18 = vsel %vm5066_vm7, %v5069_v56, %v5071_v39  ;;  %v4821_v62 = vxor.u32 2147483648, %v10421_v24  ;;  %v3691_v60 = vpop.permute.xlu1 %3690 }
 0x419   : > { %v4910_v19 = vsel %vm4827_vm9, %v4909_v13, %v4908_v51  ;;  %vm5090_vm13 = vc.u32 %v13779_v25, %v13763_v55  ;;  %v5151_v5 = vand.u32 31, %v5149_v31  ;;  %v4818_v6 = vxor.u32 2147483648, %v10423_v38 }
 0x41a   : > { %v4914_v42 = vsel %vm13749_vm12, 0, %v4912_v0  ;;  %v5004_v49 = vor.u32 %v5003_v58, %v5002_v34  ;;  %v5007_v16 = vshll.u32 %v5006_v15, 23  ;;  %v13813_v20 = vsel %vm4709_vm11, nan, %v6395_v2 }
 0x41b   : > { %15627 = vst [vmem:[#allocation32_spill] sm:$0xff] %v13813_v20  ;;  %v5016_v37 = vsel %vm4931_vm5, %v5015_v22, %v13701_v43  ;;  %v5088_v51 = vmul.u32 %v13742_v57, %v5072_v18  ;;  %v5092_v13 = vsel %vm5090_vm13, %v5091_v21, %v13764_v32  ;;  %v4913_v12 = vsel %vm13749_vm12, %v13257_v3, %v4910_v19 }
 0x41c   : > { %v5008_v56 = vor.u32 4788187, %v5007_v16  ;;  %v5144_v39 = vand.u32 8388607, %v15463_v10  ;;  %v5152_v0 = vsub.s32 32, %v5151_v5  ;;  %vm4816_vm11 = vcmp.lt.s32.totalorder %v13673_v30, 2  ;;  %v3755_v23 = vpop.permute.xlu1 %3754 }
 0x41d   : > { %v4822_v53 = vsel %vm4820_vm15, %v4821_v62, %v10423_v38  ;;  %vm6491_vm9 = vcmp.lt.s32.totalorder %v13675_v54, 2  ;;  %v4918_v43 = vadd.s32 3, %v4914_v42  ;;  %v13829_v2 = vand.u32 3, %v4914_v42 }
 0x41e   : > { %v5093_v57 = vadd.s32 %v5092_v13, %v5088_v51  ;;  %v4819_v63 = vsel %vm4817_vm8, %v10421_v24, %v4818_v6  ;;  %v6497_v32 = vsel %vm6495_vm4, %v4821_v62, %v10423_v38  ;;  %v5009_v36 = vand.u32 2147483647, %v5008_v56 }
 0x41f   : > { %v5011_v28 = vcvt.s32.f32 %v5004_v49  ;;  %v6494_v11 = vsel %vm6492_vm6, %v10421_v24, %v4818_v6  ;;  %10424 = vcosq.f32 %v4913_v12  ;;  %v13839_v22 = vsel %vm13793_vm10, 0, %v5016_v37  ;;  %v13848_v6 = vpop.f32.mrb[28].mxu1 }
 0x420   : > { %v5094_v21 = vadd.s32 536870912, %v5093_v57  ;;  %v5145_v58 = vor.u32 8388608, %v5144_v39  ;;  %v5155_v15 = vshrl.u32 %v15585_v7, %v5152_v0  ;;  %v5164_v18 = vshrl.u32 %v15580_v8, %v5152_v0  ;;  %v13853_v51 = vpop.f32.mrb[29].mxu1 }
 0x421   : > { %v5012_v34 = vmul.f32 %v5011_v28, %v5009_v36  ;;  %v5154_v38 = vshll.u32 %v15582_v26, %v5151_v5  ;;  %v5158_v62 = vshrl.u32 %v15586_v41, %v5152_v0  ;;  %v5161_v24 = vshrl.u32 %v15579_v9, %v5152_v0 }
 0x422   : > { %v13843_v19 = vshrl.u32 %v5094_v21, 30  ;;  %v5163_v49 = vshll.u32 %v15579_v9, %v5151_v5  ;;  %v5166_v16 = vshll.u32 %v15580_v8, %v5151_v5  ;;  %v5167_v37 = vshrl.u32 %v15578_v44, %v5152_v0 }
 0x423   : > { %v5013_v42 = vxor.u32 2147483648, %v5012_v34  ;;  %v13856_v56 = vshrl.u32 %v5149_v31, 5  ;;  %v5157_v39 = vshll.u32 %v15585_v7, %v5151_v5  ;;  %v5160_v36 = vshll.u32 %v15586_v41, %v5151_v5 }
 0x424   : > { %v5096_v13 = vshll.u32 %v13843_v19, 30  ;;  %10426 = vsinq.f32 %v4913_v12  ;;  %v5156_v28 = vor.u32 %v5155_v15, %v5154_v38  ;;  %v5165_v21 = vor.u32 %v5164_v18, %v5163_v49 }
 0x425   : > { %v5168_v10 = vor.u32 %v5167_v37, %v5166_v16  ;;  %v5014_v20 = vsel %vm4931_vm5, %v5013_v42, %v5012_v34  ;;  %v5159_v4 = vor.u32 %v5158_v62, %v5157_v39  ;;  %v5162_v17 = vor.u32 %v5161_v24, %v5160_v36  ;;  %v15628_v34 = vld [vmem:[#allocation18_spill] sm:$0xff]  ;;  %v3819_v62 = vpop.permute.xlu1 %3818 }
 0x426   : > { %v13862_v61 = vsub.s32 %v5093_v57, %v5096_v13  ;;  %vm4813_vm2 = vweird.f32 %v13113_v59  ;;  %v4823_v31 = vsel %vm4816_vm11, %v4819_v63, %v4822_v53  ;;  %v6498_v5 = vsel %vm6491_vm9, %v6494_v11, %v6497_v32  ;;  %v3693_v13 = vpop.permute.xlu0 %3692 }
 0x427   : > { %v13869_v12 = vand.u32 3, %v4918_v43  ;;  %v5022_v15 = vadd.s32 3, %v13839_v22  ;;  %vm5172_vm7 = vcmp.lt.s32.totalorder %v13856_v56, 4  ;;  %v13874_v57 = vshll.u32 %v5145_v58, 8 }
 0x428   : > { %v5099_v18 = vsub.s32 0, %v13862_v61  ;;  %v3597_v38 = vmul.f32 100.0, %v15628_v34  ;;  %v5017_v30 = vsel %vm13793_vm10, %v13409_v47, %v5014_v20  ;;  %vm5169_vm12 = vcmp.lt.s32.totalorder %v13856_v56, 1 }
 0x429   : > { %v5178_v54 = vsel %vm5172_vm7, %v5165_v21, 920167782  ;;  %v5182_v53 = vsel %vm5172_vm7, %v5168_v10, 1326507024  ;;  %v13885_v43 = vpop.eup %10424  ;;  %vm5171_vm5 = vcmp.lt.s32.totalorder %v13856_v56, 3  ;;  %v5177_v32 = vsel %vm5169_vm12, %v5156_v28, %v5159_v4 }
 0x42a   : > { %v9391_v63 = vmin.u32 %v5099_v18, %v13862_v61  ;;  %v5181_v52 = vsel %vm5169_vm12, %v5159_v4, %v5162_v17  ;;  %v5153_v20 = vshrl.u32 %v15582_v26, %v5152_v0  ;;  %v5179_v11 = vsel %vm5171_vm5, %v5162_v17, %v5178_v54 }
 0x42b   : > { %v5183_v10 = vsel %vm5171_vm5, %v5165_v21, %v5182_v53  ;;  %v3853_v58 = vsel %vm405_vm0, %v3597_v38, %v3691_v60  ;;  %vm4924_vm10 = vcmp.eq.s32.totalorder %v13869_v12, 2  ;;  %10428 = vcosq.f32 %v5017_v30 }
 0x42c   : > { %v5101_v24 = vclz %v9391_v63  ;;  %vm5170_vm15 = vcmp.lt.s32.totalorder %v13856_v56, 2  ;;  %v5174_v42 = vsel %vm5172_vm7, %v5162_v17, 2102212464  ;;  %vm4921_vm14 = vcmp.eq.s32.totalorder %v13869_v12, 0 }
 0x42d   : > { %vm6598_vm8 = vcmp.eq.s32.totalorder %v13829_v2, 2  ;;  %10430 = vsinq.f32 %v5017_v30  ;;  %v5180_v0 = vsel %vm5170_vm15, %v5177_v32, %v5179_v11  ;;  %v5184_v60 = vsel %vm5170_vm15, %v5181_v52, %v5183_v10 }
 0x42e   : > { %v3869_v49 = vsel %vm635_vm3, %v3853_v58, %v3755_v23  ;;  %vm6595_vm4 = vcmp.eq.s32.totalorder %v13829_v2, 0  ;;  %vm5035_vm1 = vcmp.lt.s32.totalorder %v13571_v29, 0  ;;  %v9392_v16 = vadd.s32 4294967294, %v5101_v24  ;;  %v10427_v36 = vpop.eup %10426 }
 0x42f   : > { %v13913_v17 = vmul.u32.u64.low %v13874_v57, %v5184_v60  ;;  %v13914_v37 = vmul.u32.u64.high %v13874_v57, %v5184_v60, %v13913_v17  ;;  %vm15629_vm6 = vcmask 785408   ;;  %v5173_v21 = vsel %vm5169_vm12, %v5153_v20, %v5156_v28 }
 0x430   : > { %v13917_v39 = vsel %vm15629_vm6, %v3869_v49, %v3819_v62  ;;  %v5175_v23 = vsel %vm5171_vm5, %v5159_v4, %v5174_v42  ;;  %v13924_v18 = vmul.u32.u64.low %v13874_v57, %v5180_v0  ;;  %v13925_v34 = vmul.u32.u64.high %v13874_v57, %v5180_v0, %v13924_v18  ;;  %v15635_v62 = vld [vmem:[#allocation25_spill] sm:$0xff]  ;;  %v3757_v42 = vpop.permute.xlu0 %3756 }
 0x431   : > { %v13930_v38 = vsel %vm4813_vm2, nan, %v4823_v31  ;;  %v13934_v30 = vsel %vm4813_vm2, nan, %v6498_v5  ;;  %vm4920_vm13 = vcmp.lt.s32.totalorder %v13869_v12, 2  ;;  %v13938_v28 = vand.u32 3, %v13839_v22 }
 0x432   : > { %15630 = vst [vmem:[#allocation13_spill] sm:$0xff] %v13930_v38  ;;  %15631 = vst [vmem:[#allocation18_spill] sm:$0xff] %v13934_v30  ;;  %vm9393_vm11 = vcmp.lt.s32.totalorder %v9392_v16, 0  ;;  %v4925_v4 = vxor.u32 2147483648, %v13885_v43  ;;  %vm6594_vm9 = vcmp.lt.s32.totalorder %v13829_v2, 2  ;;  %v5089_v59 = vadd.s32 %v13763_v55, %v13779_v25 }
 0x433   : > { %v15632_v54 = vand.u32 2147483647, %v13571_v29  ;;  %v5104_v31 = vsel %vm9393_vm11, 0, %v9392_v16  ;;  %v5244_v5 = vand.u32 2139095040, %v13917_v39  ;;  %v4922_v63 = vxor.u32 2147483648, %v10427_v36 }
 0x434   : > { %v5105_v22 = vsub.s32 32, %v5104_v31  ;;  %v5109_v32 = vsub.s32 4294967266, %v5104_v31  ;;  %v5176_v52 = vsel %vm5170_vm15, %v5173_v21, %v5175_v23  ;;  %v13953_v20 = vand.u32 3, %v5022_v15  ;;  %v3821_v12 = vpop.permute.xlu0 %3820 }
 0x435   : > { %vm13944_vm7 = vcmp.le.f32.partialorder %v15632_v54, 0.7853982  ;;  %v5119_v11 = vsub.s32 4, %v13843_v19  ;;  %vm5194_vm2 = vc.u32 %v13914_v37, %v13924_v18  ;;  %v5195_v10 = vadd.s32 1, %v13925_v34  ;;  %v10429_v49 = vpop.eup %10428 }
 0x436   : > { %v5106_v55 = vshll.u32 %v13862_v61, %v5104_v31  ;;  %v5107_v25 = vshrl.u32 %v5089_v59, %v5105_v22  ;;  %v5110_v58 = vadd.s32 127, %v5109_v32  ;;  %v3598_v24 = vmul.f32 100.0, %v15635_v62  ;;  %v13985_v22 = vpop.permute.xlu1 %3694 }
 0x437   : > { %vm4917_vm12 = vweird.f32 %v13257_v3  ;;  %v4926_v56 = vsel %vm4924_vm10, %v4925_v4, %v10427_v36  ;;  %v5192_v15 = vmul.u32 %v13874_v57, %v5176_v52  ;;  %v5196_v0 = vsel %vm5194_vm2, %v5195_v10, %v13925_v34  ;;  %v10431_v23 = vpop.eup %10430 }
 0x438   : > { %v5245_v60 = vshrl.u32 %v5244_v5, 23  ;;  %v4923_v61 = vsel %vm4921_vm14, %v13885_v43, %v4922_v63  ;;  %v6600_v16 = vsel %vm6598_vm8, %v4925_v4, %v10427_v36  ;;  %v5108_v17 = vor.u32 %v5107_v25, %v5106_v55 }
 0x439   : > { %v5111_v21 = vshll.u32 %v5110_v58, 23  ;;  %v6597_v54 = vsel %vm6595_vm4, %v13885_v43, %v4922_v63  ;;  %vm6698_vm5 = vcmp.eq.s32.totalorder %v13938_v28, 0  ;;  %v5120_v57 = vsel %vm5035_vm1, %v5119_v11, %v13843_v19 }
 0x43a   : > { %v5197_v34 = vadd.s32 %v5196_v0, %v5192_v15  ;;  %v9398_v59 = vadd.s32 4294967169, %v5245_v60  ;;  %vm5025_vm10 = vcmp.eq.s32.totalorder %v13953_v20, 0  ;;  %vm6701_vm15 = vcmp.eq.s32.totalorder %v13938_v28, 2 }
 0x43b   : > { %v5112_v36 = vor.u32 4788187, %v5111_v21  ;;  %v15465_v4 = vand.u32 2147483647, %v13917_v39  ;;  %v4927_v31 = vsel %vm4920_vm13, %v4923_v61, %v4926_v56  ;;  %vm5024_vm14 = vcmp.lt.s32.totalorder %v13953_v20, 2 }
 0x43c   : > { %v5198_v43 = vadd.s32 536870912, %v5197_v34  ;;  %v3854_v5 = vsel %vm405_vm0, %v3598_v24, %v3693_v13  ;;  %v5251_v63 = vadd.s32 1, %v9398_v59  ;;  %v6601_v19 = vsel %vm6594_vm9, %v6597_v54, %v6600_v16 }
 0x43d   : > { %vm6697_vm8 = vcmp.lt.s32.totalorder %v13938_v28, 2  ;;  %v5113_v32 = vand.u32 2147483647, %v5112_v36  ;;  %v5115_v52 = vcvt.s32.f32 %v5108_v17  ;;  %v5122_v11 = vsel %vm13944_vm7, 0, %v5120_v57  ;;  %v14014_v57 = vpop.permute.xlu1 %3758 }
 0x43e   : > { %v5026_v10 = vxor.u32 2147483648, %v10431_v23  ;;  %v5029_v55 = vxor.u32 2147483648, %v10429_v49  ;;  %v13992_v25 = vshrl.u32 %v5198_v43, 30  ;;  %vm5252_vm4 = vcmp.gt.s32.totalorder %v5251_v63, 0 }
 0x43f   : > { %v5116_v13 = vmul.f32 %v5115_v52, %v5113_v32  ;;  %v3870_v58 = vsel %vm635_vm3, %v3854_v5, %v3757_v42  ;;  %v5248_v2 = vand.u32 8388607, %v15465_v4  ;;  %v5253_v62 = vsel %vm5252_vm4, %v5251_v63, 0 }
 0x440   : > { %v5126_v24 = vadd.s32 3, %v5122_v11  ;;  %v5200_v56 = vshll.u32 %v13992_v25, 30  ;;  %v5255_v15 = vand.u32 31, %v5253_v62  ;;  %v13999_v0 = vsel %vm15629_vm6, %v3870_v58, %v3821_v12 }
 0x441   : > { %v14003_v60 = vsel %vm4917_vm12, nan, %v4927_v31  ;;  %v14007_v61 = vsel %vm4917_vm12, nan, %v6601_v19  ;;  %vm5028_vm13 = vcmp.eq.s32.totalorder %v13953_v20, 2  ;;  %v5117_v42 = vxor.u32 2147483648, %v5116_v13 }
 0x442   : > { %15636 = vst [vmem:[#allocation25_spill] sm:$0xff] %v14003_v60  ;;  %15637 = vst [vmem:[#allocation35_spill] sm:$0xff] %v14007_v61  ;;  %v5027_v16 = vsel %vm5025_vm10, %v10429_v49, %v5026_v10  ;;  %v5030_v17 = vsel %vm5028_vm13, %v5029_v55, %v10431_v23  ;;  %v14012_v21 = vsub.s32 %v5197_v34, %v5200_v56  ;;  %v5256_v54 = vsub.s32 32, %v5255_v15  ;;  %v14052_v56 = vpop.permute.xlu1 %3822 }
 0x443   : > { %v6700_v59 = vsel %vm6698_vm5, %v10429_v49, %v5026_v10  ;;  %v6703_v3 = vsel %vm6701_vm15, %v5029_v55, %v10431_v23  ;;  %v5249_v36 = vor.u32 8388608, %v5248_v2  ;;  %v5348_v31 = vand.u32 2139095040, %v13999_v0 }
 0x444   : > { %v14021_v43 = vand.u32 3, %v5126_v24  ;;  %v14023_v5 = vand.u32 3, %v5122_v11  ;;  %v5193_v34 = vadd.s32 %v13924_v18, %v13914_v37  ;;  %v5203_v63 = vsub.s32 0, %v14012_v21 }
 0x445   : > { %v14030_v19 = vsel %vm5024_vm14, %v5027_v16, %v5030_v17  ;;  %v5118_v49 = vsel %vm5035_vm1, %v5117_v42, %v5116_v13  ;;  %v5259_v23 = vshrl.u32 %v15585_v7, %v5256_v54  ;;  %v5262_v32 = vshrl.u32 %v15586_v41, %v5256_v54  ;;  %v14046_v13 = vpop.f32.mrb[30].mxu1 }
 0x446   : > { %v6704_v52 = vsel %vm6697_vm8, %v6700_v59, %v6703_v3  ;;  %v9395_v11 = vmin.u32 %v5203_v63, %v14012_v21  ;;  %v5258_v37 = vshll.u32 %v15582_v26, %v5255_v15  ;;  %v14041_v12 = vshrl.u32 %v5253_v62, 5  ;;  %v14054_v42 = vpop.f32.mrb[31].mxu1 }
 0x447   : > { %v5261_v20 = vshll.u32 %v15585_v7, %v5255_v15  ;;  %v14044_v10 = vshll.u32 %v5249_v36, 8  ;;  %v5349_v55 = vshrl.u32 %v5348_v31, 23  ;;  %v5121_v28 = vsel %vm13944_vm7, %v13571_v29, %v5118_v49 }
 0x448   : > { %v5205_v58 = vclz %v9395_v11  ;;  %v5260_v2 = vor.u32 %v5259_v23, %v5258_v37  ;;  %v5264_v24 = vshll.u32 %v15586_v41, %v5255_v15  ;;  %v5265_v16 = vshrl.u32 %v15579_v9, %v5256_v54 }
 0x449   : > { %v5263_v62 = vor.u32 %v5262_v32, %v5261_v20  ;;  %v5267_v17 = vshll.u32 %v15579_v9, %v5255_v15  ;;  %v5268_v59 = vshrl.u32 %v15580_v8, %v5256_v54  ;;  %vm5021_vm1 = vweird.f32 %v13409_v47 }
 0x44a   : > { %v9396_v3 = vadd.s32 4294967294, %v5205_v58  ;;  %v5223_v53 = vsub.s32 4, %v13992_v25  ;;  %v5270_v36 = vshll.u32 %v15580_v8, %v5255_v15  ;;  %v5271_v31 = vshrl.u32 %v15578_v44, %v5256_v54 }
 0x44b   : > { %10432 = vcosq.f32 %v5121_v28  ;;  %v5266_v63 = vor.u32 %v5265_v16, %v5264_v24  ;;  %v5269_v49 = vor.u32 %v5268_v59, %v5267_v17  ;;  %v9402_v23 = vadd.s32 4294967169, %v5349_v55  ;;  %v14071_v55 = vpop.permute.xlu1 %907  ;;  %v15649_v16 = vld [vmem:[#allocation28_spill] sm:$0xff] }
 0x44c   : > { %vm5139_vm11 = vcmp.lt.s32.totalorder %v13698_v48, 0  ;;  %vm9397_vm9 = vcmp.lt.s32.totalorder %v9396_v3, 0  ;;  %v5272_v32 = vor.u32 %v5271_v31, %v5270_v36  ;;  %vm5273_vm7 = vcmp.lt.s32.totalorder %v14041_v12, 1 }
 0x44d   : > { %vm5276_vm2 = vcmp.lt.s32.totalorder %v14041_v12, 4  ;;  %v5208_v11 = vsel %vm9397_vm9, 0, %v9396_v3  ;;  %v5257_v37 = vshrl.u32 %v15582_v26, %v5256_v54  ;;  %v5281_v15 = vsel %vm5273_vm7, %v5260_v2, %v5263_v62 }
 0x44e   : > { %v5282_v20 = vsel %vm5276_vm2, %v5269_v49, 920167782  ;;  %v5209_v58 = vsub.s32 32, %v5208_v11  ;;  %v5213_v4 = vsub.s32 4294967266, %v5208_v11  ;;  %vm5274_vm12 = vcmp.lt.s32.totalorder %v14041_v12, 2 }
 0x44f   : > { %vm5275_vm5 = vcmp.lt.s32.totalorder %v14041_v12, 3  ;;  %v15638_v24 = vand.u32 2147483647, %v13698_v48  ;;  %v5278_v17 = vsel %vm5276_vm2, %v5266_v63, 2102212464  ;;  %v5285_v59 = vsel %vm5273_vm7, %v5263_v62, %v5266_v63 }
 0x450   : > { %v5283_v54 = vsel %vm5275_vm5, %v5266_v63, %v5282_v20  ;;  %v5286_v3 = vsel %vm5276_vm2, %v5272_v32, 1326507024  ;;  %v5210_v36 = vshll.u32 %v14012_v21, %v5208_v11  ;;  %v5211_v31 = vshrl.u32 %v5193_v34, %v5209_v58  ;;  %v14098_v21 = vld [vmem:[%s15372_s5 + $0x63] ss:$0 sm:$0xff] }
 0x451   : > { %vm14075_vm10 = vcmp.le.f32.partialorder %v15638_v24, 0.7853982  ;;  %v5214_v18 = vadd.s32 127, %v5213_v4  ;;  %v5284_v61 = vsel %vm5274_vm12, %v5281_v15, %v5283_v54  ;;  %v5277_v24 = vsel %vm5273_vm7, %v5257_v37, %v5260_v2  ;;  %v831_v2 = vpop.permute.xlu0 %830  ;;  %v15645_v58 = vld [vmem:[#allocation15_spill] sm:$0xff] }
 0x452   : > { %v5287_v60 = vsel %vm5275_vm5, %v5269_v49, %v5286_v3  ;;  %v14091_v30 = vmul.u32.u64.low %v14044_v10, %v5284_v61  ;;  %v14092_v20 = vmul.u32.u64.high %v14044_v10, %v5284_v61, %v14091_v30  ;;  %v5212_v4 = vor.u32 %v5211_v31, %v5210_v36 }
 0x453   : > { %v5215_v34 = vshll.u32 %v5214_v18, 23  ;;  %v5279_v63 = vsel %vm5275_vm5, %v5263_v62, %v5278_v17  ;;  %v5355_v32 = vadd.s32 1, %v9402_v23  ;;  %v14105_v49 = vsel %vm5021_vm1, nan, %v14030_v19  ;;  %v14116_v18 = vld [vmem:[%s15372_s5 + $0x64] ss:$0 sm:$0xff]  ;;  %v15644_v19 = vld [vmem:[#allocation24_spill] sm:$0xff] }
 0x454   : > { %15641 = vst [vmem:[#allocation36_spill] sm:$0xff] %v14105_v49  ;;  %v14109_v61 = vsel %vm5021_vm1, nan, %v6704_v52  ;;  %10434 = vsinq.f32 %v5121_v28  ;;  %v5288_v11 = vsel %vm5274_vm12, %v5285_v59, %v5287_v60  ;;  %v15643_v23 = vand.u32 2147483647, %v13999_v0  ;;  %v1062_v52 = vpop.permute.xlu1 %1061 }
 0x455   : > { %15642 = vst [vmem:[#allocation37_spill] sm:$0xff] %v14109_v61  ;;  %v5216_v62 = vor.u32 4788187, %v5215_v34  ;;  %v3599_v15 = vmul.f32 100.0, %v15644_v19  ;;  %v5557_v47 = vmul.f32 %v14098_v21, %v15645_v58  ;;  %v14125_v28 = vpop.eup %10432  ;;  %v5224_v60 = vsel %vm5139_vm11, %v5223_v53, %v13992_v25  ;;  %v14137_v34 = vpop.permute.xlu0 %984  ;;  %v15646_v25 = vld [vmem:[#allocation21_spill] sm:$0xff] }
 0x456   : > { %v14120_v37 = vand.u32 8388607, %v15643_v23  ;;  %v5280_v17 = vsel %vm5274_vm12, %v5277_v24, %v5279_v63  ;;  %v14133_v54 = vmul.u32.u64.low %v14044_v10, %v5288_v11  ;;  %v14134_v59 = vmul.u32.u64.high %v14044_v10, %v5288_v11, %v14133_v54 }
 0x457   : > { %v5217_v3 = vand.u32 2147483647, %v5216_v62  ;;  %v5219_v36 = vcvt.s32.f32 %v5212_v4  ;;  %v5299_v31 = vadd.s32 1, %v14092_v20  ;;  %vm5356_vm15 = vcmp.gt.s32.totalorder %v5355_v32, 0  ;;  %v14152_v4 = vld [vmem:[%s15372_s5 + $0x61] ss:$0 sm:$0xff] }
 0x458   : > { %v5357_v23 = vsel %vm5356_vm15, %v5355_v32, 0  ;;  %v14141_v19 = vsel %vm405_vm0, %v3599_v15, %v13985_v22  ;;  %v7225_v12 = vmul.f32 %v14116_v18, %v15646_v25  ;;  %v14147_v24 = vsel %vm14075_vm10, 0, %v5224_v60 }
 0x459   : > { %v5220_v53 = vmul.f32 %v5219_v36, %v5217_v3  ;;  %v5359_v63 = vand.u32 31, %v5357_v23  ;;  %v14156_v32 = vadd.f32 %v14152_v4, %v13848_v6  ;;  %v10658_v22 = vmov 0.0   ;;  %v15648_v36 = vld [vmem:[#allocation26_spill] sm:$0xff] }
 0x45a   : > { %9711 = vmatprep.subr.mxu0 %v10658_v22  ;;  %9726 = vmatprep.subr.mxu1 %v10658_v22  ;;  %v5296_v11 = vmul.u32 %v14044_v10, %v5280_v17  ;;  %vm5298_vm14 = vc.u32 %v14134_v59, %v14091_v30  ;;  %v14163_v62 = vadd.f32 %v7225_v12, %v5557_v47  ;;  %vm10659_vm8 = vmmov 0   ;;  %v1216_v10 = vpop.permute.xlu1 %1215 }
 0x45b   : > { %9712 = vmatpush3.xpose.msk.msra.mxu0 %vm405_vm0, %v831_v2  ;;  %9727 = vmatpush3.xpose.msk.msra.mxu1 %vm405_vm0, %v1062_v52  ;;  %v5221_v15 = vxor.u32 2147483648, %v5220_v53  ;;  %v5300_v6 = vsel %vm5298_vm14, %v5299_v31, %v14092_v20  ;;  %v14168_v58 = vsub.s32 32, %v5359_v63  ;;  %v14172_v60 = vadd.f32 %v14152_v4, %v13853_v51  ;;  %v14192_v31 = vpop.permute.xlu0 %1138 }
 0x45c   : > { %15647 = vst [vmem:[#allocation24_spill] sm:$0xff] %v14163_v62  ;;  %9713 = vmatprep.mubr.msk.f32.mxu0 %vm10659_vm8, %v10658_v22  ;;  %9716 = vmatprep.subr.mxu0 %v10658_v22  ;;  %v5301_v47 = vadd.s32 %v5300_v6, %v5296_v11  ;;  %v14177_v2 = vshrl.u32 %v5357_v23, 5  ;;  %v5362_v52 = vshll.u32 %v15582_v26, %v5359_v63  ;;  %vm5132_vm4 = vcmp.eq.s32.totalorder %v14021_v43, 2 }
 0x45d   : > { %v5365_v20 = vshll.u32 %v15585_v7, %v5359_v63  ;;  %7273 = vrot.lane.b32.xlu0 %v14163_v62, %s10650_s7  ;;  %v5222_v51 = vsel %vm5139_vm11, %v5221_v15, %v5220_v53  ;;  %v5363_v17 = vshrl.u32 %v15585_v7, %v14168_v58  ;;  %v5366_v54 = vshrl.u32 %v15586_v41, %v14168_v58 }
 0x45e   : > { %v5368_v3 = vshll.u32 %v15586_v41, %v5359_v63  ;;  %9714 = vmatmul.mubr.msk.f32.vlgmr.msra.gmra.mrb[0].mxu0 %vm405_vm0, %v15648_v36  ;;  %v14194_v23 = vpop.eup %10434  ;;  %v5302_v25 = vadd.s32 536870912, %v5301_v47  ;;  %v5369_v12 = vshrl.u32 %v15579_v9, %v14168_v58  ;;  %v5371_v53 = vshll.u32 %v15579_v9, %v5359_v63  ;;  %9728 = vmatprep.mubr.msk.f32.mxu1 %vm10659_vm8, %v10658_v22 }
 0x45f   : > { %v5372_v11 = vshrl.u32 %v15580_v8, %v14168_v58  ;;  %9717 = vmatpush3.xpose.msk.msra.mxu0 %vm405_vm0, %v14071_v55  ;;  %9718 = vmatprep.mubr.msk.f32.mxu0 %vm10659_vm8, %v10658_v22  ;;  %vm5129_vm6 = vcmp.eq.s32.totalorder %v14021_v43, 0  ;;  %v5225_v15 = vsel %vm14075_vm10, %v13698_v48, %v5222_v51  ;;  %v5353_v6 = vor.u32 8388608, %v14120_v37 }
 0x460   : > { %v14211_v36 = vor.u32 %v5363_v17, %v5362_v52  ;;  %v14213_v62 = vor.u32 %v5366_v54, %v5365_v20  ;;  %9721 = vmatprep.subr.mxu0 %v10658_v22  ;;  %v5230_v55 = vadd.s32 3, %v14147_v24  ;;  %vm5243_vm13 = vcmp.lt.s32.totalorder %v13917_v39, 0  ;;  %9729 = vmatmul.mubr.msk.f32.vlgmr.msra.gmra.mrb[32].mxu1 %vm405_vm0, %v15649_v16  ;;  %v15650_v17 = vld [vmem:[#allocation33_spill] sm:$0xff]  ;;  %v1370_v54 = vpop.permute.xlu1 %1369 }
 0x461   : > { %v5303_v61 = vshrl.u32 %v5302_v25, 30  ;;  %v5370_v49 = vor.u32 %v5369_v12, %v5368_v3  ;;  %v5373_v38 = vor.u32 %v5372_v11, %v5371_v53  ;;  %1754 = vrot.lane.b32.xlu0 %v14172_v60, %s10651_s12  ;;  %vm6801_vm1 = vcmp.eq.s32.totalorder %v14023_v5, 0  ;;  %9736 = vmatprep.subr.mxu1 %v10658_v22  ;;  %v1293_v11 = vpop.permute.xlu0 %1292 }
 0x462   : > { %vm6804_vm11 = vcmp.eq.s32.totalorder %v14023_v5, 2  ;;  %v5374_v20 = vshll.u32 %v15580_v8, %v5359_v63  ;;  %v5375_v51 = vshrl.u32 %v15578_v44, %v14168_v58  ;;  %9719 = vmatmul.mubr.msk.f32.vlgmr.msra.gmra.mrb[2].mxu0 %vm405_vm0, %v15650_v17  ;;  %vm5128_vm9 = vcmp.lt.s32.totalorder %v14021_v43, 2  ;;  %9737 = vmatpush3.xpose.msk.msra.mxu1 %vm405_vm0, %v1216_v10 }
 0x463   : > { %10436 = vcosq.f32 %v5225_v15  ;;  %v5304_v3 = vshll.u32 %v5303_v61, 30  ;;  %vm5377_vm7 = vcmp.lt.s32.totalorder %v14177_v2, 1  ;;  %vm5380_vm2 = vcmp.lt.s32.totalorder %v14177_v2, 4  ;;  %9722 = vmatpush3.xpose.msk.msra.mxu0 %vm405_vm0, %v14137_v34  ;;  %9723 = vmatprep.mubr.msk.f32.mxu0 %vm10659_vm8, %v10658_v22 }
 0x464   : > { %v15651_v63 = vand.u32 2147483647, %v13917_v39  ;;  %v5376_v12 = vor.u32 %v5375_v51, %v5374_v20  ;;  %vm5379_vm5 = vcmp.lt.s32.totalorder %v14177_v2, 3  ;;  %v5385_v53 = vsel %vm5377_vm7, %v14211_v36, %v14213_v62  ;;  %9731 = vmatprep.subr.mxu0 %v10658_v22  ;;  %9738 = vmatprep.mubr.msk.f32.mxu1 %vm10659_vm8, %v10658_v22 }
 0x465   : > { %v5386_v34 = vsel %vm5380_vm2, %v5373_v38, 920167782  ;;  %vm6800_vm10 = vcmp.lt.s32.totalorder %v14023_v5, 2  ;;  %10438 = vsinq.f32 %v5225_v15  ;;  %vm5378_vm15 = vcmp.lt.s32.totalorder %v14177_v2, 2  ;;  %9746 = vmatprep.subr.mxu1 %v10658_v22 }
 0x466   : > { %vm14243_vm12 = vcmp.le.f32.partialorder %v15651_v63, 0.7853982  ;;  %v14257_v63 = vsub.s32 %v5301_v47, %v5304_v3  ;;  %v5387_v20 = vsel %vm5379_vm5, %v5370_v49, %v5386_v34  ;;  %vm5125_vm14 = vweird.f32 %v13571_v29  ;;  %v15654_v47 = vld [vmem:[#allocation20_spill] sm:$0xff] }
 0x467   : > { %v5327_v51 = vsub.s32 4, %v5303_v61  ;;  %v5361_v10 = vshrl.u32 %v15582_v26, %v14168_v58  ;;  %v5388_v37 = vsel %vm5378_vm15, %v5385_v53, %v5387_v20  ;;  %v14269_v15 = vshll.u32 %v5353_v6, 8  ;;  %9724 = vmatmul.mubr.msk.f32.vlgmr.msra.gmra.mrb[4].mxu0 %vm405_vm0, %v15654_v47 }
 0x468   : > { %v5307_v3 = vsub.s32 0, %v14257_v63  ;;  %v5382_v34 = vsel %vm5380_vm2, %v5370_v49, 2102212464  ;;  %v5389_v52 = vsel %vm5377_vm7, %v14213_v62, %v5370_v49  ;;  %v5390_v58 = vsel %vm5380_vm2, %v5376_v12, 1326507024  ;;  %9732 = vmatpush3.xpose.msk.msra.mxu0 %vm405_vm0, %v14192_v31  ;;  %9733 = vmatprep.mubr.msk.f32.mxu0 %vm10659_vm8, %v10658_v22  ;;  %v15656_v12 = vld [vmem:[#allocation16_spill] sm:$0xff]  ;;  %v1524_v31 = vpop.permute.xlu1 %1523 }
 0x469   : > { %v15655_v6 = vxor.u32 2147483648, %v14125_v28  ;;  %v5391_v20 = vsel %vm5379_vm5, %v5373_v38, %v5390_v58  ;;  %v14294_v49 = vmul.u32.u64.low %v14269_v15, %v5388_v37  ;;  %v14295_v47 = vmul.u32.u64.high %v14269_v15, %v5388_v37, %v14294_v49  ;;  %9739 = vmatmul.mubr.msk.f32.vlgmr.msra.gmra.mrb[34].mxu1 %vm405_vm0, %v15656_v12  ;;  %9741 = vmatprep.subr.mxu0 %v10658_v22 }
 0x46a   : > { %v15657_v16 = vxor.u32 2147483648, %v14194_v23  ;;  %v14307_v17 = vand.u32 3, %v14147_v24  ;;  %v9399_v38 = vmin.u32 %v5307_v3, %v14257_v63  ;;  %v5381_v37 = vsel %vm5377_vm7, %v5361_v10, %v14211_v36  ;;  %9747 = vmatpush3.xpose.msk.msra.mxu1 %vm405_vm0, %v1370_v54  ;;  %9748 = vmatprep.mubr.msk.f32.mxu1 %vm10659_vm8, %v10658_v22  ;;  %v15658_v3 = vld [vmem:[#allocation27_spill] sm:$0xff]  ;;  %v1447_v36 = vpop.permute.xlu0 %1446 }
 0x46b   : > { %v5134_v53 = vsel %vm5132_vm4, %v15655_v6, %v14194_v23  ;;  %v14316_v58 = vand.u32 3, %v5230_v55  ;;  %v5328_v12 = vsel %vm5243_vm13, %v5327_v51, %v5303_v61  ;;  %v5383_v24 = vsel %vm5379_vm5, %v14213_v62, %v5382_v34  ;;  %9734 = vmatmul.mubr.msk.f32.vlgmr.msra.gmra.mrb[6].mxu0 %vm405_vm0, %v15658_v3  ;;  %9756 = vmatprep.subr.mxu1 %v10658_v22 }
 0x46c   : > { %v5131_v6 = vsel %vm5129_vm6, %v14125_v28, %v15657_v16  ;;  %v5392_v16 = vsel %vm5378_vm15, %v5389_v52, %v5391_v20  ;;  %v15659_v54 = vxor.u32 2147483648, %v14194_v23  ;;  %v15660_v61 = vxor.u32 2147483648, %v14125_v28  ;;  %9742 = vmatpush3.xpose.msk.msra.mxu0 %vm405_vm0, %v1293_v11  ;;  %9743 = vmatprep.mubr.msk.f32.mxu0 %vm10659_vm8, %v10658_v22  ;;  %v1678_v2 = vpop.permute.xlu1 %1677 }
 0x46d   : > { %v5309_v51 = vclz %v9399_v38  ;;  %v3871_v52 = vsel %vm635_vm3, %v14141_v19, %v14014_v57  ;;  %v5135_v10 = vsel %vm5128_vm9, %v5131_v6, %v5134_v53  ;;  %vm15661_vm4 = vcmask 785408   ;;  %9751 = vmatprep.subr.mxu0 %v10658_v22  ;;  %v14357_v57 = vpop.eup %10436 }
 0x46e   : > { %v6803_v55 = vsel %vm6801_vm1, %v14125_v28, %v15659_v54  ;;  %v6806_v62 = vsel %vm6804_vm11, %v15660_v61, %v14194_v23  ;;  %v14347_v34 = vmul.u32.u64.low %v14269_v15, %v5392_v16  ;;  %v14348_v20 = vmul.u32.u64.high %v14269_v15, %v5392_v16, %v14347_v34  ;;  %v15662_v23 = vld [vmem:[#allocation17_spill] sm:$0xff] }
 0x46f   : > { %v14352_v28 = vsel %vm15661_vm4, %v3871_v52, %v14052_v56  ;;  %9749 = vmatmul.mubr.msk.f32.vlgmr.msra.gmra.mrb[36].mxu1 %vm405_vm0, %v15662_v23  ;;  %vm6907_vm6 = vcmp.eq.s32.totalorder %v14307_v17, 2  ;;  %v9400_v19 = vadd.s32 4294967294, %v5309_v51  ;;  %v14362_v43 = vsel %vm14243_vm12, 0, %v5328_v12  ;;  %v15663_v12 = vld [vmem:[#allocation34_spill] sm:$0xff] }
 0x470   : > { %v5384_v11 = vsel %vm5378_vm15, %v5381_v37, %v5383_v24  ;;  %9757 = vmatpush3.xpose.msk.msra.mxu1 %vm405_vm0, %v1524_v31  ;;  %9758 = vmatprep.mubr.msk.f32.mxu1 %vm10659_vm8, %v10658_v22  ;;  %v14371_v56 = vsel %vm6800_vm10, %v6803_v55, %v6806_v62  ;;  %vm5233_vm1 = vcmp.eq.s32.totalorder %v14316_v58, 0  ;;  %vm5236_vm11 = vcmp.eq.s32.totalorder %v14316_v58, 2  ;;  %v10439_v31 = vpop.eup %10438  ;;  %v15664_v55 = vld [vmem:[#allocation19_spill] sm:$0xff] }
 0x471   : > { %vm6904_vm9 = vcmp.eq.s32.totalorder %v14307_v17, 0  ;;  %v5403_v53 = vadd.s32 1, %v14295_v47  ;;  %9744 = vmatmul.mubr.msk.f32.vlgmr.msra.gmra.mrb[8].mxu0 %vm405_vm0, %v15663_v12  ;;  %9766 = vmatprep.subr.mxu1 %v10658_v22  ;;  %v14382_v5 = vsel %vm5125_vm14, nan, %v5135_v10  ;;  %v5297_v6 = vadd.s32 %v14091_v30, %v14134_v59  ;;  %v1601_v30 = vpop.permute.xlu0 %1600  ;;  %v15665_v10 = vld [vmem:[#allocation23_spill] sm:$0xff] }
 0x472   : > { %vm9401_vm7 = vcmp.lt.s32.totalorder %v9400_v19, 0  ;;  %v5452_v38 = vand.u32 2139095040, %v14352_v28  ;;  %9752 = vmatpush3.xpose.msk.msra.mxu0 %vm405_vm0, %v1447_v36  ;;  %9753 = vmatprep.mubr.msk.f32.mxu0 %vm10659_vm8, %v10658_v22  ;;  %v5237_v37 = vxor.u32 2147483648, %v14357_v57  ;;  %v14392_v16 = vadd.s32 3, %v14362_v43 }
 0x473   : > { %v5312_v24 = vsel %vm9401_vm7, 0, %v9400_v19  ;;  %v5400_v54 = vmul.u32 %v14269_v15, %v5384_v11  ;;  %9759 = vmatmul.mubr.msk.f32.vlgmr.msra.gmra.mrb[38].mxu1 %vm405_vm0, %v15664_v55  ;;  %9761 = vmatprep.subr.mxu0 %v10658_v22  ;;  %vm5232_vm2 = vcmp.lt.s32.totalorder %v14316_v58, 2  ;;  %vm5402_vm5 = vc.u32 %v14348_v20, %v14294_v49 }
 0x474   : > { %v5313_v59 = vsub.s32 32, %v5312_v24  ;;  %v5317_v36 = vsub.s32 4294967266, %v5312_v24  ;;  %v5558_v61 = vmul.f32 %v14098_v21, %v13146_v33  ;;  %9767 = vmatpush3.xpose.msk.msra.mxu1 %vm405_vm0, %v1678_v2  ;;  %9768 = vmatprep.mubr.msk.f32.mxu1 %vm10659_vm8, %v10658_v22  ;;  %v5234_v15 = vxor.u32 2147483648, %v10439_v31 }
 0x475   : > { %v5404_v62 = vsel %vm5402_vm5, %v5403_v53, %v14295_v47  ;;  %v5449_v51 = vand.u32 2147483647, %v14352_v28  ;;  %v5453_v52 = vshrl.u32 %v5452_v38, 23  ;;  %9754 = vmatmul.mubr.msk.f32.vlgmr.msra.gmra.mrb[10].mxu0 %vm405_vm0, %v15665_v10  ;;  %9776 = vmatprep.subr.mxu1 %v10658_v22  ;;  %vm6903_vm10 = vcmp.lt.s32.totalorder %v14307_v17, 2 }
 0x476   : > { %v5314_v33 = vshll.u32 %v14257_v63, %v5312_v24  ;;  %v5315_v34 = vshrl.u32 %v5297_v6, %v5313_v59  ;;  %v5318_v19 = vadd.s32 127, %v5317_v36  ;;  %v5405_v11 = vadd.s32 %v5404_v62, %v5400_v54  ;;  %9762 = vmatpush3.xpose.msk.msra.mxu0 %vm405_vm0, %v1601_v30  ;;  %9763 = vmatprep.mubr.msk.f32.mxu0 %vm10659_vm8, %v10658_v22  ;;  %v15666_v6 = vld [vmem:[#allocation14_spill] sm:$0xff]  ;;  %v15667_v36 = vld [vmem:[#allocation11_spill] sm:$0xff] }
 0x477   : > { %vm5229_vm15 = vweird.f32 %v13698_v48  ;;  %v5238_v47 = vsel %vm5236_vm11, %v5237_v37, %v10439_v31  ;;  %v6909_v53 = vsel %vm6907_vm6, %v5237_v37, %v10439_v31  ;;  %v9406_v2 = vadd.s32 4294967169, %v5453_v52  ;;  %9769 = vmatmul.mubr.msk.f32.vlgmr.msra.gmra.mrb[40].mxu1 %vm405_vm0, %v15666_v6  ;;  %9771 = vmatprep.subr.mxu0 %v10658_v22  ;;  %v15673_v48 = vld [vmem:[#allocation29_spill] sm:$0xff] }
 0x478   : > { %v7226_v63 = vmul.f32 %v14116_v18, %v13151_v1  ;;  %v5316_v38 = vor.u32 %v5315_v34, %v5314_v33  ;;  %v5319_v24 = vshll.u32 %v5318_v19, 23  ;;  %v5406_v54 = vadd.s32 536870912, %v5405_v11  ;;  %9778 = vmatprep.mubr.msk.f32.mxu1 %vm10659_vm8, %v10658_v22 }
 0x479   : > { %v5559_v30 = vmul.f32 %v14098_v21, %v13172_v35  ;;  %v5456_v31 = vand.u32 8388607, %v5449_v51  ;;  %v5459_v37 = vadd.s32 1, %v9406_v2  ;;  %v7227_v1 = vmul.f32 %v14116_v18, %v13186_v27  ;;  %9764 = vmatmul.mubr.msk.f32.vlgmr.msra.gmra.mrb[12].mxu0 %vm405_vm0, %v15667_v36 }
 0x47a   : > { %v14432_v59 = vadd.f32 %v7226_v63, %v5558_v61  ;;  %v5235_v62 = vsel %vm5233_vm1, %v14357_v57, %v5234_v15  ;;  %v6906_v35 = vsel %vm6904_vm9, %v14357_v57, %v5234_v15  ;;  %v5320_v52 = vor.u32 4788187, %v5319_v24  ;;  %9773 = vmatprep.mubr.msk.f32.mxu0 %vm10659_vm8, %v10658_v22 }
 0x47b   : > { %v14444_v33 = vshrl.u32 %v5406_v54, 30  ;;  %vm5460_vm4 = vcmp.gt.s32.totalorder %v5459_v37, 0  ;;  %v14450_v27 = vadd.f32 %v7227_v1, %v5559_v30  ;;  %v5560_v61 = vmul.f32 %v14098_v21, %v13317_v46 }
 0x47c   : > { %7275 = vrot.lane.b32.xlu1 %v14432_v59, %s10650_s7  ;;  %v7228_v34 = vmul.f32 %v14116_v18, %v13331_v14  ;;  %v5321_v19 = vand.u32 2147483647, %v5320_v52  ;;  %v5323_v57 = vcvt.s32.f32 %v5316_v38  ;;  %v5461_v2 = vsel %vm5460_vm4, %v5459_v37, 0 }
 0x47d   : > { %v5408_v15 = vshll.u32 %v14444_v33, 30  ;;  %v5239_v63 = vsel %vm5232_vm2, %v5235_v62, %v5238_v47  ;;  %v5457_v24 = vor.u32 8388608, %v5456_v31  ;;  %v5463_v54 = vand.u32 31, %v5461_v2  ;;  %7277 = vrot.lane.b32.xlu0 %v14450_v27, %s10650_s7 }
 0x47e   : > { %v14463_v30 = vadd.f32 %v14152_v4, %v14054_v42  ;;  %v14468_v46 = vsel %vm5125_vm14, nan, %v14371_v56  ;;  %v5324_v14 = vmul.f32 %v5323_v57, %v5321_v19  ;;  %v14471_v38 = vand.u32 3, %v14362_v43 }
 0x47f   : > { %v14473_v58 = vsub.s32 %v5405_v11, %v5408_v15  ;;  %v14477_v47 = vsel %vm6903_vm10, %v6906_v35, %v6909_v53  ;;  %v14480_v31 = vand.u32 3, %v14392_v16  ;;  %v5464_v42 = vsub.s32 32, %v5463_v54 }
 0x480   : > { %1831 = vrot.lane.b32.xlu1 %v14156_v32, %s10651_s12  ;;  %v14484_v29 = vadd.f32 %v7228_v34, %v5560_v61  ;;  %v14488_v56 = vsel %vm5229_vm15, nan, %v5239_v63  ;;  %v5325_v43 = vxor.u32 2147483648, %v5324_v14  ;;  %v5401_v11 = vadd.s32 %v14294_v49, %v14348_v20 }
 0x481   : > { %v5411_v17 = vsub.s32 0, %v14473_v58  ;;  %v5431_v53 = vsub.s32 4, %v14444_v33  ;;  %v5467_v16 = vshrl.u32 %v15585_v7, %v5464_v42  ;;  %v14495_v37 = vshll.u32 %v5457_v24, 8  ;;  %1908 = vrot.lane.b32.xlu0 %v14463_v30, %s10651_s12 }
 0x482   : > { %v14499_v1 = vadd.f32 %v14152_v4, %v14046_v13  ;;  %v5326_v62 = vsel %vm5243_vm13, %v5325_v43, %v5324_v14  ;;  %v5462_v20 = vshrl.u32 %v5461_v2, 5  ;;  %v5470_v35 = vshrl.u32 %v15586_v41, %v5464_v42 }
 0x483   : > { %v9403_v49 = vmin.u32 %v5411_v17, %v14473_v58  ;;  %v5329_v52 = vsel %vm14243_vm12, %v13917_v39, %v5326_v62  ;;  %v5466_v61 = vshll.u32 %v15582_v26, %v5463_v54  ;;  %v5561_v13 = vmul.f32 %v14098_v21, %v13368_v45 }
 0x484   : > { %7279 = vrot.lane.b32.xlu1 %v14484_v29, %s10650_s7  ;;  %v7229_v4 = vmul.f32 %v14116_v18, %v13476_v40  ;;  %10440 = vcosq.f32 %v5329_v52  ;;  %v5465_v19 = vshrl.u32 %v15582_v26, %v5464_v42  ;;  %v5469_v57 = vshll.u32 %v15585_v7, %v5463_v54 }
 0x485   : > { %v5413_v34 = vclz %v9403_v49  ;;  %10442 = vsinq.f32 %v5329_v52  ;;  %v5468_v25 = vor.u32 %v5467_v16, %v5466_v61  ;;  %v5472_v15 = vshll.u32 %v15586_v41, %v5463_v54 }
 0x486   : > { %v5473_v2 = vshrl.u32 %v15579_v9, %v5464_v42  ;;  %v5471_v24 = vor.u32 %v5470_v35, %v5469_v57  ;;  %v5475_v14 = vshll.u32 %v15579_v9, %v5463_v54  ;;  %v5476_v45 = vshrl.u32 %v15580_v8, %v5464_v42 }
 0x487   : > { %v9404_v63 = vadd.s32 4294967294, %v5413_v34  ;;  %v5478_v40 = vshll.u32 %v15580_v8, %v5463_v54  ;;  %v5479_v17 = vshrl.u32 %v15578_v44, %v5464_v42  ;;  %vm5481_vm13 = vcmp.lt.s32.totalorder %v5462_v20, 1 }
 0x488   : > { %v5474_v43 = vor.u32 %v5473_v2, %v5472_v15  ;;  %1985 = vrot.lane.b32.xlu1 %v14499_v1, %s10651_s12  ;;  %vm5340_vm12 = vcmp.eq.s32.totalorder %v14480_v31, 2  ;;  %vm7010_vm14 = vcmp.eq.s32.totalorder %v14471_v38, 2  ;;  %v5477_v26 = vor.u32 %v5476_v45, %v5475_v14 }
 0x489   : > { %vm9405_vm6 = vcmp.lt.s32.totalorder %v9404_v63, 0  ;;  %vm5482_vm1 = vcmp.lt.s32.totalorder %v5462_v20, 2  ;;  %vm5484_vm11 = vcmp.lt.s32.totalorder %v5462_v20, 4  ;;  %vm5337_vm9 = vcmp.eq.s32.totalorder %v14480_v31, 0 }
 0x48a   : > { %vm7007_vm7 = vcmp.eq.s32.totalorder %v14471_v38, 0  ;;  %v5416_v9 = vsel %vm9405_vm6, 0, %v9404_v63  ;;  %v5480_v8 = vor.u32 %v5479_v17, %v5478_v40  ;;  %vm5483_vm2 = vcmp.lt.s32.totalorder %v5462_v20, 3 }
 0x48b   : > { %v5486_v44 = vsel %vm5484_vm11, %v5474_v43, 2102212464  ;;  %vm5336_vm5 = vcmp.lt.s32.totalorder %v14480_v31, 2  ;;  %vm5347_vm10 = vcmp.lt.s32.totalorder %v13999_v0, 0  ;;  %v5417_v7 = vsub.s32 32, %v5416_v9 }
 0x48c   : > { %v5421_v41 = vsub.s32 4294967266, %v5416_v9  ;;  %v5485_v54 = vsel %vm5481_vm13, %v5465_v19, %v5468_v25  ;;  %v5487_v42 = vsel %vm5483_vm2, %v5471_v24, %v5486_v44  ;;  %vm7006_vm4 = vcmp.lt.s32.totalorder %v14471_v38, 2  ;;  %v15672_v44 = vld [vmem:[#allocation22_spill] sm:$0xff]  ;;  %v15676_v38 = vld [vmem:[#allocation13_spill] sm:$0xff] }
 0x48d   : > { %v5418_v16 = vshll.u32 %v14473_v58, %v5416_v9  ;;  %v5489_v62 = vsel %vm5481_vm13, %v5468_v25, %v5471_v24  ;;  %v5490_v49 = vsel %vm5484_vm11, %v5477_v26, 920167782  ;;  %v5493_v35 = vsel %vm5481_vm13, %v5471_v24, %v5474_v43 }
 0x48e   : > { %v5419_v52 = vshrl.u32 %v5401_v11, %v5417_v7  ;;  %v5422_v61 = vadd.s32 127, %v5421_v41  ;;  %v5491_v34 = vsel %vm5483_vm2, %v5474_v43, %v5490_v49  ;;  %v5494_v57 = vsel %vm5484_vm11, %v5480_v8, 1326507024  ;;  %v10441_v58 = vpop.eup %10440 }
 0x48f   : > { %v5488_v19 = vsel %vm5482_vm1, %v5485_v54, %v5487_v42  ;;  %v5492_v15 = vsel %vm5482_vm1, %v5489_v62, %v5491_v34  ;;  %v5495_v2 = vsel %vm5483_vm2, %v5477_v26, %v5494_v57  ;;  %v14546_v63 = vadd.f32 %v7229_v4, %v5561_v13  ;;  %v10443_v24 = vpop.eup %10442  ;;  %v15668_v26 = vld [vmem:[#allocation30_spill] sm:$0xff] }
 0x490   : > { %v5420_v25 = vor.u32 %v5419_v52, %v5418_v16  ;;  %v5423_v14 = vshll.u32 %v5422_v61, 23  ;;  %v5496_v45 = vsel %vm5482_vm1, %v5493_v35, %v5495_v2  ;;  %v5562_v11 = vmul.f32 %v14098_v21, %v13496_v50 }
 0x491   : > { %v5341_v43 = vxor.u32 2147483648, %v10441_v58  ;;  %v14552_v40 = vmul.u32.u64.low %v14495_v37, %v5496_v45  ;;  %v14553_v17 = vmul.u32.u64.high %v14495_v37, %v5496_v45, %v14552_v40  ;;  %7281 = vrot.lane.b32.xlu0 %v14546_v63, %s10650_s7  ;;  %v7230_v13 = vmul.f32 %v14116_v18, %v15668_v26 }
 0x492   : > { %v5338_v4 = vxor.u32 2147483648, %v10443_v24  ;;  %v15669_v9 = vand.u32 2147483647, %v13999_v0  ;;  %v5424_v50 = vor.u32 4788187, %v5423_v14  ;;  %v5427_v8 = vcvt.s32.f32 %v5420_v25  ;;  %v15674_v25 = vld [vmem:[#allocation31_spill] sm:$0xff] }
 0x493   : > { %v5563_v7 = vmul.f32 %v14098_v21, %v15672_v44  ;;  %vm5333_vm6 = vweird.f32 %v13917_v39  ;;  %v5342_v41 = vsel %vm5340_vm12, %v5341_v43, %v10443_v24  ;;  %v7012_v54 = vsel %vm7010_vm14, %v5341_v43, %v10443_v24  ;;  %v15678_v43 = vld [vmem:[#allocation25_spill] sm:$0xff] }
 0x494   : > { %vm14561_vm13 = vcmp.le.f32.partialorder %v15669_v9, 0.7853982  ;;  %v14573_v42 = vmul.u32.u64.low %v14495_v37, %v5492_v15  ;;  %v14574_v16 = vmul.u32.u64.high %v14495_v37, %v5492_v15, %v14573_v42  ;;  %v5339_v62 = vsel %vm5337_vm9, %v10441_v58, %v5338_v4 }
 0x495   : > { %v7009_v49 = vsel %vm7007_vm7, %v10441_v58, %v5338_v4  ;;  %v5425_v35 = vand.u32 2147483647, %v5424_v50  ;;  %v14581_v52 = vadd.f32 %v7230_v13, %v5562_v11  ;;  %v6911_v61 = vsel %vm5229_vm15, nan, %v14477_v47  ;;  %v15677_v11 = vld [vmem:[#allocation18_spill] sm:$0xff]  ;;  %v15679_v4 = vld [vmem:[#allocation35_spill] sm:$0xff]  ;;  %v15680_v50 = vld [vmem:[#allocation36_spill] sm:$0xff] }
 0x496   : > { %v5343_v34 = vsel %vm5336_vm5, %v5339_v62, %v5342_v41  ;;  %v5432_v57 = vsel %vm5347_vm10, %v5431_v53, %v14444_v33  ;;  %v5504_v15 = vmul.u32 %v14495_v37, %v5488_v19  ;;  %v7013_v2 = vsel %vm7006_vm4, %v7009_v49, %v7012_v54  ;;  %v15675_v53 = vld [vmem:[#allocation32_spill] sm:$0xff]  ;;  %v15681_v54 = vld [vmem:[#allocation37_spill] sm:$0xff] }
 0x497   : > { %v5428_v58 = vmul.f32 %v5427_v8, %v5425_v35  ;;  %vm5506_vm12 = vc.u32 %v14553_v17, %v14573_v42  ;;  %7283 = vrot.lane.b32.xlu1 %v14581_v52, %s10650_s7  ;;  %v7231_v47 = vmul.f32 %v14116_v18, %v15673_v48  ;;  %v5507_v31 = vadd.s32 1, %v14574_v16 }
 0x498   : > { %v5564_v33 = vmul.f32 %v14098_v21, %v15674_v25  ;;  %v7232_v37 = vmul.f32 %v14116_v18, %v15675_v53  ;;  %v5565_v19 = vmul.f32 %v14098_v21, %v15676_v38  ;;  %v7233_v24 = vmul.f32 %v14116_v18, %v15677_v11 }
 0x499   : > { %v5429_v14 = vxor.u32 2147483648, %v5428_v58  ;;  %v14609_v45 = vadd.f32 %v7231_v47, %v5563_v7  ;;  %v5566_v40 = vmul.f32 %v14098_v21, %v15678_v43  ;;  %v5508_v26 = vsel %vm5506_vm12, %v5507_v31, %v14574_v16 }
 0x49a   : > { %v14616_v13 = vadd.f32 %v7232_v37, %v5564_v33  ;;  %v7234_v9 = vmul.f32 %v14116_v18, %v15679_v4  ;;  %v5567_v8 = vmul.f32 %v14098_v21, %v15680_v50  ;;  %v5509_v7 = vadd.s32 %v5508_v26, %v5504_v15 }
 0x49b   : > { %v5430_v44 = vsel %vm5347_vm10, %v5429_v14, %v5428_v58  ;;  %7285 = vrot.lane.b32.xlu0 %v14609_v45, %s10650_s7  ;;  %v14626_v41 = vadd.f32 %v7233_v24, %v5565_v19  ;;  %v7235_v16 = vmul.f32 %v14116_v18, %v15681_v54  ;;  %v5568_v35 = vmul.f32 %v14098_v21, %v14382_v5 }
 0x49c   : > { %v5433_v62 = vsel %vm14561_vm13, %v13999_v0, %v5430_v44  ;;  %7287 = vrot.lane.b32.xlu1 %v14616_v13, %s10650_s7  ;;  %v14635_v49 = vadd.f32 %v7234_v9, %v5566_v40  ;;  %v7236_v15 = vmul.f32 %v14116_v18, %v14468_v46  ;;  %v5344_v58 = vsel %vm5333_vm6, nan, %v5343_v34 }
 0x49d   : > { %v7014_v48 = vsel %vm5333_vm6, nan, %v7013_v2  ;;  %10444 = vcosq.f32 %v5433_v62  ;;  %v5510_v47 = vadd.s32 536870912, %v5509_v7  ;;  %v5434_v31 = vsel %vm14561_vm13, 0, %v5432_v57 }
 0x49e   : > { %10446 = vsinq.f32 %v5433_v62  ;;  %v14651_v5 = vadd.f32 %v7235_v16, %v5567_v8  ;;  %v5569_v46 = vmul.f32 %v14098_v21, %v14488_v56  ;;  %v7237_v34 = vmul.f32 %v14116_v18, %v6911_v61 }
 0x49f   : > { %v14647_v25 = vshrl.u32 %v5510_v47, 30  ;;  %7289 = vrot.lane.b32.xlu0 %v14626_v41, %s10650_s7  ;;  %v14658_v39 = vadd.f32 %v7236_v15, %v5568_v35  ;;  %v5570_v20 = vmul.f32 %v14098_v21, %v5344_v58  ;;  %v7238_v57 = vmul.f32 %v14116_v18, %v7014_v48 }
 0x4a0   : > { %7291 = vrot.lane.b32.xlu1 %v14635_v49, %s10650_s7  ;;  %v5438_v2 = vadd.s32 3, %v5434_v31  ;;  %v14665_v37 = vadd.f32 %v7237_v34, %v5569_v46  ;;  %v7108_v56 = vand.u32 3, %v5434_v31  ;;  %vm5437_vm2 = vweird.f32 %v13999_v0 }
 0x4a1   : > { %v5512_v33 = vshll.u32 %v14647_v25, 30  ;;  %v14669_v61 = vadd.f32 %v7238_v57, %v5570_v20  ;;  %v5505_v48 = vadd.s32 %v14573_v42, %v14553_v17  ;;  %vm5451_vm10 = vcmp.lt.s32.totalorder %v14352_v28, 0 }
 0x4a2   : > { %v5439_v38 = vand.u32 3, %v5438_v2  ;;  %vm7109_vm15 = vcmp.lt.s32.totalorder %v7108_v56, 2  ;;  %vm7113_vm1 = vcmp.eq.s32.totalorder %v7108_v56, 2  ;;  %vm7110_vm9 = vcmp.eq.s32.totalorder %v7108_v56, 0 }
 0x4a3   : > { %v5513_v53 = vsub.s32 %v5509_v7, %v5512_v33  ;;  %7293 = vrot.lane.b32.xlu0 %v14651_v5, %s10650_s7  ;;  %vm5450_vm4 = vcmp.le.f32.partialorder %v5449_v51, 0.7853982 }
 0x4a4   : > { %7295 = vrot.lane.b32.xlu1 %v14658_v39, %s10650_s7  ;;  %vm5444_vm14 = vcmp.eq.s32.totalorder %v5439_v38, 2  ;;  %vm5441_vm11 = vcmp.eq.s32.totalorder %v5439_v38, 0  ;;  %vm5440_vm7 = vcmp.lt.s32.totalorder %v5439_v38, 2 }
 0x4a5   : > { %v5515_v19 = vsub.s32 0, %v5513_v53 }
 0x4a7   : > { %v10445_v14 = vpop.eup %10444  ;;  %v9407_v11 = vmin.u32 %v5515_v19, %v5513_v53  ;;  %7297 = vrot.lane.b32.xlu0 %v14665_v37, %s10650_s7 }
 0x4a8   : > { %v10447_v24 = vpop.eup %10446  ;;  %v5445_v43 = vxor.u32 2147483648, %v10445_v14  ;;  %7299 = vrot.lane.b32.xlu1 %v14669_v61, %s10650_s7 }
 0x4a9   : > { %v5442_v40 = vxor.u32 2147483648, %v10447_v24  ;;  %v5517_v26 = vclz %v9407_v11 }
 0x4aa   : > { %v5446_v4 = vsel %vm5444_vm14, %v5445_v43, %v10447_v24  ;;  %v7115_v9 = vsel %vm7113_vm1, %v5445_v43, %v10447_v24 }
 0x4ab   : > { %v5443_v50 = vsel %vm5441_vm11, %v10445_v14, %v5442_v40  ;;  %v7112_v8 = vsel %vm7110_vm9, %v10445_v14, %v5442_v40  ;;  %v9408_v44 = vadd.s32 4294967294, %v5517_v26  ;;  %v5535_v14 = vsub.s32 4, %v14647_v25 }
 0x4ac   : > { %v5447_v7 = vsel %vm5440_vm7, %v5443_v50, %v5446_v4  ;;  %v7116_v54 = vsel %vm7109_vm15, %v7112_v8, %v7115_v9  ;;  %vm5541_vm11 = vweird.f32 %v14352_v28  ;;  %vm15692_vm9 = vcmask 64512  }
 0x4ad   : > { %v5448_v16 = vsel %vm5437_vm2, nan, %v5447_v7  ;;  %v7117_v62 = vsel %vm5437_vm2, nan, %v7116_v54  ;;  %vm9409_vm5 = vcmp.lt.s32.totalorder %v9408_v44, 0  ;;  %v5536_v42 = vsel %vm5451_vm10, %v5535_v14, %v14647_v25  ;;  %vm15693_vm7 = vmmov %vm15692_vm9 }
 0x4ae   : > { %v5520_v35 = vsel %vm9409_vm5, 0, %v9408_v44  ;;  %v5571_v15 = vmul.f32 %v14098_v21, %v5448_v16  ;;  %v7239_v58 = vmul.f32 %v14116_v18, %v7117_v62  ;;  %v5538_v24 = vsel %vm5450_vm4, 0, %v5536_v42  ;;  %vm15694_vm2 = vmmov %vm15693_vm7 }
 0x4af   : > { %v5521_v47 = vsub.s32 32, %v5520_v35  ;;  %v5525_v31 = vsub.s32 4294967266, %v5520_v35  ;;  %v5522_v34 = vshll.u32 %v5513_v53, %v5520_v35  ;;  %v5542_v43 = vadd.s32 3, %v5538_v24  ;;  %vm15695_vm5 = vmmov %vm15694_vm2 }
 0x4b0   : > { %v14681_v46 = vadd.f32 %v7239_v58, %v5571_v15  ;;  %v7211_v26 = vand.u32 3, %v5538_v24 }
 0x4b1   : > { %v5523_v0 = vshrl.u32 %v5505_v48, %v5521_v47  ;;  %v5526_v20 = vadd.s32 127, %v5525_v31  ;;  %v5543_v40 = vand.u32 3, %v5542_v43  ;;  %v15682_v31 = vld [vmem:[#allocation24_spill] sm:$0xff] }
 0x4b2   : > { %7301 = vrot.lane.b32.xlu0 %v14681_v46, %s10650_s7  ;;  %vm7216_vm6 = vcmp.eq.s32.totalorder %v7211_v26, 2  ;;  %vm7213_vm15 = vcmp.eq.s32.totalorder %v7211_v26, 0  ;;  %vm7212_vm1 = vcmp.lt.s32.totalorder %v7211_v26, 2 }
 0x4b3   : > { %v5524_v57 = vor.u32 %v5523_v0, %v5522_v34  ;;  %v5527_v2 = vshll.u32 %v5526_v20, 23  ;;  %vm5548_vm13 = vcmp.eq.s32.totalorder %v5543_v40, 2  ;;  %vm5545_vm12 = vcmp.eq.s32.totalorder %v5543_v40, 0 }
 0x4b4   : > { %vm5544_vm14 = vcmp.lt.s32.totalorder %v5543_v40, 2 }
 0x4b5   : > { %v5528_v33 = vor.u32 4788187, %v5527_v2  ;;  %v5531_v38 = vcvt.s32.f32 %v5524_v57 }
 0x4b7   : > { %v5529_v56 = vand.u32 2147483647, %v5528_v33 }
 0x4b9   : > { %v5532_v19 = vmul.f32 %v5531_v38, %v5529_v56 }
 0x4bb   : > { %v5533_v11 = vxor.u32 2147483648, %v5532_v19 }
 0x4bd   : > { %v5534_v17 = vsel %vm5451_vm10, %v5533_v11, %v5532_v19  ;;  %vm15696_vm10 = vmmov %vm15694_vm2 }
 0x4be   : > { %v5537_v53 = vsel %vm5450_vm4, %v14352_v28, %v5534_v17  ;;  %vm15697_vm4 = vmmov %vm15694_vm2 }
 0x4bf   : > { %10448 = vcosq.f32 %v5537_v53 }
 0x4c0   : > { %10450 = vsinq.f32 %v5537_v53 }
 0x4c9   : > { %v10449_v4 = vpop.eup %10448 }
 0x4ca   : > { %v10451_v9 = vpop.eup %10450  ;;  %v5549_v50 = vxor.u32 2147483648, %v10449_v4 }
 0x4cb   : > { %v5546_v8 = vxor.u32 2147483648, %v10451_v9 }
 0x4cc   : > { %v5550_v44 = vsel %vm5548_vm13, %v5549_v50, %v10451_v9  ;;  %v7218_v51 = vsel %vm7216_vm6, %v5549_v50, %v10451_v9  ;;  %vm15698_vm13 = vmmov %vm15694_vm2 }
 0x4cd   : > { %v5547_v25 = vsel %vm5545_vm12, %v10449_v4, %v5546_v8  ;;  %v7215_v7 = vsel %vm7213_vm15, %v10449_v4, %v5546_v8  ;;  %vm15699_vm6 = vmmov %vm15694_vm2 }
 0x4ce   : > { %v5551_v54 = vsel %vm5544_vm14, %v5547_v25, %v5550_v44  ;;  %v7219_v16 = vsel %vm7212_vm1, %v7215_v7, %v7218_v51  ;;  %vm15700_vm12 = vmmov %vm15694_vm2 }
 0x4cf   : > { %v5552_v62 = vsel %vm5541_vm11, nan, %v5551_v54  ;;  %v7220_v35 = vsel %vm5541_vm11, nan, %v7219_v16  ;;  %v7274_v47 = vpop.permute.xlu0 %7273  ;;  %vm15701_vm15 = vmmov %vm15694_vm2 }
 0x4d0   : > { %v5572_v15 = vmul.f32 %v14098_v21, %v5552_v62  ;;  %v7240_v58 = vmul.f32 %v14116_v18, %v7220_v35  ;;  %v14699_v34 = vadd.f32 %v7274_v47, %v15682_v31  ;;  %vm15702_vm14 = vmmov %vm15694_vm2 }
 0x4d1   : > { %vm15703_vm1 = vmmov %vm15694_vm2 }
 0x4d2   : > { %v14694_v48 = vadd.f32 %v7240_v58, %v5572_v15  ;;  %7353 = vrot.lane.b32.xlu0 %v14699_v34, %s10651_s12  ;;  %vm15704_vm11 = vmmov %vm15703_vm1 }
 0x4d3   : > { %v1755_v28 = vpop.permute.xlu0 %1754 }
 0x4d4   : > { %7303 = vrot.lane.b32.xlu1 %v14694_v48, %s10650_s7  ;;  %9772 = vmatpush3.xpose.msk.msra.mxu0 %vm405_vm0, %v1755_v28 }
 0x4d5   : > { %9781 = vmatprep.subr.mxu0 %v10658_v22 }
 0x4d7   : > { %9774 = vmatmul.mubr.msk.f32.vlgmr.msra.gmra.mrb[14].mxu0 %vm405_vm0, %v14172_v60 }
 0x4d8   : > { %9783 = vmatprep.mubr.msk.f32.mxu0 %vm10659_vm8, %v10658_v22 }
 0x4ee   : > { %v7276_v21 = vpop.permute.xlu1 %7275 }
 0x4ef   : > { %v14710_v18 = vadd.f32 %v7276_v21, %v14432_v59  ;;  %v7278_v0 = vpop.permute.xlu0 %7277 }
 0x4f0   : > { %v14713_v20 = vadd.f32 %v7278_v0, %v14450_v27 }
 0x4f1   : > { %7355 = vrot.lane.b32.xlu1 %v14710_v18, %s10651_s12 }
 0x4f2   : > { %v1832_v57 = vpop.permute.xlu1 %1831  ;;  %7357 = vrot.lane.b32.xlu0 %v14713_v20, %s10651_s12 }
 0x4f3   : > { %9777 = vmatpush3.xpose.msk.msra.mxu1 %vm405_vm0, %v1832_v57  ;;  %v1909_v2 = vpop.permute.xlu0 %1908 }
 0x4f4   : > { %9786 = vmatprep.subr.mxu1 %v10658_v22  ;;  %9782 = vmatpush3.xpose.msk.msra.mxu0 %vm405_vm0, %v1909_v2 }
 0x4f5   : > { %9791 = vmatprep.subr.mxu0 %v10658_v22 }
 0x4f6   : > { %9779 = vmatmul.mubr.msk.f32.vlgmr.msra.gmra.mrb[42].mxu1 %vm405_vm0, %v14156_v32  ;;  %v7280_v59 = vpop.permute.xlu1 %7279 }
 0x4f7   : > { %v14726_v27 = vadd.f32 %v7280_v59, %v14484_v29  ;;  %9788 = vmatprep.mubr.msk.f32.mxu1 %vm10659_vm8, %v10658_v22  ;;  %9784 = vmatmul.mubr.msk.f32.vlgmr.msra.gmra.mrb[16].mxu0 %vm405_vm0, %v14463_v30 }
 0x4f8   : > { %9793 = vmatprep.mubr.msk.f32.mxu0 %vm10659_vm8, %v10658_v22 }
 0x4f9   : > { %7359 = vrot.lane.b32.xlu1 %v14726_v27, %s10651_s12 }
 0x4fa   : > { %v1986_v33 = vpop.permute.xlu1 %1985 }
 0x4fb   : > { %9787 = vmatpush3.xpose.msk.msra.mxu1 %vm405_vm0, %v1986_v33 }
 0x4fc   : > { %9796 = vmatprep.subr.mxu1 %v10658_v22 }
 0x4fe   : > { %9789 = vmatmul.mubr.msk.f32.vlgmr.msra.gmra.mrb[44].mxu1 %vm405_vm0, %v14499_v1 }
 0x4ff   : > { %9798 = vmatprep.mubr.msk.f32.mxu1 %vm10659_vm8, %v10658_v22 }
 0x503   : > { %v7282_v29 = vpop.permute.xlu0 %7281 }
 0x504   : > { %v14743_v56 = vadd.f32 %v7282_v29, %v14546_v63 }
 0x506   : > { %7361 = vrot.lane.b32.xlu0 %v14743_v56, %s10651_s12 }
 0x509   : > { %v7284_v38 = vpop.permute.xlu1 %7283 }
 0x50a   : > { %v14748_v19 = vadd.f32 %v7284_v38, %v14581_v52 }
 0x50c   : > { %7363 = vrot.lane.b32.xlu1 %v14748_v19, %s10651_s12 }
 0x50d   : > { %v7286_v14 = vpop.permute.xlu0 %7285 }
 0x50e   : > { %v14753_v11 = vadd.f32 %v7286_v14, %v14609_v45  ;;  %v7288_v17 = vpop.permute.xlu1 %7287  ;;  %v15683_v14 = vld [vmem:[#allocation33_spill] sm:$0xff] }
 0x50f   : > { %v14756_v42 = vadd.f32 %v7288_v17, %v14616_v13 }
 0x510   : > { %7365 = vrot.lane.b32.xlu0 %v14753_v11, %s10651_s12 }
 0x511   : > { %v7290_v63 = vpop.permute.xlu0 %7289  ;;  %7367 = vrot.lane.b32.xlu1 %v14756_v42, %s10651_s12 }
 0x512   : > { %v14763_v52 = vadd.f32 %v7290_v63, %v14626_v41  ;;  %v7292_v53 = vpop.permute.xlu1 %7291 }
 0x513   : > { %v14766_v24 = vadd.f32 %v7292_v53, %v14635_v49 }
 0x514   : > { %7369 = vrot.lane.b32.xlu0 %v14763_v52, %s10651_s12 }
 0x515   : > { %v7294_v45 = vpop.permute.xlu0 %7293  ;;  %7371 = vrot.lane.b32.xlu1 %v14766_v24, %s10651_s12 }
 0x516   : > { %v14773_v13 = vadd.f32 %v7294_v45, %v14651_v5  ;;  %v7296_v43 = vpop.permute.xlu1 %7295  ;;  %v15684_v45 = vld [vmem:[#allocation26_spill] sm:$0xff] }
 0x517   : > { %v14776_v40 = vadd.f32 %v7296_v43, %v14658_v39 }
 0x518   : > { %7373 = vrot.lane.b32.xlu0 %v14773_v13, %s10651_s12 }
 0x519   : > { %v7298_v41 = vpop.permute.xlu0 %7297  ;;  %7375 = vrot.lane.b32.xlu1 %v14776_v40, %s10651_s12 }
 0x51a   : > { %v14783_v49 = vadd.f32 %v7298_v41, %v14665_v37  ;;  %v7300_v26 = vpop.permute.xlu1 %7299  ;;  %v15685_v41 = vld [vmem:[#allocation28_spill] sm:$0xff] }
 0x51b   : > { %v14786_v4 = vadd.f32 %v7300_v26, %v14669_v61 }
 0x51c   : > { %7377 = vrot.lane.b32.xlu0 %v14783_v49, %s10651_s12 }
 0x51d   : > { %7379 = vrot.lane.b32.xlu1 %v14786_v4, %s10651_s12 }
 0x524   : > { %v7302_v5 = vpop.permute.xlu0 %7301 }
 0x525   : > { %v14793_v39 = vadd.f32 %v7302_v5, %v14681_v46 }
 0x527   : > { %7381 = vrot.lane.b32.xlu0 %v14793_v39, %s10651_s12 }
 0x531   : > { %v14797_v9 = vpop.f32.mrb[0].mxu0 }
 0x532   : > { %v9715_v37 = vpop.f32.mrb[1].mxu0 }
 0x533   : > { %v14799_v50 = vpop.f32.mrb[32].mxu1 }
 0x534   : > { %v9730_v8 = vpop.f32.mrb[33].mxu1 }
 0x535   : > { %v14801_v61 = vpop.f32.mrb[2].mxu0 }
 0x536   : > { %v9720_v44 = vpop.f32.mrb[3].mxu0 }
 0x53a   : > { %v14803_v51 = vpop.f32.mrb[4].mxu0 }
 0x53b   : > { %v9725_v25 = vpop.f32.mrb[5].mxu0 }
 0x53c   : > { %v14805_v7 = vpop.f32.mrb[34].mxu1 }
 0x53d   : > { %v9740_v54 = vpop.f32.mrb[35].mxu1 }
 0x53e   : > { %v14807_v46 = vpop.f32.mrb[6].mxu0 }
 0x53f   : > { %v9735_v16 = vpop.f32.mrb[7].mxu0 }
 0x542   : > { %v14809_v62 = vpop.f32.mrb[36].mxu1 }
 0x543   : > { %v9750_v15 = vpop.f32.mrb[37].mxu1 }
 0x544   : > { %v14814_v47 = vpop.f32.mrb[8].mxu0  ;;  %v7354_v21 = vpop.permute.xlu0 %7353 }
 0x545   : > { %v9745_v31 = vpop.f32.mrb[9].mxu0  ;;  %v14821_v57 = vadd.f32 %v7354_v21, %v14699_v34 }
 0x546   : > { %v7304_v35 = vpop.permute.xlu1 %7303  ;;  %v14818_v28 = vpop.f32.mrb[38].mxu1 }
 0x547   : > { %v14812_v58 = vadd.f32 %v7304_v35, %v14694_v48  ;;  %v9760_v0 = vpop.f32.mrb[39].mxu1  ;;  %7433 = vrot.lane.b32.xlu0 %v14821_v57, %s10660_s14 }
 0x548   : > { %v14823_v2 = vpop.f32.mrb[10].mxu0 }
 0x549   : > { %7383 = vrot.lane.b32.xlu1 %v14812_v58, %s10651_s12  ;;  %v9755_v59 = vpop.f32.mrb[11].mxu0  ;;  %s367_s12 = sld [smem:[#allocation6]] }
 0x54a   : > { %v14827_v48 = vpop.f32.mrb[40].mxu1 }
 0x54b   : > { %v9770_v33 = vpop.f32.mrb[41].mxu1  ;;  %7851 = vrot.lane.b32.xlu0 %v15683_v14, %s10650_s7 }
 0x54c   : > { %v14829_v29 = vpop.f32.mrb[12].mxu0 }
 0x54d   : > { %v9765_v38 = vpop.f32.mrb[13].mxu0 }
 0x563   : > { %v7356_v17 = vpop.permute.xlu1 %7355 }
 0x564   : > { %v14834_v34 = vadd.f32 %v7356_v17, %v14710_v18  ;;  %v7358_v63 = vpop.permute.xlu0 %7357 }
 0x565   : > { %v14837_v53 = vadd.f32 %v7358_v63, %v14713_v20  ;;  %v15686_v20 = vld [vmem:[#allocation20_spill] sm:$0xff] }
 0x566   : > { %7435 = vrot.lane.b32.xlu1 %v14834_v34, %s10660_s14 }
 0x567   : > { %7437 = vrot.lane.b32.xlu0 %v14837_v53, %s10660_s14 }
 0x56a   : > { %7775 = vrot.lane.b32.xlu1 %v15684_v45, %s10650_s7 }
 0x56b   : > { %v7360_v43 = vpop.permute.xlu1 %7359  ;;  %8003 = vrot.lane.b32.xlu0 %v15685_v41, %s10650_s7 }
 0x56c   : > { %v14848_v18 = vadd.f32 %v7360_v43, %v14726_v27  ;;  %v15687_v27 = vld [vmem:[#allocation16_spill] sm:$0xff] }
 0x56e   : > { %7439 = vrot.lane.b32.xlu1 %v14848_v18, %s10660_s14 }
 0x572   : > { %7927 = vrot.lane.b32.xlu1 %v15686_v20, %s10650_s7 }
 0x578   : > { %v7362_v26 = vpop.permute.xlu0 %7361 }
 0x579   : > { %v14855_v5 = vadd.f32 %v7362_v26, %v14743_v56 }
 0x57b   : > { %7441 = vrot.lane.b32.xlu0 %v14855_v5, %s10660_s14 }
 0x57e   : > { %v7364_v37 = vpop.permute.xlu1 %7363 }
 0x57f   : > { %v14860_v8 = vadd.f32 %v7364_v37, %v14748_v19  ;;  %8155 = vrot.lane.b32.xlu0 %v15687_v27, %s10650_s7 }
 0x581   : > { %7443 = vrot.lane.b32.xlu1 %v14860_v8, %s10660_s14 }
 0x582   : > { %v7366_v44 = vpop.permute.xlu0 %7365 }
 0x583   : > { %v14867_v25 = vadd.f32 %v7366_v44, %v14753_v11  ;;  %v7368_v54 = vpop.permute.xlu1 %7367 }
 0x584   : > { %v14874_v56 = vadd.f32 %v7368_v54, %v14756_v42 }
 0x585   : > { %7445 = vrot.lane.b32.xlu0 %v14867_v25, %s10660_s14  ;;  %8079 = vrot.lane.b32.xlu1 %v15658_v3, %s10650_s7 }
 0x586   : > { %v7370_v19 = vpop.permute.xlu0 %7369 }
 0x587   : > { %v14879_v16 = vadd.f32 %v7370_v19, %v14763_v52  ;;  %v7372_v11 = vpop.permute.xlu1 %7371 }
 0x588   : > { %v14888_v3 = vadd.f32 %v7372_v11, %v14766_v24 }
 0x589   : > { %8307 = vrot.lane.b32.xlu0 %v15662_v23, %s10650_s7  ;;  %7447 = vrot.lane.b32.xlu1 %v14874_v56, %s10660_s14 }
 0x58a   : > { %v7374_v42 = vpop.permute.xlu0 %7373 }
 0x58b   : > { %v14893_v23 = vadd.f32 %v7374_v42, %v14773_v13  ;;  %v7376_v52 = vpop.permute.xlu1 %7375 }
 0x58d   : > { %7449 = vrot.lane.b32.xlu0 %v14879_v16, %s10660_s14  ;;  %8231 = vrot.lane.b32.xlu1 %v15663_v12, %s10650_s7  ;;  %v14902_v12 = vadd.f32 %v7376_v52, %v14776_v40 }
 0x58e   : > { %v7378_v35 = vpop.permute.xlu0 %7377 }
 0x58f   : > { %v14905_v24 = vadd.f32 %v7378_v35, %v14783_v49  ;;  %v7380_v13 = vpop.permute.xlu1 %7379 }
 0x591   : > { %8459 = vrot.lane.b32.xlu0 %v15664_v55, %s10650_s7  ;;  %7451 = vrot.lane.b32.xlu1 %v14888_v3, %s10660_s14 }
 0x595   : > { %7453 = vrot.lane.b32.xlu0 %v14893_v23, %s10660_s14  ;;  %8383 = vrot.lane.b32.xlu1 %v15665_v10, %s10650_s7  ;;  %v14917_v10 = vadd.f32 %v7380_v13, %v14786_v4 }
 0x599   : > { %7455 = vrot.lane.b32.xlu1 %v14902_v12, %s10660_s14  ;;  %7457 = vrot.lane.b32.xlu0 %v14905_v24, %s10660_s14  ;;  %v7382_v55 = vpop.permute.xlu0 %7381 }
 0x59a   : > { %v14912_v15 = vadd.f32 %v7382_v55, %v14793_v39 }
 0x59d   : > { %8535 = vrot.lane.b32.xlu1 %v15667_v36, %s10650_s7  ;;  %7461 = vrot.lane.b32.xlu0 %v14912_v15, %s10660_s14 }
 0x5a1   : > { %7459 = vrot.lane.b32.xlu1 %v14917_v10, %s10660_s14 }
 0x5a5   : > { %8611 = vrot.lane.b32.xlu1 %v15666_v6, %s10650_s7 }
 0x5aa   : > { %v14925_v40 = vpop.f32.mrb[14].mxu0 }
 0x5ab   : > { %v9775_v49 = vpop.f32.mrb[15].mxu0 }
 0x5b9   : > { %v7434_v36 = vpop.permute.xlu0 %7433 }
 0x5ba   : > { %v14933_v4 = vadd.f32 %v7434_v36, %v14821_v57 }
 0x5bb   : > { %v7384_v39 = vpop.permute.xlu1 %7383 }
 0x5bc   : > { %v14928_v31 = vadd.f32 %v7384_v39, %v14812_v58  ;;  %7513 = vrot.lane.b32.xlu0 %v14933_v4, %s10661_s25 }
 0x5bd   : > { %v7852_v21 = vpop.permute.xlu0 %7851 }
 0x5be   : > { %7463 = vrot.lane.b32.xlu1 %v14928_v31, %s10660_s14  ;;  %9797 = vmatpush3.msra.mxu1 %v7852_v21  ;;  %s10571_s14 = sshll.u32 %s10663_s19, 4  ;;  %s10572_s14 = int_to_ptr.vmem [resolvable:$false] %s10571_s14 }
 0x5bf   : > { %9806 = vmatprep.subr.mxu1 %v10658_v22  ;;  %p10574_p1 = scmp.lt.s32.totalorder %s15325_s15, %s10572_s14 }
 0x5c9   : > { %v14938_v6 = vpop.f32.mrb[42].mxu1 }
 0x5ca   : > { %v9780_v0 = vpop.f32.mrb[43].mxu1  ;;  %v14940_v58 = vpop.f32.mrb[16].mxu0 }
 0x5cb   : > { %v9785_v59 = vpop.f32.mrb[17].mxu0 }
 0x5d1   : > { %v14942_v33 = vpop.f32.mrb[44].mxu1 }
 0x5d2   : > { %v9790_v38 = vpop.f32.mrb[45].mxu1 }
 0x5d8   : > { %v7436_v14 = vpop.permute.xlu1 %7435 }
 0x5d9   : > { %v14945_v57 = vadd.f32 %v7436_v14, %v14834_v34  ;;  %v7438_v17 = vpop.permute.xlu0 %7437 }
 0x5da   : > { %v14948_v63 = vadd.f32 %v7438_v17, %v14837_v53 }
 0x5db   : > { %7515 = vrot.lane.b32.xlu1 %v14945_v57, %s10661_s25 }
 0x5dc   : > { %v7776_v45 = vpop.permute.xlu1 %7775  ;;  %7517 = vrot.lane.b32.xlu0 %v14948_v63, %s10661_s25 }
 0x5dd   : > { %9792 = vmatpush3.msra.mxu0 %v7776_v45  ;;  %v14960_v34 = vpop.permute.xlu0 %8003 }
 0x5de   : > { %9801 = vmatprep.subr.mxu0 %v10658_v22 }
 0x5e0   : > { %v7440_v43 = vpop.permute.xlu1 %7439 }
 0x5e1   : > { %v14956_v41 = vadd.f32 %v7440_v43, %v14848_v18  ;;  %v15041_v43 = vstv %s9279_s16 }
 0x5e3   : > { %7519 = vrot.lane.b32.xlu1 %v14956_v41, %s10661_s25 }
 0x5e4   : > { %v14965_v26 = vpop.permute.xlu1 %7927 }
 0x5ed   : > { %v7442_v53 = vpop.permute.xlu0 %7441 }
 0x5ee   : > { %v14963_v20 = vadd.f32 %v7442_v53, %v14855_v5 }
 0x5f0   : > { %7521 = vrot.lane.b32.xlu0 %v14963_v20, %s10661_s25 }
 0x5f1   : > { %v14969_v37 = vpop.permute.xlu0 %8155 }
 0x5f3   : > { %v7444_v27 = vpop.permute.xlu1 %7443 }
 0x5f4   : > { %v14972_v18 = vadd.f32 %v7444_v27, %v14860_v8  ;;  %v15688_v27 = vlaneseq }
 0x5f6   : > { %7523 = vrot.lane.b32.xlu1 %v14972_v18, %s10661_s25 }
 0x5f7   : > { %v7446_v44 = vpop.permute.xlu0 %7445  ;;  %v14976_v54 = vpop.permute.xlu1 %8079 }
 0x5f8   : > { %v14979_v5 = vadd.f32 %v7446_v44, %v14867_v25  ;;  %v7661_v44 = vand.u32 127, %v15688_v27 }
 0x5fa   : > { %7525 = vrot.lane.b32.xlu0 %v14979_v5, %s10661_s25 }
 0x5fb   : > { %v14983_v19 = vpop.permute.xlu0 %8307  ;;  %v7448_v11 = vpop.permute.xlu1 %7447 }
 0x5fc   : > { %v14986_v42 = vadd.f32 %v7448_v11, %v14874_v56 }
 0x5fe   : > { %7527 = vrot.lane.b32.xlu1 %v14986_v42, %s10661_s25 }
 0x5ff   : > { %v7450_v8 = vpop.permute.xlu0 %7449  ;;  %v14990_v52 = vpop.permute.xlu1 %8231 }
 0x600   : > { %v14993_v35 = vadd.f32 %v7450_v8, %v14879_v16 }
 0x602   : > { %7529 = vrot.lane.b32.xlu0 %v14993_v35, %s10661_s25 }
 0x603   : > { %v14997_v25 = vpop.permute.xlu0 %8459  ;;  %v7452_v55 = vpop.permute.xlu1 %7451 }
 0x604   : > { %v15000_v13 = vadd.f32 %v7452_v55, %v14888_v3  ;;  %v15689_v55 = vld [vmem:[#allocation12_spill] sm:$0xff] }
 0x605   : > { %vm15047_vm0 = vcmp.eq.s32.totalorder %v15689_v55, %v7661_v44 }
 0x606   : > { %7531 = vrot.lane.b32.xlu1 %v15000_v13, %s10661_s25 }
 0x607   : > { %v7454_v56 = vpop.permute.xlu0 %7453  ;;  %v15004_v49 = vpop.permute.xlu1 %8383 }
 0x608   : > { %v15007_v39 = vadd.f32 %v7454_v56, %v14893_v23 }
 0x60a   : > { %7533 = vrot.lane.b32.xlu0 %v15007_v39, %s10661_s25 }
 0x60b   : > { %v7456_v16 = vpop.permute.xlu1 %7455  ;;  %v7458_v36 = vpop.permute.xlu0 %7457 }
 0x60c   : > { %v15012_v21 = vadd.f32 %v7456_v16, %v14902_v12  ;;  %v15015_v3 = vadd.f32 %v7458_v36, %v14905_v24  ;;  %v2061_v24 = vmul.f32 0.17677669, %v14797_v9 }
 0x60e   : > { %7535 = vrot.lane.b32.xlu1 %v15012_v21, %s10661_s25  ;;  %7537 = vrot.lane.b32.xlu0 %v15015_v3, %s10661_s25  ;;  %v7610_v14 = vmul.f32 1.442695, %v2061_v24 }
 0x60f   : > { %v15021_v0 = vpop.permute.xlu1 %8535  ;;  %v7462_v23 = vpop.permute.xlu0 %7461 }
 0x610   : > { %v15024_v59 = vadd.f32 %v7462_v23, %v14912_v15  ;;  %10452 = vpow2.f32 %v7610_v14  ;;  %v2063_v23 = vmul.f32 0.17677669, %v14803_v51  ;;  %v2064_v14 = vmul.f32 0.17677669, %v14799_v50 }
 0x611   : > { %v2065_v50 = vmul.f32 0.17677669, %v14807_v46 }
 0x612   : > { %7541 = vrot.lane.b32.xlu0 %v15024_v59, %s10661_s25  ;;  %v7614_v24 = vmul.f32 1.442695, %v2063_v23 }
 0x613   : > { %v7460_v12 = vpop.permute.xlu1 %7459 }
 0x614   : > { %v15029_v38 = vadd.f32 %v7460_v12, %v14917_v10 }
 0x616   : > { %7539 = vrot.lane.b32.xlu1 %v15029_v38, %s10661_s25 }
 0x617   : > { %v15034_v17 = vpop.permute.xlu1 %8611 }
 0x61a   : > { %v10453_v8 = vpop.eup %10452 }
 0x62e   : > { %v7514_v10 = vpop.permute.xlu0 %7513 }
 0x62f   : > { %v7561_v53 = vadd.f32 %v7514_v10, %v14933_v4  ;;  %v2062_v4 = vmul.f32 0.17677669, %v14801_v61 }
 0x630   : > { %v7464_v45 = vpop.permute.xlu1 %7463 }
 0x631   : > { %v15037_v15 = vadd.f32 %v7464_v45, %v14928_v31  ;;  %v7578_v9 = vadd.f32 %v15041_v43, %v7561_v53  ;;  %v7612_v12 = vmul.f32 1.442695, %v2062_v4  ;;  %v7616_v45 = vmul.f32 1.442695, %v2064_v14 }
 0x632   : > { %v7618_v14 = vmul.f32 1.442695, %v2065_v50 }
 0x633   : > { %7543 = vrot.lane.b32.xlu1 %v15037_v15, %s10661_s25  ;;  %v7594_v11 = vmax.f32 %v7578_v9, 0.0  ;;  %10454 = vpow2.f32 %v7612_v12  ;;  %s10573_s25 = scalar_lea.vmem %s10572_s14, 32 }
 0x634   : > { %10456 = vpow2.f32 %v7614_v24  ;;  %p10575_p4 = scmp.lt.s32.totalorder %s10573_s25, %s10567_s13 }
 0x635   : > { %v7642_v31 = vmul.f32 %v10453_v8, %v7594_v11  ;;  %10458 = vpow2.f32 %v7616_v45  ;;  %v2066_v45 = vmul.f32 0.17677669, %v14805_v7  ;;  %v2068_v7 = vmul.f32 0.17677669, %v14809_v62 }
 0x636   : > { %10460 = vpow2.f32 %v7618_v14  ;;  %v2070_v62 = vmul.f32 0.17677669, %v14818_v28  ;;  %v2071_v28 = vmul.f32 0.17677669, %v14829_v29  ;;  %p10576_p11 = por %p10575_p4, %p10574_p1 }
 0x637   : > { %v15053_v16 = vsel %vm15047_vm0, 0.0, %v7642_v31 }
 0x638   : > { %v7679_v36 = vsel %vm15692_vm9, %v15053_v16, 0.0  ;;  %v7630_v29 = vmul.f32 1.442695, %v2071_v28  ;;  %vm15705_vm9 = vmmov %vm15703_vm1  ;;  %p10577_p0 = pnand %p10576_p11, %p10570_p10 }
 0x639   : > { %7680 = vadd.xlane.f32.xlu0 %v7679_v36 }
 0x63d   : > { %v10455_v51 = vpop.eup %10454 }
 0x63e   : > { %v10457_v31 = vpop.eup %10456 }
 0x64d   : > { %v7516_v10 = vpop.permute.xlu1 %7515 }
 0x64e   : > { %v7562_v53 = vadd.f32 %v7516_v10, %v14945_v57  ;;  %v7518_v27 = vpop.permute.xlu0 %7517 }
 0x64f   : > { %v7563_v9 = vadd.f32 %v7518_v27, %v14948_v63  ;;  %v7620_v27 = vmul.f32 1.442695, %v2066_v45 }
 0x650   : > { %v7579_v44 = vadd.f32 %v15041_v43, %v7562_v53 }
 0x651   : > { %v7580_v61 = vadd.f32 %v15041_v43, %v7563_v9  ;;  %10462 = vpow2.f32 %v7620_v27  ;;  %v7628_v27 = vmul.f32 1.442695, %v2070_v62 }
 0x652   : > { %v7595_v11 = vmax.f32 %v7579_v44, 0.0  ;;  %v2067_v44 = vmul.f32 0.17677669, %v14814_v47  ;;  %v2069_v47 = vmul.f32 0.17677669, %v14823_v2 }
 0x653   : > { %v7596_v8 = vmax.f32 %v7580_v61, 0.0 }
 0x654   : > { %v7643_v55 = vmul.f32 %v10455_v51, %v7595_v11  ;;  %v7622_v51 = vmul.f32 1.442695, %v2067_v44  ;;  %v7626_v14 = vmul.f32 1.442695, %v2069_v47  ;;  %v2073_v47 = vmul.f32 0.17677669, %v14925_v40 }
 0x655   : > { %v7520_v36 = vpop.permute.xlu1 %7519  ;;  %v7644_v23 = vmul.f32 %v10457_v31, %v7596_v8  ;;  %v7624_v31 = vmul.f32 1.442695, %v2068_v7 }
 0x656   : > { %v15067_v4 = vsel %vm15047_vm0, 0.0, %v7643_v55  ;;  %v7564_v57 = vadd.f32 %v7520_v36, %v14956_v41  ;;  %v10459_v41 = vpop.eup %10458  ;;  %10464 = vpow2.f32 %v7622_v51  ;;  %v7634_v62 = vmul.f32 1.442695, %v2073_v47 }
 0x657   : > { %v7682_v63 = vsel %vm15693_vm7, %v15067_v4, 0.0  ;;  %v15075_v24 = vsel %vm15047_vm0, 0.0, %v7644_v23  ;;  %10466 = vpow2.f32 %v7624_v31  ;;  %vm15706_vm7 = vmmov %vm15703_vm1 }
 0x658   : > { %7683 = vadd.xlane.f32.xlu1 %v7682_v63  ;;  %v7581_v12 = vadd.f32 %v15041_v43, %v7564_v57  ;;  %v7685_v46 = vsel %vm15694_vm2, %v15075_v24, 0.0  ;;  %v10461_v57 = vpop.eup %10460  ;;  %10468 = vpow2.f32 %v7626_v14  ;;  %vm15707_vm2 = vmmov %vm15703_vm1 }
 0x659   : > { %7686 = vadd.xlane.f32.xlu0 %v7685_v46  ;;  %10470 = vpow2.f32 %v7628_v27 }
 0x65a   : > { %v7597_v10 = vmax.f32 %v7581_v12, 0.0  ;;  %10472 = vpow2.f32 %v7630_v29 }
 0x65c   : > { %v7645_v53 = vmul.f32 %v10459_v41, %v7597_v10  ;;  %v10463_v41 = vpop.eup %10462 }
 0x65e   : > { %v15083_v9 = vsel %vm15047_vm0, 0.0, %v7645_v53 }
 0x65f   : > { %v7688_v11 = vsel %vm15695_vm5, %v15083_v9, 0.0  ;;  %vm15708_vm5 = vmmov %vm15703_vm1 }
 0x660   : > { %7689 = vadd.xlane.f32.xlu0 %v7688_v11  ;;  %v10465_v7 = vpop.eup %10464 }
 0x662   : > { %v7522_v61 = vpop.permute.xlu0 %7521 }
 0x663   : > { %v7565_v8 = vadd.f32 %v7522_v61, %v14963_v20 }
 0x665   : > { %v7582_v55 = vadd.f32 %v15041_v43, %v7565_v8  ;;  %v2072_v8 = vmul.f32 0.17677669, %v14827_v48 }
 0x667   : > { %v7598_v50 = vmax.f32 %v7582_v55, 0.0 }
 0x668   : > { %v7524_v36 = vpop.permute.xlu1 %7523 }
 0x669   : > { %v7566_v23 = vadd.f32 %v7524_v36, %v14972_v18  ;;  %v7646_v63 = vmul.f32 %v10461_v57, %v7598_v50 }
 0x66b   : > { %v7583_v12 = vadd.f32 %v15041_v43, %v7566_v23  ;;  %v15096_v20 = vsel %vm15047_vm0, 0.0, %v7646_v63  ;;  %v10467_v23 = vpop.eup %10466  ;;  %v7632_v63 = vmul.f32 1.442695, %v2072_v8 }
 0x66c   : > { %v7526_v46 = vpop.permute.xlu0 %7525  ;;  %v7691_v2 = vsel %vm15696_vm10, %v15096_v20, 0.0 }
 0x66d   : > { %v7599_v45 = vmax.f32 %v7583_v12, 0.0  ;;  %v7567_v10 = vadd.f32 %v7526_v46, %v14979_v5  ;;  %7692 = vadd.xlane.f32.xlu1 %v7691_v2  ;;  %10474 = vpow2.f32 %v7632_v63 }
 0x66e   : > { %10476 = vpow2.f32 %v7634_v62 }
 0x66f   : > { %v7584_v18 = vadd.f32 %v15041_v43, %v7567_v10  ;;  %v7647_v53 = vmul.f32 %v10463_v41, %v7599_v45 }
 0x670   : > { %v7528_v44 = vpop.permute.xlu1 %7527 }
 0x671   : > { %v7600_v11 = vmax.f32 %v7584_v18, 0.0  ;;  %v15105_v61 = vsel %vm15047_vm0, 0.0, %v7647_v53  ;;  %v7568_v51 = vadd.f32 %v7528_v44, %v14986_v42  ;;  %v2074_v53 = vmul.f32 0.17677669, %v14938_v6 }
 0x672   : > { %v7694_v5 = vsel %vm15697_vm4, %v15105_v61, 0.0 }
 0x673   : > { %7695 = vadd.xlane.f32.xlu0 %v7694_v5  ;;  %v7585_v55 = vadd.f32 %v15041_v43, %v7568_v51  ;;  %v7648_v31 = vmul.f32 %v10465_v7, %v7600_v11  ;;  %v7636_v8 = vmul.f32 1.442695, %v2074_v53 }
 0x674   : > { %v7530_v50 = vpop.permute.xlu0 %7529 }
 0x675   : > { %v7601_v36 = vmax.f32 %v7585_v55, 0.0  ;;  %v15115_v57 = vsel %vm15047_vm0, 0.0, %v7648_v31  ;;  %v7569_v42 = vadd.f32 %v7530_v50, %v14993_v35  ;;  %v10469_v35 = vpop.eup %10468  ;;  %10478 = vpow2.f32 %v7636_v8 }
 0x676   : > { %v7697_v48 = vsel %vm15698_vm13, %v15115_v57, 0.0  ;;  %v10471_v11 = vpop.eup %10470 }
 0x677   : > { %7698 = vadd.xlane.f32.xlu1 %v7697_v48  ;;  %v7586_v12 = vadd.f32 %v15041_v43, %v7569_v42  ;;  %v7649_v14 = vmul.f32 %v10467_v23, %v7601_v36  ;;  %v10473_v50 = vpop.eup %10472 }
 0x678   : > { %v7532_v40 = vpop.permute.xlu1 %7531  ;;  %v10475_v63 = vpop.eup %10474 }
 0x679   : > { %v7602_v46 = vmax.f32 %v7586_v12, 0.0  ;;  %v15123_v45 = vsel %vm15047_vm0, 0.0, %v7649_v14  ;;  %v7570_v2 = vadd.f32 %v7532_v40, %v15000_v13  ;;  %v10477_v62 = vpop.eup %10476 }
 0x67a   : > { %v7700_v10 = vsel %vm15699_vm6, %v15123_v45, 0.0 }
 0x67b   : > { %7701 = vadd.xlane.f32.xlu0 %v7700_v10  ;;  %v7587_v41 = vadd.f32 %v15041_v43, %v7570_v2  ;;  %v7650_v18 = vmul.f32 %v10469_v35, %v7602_v46 }
 0x67c   : > { %v7534_v27 = vpop.permute.xlu0 %7533 }
 0x67d   : > { %v7603_v28 = vmax.f32 %v7587_v41, 0.0  ;;  %v15132_v44 = vsel %vm15047_vm0, 0.0, %v7650_v18  ;;  %v7571_v13 = vadd.f32 %v7534_v27, %v15007_v39 }
 0x67e   : > { %v7703_v51 = vsel %vm15700_vm12, %v15132_v44, 0.0 }
 0x67f   : > { %7704 = vadd.xlane.f32.xlu1 %v7703_v51  ;;  %v7588_v7 = vadd.f32 %v15041_v43, %v7571_v13  ;;  %v7651_v5 = vmul.f32 %v10471_v11, %v7603_v28  ;;  %v10479_v13 = vpop.eup %10478 }
 0x680   : > { %v7536_v55 = vpop.permute.xlu1 %7535  ;;  %v7538_v31 = vpop.permute.xlu0 %7537 }
 0x681   : > { %v7604_v6 = vmax.f32 %v7588_v7, 0.0  ;;  %v15140_v29 = vsel %vm15047_vm0, 0.0, %v7651_v5  ;;  %v7572_v47 = vadd.f32 %v7536_v55, %v15012_v21  ;;  %v7573_v39 = vadd.f32 %v7538_v31, %v15015_v3 }
 0x682   : > { %v7706_v36 = vsel %vm15701_vm15, %v15140_v29, 0.0  ;;  %v2075_v7 = vmul.f32 0.17677669, %v14940_v58  ;;  %v2076_v31 = vmul.f32 0.17677669, %v14942_v33 }
 0x683   : > { %7707 = vadd.xlane.f32.xlu0 %v7706_v36  ;;  %v7589_v42 = vadd.f32 %v15041_v43, %v7572_v47  ;;  %v7652_v23 = vmul.f32 %v10473_v50, %v7604_v6  ;;  %v7590_v48 = vadd.f32 %v15041_v43, %v7573_v39 }
 0x684   : > { %v7638_v5 = vmul.f32 1.442695, %v2075_v7  ;;  %v7542_v8 = vpop.permute.xlu0 %7541  ;;  %v7640_v47 = vmul.f32 1.442695, %v2076_v31 }
 0x685   : > { %v7605_v12 = vmax.f32 %v7589_v42, 0.0  ;;  %v15150_v14 = vsel %vm15047_vm0, 0.0, %v7652_v23  ;;  %v7606_v21 = vmax.f32 %v7590_v48, 0.0  ;;  %v7575_v55 = vadd.f32 %v7542_v8, %v15024_v59 }
 0x686   : > { %v7709_v3 = vsel %vm15702_vm14, %v15150_v14, 0.0  ;;  %10480 = vpow2.f32 %v7638_v5 }
 0x687   : > { %7710 = vadd.xlane.f32.xlu1 %v7709_v3  ;;  %v7653_v40 = vmul.f32 %v10475_v63, %v7605_v12  ;;  %v7654_v46 = vmul.f32 %v10477_v62, %v7606_v21  ;;  %v7592_v6 = vadd.f32 %v15041_v43, %v7575_v55  ;;  %10482 = vpow2.f32 %v7640_v47 }
 0x688   : > { %v7540_v2 = vpop.permute.xlu1 %7539 }
 0x689   : > { %v15156_v35 = vsel %vm15047_vm0, 0.0, %v7653_v40  ;;  %v7574_v10 = vadd.f32 %v7540_v2, %v15029_v38  ;;  %v15161_v41 = vsel %vm15047_vm0, 0.0, %v7654_v46  ;;  %v7608_v50 = vmax.f32 %v7592_v6, 0.0 }
 0x68a   : > { %v7712_v18 = vsel %vm15703_vm1, %v15156_v35, 0.0  ;;  %v7715_v53 = vsel %vm15704_vm11, %v15161_v41, 0.0 }
 0x68b   : > { %7713 = vadd.xlane.f32.xlu0 %v7712_v18  ;;  %v7591_v27 = vadd.f32 %v15041_v43, %v7574_v10  ;;  %7716 = vadd.xlane.f32.xlu1 %v7715_v53 }
 0x68d   : > { %v7607_v28 = vmax.f32 %v7591_v27, 0.0 }
 0x68f   : > { %v7655_v11 = vmul.f32 %v10479_v13, %v7607_v28 }
 0x691   : > { %v15170_v38 = vsel %vm15047_vm0, 0.0, %v7655_v11 }
 0x692   : > { %v7718_v51 = vsel %vm15705_vm9, %v15170_v38, 0.0 }
 0x693   : > { %7719 = vadd.xlane.f32.xlu0 %v7718_v51 }
 0x69c   : > { %8763 = vrot.lane.b32.xlu1 %v14156_v32, %s10650_s7  ;;  %v10481_v32 = vpop.eup %10480 }
 0x69d   : > { %v7656_v42 = vmul.f32 %v10481_v32, %v7608_v50  ;;  %v10483_v59 = vpop.eup %10482 }
 0x6a5   : > { %v7544_v39 = vpop.permute.xlu1 %7543 }
 0x6a6   : > { %v7576_v36 = vadd.f32 %v7544_v39, %v15037_v15 }
 0x6a8   : > { %v7593_v58 = vadd.f32 %v15041_v43, %v7576_v36 }
 0x6a9   : > { %8687 = vrot.lane.b32.xlu0 %v14172_v60, %s10650_s7  ;;  %v15186_v60 = vsel %vm15047_vm0, 0.0, %v7656_v42 }
 0x6aa   : > { %v7609_v23 = vmax.f32 %v7593_v58, 0.0  ;;  %v7721_v33 = vsel %vm15706_vm7, %v15186_v60, 0.0 }
 0x6ac   : > { %v7657_v48 = vmul.f32 %v10483_v59, %v7609_v23 }
 0x6ae   : > { %v15192_v63 = vsel %vm15047_vm0, 0.0, %v7657_v48  ;;  %vm15709_vm0 = vmmov %vm15703_vm1 }
 0x6af   : > { %v7724_v15 = vsel %vm15707_vm2, %v15192_v63, 0.0  ;;  %vm15710_vm10 = vmmov %vm15709_vm0 }
 0x6b0   : > { %vm15711_vm4 = vmmov %vm15709_vm0 }
 0x6b1   : > { %vm15712_vm13 = vmmov %vm15709_vm0 }
 0x6b2   : > { %vm15713_vm6 = vmmov %vm15709_vm0 }
 0x6b3   : > { %vm15714_vm12 = vmmov %vm15709_vm0 }
 0x6b4   : > { %vm15715_vm15 = vmmov %vm15709_vm0 }
 0x6b5   : > { %vm15716_vm14 = vmmov %vm15709_vm0 }
 0x6b6   : > { %vm15717_vm1 = vmmov %vm15709_vm0 }
 0x6b7   : > { %vm15718_vm11 = vmmov %vm15709_vm0 }
 0x6b8   : > { %vm15719_vm9 = vmmov %vm15709_vm0 }
 0x6b9   : > { %vm15720_vm7 = vmmov %vm15709_vm0 }
 0x6ba   : > { %vm15721_vm2 = vmmov %vm15709_vm0 }
 0x6c0   : > { %7722 = vadd.xlane.f32.xlu1 %v7721_v33 }
 0x6c6   : > { %v7681_v43 = vpop.xlane.xlu0 %7680 }
 0x6c7   : > { %v7727_v12 = vadd.f32 1e-10, %v7681_v43 }
 0x6c8   : > { %7725 = vadd.xlane.f32.xlu0 %v7724_v15 }
 0x6c9   : > { %10484 = vrcp.f32 %v7727_v12 }
 0x6d1   : > { %8915 = vrot.lane.b32.xlu1 %v14499_v1, %s10650_s7 }
 0x6d3   : > { %v10485_v21 = vpop.eup %10484 }
 0x6d4   : > { %v7744_v62 = vmul.f32 %v10485_v21, %v15053_v16 }
 0x6d6   : > { %9794 = vmatmul.mubr.msk.f32.vlgmr.msra.gmra.mrb[18].mxu0 %vm15708_vm5, %v7744_v62  ;;  %vm15722_vm5 = vmmov %vm15709_vm0 }
 0x6d7   : > { %9802 = vmatpush3.msra.mxu0 %v14965_v26  ;;  %9803 = vmatprep.mubr.msk.f32.mxu0 %vm10659_vm8, %v10658_v22 }
 0x6d8   : > { %9811 = vmatprep.subr.mxu0 %v10658_v22 }
 0x6de   : > { %8839 = vrot.lane.b32.xlu0 %v14463_v30, %s10650_s7 }
 0x6e5   : > { %v7684_v56 = vpop.xlane.xlu1 %7683 }
 0x6e6   : > { %v7728_v3 = vadd.f32 1e-10, %v7684_v56  ;;  %v7687_v40 = vpop.xlane.xlu0 %7686 }
 0x6e7   : > { %v7729_v1 = vadd.f32 1e-10, %v7687_v40  ;;  %v10662_v40 = vmov 0.0|0.0  }
 0x6e8   : > { %10486 = vrcp.f32 %v7728_v3 }
 0x6e9   : > { %10488 = vrcp.f32 %v7729_v1 }
 0x6ed   : > { %v7690_v46 = vpop.xlane.xlu0 %7689 }
 0x6ee   : > { %v7730_v16 = vadd.f32 1e-10, %v7690_v46 }
 0x6f0   : > { %10490 = vrcp.f32 %v7730_v16 }
 0x6f2   : > { %v10487_v2 = vpop.eup %10486 }
 0x6f3   : > { %v7746_v26 = vmul.f32 %v10487_v2, %v15067_v4  ;;  %v10489_v10 = vpop.eup %10488 }
 0x6f4   : > { %v7748_v18 = vmul.f32 %v10489_v10, %v15075_v24 }
 0x6f5   : > { %9799 = vmatmul.mubr.msk.f32.vlgmr.msra.gmra.mrb[46].mxu1 %vm15709_vm0, %v7746_v26 }
 0x6f6   : > { %9807 = vmatpush3.msra.mxu1 %v14960_v34  ;;  %9808 = vmatprep.mubr.msk.f32.mxu1 %vm10659_vm8, %v10658_v22 }
 0x6f7   : > { %9804 = vmatmul.mubr.msk.f32.vlgmr.msra.gmra.mrb[20].mxu0 %vm15710_vm10, %v7748_v18  ;;  %9816 = vmatprep.subr.mxu1 %v10658_v22  ;;  %vm15287_vm10 = vmpackc.low %vm635_vm3, %vm635_vm3 }
 0x6f8   : > { %9812 = vmatpush3.msra.mxu0 %v14976_v54  ;;  %9813 = vmatprep.mubr.msk.f32.mxu0 %vm10659_vm8, %v10658_v22 }
 0x6f9   : > { %9821 = vmatprep.subr.mxu0 %v10658_v22 }
 0x6fa   : > { %v7693_v30 = vpop.xlane.xlu1 %7692  ;;  %v10491_v4 = vpop.eup %10490 }
 0x6fb   : > { %v7731_v53 = vadd.f32 1e-10, %v7693_v30  ;;  %v7750_v24 = vmul.f32 %v10491_v4, %v15083_v9 }
 0x6fd   : > { %10492 = vrcp.f32 %v7731_v53  ;;  %9809 = vmatmul.mubr.msk.f32.vlgmr.msra.gmra.mrb[48].mxu1 %vm15711_vm4, %v7750_v24 }
 0x6fe   : > { %9817 = vmatpush3.msra.mxu1 %v14969_v37  ;;  %9818 = vmatprep.mubr.msk.f32.mxu1 %vm10659_vm8, %v10658_v22 }
 0x6ff   : > { %9826 = vmatprep.subr.mxu1 %v10658_v22 }
 0x700   : > { %v7696_v34 = vpop.xlane.xlu0 %7695 }
 0x701   : > { %v7732_v54 = vadd.f32 1e-10, %v7696_v34 }
 0x703   : > { %10494 = vrcp.f32 %v7732_v54 }
 0x704   : > { %v7699_v27 = vpop.xlane.xlu1 %7698 }
 0x705   : > { %v7733_v28 = vadd.f32 1e-10, %v7699_v27 }
 0x707   : > { %10496 = vrcp.f32 %v7733_v28  ;;  %v10493_v13 = vpop.eup %10492 }
 0x708   : > { %v7702_v11 = vpop.xlane.xlu0 %7701  ;;  %v7752_v9 = vmul.f32 %v10493_v13, %v15096_v20 }
 0x709   : > { %v7734_v51 = vadd.f32 1e-10, %v7702_v11 }
 0x70a   : > { %9814 = vmatmul.mubr.msk.f32.vlgmr.msra.gmra.mrb[22].mxu0 %vm15712_vm13, %v7752_v9 }
 0x70b   : > { %10498 = vrcp.f32 %v7734_v51  ;;  %9822 = vmatpush3.msra.mxu0 %v14990_v52  ;;  %9823 = vmatprep.mubr.msk.f32.mxu0 %vm10659_vm8, %v10658_v22 }
 0x70c   : > { %v7705_v37 = vpop.xlane.xlu1 %7704  ;;  %9831 = vmatprep.subr.mxu0 %v10658_v22 }
 0x70d   : > { %v10495_v7 = vpop.eup %10494  ;;  %v7735_v5 = vadd.f32 1e-10, %v7705_v37 }
 0x70e   : > { %v7754_v8 = vmul.f32 %v10495_v7, %v15105_v61 }
 0x70f   : > { %10500 = vrcp.f32 %v7735_v5 }
 0x710   : > { %9819 = vmatmul.mubr.msk.f32.vlgmr.msra.gmra.mrb[50].mxu1 %vm15713_vm6, %v7754_v8  ;;  %v7708_v20 = vpop.xlane.xlu0 %7707 }
 0x711   : > { %v10497_v55 = vpop.eup %10496  ;;  %9827 = vmatpush3.msra.mxu1 %v14983_v19  ;;  %v7736_v31 = vadd.f32 1e-10, %v7708_v20  ;;  %9828 = vmatprep.mubr.msk.f32.mxu1 %vm10659_vm8, %v10658_v22 }
 0x712   : > { %v7756_v52 = vmul.f32 %v10497_v55, %v15115_v57  ;;  %9836 = vmatprep.subr.mxu1 %v10658_v22 }
 0x713   : > { %10502 = vrcp.f32 %v7736_v31 }
 0x714   : > { %9824 = vmatmul.mubr.msk.f32.vlgmr.msra.gmra.mrb[24].mxu0 %vm15714_vm12, %v7756_v52  ;;  %v7711_v6 = vpop.xlane.xlu1 %7710 }
 0x715   : > { %v10499_v61 = vpop.eup %10498  ;;  %9832 = vmatpush3.msra.mxu0 %v15004_v49  ;;  %v7737_v47 = vadd.f32 1e-10, %v7711_v6  ;;  %9833 = vmatprep.mubr.msk.f32.mxu0 %vm10659_vm8, %v10658_v22 }
 0x716   : > { %v7758_v19 = vmul.f32 %v10499_v61, %v15123_v45  ;;  %9841 = vmatprep.subr.mxu0 %v10658_v22 }
 0x717   : > { %10504 = vrcp.f32 %v7737_v47 }
 0x718   : > { %9829 = vmatmul.mubr.msk.f32.vlgmr.msra.gmra.mrb[52].mxu1 %vm15715_vm15, %v7758_v19  ;;  %v7714_v57 = vpop.xlane.xlu0 %7713  ;;  %v7717_v39 = vpop.xlane.xlu1 %7716 }
 0x719   : > { %v10501_v50 = vpop.eup %10500  ;;  %9837 = vmatpush3.msra.mxu1 %v14997_v25  ;;  %v7738_v36 = vadd.f32 1e-10, %v7714_v57  ;;  %v7739_v32 = vadd.f32 1e-10, %v7717_v39  ;;  %9838 = vmatprep.mubr.msk.f32.mxu1 %vm10659_vm8, %v10658_v22 }
 0x71a   : > { %v7760_v49 = vmul.f32 %v10501_v50, %v15132_v44  ;;  %9846 = vmatprep.subr.mxu1 %v10658_v22 }
 0x71b   : > { %10506 = vrcp.f32 %v7738_v36 }
 0x71c   : > { %9834 = vmatmul.mubr.msk.f32.vlgmr.msra.gmra.mrb[26].mxu0 %vm15716_vm14, %v7760_v49  ;;  %10508 = vrcp.f32 %v7739_v32  ;;  %v8764_v48 = vpop.permute.xlu1 %8763 }
 0x71d   : > { %v10503_v45 = vpop.eup %10502  ;;  %9842 = vmatpush3.msra.mxu0 %v15021_v0  ;;  %9843 = vmatprep.mubr.msk.f32.mxu0 %vm10659_vm8, %v10658_v22 }
 0x71e   : > { %v7762_v25 = vmul.f32 %v10503_v45, %v15140_v29  ;;  %9851 = vmatprep.subr.mxu0 %v10658_v22 }
 0x720   : > { %9839 = vmatmul.mubr.msk.f32.vlgmr.msra.gmra.mrb[54].mxu1 %vm15717_vm1, %v7762_v25  ;;  %v7720_v58 = vpop.xlane.xlu0 %7719 }
 0x721   : > { %v10505_v44 = vpop.eup %10504  ;;  %9847 = vmatpush3.msra.mxu1 %v15034_v17  ;;  %v7740_v42 = vadd.f32 1e-10, %v7720_v58  ;;  %9848 = vmatprep.mubr.msk.f32.mxu1 %vm10659_vm8, %v10658_v22 }
 0x722   : > { %v7764_v23 = vmul.f32 %v10505_v44, %v15150_v14  ;;  %9856 = vmatprep.subr.mxu1 %v10658_v22 }
 0x723   : > { %10510 = vrcp.f32 %v7740_v42 }
 0x724   : > { %9844 = vmatmul.mubr.msk.f32.vlgmr.msra.gmra.mrb[28].mxu0 %vm15718_vm11, %v7764_v23  ;;  %v8688_v0 = vpop.permute.xlu0 %8687 }
 0x725   : > { %v10507_v29 = vpop.eup %10506  ;;  %9852 = vmatpush3.msra.mxu0 %v8688_v0  ;;  %9853 = vmatprep.mubr.msk.f32.mxu0 %vm10659_vm8, %v10658_v22 }
 0x726   : > { %v10509_v59 = vpop.eup %10508  ;;  %v7766_v17 = vmul.f32 %v10507_v29, %v15156_v35  ;;  %9861 = vmatprep.subr.mxu0 %v10658_v22 }
 0x727   : > { %v7768_v33 = vmul.f32 %v10509_v59, %v15161_v41 }
 0x728   : > { %9849 = vmatmul.mubr.msk.f32.vlgmr.msra.gmra.mrb[56].mxu1 %vm15719_vm9, %v7766_v17 }
 0x729   : > { %9857 = vmatpush3.msra.mxu1 %v8764_v48  ;;  %9854 = vmatmul.mubr.msk.f32.vlgmr.msra.gmra.mrb[30].mxu0 %vm15720_vm7, %v7768_v33 }
 0x72a   : > { %9858 = vmatprep.mubr.msk.f32.mxu1 %vm10659_vm8, %v10658_v22  ;;  %9866 = vmatprep.subr.mxu1 %v10658_v22 }
 0x72b   : > { %9863 = vmatprep.mubr.msk.f32.mxu0 %vm10659_vm8, %v10658_v22 }
 0x72d   : > { %v10511_v14 = vpop.eup %10510 }
 0x72e   : > { %v7770_v35 = vmul.f32 %v10511_v14, %v15170_v38 }
 0x730   : > { %9859 = vmatmul.mubr.msk.f32.vlgmr.msra.gmra.mrb[58].mxu1 %vm15721_vm2, %v7770_v35 }
 0x731   : > { %9868 = vmatprep.mubr.msk.f32.mxu1 %vm10659_vm8, %v10658_v22 }
 0x74d   : > { %v7723_v41 = vpop.xlane.xlu1 %7722 }
 0x74e   : > { %v7741_v15 = vadd.f32 1e-10, %v7723_v41 }
 0x750   : > { %10512 = vrcp.f32 %v7741_v15 }
 0x751   : > { %v8916_v43 = vpop.permute.xlu1 %8915 }
 0x752   : > { %9867 = vmatpush3.msra.mxu1 %v8916_v43 }
 0x755   : > { %v7726_v12 = vpop.xlane.xlu0 %7725 }
 0x756   : > { %v7742_v21 = vadd.f32 1e-10, %v7726_v12 }
 0x758   : > { %10514 = vrcp.f32 %v7742_v21  ;;  %v364_v21 = vld [vmem:[%s15372_s5 + $0x62] sm:$0x1] }
 0x759   : > { %v8840_v62 = vpop.permute.xlu0 %8839 }
 0x75a   : > { %v10513_v56 = vpop.eup %10512  ;;  %9862 = vmatpush3.msra.mxu0 %v8840_v62  ;;  %v9007_v62 = vstv %s367_s12 }
 0x75b   : > { %v7772_v3 = vmul.f32 %v10513_v56, %v15186_v60  ;;  %9930 = vmatprep.subr.bf16.mxu0 %v10662_v40 }
 0x75d   : > { %9864 = vmatmul.mubr.msk.f32.vlgmr.msra.gmra.mrb[32].mxu0 %vm15722_vm5, %v7772_v3 }
 0x75e   : > { %9903 = vmatprep.mubr.msk.f32.mxu0 %vm10659_vm8, %v10658_v22 }
 0x762   : > { %v10515_v38 = vpop.eup %10514 }
 0x763   : > { %v7774_v1 = vmul.f32 %v10515_v38, %v15192_v63 }
 0x765   : > { %9869 = vmatmul.mubr.msk.f32.vlgmr.msra.gmra.mrb[60].mxu1 %vm15709_vm0, %v7774_v1 }
 0x7a9   : > { %v7847_v46 = vpop.f32.mrb[18].mxu0 }
 0x7aa   : > { %v9795_v16 = vpop.f32.mrb[19].mxu0  ;;  %v8991_v26 = vmax.f32 %v7847_v46, 0.0 }
 0x7c8   : > { %v7923_v2 = vpop.f32.mrb[46].mxu1 }
 0x7c9   : > { %v8992_v10 = vmax.f32 %v7923_v2, 0.0  ;;  %v9800_v18 = vpop.f32.mrb[47].mxu1 }
 0x7ca   : > { %v7999_v60 = vpop.f32.mrb[20].mxu0 }
 0x7cb   : > { %v9931_v4 = vpack.c.bf16 %v8992_v10, %v8991_v26  ;;  %v9805_v22 = vpop.f32.mrb[21].mxu0  ;;  %v8993_v53 = vmax.f32 %v7999_v60, 0.0 }
 0x7cd   : > { %9933 = vmatpush3.bf16.xpose.msk.msra.mxu0 %vm15287_vm10, %v9931_v4 }
 0x7ce   : > { %9934 = vmatprep.subr.bf16.mxu0 %v10662_v40 }
 0x7d0   : > { %v8075_v63 = vpop.f32.mrb[48].mxu1 }
 0x7d1   : > { %v8994_v24 = vmax.f32 %v8075_v63, 0.0  ;;  %v9810_v34 = vpop.f32.mrb[49].mxu1 }
 0x7d3   : > { %v9935_v54 = vpack.c.bf16 %v8994_v24, %v8993_v53 }
 0x7d5   : > { %9937 = vmatpush3.bf16.xpose.msk.msra.mxu0 %vm15287_vm10, %v9935_v54 }
 0x7d6   : > { %9938 = vmatprep.subr.bf16.mxu0 %v10662_v40 }
 0x7dd   : > { %v8151_v27 = vpop.f32.mrb[22].mxu0 }
 0x7de   : > { %v9815_v28 = vpop.f32.mrb[23].mxu0  ;;  %v8995_v11 = vmax.f32 %v8151_v27, 0.0 }
 0x7e3   : > { %v8227_v13 = vpop.f32.mrb[50].mxu1 }
 0x7e4   : > { %v8996_v9 = vmax.f32 %v8227_v13, 0.0  ;;  %v9820_v51 = vpop.f32.mrb[51].mxu1 }
 0x7e6   : > { %v9939_v37 = vpack.c.bf16 %v8996_v9, %v8995_v11 }
 0x7e7   : > { %v8303_v7 = vpop.f32.mrb[24].mxu0 }
 0x7e8   : > { %v9825_v5 = vpop.f32.mrb[25].mxu0  ;;  %9941 = vmatpush3.bf16.xpose.msk.msra.mxu0 %vm15287_vm10, %v9939_v37  ;;  %v8997_v20 = vmax.f32 %v8303_v7, 0.0 }
 0x7e9   : > { %9942 = vmatprep.subr.bf16.mxu0 %v10662_v40 }
 0x7eb   : > { %v8379_v8 = vpop.f32.mrb[52].mxu1 }
 0x7ec   : > { %v8998_v55 = vmax.f32 %v8379_v8, 0.0  ;;  %v9830_v31 = vpop.f32.mrb[53].mxu1 }
 0x7ee   : > { %v9943_v52 = vpack.c.bf16 %v8998_v55, %v8997_v20 }
 0x7ef   : > { %v8455_v6 = vpop.f32.mrb[26].mxu0 }
 0x7f0   : > { %v9835_v61 = vpop.f32.mrb[27].mxu0  ;;  %9945 = vmatpush3.bf16.xpose.msk.msra.mxu0 %vm15287_vm10, %v9943_v52  ;;  %v8999_v19 = vmax.f32 %v8455_v6, 0.0 }
 0x7f1   : > { %9946 = vmatprep.subr.bf16.mxu0 %v10662_v40 }
 0x7f3   : > { %v8531_v47 = vpop.f32.mrb[54].mxu1 }
 0x7f4   : > { %v9000_v57 = vmax.f32 %v8531_v47, 0.0  ;;  %v9840_v39 = vpop.f32.mrb[55].mxu1 }
 0x7f6   : > { %v9947_v50 = vpack.c.bf16 %v9000_v57, %v8999_v19 }
 0x7f7   : > { %v8607_v36 = vpop.f32.mrb[28].mxu0 }
 0x7f8   : > { %v9845_v32 = vpop.f32.mrb[29].mxu0  ;;  %9949 = vmatpush3.bf16.xpose.msk.msra.mxu0 %vm15287_vm10, %v9947_v50  ;;  %v9001_v45 = vmax.f32 %v8607_v36, 0.0 }
 0x7f9   : > { %9950 = vmatprep.subr.bf16.mxu0 %v10662_v40 }
 0x7fb   : > { %v8683_v49 = vpop.f32.mrb[56].mxu1 }
 0x7fc   : > { %v9002_v25 = vmax.f32 %v8683_v49, 0.0  ;;  %v9850_v58 = vpop.f32.mrb[57].mxu1  ;;  %v8759_v44 = vpop.f32.mrb[30].mxu0 }
 0x7fd   : > { %v9855_v42 = vpop.f32.mrb[31].mxu0  ;;  %v9003_v29 = vmax.f32 %v8759_v44, 0.0 }
 0x7fe   : > { %v9951_v23 = vpack.c.bf16 %v9002_v25, %v9001_v45 }
 0x800   : > { %9953 = vmatpush3.bf16.xpose.msk.msra.mxu0 %vm15287_vm10, %v9951_v23 }
 0x801   : > { %9954 = vmatprep.subr.bf16.mxu0 %v10662_v40 }
 0x803   : > { %v8835_v0 = vpop.f32.mrb[58].mxu1 }
 0x804   : > { %v9004_v59 = vmax.f32 %v8835_v0, 0.0  ;;  %v9860_v17 = vpop.f32.mrb[59].mxu1 }
 0x806   : > { %v9955_v33 = vpack.c.bf16 %v9004_v59, %v9003_v29 }
 0x808   : > { %9957 = vmatpush3.bf16.xpose.msk.msra.mxu0 %vm15287_vm10, %v9955_v33 }
 0x809   : > { %9958 = vmatprep.subr.bf16.mxu0 %v10662_v40 }
 0x830   : > { %v8911_v48 = vpop.f32.mrb[32].mxu0 }
 0x831   : > { %v9865_v14 = vpop.f32.mrb[33].mxu0  ;;  %v9005_v41 = vmax.f32 %v8911_v48, 0.0 }
 0x838   : > { %v8987_v35 = vpop.f32.mrb[60].mxu1 }
 0x839   : > { %v9006_v15 = vmax.f32 %v8987_v35, 0.0  ;;  %v9870_v43 = vpop.f32.mrb[61].mxu1 }
 0x83b   : > { %v9959_v12 = vpack.c.bf16 %v9006_v15, %v9005_v41 }
 0x83d   : > { %9961 = vmatpush3.bf16.xpose.msk.msra.mxu0 %vm15287_vm10, %v9959_v12 }
 0x844   : > { %9904 = vmatmul.mubr.msk.f32.vlgmr.msra.gmra.mrb[34].mxu0 %vm635_vm3, %v364_v21 }
 0x917   : > { %v9125_v56 = vpop.f32.mrb[34].mxu0 }
 0x918   : > { %v9126_v3 = vadd.f32 %v9125_v56, %v9007_v62  ;;  %v9905_v40 = vpop.f32.mrb[35].mxu0 }
 0x91a   : > { %v9509_v38 = vmul.f32 -1.442695, %v9126_v3 }
 0x91c   : > { %10516 = vpow2.f32 %v9509_v38 }
 0x926   : > { %v10517_v1 = vpop.eup %10516 }
 0x927   : > { %v9132_v46 = vadd.f32 1.0, %v10517_v1 }
 0x929   : > { %10518 = vrcp.f32 %v9132_v46 }
 0x933   : > { %v10519_v16 = vpop.eup %10518 }
 0x934   : > { %9135 = vst [vmem:[%s330_s8] sm:$0x1] %v10519_v16 }
 0x935   : > { %10580 = shalt.err (!%p10577_p0)
}
 0x936   : > { %s10581_s20 = scalar_lea.hbm %s15323_s28, 16  ;;  %s10585_s17 = scalar_lea.hbm %s15373_s6, 32 }
 0x937   : > { %p10582_p2 = scmp.ne.s32.totalorder %s15323_s28, %s10581_s20  ;;  %p10586_p3 = scmp.lt.u32.totalorder %s15323_s28, %s15373_s6 }
 0x938   : > { %p10587_p13 = scmp.lt.u32.totalorder %s10585_s17, %s10581_s20  ;;  %p10589_p12 = scmp.lt.u32.totalorder %s10581_s20, %s15323_s28 }
 0x939   : > { %p10583_p7 = pnand %p10582_p2, %p15725_p8 }
 0x93a   : > { %p10588_p5 = por %p10587_p13, %p10586_p3 }
 0x93b   : > { %p10584_p6 = pneg %p10583_p7 }
 0x93c   : > { %p10590_p9 = por %p10589_p12, %p10588_p5 }
 0x93e   : > { %p10591_p10 = pnand %p10590_p9, %p10584_p6 }
 0x940   : > { %10594 = shalt.err (!%p10591_p10)
}
 0x941   : > { %10032 = dma.vmem_to_hbm [thread:$0]  (%p15725_p8), %s15325_s15, 16, %s15323_s28, %s9137_s29  }
 0x942 PF: > { %s9161_s8 = sand.u32 1, %s10625_s21   ;;  %p15726_p1 = scmp.ne.s32.totalorder %s15470_s10, 0 }
 0x943   : > { %p15727_p4 = scmp.ge.s32.totalorder %s10637_s24, 2  ;;  %s9162_s18 = scalar_lea.sflag [#allocation4], %s9161_s8 }
 0x945   : > { %p10043_p11 = pnand %p15727_p4, %p15726_p1 }
 0x947   : > { %10620 = dma.done.wait (!%p10043_p11), %s9162_s18, 16  }
 0x948   : > { %10622 = vsyncadd (!%p10043_p11), %s9162_s18, 4294967280  ;;  %p20_p0 = scmp.ge.s32.totalorder %s10724_s27, 4   ;;  %s15728_s21 = smov %s10629_s22 }
 0x949   : > { %s15729_s22 = smov %s10633_s23  ;;  %s15730_s23 = smov %s10736_s30 }
 0x94a   : > { %s15731_s24 = smov %s10724_s27  ;;  %22 = sbr.rel (!%p20_p0) target bundleno = 6 (0x6), region = 103 }
 0x951   :  { %9166 = vsyncpa [#allocation3], 1 }
 0x952   :  { %9168 = vsyncpa [#allocation3 + $0x1], 1 }
 0x953   :  { %9169 = vsyncpa [#allocation4], 1 }
 0x954   :  { %9171 = vsyncpa [#allocation4 + $0x1], 1 }
 0x955   :  { %9172 = vsyncpa [#allocation5], 1 }
 0x956   :  { %9174 = vsyncpa [#allocation5 + $0x1], 1 }

</bundles_post_ra>
